<compile_context>
chip_gen: v7x
topology: tpu7x:2x2x1
jax: 0.10.0
libtpu: 0.0.40
codegen_flags: <defaults>
</compile_context>

<pallas_src>
import math
import jax
import jax.numpy as jnp
from jax import lax
from jax.experimental import pallas as pl
from jax.experimental.pallas import tpu as pltpu


def encoder_block_kernel(x_ref, wqkv_ref, bqkv_ref, wo_ref, bo_ref,
                         g1_ref, be1_ref, wff_ref, bff_ref, g2_ref, be2_ref,
                         out_ref, attn_ref, ctx_scr):
    # x_ref block: (Bb, S, E) f32; attn_ref block: (Bb, H, S, S); ctx_scr: (Bb*S, E) bf16 VMEM.
    Bb, S, E = x_ref.shape
    H = attn_ref.shape[1]
    Dh = E // H
    scale = 1.0 / math.sqrt(Dh)

    # Flatten batch rows into one slab so every projection is a single long MXU matmul.
    x = x_ref[...].reshape(Bb * S, E)                               # (Bb*S, E) f32

    # ---- fused QKV projection (bf16 inputs, f32 accumulate) ----
    qkv = jnp.dot(x.astype(jnp.bfloat16), wqkv_ref[...],
                  preferred_element_type=jnp.float32) + bqkv_ref[0]  # (Bb*S, 3E) f32
    qkv_bf = qkv.astype(jnp.bfloat16)

    # ---- per-(batch, head) scaled-dot-product attention (statically unrolled) ----
    # Dh is a multiple of 128 in the demo so every head slice is a whole-vreg lane slice.
    # Each head's context is written into a column range of the (Bb*S, E) VMEM scratch, so
    # there is no concatenate and the output projection is one big matmul.
    for b in range(Bb):
        rows = slice(b * S, (b + 1) * S)
        for h in range(H):
            qh = qkv_bf[rows, 0 * E + h * Dh:0 * E + (h + 1) * Dh]   # (S, Dh) bf16
            kh = qkv_bf[rows, 1 * E + h * Dh:1 * E + (h + 1) * Dh]
            vh = qkv_bf[rows, 2 * E + h * Dh:2 * E + (h + 1) * Dh]
            # QK^T via dot_general contracting the last dims — no explicit transpose.
            s = lax.dot_general(qh, kh, (((1,), (1,)), ((), ())),
                                preferred_element_type=jnp.float32) * scale   # (S, S) f32
            m = s.max(axis=-1, keepdims=True)
            p = jnp.exp(s - m)
            # Exact divide: the stored attention rows must sum to 1 (module contract).
            probs = p / p.sum(axis=-1, keepdims=True)
            attn_ref[b, h] = probs.astype(attn_ref.dtype)            # lane-dense store
            ctx_scr[rows, h * Dh:(h + 1) * Dh] = jnp.dot(
                probs.astype(jnp.bfloat16), vh,
                preferred_element_type=jnp.float32).astype(jnp.bfloat16)

    attn_out = jnp.dot(ctx_scr[...], wo_ref[...],
                       preferred_element_type=jnp.float32) + bo_ref[0]        # (Bb*S, E) f32

    # ---- residual + LayerNorm, feed-forward Linear, residual + LayerNorm (all f32) ----
    def layer_norm(val, gamma, beta):
        inv_e = 1.0 / val.shape[-1]
        # Fused single-sweep statistics: sum and sum-of-squares are independent reductions.
        s1 = jnp.sum(val, axis=-1, keepdims=True)
        s2 = jnp.sum(val * val, axis=-1, keepdims=True)
        mu = s1 * inv_e
        var = jnp.maximum(s2 * inv_e - mu * mu, 0.0)
        return (val - mu) * lax.rsqrt(var + 1e-5) * gamma + beta

    h1 = layer_norm(x + attn_out, g1_ref[0], be1_ref[0])
    ff = jnp.dot(h1.astype(jnp.bfloat16), wff_ref[...],
                 preferred_element_type=jnp.float32) + bff_ref[0]
    h2 = layer_norm(h1 + ff, g2_ref[0], be2_ref[0])
    out_ref[...] = h2.reshape(Bb, S, E)                              # lane-dense store


def transformer_encoder_block(x, params, num_heads, *, batch_block=2,
                              attn_dtype=jnp.float32):
    B, S, E = x.shape
    H = num_heads
    Bb = min(batch_block, B)
    assert B % Bb == 0, "batch must be divisible by batch_block"
    f32, bf16 = jnp.float32, jnp.bfloat16

    # Fuse the QKV projection weights/biases on the host (free, outside the kernel).
    wqkv = jnp.concatenate([params["wq"], params["wk"], params["wv"]], axis=1).astype(bf16)
    bqkv = jnp.concatenate([params["bq"], params["bk"], params["bv"]]).reshape(1, 3 * E).astype(f32)
    wo = params["wo"].astype(bf16)
    wff = params["wff"].astype(bf16)

    def row(p):  # 1-D params as (1, E) rows so the last dim maps to lanes
        return p.reshape(1, E).astype(f32)

    def full(shape):  # grid-invariant block: whole array, single-buffered
        return pl.BlockSpec(shape, lambda b: (0,) * len(shape),
                            pipeline_mode=pl.Buffered(1))

    # Size the VMEM limit from the actual block math (double-buffered I/O blocks,
    # single-buffered weights, ctx scratch), with 2x margin for Mosaic temporaries.
    attn_bytes = jnp.dtype(attn_dtype).itemsize
    io_blocks = 2 * (Bb * S * E * 4            # x
                     + Bb * S * E * 4          # out
                     + Bb * H * S * S * attn_bytes)
    weights = (E * 3 * E * 2 + 3 * E * 4       # Wqkv (bf16) + bqkv (f32)
               + 2 * (E * E * 2 + E * 4)       # Wo / Wff + biases
               + 4 * E * 4)                    # two LayerNorm gamma/beta pairs
    scratch = Bb * S * E * 2                   # ctx (bf16)
    vmem_limit = int(min(max(2 * (io_blocks + weights + scratch),
                             16 * 1024 * 1024),
                         48 * 1024 * 1024))    # cap leaves headroom on v7x (64 MiB physical)

    return pl.pallas_call(
        encoder_block_kernel,
        out_shape=(jax.ShapeDtypeStruct((B, S, E), f32),
                   jax.ShapeDtypeStruct((B, H, S, S), attn_dtype)),
        grid_spec=pltpu.PrefetchScalarGridSpec(
            num_scalar_prefetch=0,
            grid=(B // Bb,),
            in_specs=[
                pl.BlockSpec((Bb, S, E), lambda b: (b, 0, 0)),       # x
                full((E, 3 * E)), full((1, 3 * E)),                  # Wqkv, bqkv
                full((E, E)), full((1, E)),                          # Wo, bo
                full((1, E)), full((1, E)),                          # LN1 gamma, beta
                full((E, E)), full((1, E)),                          # Wff, bff
                full((1, E)), full((1, E)),                          # LN2 gamma, beta
            ],
            out_specs=[
                pl.BlockSpec((Bb, S, E), lambda b: (b, 0, 0)),
                pl.BlockSpec((Bb, H, S, S), lambda b: (b, 0, 0, 0)),
            ],
            scratch_shapes=[pltpu.VMEM((Bb * S, E), bf16)],          # per-head context columns
        ),
        compiler_params=pltpu.CompilerParams(
            # TODO(synk): if a v7x profile shows one idle TensorCore, switch to
            #             pltpu.CORE_PARALLEL (or an explicit pl.core_map split).
            dimension_semantics=("parallel",),
            vmem_limit_bytes=vmem_limit,
        ),
    )(x.astype(f32),
      wqkv, bqkv,
      wo, row(params["bo"]),
      row(params["ln1_g"]), row(params["ln1_b"]),
      wff, row(params["bff"]),
      row(params["ln2_g"]), row(params["ln2_b"]))


def reference_block(x, params, num_heads):
    # Pure-JAX reference mirroring the kernel's precision policy
    # (bf16 matmul inputs, f32 accumulation, f32 softmax/LayerNorm).
    B, S, E = x.shape
    H = num_heads
    Dh = E // H
    f32, bf16 = jnp.float32, jnp.bfloat16

    def mm(a, w):
        return jnp.dot(a.astype(bf16), w.astype(bf16), preferred_element_type=f32)

    x = x.astype(f32)
    wqkv = jnp.concatenate([params["wq"], params["wk"], params["wv"]], axis=1)
    bqkv = jnp.concatenate([params["bq"], params["bk"], params["bv"]])
    qkv = (mm(x, wqkv) + bqkv).astype(bf16)          # (B, S, 3E)
    q, k, v = qkv[..., :E], qkv[..., E:2 * E], qkv[..., 2 * E:]
    qh = q.reshape(B, S, H, Dh).transpose(0, 2, 1, 3)
    kh = k.reshape(B, S, H, Dh).transpose(0, 2, 1, 3)
    vh = v.reshape(B, S, H, Dh).transpose(0, 2, 1, 3)
    s = jnp.einsum("bhqd,bhkd->bhqk", qh, kh, preferred_element_type=f32) / math.sqrt(Dh)
    a = jax.nn.softmax(s, axis=-1)
    ctx = jnp.einsum("bhqk,bhkd->bhqd", a.astype(bf16), vh, preferred_element_type=f32)
    ctx = ctx.transpose(0, 2, 1, 3).reshape(B, S, E).astype(bf16)
    attn_out = jnp.dot(ctx, params["wo"].astype(bf16), preferred_element_type=f32) + params["bo"]

    def ln(val, g, b):
        mu = val.mean(-1, keepdims=True)
        var = ((val - mu) ** 2).mean(-1, keepdims=True)
        return (val - mu) / jnp.sqrt(var + 1e-5) * g + b

    h1 = ln(x + attn_out, params["ln1_g"], params["ln1_b"])
    ff = mm(h1, params["wff"]) + params["bff"]
    h2 = ln(h1 + ff, params["ln2_g"], params["ln2_b"])
    return h2, a


def make_params(key, emb_dim):
    ks = jax.random.split(key, 14)
    scale = 1.0 / math.sqrt(emb_dim)

    def n(k, shape, s):
        return jax.random.normal(k, shape, jnp.float32) * s

    return {
        "wq": n(ks[0], (emb_dim, emb_dim), scale),
        "wk": n(ks[1], (emb_dim, emb_dim), scale),
        "wv": n(ks[2], (emb_dim, emb_dim), scale),
        "wo": n(ks[3], (emb_dim, emb_dim), scale),
        "wff": n(ks[4], (emb_dim, emb_dim), scale),
        "bq": n(ks[5], (emb_dim,), 0.02),
        "bk": n(ks[6], (emb_dim,), 0.02),
        "bv": n(ks[7], (emb_dim,), 0.02),
        "bo": n(ks[8], (emb_dim,), 0.02),
        "bff": n(ks[9], (emb_dim,), 0.02),
        "ln1_g": 1.0 + n(ks[10], (emb_dim,), 0.05),
        "ln1_b": n(ks[11], (emb_dim,), 0.05),
        "ln2_g": 1.0 + n(ks[12], (emb_dim,), 0.05),
        "ln2_b": n(ks[13], (emb_dim,), 0.05),
    }


if __name__ == "__main__":
    # Small but TPU-friendly shapes: head_dim = E/H = 128 (lane/MXU aligned), S and E multiples
    # of 128 (lane-dense output stores). Bb=2 batch elements per grid step amortise the fixed
    # per-step overhead while leaving >1 grid step for megacore sharding on v7x.
    B, S, E, H = 4, 128, 256, 2
    key = jax.random.PRNGKey(0)
    k_x, k_p = jax.random.split(key)
    x = jax.random.normal(k_x, (B, S, E), jnp.float32)
    params = make_params(k_p, E)

    out, attn = transformer_encoder_block(x, params, H, batch_block=2)
    out = jax.block_until_ready(out)
    attn = jax.block_until_ready(attn)

    ref_out, ref_attn = reference_block(x, params, H)
    assert out.shape == (B, S, E) and attn.shape == (B, H, S, S)
    # bf16-matmul kernel vs bf16-emulating reference.
    assert jnp.allclose(out, ref_out, atol=1e-2, rtol=1e-2), "output mismatch"
    assert jnp.allclose(attn, ref_attn, atol=1e-2, rtol=1e-2), "attention score mismatch"
    print("KERNEL_OK")
</pallas_src>

<mosaic_0001>
module attributes {stable_mosaic.version = 11 : i64} {
  func.func @encoder_block_kernel(%arg0: i32, %arg1: memref<2x128x256xf32, #tpu.memory_space<vmem>>, %arg2: memref<256x768xbf16, #tpu.memory_space<vmem>>, %arg3: memref<1x768xf32, #tpu.memory_space<vmem>>, %arg4: memref<256x256xbf16, #tpu.memory_space<vmem>>, %arg5: memref<1x256xf32, #tpu.memory_space<vmem>>, %arg6: memref<1x256xf32, #tpu.memory_space<vmem>>, %arg7: memref<1x256xf32, #tpu.memory_space<vmem>>, %arg8: memref<256x256xbf16, #tpu.memory_space<vmem>>, %arg9: memref<1x256xf32, #tpu.memory_space<vmem>>, %arg10: memref<1x256xf32, #tpu.memory_space<vmem>>, %arg11: memref<1x256xf32, #tpu.memory_space<vmem>>, %arg12: memref<2x128x256xf32, #tpu.memory_space<vmem>>, %arg13: memref<2x2x128x128xf32, #tpu.memory_space<vmem>>, %arg14: memref<256x256xbf16, #tpu.memory_space<vmem>>) attributes {dimension_semantics = [#tpu.dimension_semantics<parallel>], iteration_bounds = array<i64: 2>, scalar_prefetch = 0 : i64, scratch_operands = 1 : i64, tpu.core_type = #tpu.core_type<tc>, window_params = [{transform_indices = @transform_0, window_bounds = array<i64: 2, 128, 256>}, {pipeline_mode = #tpu.pipeline_mode<synchronous>, transform_indices = @transform_1, window_bounds = array<i64: 256, 768>}, {pipeline_mode = #tpu.pipeline_mode<synchronous>, transform_indices = @transform_2, window_bounds = array<i64: 1, 768>}, {pipeline_mode = #tpu.pipeline_mode<synchronous>, transform_indices = @transform_3, window_bounds = array<i64: 256, 256>}, {pipeline_mode = #tpu.pipeline_mode<synchronous>, transform_indices = @transform_4, window_bounds = array<i64: 1, 256>}, {pipeline_mode = #tpu.pipeline_mode<synchronous>, transform_indices = @transform_5, window_bounds = array<i64: 1, 256>}, {pipeline_mode = #tpu.pipeline_mode<synchronous>, transform_indices = @transform_6, window_bounds = array<i64: 1, 256>}, {pipeline_mode = #tpu.pipeline_mode<synchronous>, transform_indices = @transform_7, window_bounds = array<i64: 256, 256>}, {pipeline_mode = #tpu.pipeline_mode<synchronous>, transform_indices = @transform_8, window_bounds = array<i64: 1, 256>}, {pipeline_mode = #tpu.pipeline_mode<synchronous>, transform_indices = @transform_9, window_bounds = array<i64: 1, 256>}, {pipeline_mode = #tpu.pipeline_mode<synchronous>, transform_indices = @transform_10, window_bounds = array<i64: 1, 256>}, {transform_indices = @transform_11, window_bounds = array<i64: 2, 128, 256>}, {transform_indices = @transform_12, window_bounds = array<i64: 2, 2, 128, 128>}]} {
    %c0 = arith.constant 0 : index
    %c0_0 = arith.constant 0 : index
    %c0_1 = arith.constant 0 : index
    %0 = vector.load %arg1[%c0, %c0_0, %c0_1] : memref<2x128x256xf32, #tpu.memory_space<vmem>>, vector<2x128x256xf32>
    %1 = vector.shape_cast %0 : vector<2x128x256xf32> to vector<256x256xf32>
    %2 = arith.truncf %1 : vector<256x256xf32> to vector<256x256xbf16>
    %c0_2 = arith.constant 0 : index
    %c0_3 = arith.constant 0 : index
    %3 = vector.load %arg2[%c0_2, %c0_3] : memref<256x768xbf16, #tpu.memory_space<vmem>>, vector<256x768xbf16>
    %cst = arith.constant dense<0.000000e+00> : vector<256x768xf32>
    %4 = tpu.matmul %2, %3, %cst {dimension_numbers = #tpu.dot_dimension_numbers<[1], [0], [0], [1], [0, 0, 1, 1], [], []>} : vector<256x256xbf16>, vector<256x768xbf16>, vector<256x768xf32> -> vector<256x768xf32>
    %c0_4 = arith.constant 0 : index
    %c0_5 = arith.constant 0 : index
    %5 = vector.load %arg3[%c0_4, %c0_5] : memref<1x768xf32, #tpu.memory_space<vmem>>, vector<1x768xf32>
    %6 = vector.shape_cast %5 : vector<1x768xf32> to vector<768xf32>
    %7 = vector.shape_cast %6 : vector<768xf32> to vector<1x768xf32>
    %8 = vector.broadcast %7 : vector<1x768xf32> to vector<256x768xf32>
    %9 = arith.addf %4, %8 : vector<256x768xf32>
    %10 = arith.truncf %9 : vector<256x768xf32> to vector<256x768xbf16>
    %11 = vector.extract_strided_slice %10 {offsets = [0, 0], sizes = [128, 128], strides = [1, 1]} : vector<256x768xbf16> to vector<128x128xbf16>
    %12 = vector.extract_strided_slice %10 {offsets = [0, 256], sizes = [128, 128], strides = [1, 1]} : vector<256x768xbf16> to vector<128x128xbf16>
    %13 = vector.extract_strided_slice %10 {offsets = [0, 512], sizes = [128, 128], strides = [1, 1]} : vector<256x768xbf16> to vector<128x128xbf16>
    %cst_6 = arith.constant dense<0.000000e+00> : vector<128x128xf32>
    %14 = tpu.matmul %11, %12, %cst_6 {dimension_numbers = #tpu.dot_dimension_numbers<[1], [1], [0], [0], [0, 0, 1, 0], [], []>} : vector<128x128xbf16>, vector<128x128xbf16>, vector<128x128xf32> -> vector<128x128xf32>
    %cst_7 = arith.constant 0.0883883461 : f32
    %15 = vector.broadcast %cst_7 : f32 to vector<128x128xf32>
    %16 = arith.mulf %14, %15 : vector<128x128xf32>
    %cst_8 = arith.constant dense<0xFF800000> : vector<128xf32>
    %17 = vector.multi_reduction <maximumf>, %16, %cst_8 [1] : vector<128x128xf32> to vector<128xf32>
    %18 = vector.shape_cast %17 : vector<128xf32> to vector<128x1xf32>
    %19 = vector.broadcast %18 : vector<128x1xf32> to vector<128x128xf32>
    %20 = arith.subf %16, %19 : vector<128x128xf32>
    %21 = math.exp %20 : vector<128x128xf32>
    %cst_9 = arith.constant dense<0.000000e+00> : vector<128xf32>
    %22 = vector.multi_reduction <add>, %21, %cst_9 [1] : vector<128x128xf32> to vector<128xf32>
    %23 = vector.shape_cast %22 : vector<128xf32> to vector<128x1xf32>
    %24 = vector.broadcast %23 : vector<128x1xf32> to vector<128x128xf32>
    %25 = arith.divf %21, %24 : vector<128x128xf32>
    %c0_10 = arith.constant 0 : index
    %c0_11 = arith.constant 0 : index
    %c0_12 = arith.constant 0 : index
    %c0_13 = arith.constant 0 : index
    %26 = vector.load %arg13[%c0_10, %c0_11, %c0_12, %c0_13] : memref<2x2x128x128xf32, #tpu.memory_space<vmem>>, vector<1x1x128x128xf32>
    %27 = vector.shape_cast %26 : vector<1x1x128x128xf32> to vector<128x128xf32>
    %28 = vector.shape_cast %25 : vector<128x128xf32> to vector<1x1x128x128xf32>
    tpu.vector_store %arg13[%c0_10, %c0_11, %c0_12, %c0_13], %28 {strides = array<i32>} : memref<2x2x128x128xf32, #tpu.memory_space<vmem>>, vector<1x1x128x128xf32>,
    %29 = arith.truncf %25 : vector<128x128xf32> to vector<128x128xbf16>
    %cst_14 = arith.constant dense<0.000000e+00> : vector<128x128xf32>
    %30 = tpu.matmul %29, %13, %cst_14 {dimension_numbers = #tpu.dot_dimension_numbers<[1], [0], [0], [1], [0, 0, 1, 1], [], []>} : vector<128x128xbf16>, vector<128x128xbf16>, vector<128x128xf32> -> vector<128x128xf32>
    %31 = arith.truncf %30 : vector<128x128xf32> to vector<128x128xbf16>
    %c0_15 = arith.constant 0 : index
    %c0_16 = arith.constant 0 : index
    %32 = vector.load %arg14[%c0_15, %c0_16] : memref<256x256xbf16, #tpu.memory_space<vmem>>, vector<128x128xbf16>
    tpu.vector_store %arg14[%c0_15, %c0_16], %31 {strides = array<i32>} : memref<256x256xbf16, #tpu.memory_space<vmem>>, vector<128x128xbf16>,
    %33 = vector.extract_strided_slice %10 {offsets = [0, 128], sizes = [128, 128], strides = [1, 1]} : vector<256x768xbf16> to vector<128x128xbf16>
    %34 = vector.extract_strided_slice %10 {offsets = [0, 384], sizes = [128, 128], strides = [1, 1]} : vector<256x768xbf16> to vector<128x128xbf16>
    %35 = vector.extract_strided_slice %10 {offsets = [0, 640], sizes = [128, 128], strides = [1, 1]} : vector<256x768xbf16> to vector<128x128xbf16>
    %cst_17 = arith.constant dense<0.000000e+00> : vector<128x128xf32>
    %36 = tpu.matmul %33, %34, %cst_17 {dimension_numbers = #tpu.dot_dimension_numbers<[1], [1], [0], [0], [0, 0, 1, 0], [], []>} : vector<128x128xbf16>, vector<128x128xbf16>, vector<128x128xf32> -> vector<128x128xf32>
    %cst_18 = arith.constant 0.0883883461 : f32
    %37 = vector.broadcast %cst_18 : f32 to vector<128x128xf32>
    %38 = arith.mulf %36, %37 : vector<128x128xf32>
    %cst_19 = arith.constant dense<0xFF800000> : vector<128xf32>
    %39 = vector.multi_reduction <maximumf>, %38, %cst_19 [1] : vector<128x128xf32> to vector<128xf32>
    %40 = vector.shape_cast %39 : vector<128xf32> to vector<128x1xf32>
    %41 = vector.broadcast %40 : vector<128x1xf32> to vector<128x128xf32>
    %42 = arith.subf %38, %41 : vector<128x128xf32>
    %43 = math.exp %42 : vector<128x128xf32>
    %cst_20 = arith.constant dense<0.000000e+00> : vector<128xf32>
    %44 = vector.multi_reduction <add>, %43, %cst_20 [1] : vector<128x128xf32> to vector<128xf32>
    %45 = vector.shape_cast %44 : vector<128xf32> to vector<128x1xf32>
    %46 = vector.broadcast %45 : vector<128x1xf32> to vector<128x128xf32>
    %47 = arith.divf %43, %46 : vector<128x128xf32>
    %c0_21 = arith.constant 0 : index
    %c1 = arith.constant 1 : index
    %c0_22 = arith.constant 0 : index
    %c0_23 = arith.constant 0 : index
    %48 = vector.load %arg13[%c0_21, %c1, %c0_22, %c0_23] : memref<2x2x128x128xf32, #tpu.memory_space<vmem>>, vector<1x1x128x128xf32>
    %49 = vector.shape_cast %48 : vector<1x1x128x128xf32> to vector<128x128xf32>
    %50 = vector.shape_cast %47 : vector<128x128xf32> to vector<1x1x128x128xf32>
    tpu.vector_store %arg13[%c0_21, %c1, %c0_22, %c0_23], %50 {strides = array<i32>} : memref<2x2x128x128xf32, #tpu.memory_space<vmem>>, vector<1x1x128x128xf32>,
    %51 = arith.truncf %47 : vector<128x128xf32> to vector<128x128xbf16>
    %cst_24 = arith.constant dense<0.000000e+00> : vector<128x128xf32>
    %52 = tpu.matmul %51, %35, %cst_24 {dimension_numbers = #tpu.dot_dimension_numbers<[1], [0], [0], [1], [0, 0, 1, 1], [], []>} : vector<128x128xbf16>, vector<128x128xbf16>, vector<128x128xf32> -> vector<128x128xf32>
    %53 = arith.truncf %52 : vector<128x128xf32> to vector<128x128xbf16>
    %c0_25 = arith.constant 0 : index
    %c128 = arith.constant 128 : index
    %54 = vector.load %arg14[%c0_25, %c128] : memref<256x256xbf16, #tpu.memory_space<vmem>>, vector<128x128xbf16>
    tpu.vector_store %arg14[%c0_25, %c128], %53 {strides = array<i32>} : memref<256x256xbf16, #tpu.memory_space<vmem>>, vector<128x128xbf16>,
    %55 = vector.extract_strided_slice %10 {offsets = [128, 0], sizes = [128, 128], strides = [1, 1]} : vector<256x768xbf16> to vector<128x128xbf16>
    %56 = vector.extract_strided_slice %10 {offsets = [128, 256], sizes = [128, 128], strides = [1, 1]} : vector<256x768xbf16> to vector<128x128xbf16>
    %57 = vector.extract_strided_slice %10 {offsets = [128, 512], sizes = [128, 128], strides = [1, 1]} : vector<256x768xbf16> to vector<128x128xbf16>
    %cst_26 = arith.constant dense<0.000000e+00> : vector<128x128xf32>
    %58 = tpu.matmul %55, %56, %cst_26 {dimension_numbers = #tpu.dot_dimension_numbers<[1], [1], [0], [0], [0, 0, 1, 0], [], []>} : vector<128x128xbf16>, vector<128x128xbf16>, vector<128x128xf32> -> vector<128x128xf32>
    %cst_27 = arith.constant 0.0883883461 : f32
    %59 = vector.broadcast %cst_27 : f32 to vector<128x128xf32>
    %60 = arith.mulf %58, %59 : vector<128x128xf32>
    %cst_28 = arith.constant dense<0xFF800000> : vector<128xf32>
    %61 = vector.multi_reduction <maximumf>, %60, %cst_28 [1] : vector<128x128xf32> to vector<128xf32>
    %62 = vector.shape_cast %61 : vector<128xf32> to vector<128x1xf32>
    %63 = vector.broadcast %62 : vector<128x1xf32> to vector<128x128xf32>
    %64 = arith.subf %60, %63 : vector<128x128xf32>
    %65 = math.exp %64 : vector<128x128xf32>
    %cst_29 = arith.constant dense<0.000000e+00> : vector<128xf32>
    %66 = vector.multi_reduction <add>, %65, %cst_29 [1] : vector<128x128xf32> to vector<128xf32>
    %67 = vector.shape_cast %66 : vector<128xf32> to vector<128x1xf32>
    %68 = vector.broadcast %67 : vector<128x1xf32> to vector<128x128xf32>
    %69 = arith.divf %65, %68 : vector<128x128xf32>
    %c1_30 = arith.constant 1 : index
    %c0_31 = arith.constant 0 : index
    %c0_32 = arith.constant 0 : index
    %c0_33 = arith.constant 0 : index
    %70 = vector.load %arg13[%c1_30, %c0_31, %c0_32, %c0_33] : memref<2x2x128x128xf32, #tpu.memory_space<vmem>>, vector<1x1x128x128xf32>
    %71 = vector.shape_cast %70 : vector<1x1x128x128xf32> to vector<128x128xf32>
    %72 = vector.shape_cast %69 : vector<128x128xf32> to vector<1x1x128x128xf32>
    tpu.vector_store %arg13[%c1_30, %c0_31, %c0_32, %c0_33], %72 {strides = array<i32>} : memref<2x2x128x128xf32, #tpu.memory_space<vmem>>, vector<1x1x128x128xf32>,
    %73 = arith.truncf %69 : vector<128x128xf32> to vector<128x128xbf16>
    %cst_34 = arith.constant dense<0.000000e+00> : vector<128x128xf32>
    %74 = tpu.matmul %73, %57, %cst_34 {dimension_numbers = #tpu.dot_dimension_numbers<[1], [0], [0], [1], [0, 0, 1, 1], [], []>} : vector<128x128xbf16>, vector<128x128xbf16>, vector<128x128xf32> -> vector<128x128xf32>
    %75 = arith.truncf %74 : vector<128x128xf32> to vector<128x128xbf16>
    %c128_35 = arith.constant 128 : index
    %c0_36 = arith.constant 0 : index
    %76 = vector.load %arg14[%c128_35, %c0_36] : memref<256x256xbf16, #tpu.memory_space<vmem>>, vector<128x128xbf16>
    tpu.vector_store %arg14[%c128_35, %c0_36], %75 {strides = array<i32>} : memref<256x256xbf16, #tpu.memory_space<vmem>>, vector<128x128xbf16>,
    %77 = vector.extract_strided_slice %10 {offsets = [128, 128], sizes = [128, 128], strides = [1, 1]} : vector<256x768xbf16> to vector<128x128xbf16>
    %78 = vector.extract_strided_slice %10 {offsets = [128, 384], sizes = [128, 128], strides = [1, 1]} : vector<256x768xbf16> to vector<128x128xbf16>
    %79 = vector.extract_strided_slice %10 {offsets = [128, 640], sizes = [128, 128], strides = [1, 1]} : vector<256x768xbf16> to vector<128x128xbf16>
    %cst_37 = arith.constant dense<0.000000e+00> : vector<128x128xf32>
    %80 = tpu.matmul %77, %78, %cst_37 {dimension_numbers = #tpu.dot_dimension_numbers<[1], [1], [0], [0], [0, 0, 1, 0], [], []>} : vector<128x128xbf16>, vector<128x128xbf16>, vector<128x128xf32> -> vector<128x128xf32>
    %cst_38 = arith.constant 0.0883883461 : f32
    %81 = vector.broadcast %cst_38 : f32 to vector<128x128xf32>
    %82 = arith.mulf %80, %81 : vector<128x128xf32>
    %cst_39 = arith.constant dense<0xFF800000> : vector<128xf32>
    %83 = vector.multi_reduction <maximumf>, %82, %cst_39 [1] : vector<128x128xf32> to vector<128xf32>
    %84 = vector.shape_cast %83 : vector<128xf32> to vector<128x1xf32>
    %85 = vector.broadcast %84 : vector<128x1xf32> to vector<128x128xf32>
    %86 = arith.subf %82, %85 : vector<128x128xf32>
    %87 = math.exp %86 : vector<128x128xf32>
    %cst_40 = arith.constant dense<0.000000e+00> : vector<128xf32>
    %88 = vector.multi_reduction <add>, %87, %cst_40 [1] : vector<128x128xf32> to vector<128xf32>
    %89 = vector.shape_cast %88 : vector<128xf32> to vector<128x1xf32>
    %90 = vector.broadcast %89 : vector<128x1xf32> to vector<128x128xf32>
    %91 = arith.divf %87, %90 : vector<128x128xf32>
    %c1_41 = arith.constant 1 : index
    %c1_42 = arith.constant 1 : index
    %c0_43 = arith.constant 0 : index
    %c0_44 = arith.constant 0 : index
    %92 = vector.load %arg13[%c1_41, %c1_42, %c0_43, %c0_44] : memref<2x2x128x128xf32, #tpu.memory_space<vmem>>, vector<1x1x128x128xf32>
    %93 = vector.shape_cast %92 : vector<1x1x128x128xf32> to vector<128x128xf32>
    %94 = vector.shape_cast %91 : vector<128x128xf32> to vector<1x1x128x128xf32>
    tpu.vector_store %arg13[%c1_41, %c1_42, %c0_43, %c0_44], %94 {strides = array<i32>} : memref<2x2x128x128xf32, #tpu.memory_space<vmem>>, vector<1x1x128x128xf32>,
    %95 = arith.truncf %91 : vector<128x128xf32> to vector<128x128xbf16>
    %cst_45 = arith.constant dense<0.000000e+00> : vector<128x128xf32>
    %96 = tpu.matmul %95, %79, %cst_45 {dimension_numbers = #tpu.dot_dimension_numbers<[1], [0], [0], [1], [0, 0, 1, 1], [], []>} : vector<128x128xbf16>, vector<128x128xbf16>, vector<128x128xf32> -> vector<128x128xf32>
    %97 = arith.truncf %96 : vector<128x128xf32> to vector<128x128xbf16>
    %c128_46 = arith.constant 128 : index
    %c128_47 = arith.constant 128 : index
    %98 = vector.load %arg14[%c128_46, %c128_47] : memref<256x256xbf16, #tpu.memory_space<vmem>>, vector<128x128xbf16>
    tpu.vector_store %arg14[%c128_46, %c128_47], %97 {strides = array<i32>} : memref<256x256xbf16, #tpu.memory_space<vmem>>, vector<128x128xbf16>,
    %c0_48 = arith.constant 0 : index
    %c0_49 = arith.constant 0 : index
    %99 = vector.load %arg14[%c0_48, %c0_49] : memref<256x256xbf16, #tpu.memory_space<vmem>>, vector<256x256xbf16>
    %c0_50 = arith.constant 0 : index
    %c0_51 = arith.constant 0 : index
    %100 = vector.load %arg4[%c0_50, %c0_51] : memref<256x256xbf16, #tpu.memory_space<vmem>>, vector<256x256xbf16>
    %cst_52 = arith.constant dense<0.000000e+00> : vector<256x256xf32>
    %101 = tpu.matmul %99, %100, %cst_52 {dimension_numbers = #tpu.dot_dimension_numbers<[1], [0], [0], [1], [0, 0, 1, 1], [], []>} : vector<256x256xbf16>, vector<256x256xbf16>, vector<256x256xf32> -> vector<256x256xf32>
    %c0_53 = arith.constant 0 : index
    %c0_54 = arith.constant 0 : index
    %102 = vector.load %arg5[%c0_53, %c0_54] : memref<1x256xf32, #tpu.memory_space<vmem>>, vector<1x256xf32>
    %103 = vector.shape_cast %102 : vector<1x256xf32> to vector<256xf32>
    %104 = vector.shape_cast %103 : vector<256xf32> to vector<1x256xf32>
    %105 = vector.broadcast %104 : vector<1x256xf32> to vector<256x256xf32>
    %106 = arith.addf %101, %105 : vector<256x256xf32>
    %107 = arith.addf %1, %106 : vector<256x256xf32>
    %c0_55 = arith.constant 0 : index
    %c0_56 = arith.constant 0 : index
    %108 = vector.load %arg6[%c0_55, %c0_56] : memref<1x256xf32, #tpu.memory_space<vmem>>, vector<1x256xf32>
    %109 = vector.shape_cast %108 : vector<1x256xf32> to vector<256xf32>
    %c0_57 = arith.constant 0 : index
    %c0_58 = arith.constant 0 : index
    %110 = vector.load %arg7[%c0_57, %c0_58] : memref<1x256xf32, #tpu.memory_space<vmem>>, vector<1x256xf32>
    %111 = vector.shape_cast %110 : vector<1x256xf32> to vector<256xf32>
    %cst_59 = arith.constant dense<0.000000e+00> : vector<256xf32>
    %112 = vector.multi_reduction <add>, %107, %cst_59 [1] : vector<256x256xf32> to vector<256xf32>
    %113 = vector.shape_cast %112 : vector<256xf32> to vector<256x1xf32>
    %114 = arith.mulf %107, %107 : vector<256x256xf32>
    %cst_60 = arith.constant dense<0.000000e+00> : vector<256xf32>
    %115 = vector.multi_reduction <add>, %114, %cst_60 [1] : vector<256x256xf32> to vector<256xf32>
    %116 = vector.shape_cast %115 : vector<256xf32> to vector<256x1xf32>
    %cst_61 = arith.constant 3.906250e-03 : f32
    %117 = vector.broadcast %cst_61 : f32 to vector<256x1xf32>
    %118 = arith.mulf %113, %117 : vector<256x1xf32>
    %cst_62 = arith.constant 3.906250e-03 : f32
    %119 = vector.broadcast %cst_62 : f32 to vector<256x1xf32>
    %120 = arith.mulf %116, %119 : vector<256x1xf32>
    %121 = arith.mulf %118, %118 : vector<256x1xf32>
    %122 = arith.subf %120, %121 : vector<256x1xf32>
    %cst_63 = arith.constant 0.000000e+00 : f32
    %123 = vector.broadcast %cst_63 : f32 to vector<256x1xf32>
    %124 = arith.maximumf %122, %123 : vector<256x1xf32>
    %125 = vector.broadcast %118 : vector<256x1xf32> to vector<256x256xf32>
    %126 = arith.subf %107, %125 : vector<256x256xf32>
    %cst_64 = arith.constant 9.99999974E-6 : f32
    %127 = vector.broadcast %cst_64 : f32 to vector<256x1xf32>
    %128 = arith.addf %124, %127 : vector<256x1xf32>
    %129 = math.rsqrt %128 : vector<256x1xf32>
    %130 = vector.broadcast %129 : vector<256x1xf32> to vector<256x256xf32>
    %131 = arith.mulf %126, %130 : vector<256x256xf32>
    %132 = vector.shape_cast %109 : vector<256xf32> to vector<1x256xf32>
    %133 = vector.broadcast %132 : vector<1x256xf32> to vector<256x256xf32>
    %134 = arith.mulf %131, %133 : vector<256x256xf32>
    %135 = vector.shape_cast %111 : vector<256xf32> to vector<1x256xf32>
    %136 = vector.broadcast %135 : vector<1x256xf32> to vector<256x256xf32>
    %137 = arith.addf %134, %136 : vector<256x256xf32>
    %138 = arith.truncf %137 : vector<256x256xf32> to vector<256x256xbf16>
    %c0_65 = arith.constant 0 : index
    %c0_66 = arith.constant 0 : index
    %139 = vector.load %arg8[%c0_65, %c0_66] : memref<256x256xbf16, #tpu.memory_space<vmem>>, vector<256x256xbf16>
    %cst_67 = arith.constant dense<0.000000e+00> : vector<256x256xf32>
    %140 = tpu.matmul %138, %139, %cst_67 {dimension_numbers = #tpu.dot_dimension_numbers<[1], [0], [0], [1], [0, 0, 1, 1], [], []>} : vector<256x256xbf16>, vector<256x256xbf16>, vector<256x256xf32> -> vector<256x256xf32>
    %c0_68 = arith.constant 0 : index
    %c0_69 = arith.constant 0 : index
    %141 = vector.load %arg9[%c0_68, %c0_69] : memref<1x256xf32, #tpu.memory_space<vmem>>, vector<1x256xf32>
    %142 = vector.shape_cast %141 : vector<1x256xf32> to vector<256xf32>
    %143 = vector.shape_cast %142 : vector<256xf32> to vector<1x256xf32>
    %144 = vector.broadcast %143 : vector<1x256xf32> to vector<256x256xf32>
    %145 = arith.addf %140, %144 : vector<256x256xf32>
    %146 = arith.addf %137, %145 : vector<256x256xf32>
    %c0_70 = arith.constant 0 : index
    %c0_71 = arith.constant 0 : index
    %147 = vector.load %arg10[%c0_70, %c0_71] : memref<1x256xf32, #tpu.memory_space<vmem>>, vector<1x256xf32>
    %148 = vector.shape_cast %147 : vector<1x256xf32> to vector<256xf32>
    %c0_72 = arith.constant 0 : index
    %c0_73 = arith.constant 0 : index
    %149 = vector.load %arg11[%c0_72, %c0_73] : memref<1x256xf32, #tpu.memory_space<vmem>>, vector<1x256xf32>
    %150 = vector.shape_cast %149 : vector<1x256xf32> to vector<256xf32>
    %cst_74 = arith.constant dense<0.000000e+00> : vector<256xf32>
    %151 = vector.multi_reduction <add>, %146, %cst_74 [1] : vector<256x256xf32> to vector<256xf32>
    %152 = vector.shape_cast %151 : vector<256xf32> to vector<256x1xf32>
    %153 = arith.mulf %146, %146 : vector<256x256xf32>
    %cst_75 = arith.constant dense<0.000000e+00> : vector<256xf32>
    %154 = vector.multi_reduction <add>, %153, %cst_75 [1] : vector<256x256xf32> to vector<256xf32>
    %155 = vector.shape_cast %154 : vector<256xf32> to vector<256x1xf32>
    %cst_76 = arith.constant 3.906250e-03 : f32
    %156 = vector.broadcast %cst_76 : f32 to vector<256x1xf32>
    %157 = arith.mulf %152, %156 : vector<256x1xf32>
    %cst_77 = arith.constant 3.906250e-03 : f32
    %158 = vector.broadcast %cst_77 : f32 to vector<256x1xf32>
    %159 = arith.mulf %155, %158 : vector<256x1xf32>
    %160 = arith.mulf %157, %157 : vector<256x1xf32>
    %161 = arith.subf %159, %160 : vector<256x1xf32>
    %cst_78 = arith.constant 0.000000e+00 : f32
    %162 = vector.broadcast %cst_78 : f32 to vector<256x1xf32>
    %163 = arith.maximumf %161, %162 : vector<256x1xf32>
    %164 = vector.broadcast %157 : vector<256x1xf32> to vector<256x256xf32>
    %165 = arith.subf %146, %164 : vector<256x256xf32>
    %cst_79 = arith.constant 9.99999974E-6 : f32
    %166 = vector.broadcast %cst_79 : f32 to vector<256x1xf32>
    %167 = arith.addf %163, %166 : vector<256x1xf32>
    %168 = math.rsqrt %167 : vector<256x1xf32>
    %169 = vector.broadcast %168 : vector<256x1xf32> to vector<256x256xf32>
    %170 = arith.mulf %165, %169 : vector<256x256xf32>
    %171 = vector.shape_cast %148 : vector<256xf32> to vector<1x256xf32>
    %172 = vector.broadcast %171 : vector<1x256xf32> to vector<256x256xf32>
    %173 = arith.mulf %170, %172 : vector<256x256xf32>
    %174 = vector.shape_cast %150 : vector<256xf32> to vector<1x256xf32>
    %175 = vector.broadcast %174 : vector<1x256xf32> to vector<256x256xf32>
    %176 = arith.addf %173, %175 : vector<256x256xf32>
    %177 = vector.shape_cast %176 : vector<256x256xf32> to vector<2x128x256xf32>
    %c0_80 = arith.constant 0 : index
    %c0_81 = arith.constant 0 : index
    %c0_82 = arith.constant 0 : index
    %178 = vector.load %arg12[%c0_80, %c0_81, %c0_82] : memref<2x128x256xf32, #tpu.memory_space<vmem>>, vector<2x128x256xf32>
    tpu.vector_store %arg12[%c0_80, %c0_81, %c0_82], %177 {strides = array<i32>} : memref<2x128x256xf32, #tpu.memory_space<vmem>>, vector<2x128x256xf32>,
    return
  }
  func.func @transform_0(%arg0: i32) -> (i32, i32, i32) {
    %c0_i32 = arith.constant 0 : i32
    %c0_i32_0 = arith.constant 0 : i32
    %c0_i32_1 = arith.constant 0 : i32
    return %arg0, %c0_i32, %c0_i32_0 : i32, i32, i32
  }
  func.func @transform_1(%arg0: i32) -> (i32, i32) {
    %c0_i32 = arith.constant 0 : i32
    %c0_i32_0 = arith.constant 0 : i32
    %c0_i32_1 = arith.constant 0 : i32
    return %c0_i32, %c0_i32_0 : i32, i32
  }
  func.func @transform_2(%arg0: i32) -> (i32, i32) {
    %c0_i32 = arith.constant 0 : i32
    %c0_i32_0 = arith.constant 0 : i32
    %c0_i32_1 = arith.constant 0 : i32
    return %c0_i32, %c0_i32_0 : i32, i32
  }
  func.func @transform_3(%arg0: i32) -> (i32, i32) {
    %c0_i32 = arith.constant 0 : i32
    %c0_i32_0 = arith.constant 0 : i32
    %c0_i32_1 = arith.constant 0 : i32
    return %c0_i32, %c0_i32_0 : i32, i32
  }
  func.func @transform_4(%arg0: i32) -> (i32, i32) {
    %c0_i32 = arith.constant 0 : i32
    %c0_i32_0 = arith.constant 0 : i32
    %c0_i32_1 = arith.constant 0 : i32
    return %c0_i32, %c0_i32_0 : i32, i32
  }
  func.func @transform_5(%arg0: i32) -> (i32, i32) {
    %c0_i32 = arith.constant 0 : i32
    %c0_i32_0 = arith.constant 0 : i32
    %c0_i32_1 = arith.constant 0 : i32
    return %c0_i32, %c0_i32_0 : i32, i32
  }
  func.func @transform_6(%arg0: i32) -> (i32, i32) {
    %c0_i32 = arith.constant 0 : i32
    %c0_i32_0 = arith.constant 0 : i32
    %c0_i32_1 = arith.constant 0 : i32
    return %c0_i32, %c0_i32_0 : i32, i32
  }
  func.func @transform_7(%arg0: i32) -> (i32, i32) {
    %c0_i32 = arith.constant 0 : i32
    %c0_i32_0 = arith.constant 0 : i32
    %c0_i32_1 = arith.constant 0 : i32
    return %c0_i32, %c0_i32_0 : i32, i32
  }
  func.func @transform_8(%arg0: i32) -> (i32, i32) {
    %c0_i32 = arith.constant 0 : i32
    %c0_i32_0 = arith.constant 0 : i32
    %c0_i32_1 = arith.constant 0 : i32
    return %c0_i32, %c0_i32_0 : i32, i32
  }
  func.func @transform_9(%arg0: i32) -> (i32, i32) {
    %c0_i32 = arith.constant 0 : i32
    %c0_i32_0 = arith.constant 0 : i32
    %c0_i32_1 = arith.constant 0 : i32
    return %c0_i32, %c0_i32_0 : i32, i32
  }
  func.func @transform_10(%arg0: i32) -> (i32, i32) {
    %c0_i32 = arith.constant 0 : i32
    %c0_i32_0 = arith.constant 0 : i32
    %c0_i32_1 = arith.constant 0 : i32
    return %c0_i32, %c0_i32_0 : i32, i32
  }
  func.func @transform_11(%arg0: i32) -> (i32, i32, i32) {
    %c0_i32 = arith.constant 0 : i32
    %c0_i32_0 = arith.constant 0 : i32
    %c0_i32_1 = arith.constant 0 : i32
    return %arg0, %c0_i32, %c0_i32_0 : i32, i32, i32
  }
  func.func @transform_12(%arg0: i32) -> (i32, i32, i32, i32) {
    %c0_i32 = arith.constant 0 : i32
    %c0_i32_0 = arith.constant 0 : i32
    %c0_i32_1 = arith.constant 0 : i32
    %c0_i32_2 = arith.constant 0 : i32
    return %arg0, %c0_i32, %c0_i32_0, %c0_i32_1 : i32, i32, i32, i32
  }
}

</mosaic_0001>

<bundles_post_ra>
// kernel: tpu_custom_call.1
= control target key start
LH: loop header
LB: loop body
LE: loop exit
PB: predicated region body
PF: predicated region fallthrough
CT: control target
= control target key end

     0   :  { %s11957_s0 = inlined_call_operand.hbm [shape: f32[4,128,256], index: 0, kind: input, shape index: {}]   ;;  %s11958_s1 = inlined_call_operand.hbm [shape: bf16[256,768], index: 1, kind: input, shape index: {}]   ;;  %s11959_s2 = inlined_call_operand.vmem [shape: f32[1,768], index: 2, kind: input, shape index: {}]   ;;  %s11960_s3 = inlined_call_operand.hbm [shape: bf16[256,256], index: 3, kind: input, shape index: {}]   ;;  %s11961_s4 = inlined_call_operand.vmem [shape: f32[1,256], index: 4, kind: input, shape index: {}]   ;;  %s11962_s5 = inlined_call_operand.vmem [shape: f32[1,256], index: 5, kind: input, shape index: {}]   ;;  %s11963_s6 = inlined_call_operand.vmem [shape: f32[1,256], index: 6, kind: input, shape index: {}]   ;;  %s11964_s7 = inlined_call_operand.hbm [shape: bf16[256,256], index: 7, kind: input, shape index: {}]   ;;  %s11965_s8 = inlined_call_operand.vmem [shape: f32[1,256], index: 8, kind: input, shape index: {}]   ;;  %s11966_s9 = inlined_call_operand.vmem [shape: f32[1,256], index: 9, kind: input, shape index: {}]   ;;  %s11967_s10 = inlined_call_operand.vmem [shape: f32[1,256], index: 10, kind: input, shape index: {}]   ;;  %s11968_s11 = inlined_call_operand.hbm [shape: f32[4,128,256], index: 11, kind: output, shape index: {0}]   ;;  %s11969_s12 = inlined_call_operand.hbm [shape: f32[4,2,128,128], index: 12, kind: output, shape index: {1}]  }
   0x1   :  { %12125 = sst [smem:[#allocation67_spill]] %s11958_s1 }
   0x2   :  { %12126 = sst [smem:[#allocation68_spill]] %s11966_s9 }
   0x3   :  { %12127 = sst [smem:[#allocation69_spill]] %s11967_s10 }
   0x4   :  { %12128 = sst [smem:[#allocation70_spill]] %s11968_s11 }
   0x5   :  { %12129 = sst [smem:[#allocation71_spill]] %s11969_s12 }
   0x6   :  { %18 = vsyncpa [#allocation4], 0 }
   0x7   :  { %20 = vsyncpa [#allocation4 + $0x1], 0 }
   0x8   :  { %21 = vsyncpa [#allocation7], 0 }
   0x9   :  { %22 = vsyncpa [#allocation10], 0 }
   0xa   :  { %23 = vsyncpa [#allocation5], 0 }
   0xb   :  { %25 = vsyncpa [#allocation5 + $0x1], 0 }
   0xc   :  { %26 = vsyncpa [#allocation13], 0 }
   0xd   :  { %28 = vsyncpa [#allocation13 + $0x1], 0  ;;  %s7931_s21 = smov 0   ;;  %s7933_s22 = smov 0  }
   0xe   :  { %s7935_s23 = smov 0   ;;  %s7937_s24 = smov 0  }
   0xf LB: > { %12130 = sst [smem:[#allocation19_spill]] %s7836_s21  ;;  %s7952_s25 = sadd.s32 4294967295, %s7848_s24   ;;  %s7848_s24 = sphi %s7937_s24, %s12527_s24   ;;  %s7844_s23 = sphi %s7935_s23, %s12526_s23   ;;  %s7840_s22 = sphi %s7933_s22, %s12525_s22   ;;  %s7836_s21 = sphi %s7931_s21, %s12524_s21  }
  0x10   : > { %s6191_s26 = sadd.s32 4294967294, %s7848_s24   ;;  %p54_p0 = scmp.ne.s32.totalorder %s7840_s22, %s7836_s21 }
  0x11   : > { %p11971_p1 = scmp.eq.s32.totalorder %s7952_s25, 0  ;;  %p294_p3 = scmp.eq.s32.totalorder %s6191_s26, 1 }
  0x12   : > { %p6192_p5 = scmp.ge.s32.totalorder %s7848_s24, 1  ;;  %p327_p7 = scmp.lt.s32.totalorder %s7848_s24, 3 }
  0x13   : > { %p7961_p4 = por %p11971_p1, %p54_p0  ;;  %p7966_p6 = por %p294_p3, %p54_p0 }
  0x14   : > { %p7971_p8 = pnand %p6192_p5, %p327_p7  ;;  %s7850_s30 = smov [#allocation6]  }
  0x15   : > { %s12131_s27 = scalar_select %p7961_p4, 1, 0 }
  0x16   : > { %s12132_s28 = scalar_select %p7966_p6, 1, 0 }
  0x17   : > { %s12134_s29 = scalar_select %p7971_p8, 1, 0 }
  0x18   : > { %12133 = sst [smem:[#allocation20_spill]] %s12132_s28  ;;  %s339_s13 = sshll.u32 %s7850_s30, 4  ;;  %s7975_s13 = int_to_ptr.vmem [resolvable:$true] %s339_s13 }
  0x19   : > { %p6866_p9 = pneg %p7971_p8  ;;  %s7851_s15 = smov [#allocation8]  }
  0x1a   : > { %s355_s16 = sshll.u32 %s7851_s15, 4  ;;  %s12136_s1 = sld [smem:[#allocation67_spill]]  ;;  %s7986_s16 = int_to_ptr.vmem [resolvable:$true] %s355_s16 }
  0x1b   : > { %p7982_p11 = pnand %p6866_p9, %p11971_p1 }
  0x1d   : > { %p7996_p13 = pneg %p7982_p11 }
  0x20   : > { %s7628_s19 = scalar_lea.hbm %s12136_s1, 12288 }
  0x21   : > { %p7629_p12 = scmp.ne.s32.totalorder %s12136_s1, %s7628_s19  ;;  %p7635_p5 = scmp.lt.u32.totalorder %s7628_s19, %s12136_s1 }
  0x23   : > { %p7631_p0 = pnand %p7996_p13, %p7629_p12 }
  0x25   : > { %p7632_p3 = pneg %p7631_p0 }
  0x27   : > { %p7637_p7 = pnand %p7635_p5, %p7632_p3 }
  0x29   : > { %7640 = shalt.err (!%p7637_p7)
}
  0x2a   : > { %s7641_s17 = scalar_lea.vmem %s7975_s13, 12288  ;;  %p7649_p2 = scmp.lt.s32.totalorder %s7975_s13, %s7975_s13 }
  0x2b   : > { %p7642_p9 = scmp.ne.s32.totalorder %s7975_s13, %s7641_s17  ;;  %p7650_p6 = scmp.lt.s32.totalorder %s7641_s17, %s7641_s17 }
  0x2d   : > { %p7644_p10 = pnand %p7642_p9, %p7996_p13  ;;  %p7651_p12 = por %p7650_p6, %p7649_p2 }
  0x2f   : > { %p7645_p1 = pneg %p7644_p10 }
  0x31   : > { %p7652_p0 = pnand %p7651_p12, %p7645_p1 }
  0x33   : > { %7655 = shalt.err (!%p7652_p0)
}
  0x34   : > { %s7852_s18 = smov 384   ;;  %s7853_s28 = smov 24  }
  0x35   : > { %6869 = dma.hbm_to_vmem [thread:$0]  (!%p7982_p11), %s12136_s1, 12288, %s7975_s13, [#allocation7], %s7852_s18, %s7852_s18, %s7853_s28  }
  0x36   : > { %s7656_s21 = scalar_lea.hbm %s11960_s3, 4096 }
  0x37   : > { %p7657_p2 = scmp.ne.s32.totalorder %s11960_s3, %s7656_s21  ;;  %p7663_p10 = scmp.lt.u32.totalorder %s7656_s21, %s11960_s3 }
  0x39   : > { %p7659_p1 = pnand %p7657_p2, %p7996_p13 }
  0x3b   : > { %p7660_p6 = pneg %p7659_p1 }
  0x3d   : > { %p7665_p3 = pnand %p7663_p10, %p7660_p6 }
  0x3f   : > { %7668 = shalt.err (!%p7665_p3)
}
  0x40   : > { %s7669_s13 = scalar_lea.vmem %s7986_s16, 4096  ;;  %p7677_p12 = scmp.lt.s32.totalorder %s7986_s16, %s7986_s16 }
  0x41   : > { %p7670_p5 = scmp.ne.s32.totalorder %s7986_s16, %s7669_s13  ;;  %p7678_p0 = scmp.lt.s32.totalorder %s7669_s13, %s7669_s13 }
  0x43   : > { %p7672_p7 = pnand %p7670_p5, %p7996_p13  ;;  %p7679_p2 = por %p7678_p0, %p7677_p12 }
  0x45   : > { %p7673_p9 = pneg %p7672_p7 }
  0x47   : > { %p7680_p1 = pnand %p7679_p2, %p7673_p9 }
  0x49   : > { %7683 = shalt.err (!%p7680_p1)
}
  0x4a   : > { %s7854_s11 = smov 128   ;;  %s7855_s10 = smov 8  }
  0x4b   : > { %6872 = dma.hbm_to_vmem [thread:$0]  (!%p7982_p11), %s11960_s3, 4096, %s7986_s16, [#allocation7], %s7854_s11, %s7854_s11, %s7855_s10  }
  0x4c   : > { %s7856_s18 = smov [#allocation9]   ;;  %s8041_s19 = sadd.s32 1, %s7848_s24  }
  0x4d   : > { %s377_s28 = sshll.u32 %s7856_s18, 4  ;;  %s7684_s15 = scalar_lea.hbm %s11964_s7, 4096  ;;  %s378_s28 = int_to_ptr.vmem [resolvable:$true] %s377_s28 }
  0x4e   : > { %p7685_p6 = scmp.ne.s32.totalorder %s11964_s7, %s7684_s15  ;;  %p7691_p5 = scmp.lt.u32.totalorder %s7684_s15, %s11964_s7 }
  0x50   : > { %p7687_p10 = pnand %p7685_p6, %p7996_p13 }
  0x52   : > { %p7688_p3 = pneg %p7687_p10 }
  0x54   : > { %p7693_p7 = pnand %p7691_p5, %p7688_p3 }
  0x56   : > { %7696 = shalt.err (!%p7693_p7)
}
  0x57   : > { %s7697_s16 = scalar_lea.vmem %s378_s28, 4096  ;;  %p7705_p2 = scmp.lt.s32.totalorder %s378_s28, %s378_s28 }
  0x58   : > { %p7698_p9 = scmp.ne.s32.totalorder %s378_s28, %s7697_s16  ;;  %p7706_p1 = scmp.lt.s32.totalorder %s7697_s16, %s7697_s16 }
  0x5a   : > { %p7700_p12 = pnand %p7698_p9, %p7996_p13  ;;  %p7707_p4 = por %p7706_p1, %p7705_p2 }
  0x5c   : > { %p7701_p0 = pneg %p7700_p12 }
  0x5e   : > { %p7708_p8 = pnand %p7707_p4, %p7701_p0 }
  0x60   : > { %7711 = shalt.err (!%p7708_p8)
}
  0x61   : > { %6875 = dma.hbm_to_vmem [thread:$0]  (!%p7982_p11), %s11964_s7, 4096, %s378_s28, [#allocation10], %s7854_s11, %s7854_s11, %s7855_s10  }
  0x62   : > { %s38_s1 = ssub.s32 %s7848_s24, %s8041_s19  ;;  %s41_s9 = sadd.s32 1, %s7844_s23 }
  0x63   : > { %p39_p4 = scmp.eq.s32.totalorder %s38_s1, 0  ;;  %p48_p8 = scmp.ne.s32.totalorder %s7844_s23, %s7840_s22 }
  0x64   : > { %p49_p13 = scmp.eq.s32.totalorder %s7848_s24, 0  ;;  %p6890_p6 = scmp.lt.s32.totalorder %s7848_s24, 2 }
  0x65   : > { %s8069_s14 = scalar_select %p39_p4, %s7844_s23, %s41_s9  }
  0x66   : > { %p50_p10 = por %p49_p13, %p48_p8  ;;  %p12138_p3 = scmp.eq.s32.totalorder %s7952_s25, 1 }
  0x67   : > { %s400_s18 = sand.u32 1, %s7844_s23   ;;  %s6427_s20 = sshll.u32 %s7848_s24, 13 }
  0x68   : > { %p8073_p5 = por %p12138_p3, %p48_p8  ;;  %s6197_s26 = sshll.u32 %s400_s18, 9 }
  0x69   : > { %s8082_s11 = scalar_lea.hbm %s11957_s0, %s6427_s20  ;;  %s404_s10 = scalar_lea.vmem [#allocation3], %s6197_s26 }
  0x6a   : > { %s412_s28 = sshll.u32 %s404_s10, 4  ;;  %p8084_p11 = pnand %p6890_p6, %p50_p10  ;;  %s8088_s28 = int_to_ptr.vmem [resolvable:$true] %s412_s28 }
  0x6b   : > { %s8090_s16 = scalar_lea.sflag [#allocation4], %s400_s18  ;;  %s7712_s12 = scalar_lea.hbm %s8082_s11, 8192 }
  0x6c   : > { %p7713_p7 = scmp.ne.s32.totalorder %s8082_s11, %s7712_s12  ;;  %p7714_p9 = pneg %p8084_p11 }
  0x6d   : > { %s7717_s9 = scalar_lea.hbm %s11957_s0, 16384  ;;  %p7718_p2 = scmp.lt.u32.totalorder %s8082_s11, %s11957_s0 }
  0x6e   : > { %p7715_p12 = pnand %p7714_p9, %p7713_p7  ;;  %p7719_p1 = scmp.lt.u32.totalorder %s7717_s9, %s7712_s12 }
  0x6f   : > { %p7721_p8 = scmp.lt.u32.totalorder %s7712_s12, %s8082_s11 }
  0x70   : > { %p7716_p0 = pneg %p7715_p12  ;;  %p7720_p4 = por %p7719_p1, %p7718_p2 }
  0x72   : > { %p7722_p13 = por %p7721_p8, %p7720_p4 }
  0x74   : > { %p7723_p6 = pnand %p7722_p13, %p7716_p0 }
  0x76   : > { %7726 = shalt.err (!%p7723_p6)
}
  0x77   : > { %s7727_s18 = scalar_lea.vmem %s8088_s28, 8192  ;;  %s7857_s15 = smov [#allocation3]  }
  0x78   : > { %p7728_p10 = scmp.ne.s32.totalorder %s8088_s28, %s7727_s18  ;;  %s7732_s17 = sshll.u32 %s7857_s15, 4  ;;  %s7733_s17 = int_to_ptr.vmem [resolvable:$false] %s7732_s17 }
  0x79   : > { %s7734_s10 = scalar_lea.vmem %s7733_s17, 16384  ;;  %p7735_p12 = scmp.lt.s32.totalorder %s8088_s28, %s7733_s17 }
  0x7a   : > { %p7730_p3 = pnand %p7728_p10, %p7714_p9  ;;  %p7736_p2 = scmp.lt.s32.totalorder %s7734_s10, %s7727_s18 }
  0x7c   : > { %p7731_p7 = pneg %p7730_p3  ;;  %p7737_p1 = por %p7736_p2, %p7735_p12 }
  0x7e   : > { %p7738_p4 = pnand %p7737_p1, %p7731_p7 }
  0x80   : > { %7741 = shalt.err (!%p7738_p4)
}
  0x81   : > { %s7858_s12 = smov 256   ;;  %s7859_s21 = smov 16  }
  0x82   : > { %6879 = dma.hbm_to_vmem [thread:$0]  (!%p8084_p11), %s8082_s11, 8192, %s8088_s28, %s8090_s16, %s7858_s12, %s7858_s12, %s7859_s21  }
  0x83   : > { %p12141_p9 = scmp.ne.s32.totalorder %s12134_s29, 0 }
  0x85   : > { %424 = sbr.rel (%p12141_p9) target bundleno = 3468 (0xd8c), region = 64 }
  0x8c   : > { %s8121_s1 = sand.u32 1, %s7840_s22   ;;  %p12142_p0 = scmp.ne.s32.totalorder %s12131_s27, 0 }
  0x8d   : > { %s8124_s9 = sshll.u32 %s8121_s1, 9  ;;  %s427_s20 = scalar_lea.sflag [#allocation4], %s8121_s1 }
  0x8e   : > { %s8128_s26 = scalar_lea.vmem [#allocation3], %s8124_s9 }
  0x8f   : > { %7815 = dma.done.wait (%p12142_p0), %s427_s20, 8192  }
  0x90   : > { %7817 = vsyncadd (%p12142_p0), %s427_s20, 4294959104  ;;  %p12143_p11 = scmp.eq.s32.totalorder %s7952_s25, 0 }
  0x92   : > { %7819 = dma.done.wait (%p12143_p11), [#allocation7], 16384   ;;  %p12144_p8 = pmov %p12143_p11 }
  0x94   : > { %7821 = vsyncadd (%p12144_p8), [#allocation7], 4294950912  ;;  %p12145_p13 = pmov %p12144_p8 }
  0x95   : > { %p12146_p6 = pmov %p12144_p8 }
  0x96   : > { %7823 = dma.done.wait (%p12145_p13), [#allocation10], 4096  }
  0x97   : > { %7825 = vsyncadd (%p12146_p6), [#allocation10], 4294963200  ;;  %v6940_v0 = vld [vmem:[#allocation6 + $0x4] ss:$24 sps:$4 sm:$0xff]   ;;  %v6944_v2 = vld [vmem:[#allocation6] ss:$24 sps:$4 sm:$0xff]  }
  0x98   : > { %v6942_v1 = vld [vmem:[#allocation6 + $0xc] ss:$24 sps:$4 sm:$0xff]   ;;  %1196 = vmatprep.subr.bf16.mxu0 %v6940_v0  ;;  %v6945_v3 = vld [vmem:[#allocation6 + $0x8] ss:$24 sps:$4 sm:$0xff]   ;;  %v6948_v5 = vld [vmem:[#allocation6 + $0x3c] ss:$24 sps:$4 sm:$0xff]  }
  0x99   : > { %1389 = vmatprep.subr.bf16.mxu1 %v6942_v1  ;;  %v6946_v4 = vld [vmem:[#allocation6 + $0x34] ss:$24 sps:$4 sm:$0xff]   ;;  %1197 = vmatpush1.bf16.msra.mxu0 %v6944_v2  ;;  %v6950_v6 = vld [vmem:[#allocation6 + $0x30] ss:$24 sps:$4 sm:$0xff]   ;;  %v6952_v8 = vld [vmem:[#allocation6 + $0x64] ss:$24 sps:$4 sm:$0xff]  }
  0x9a   : > { %1390 = vmatpush1.bf16.msra.mxu1 %v6945_v3  ;;  %1198 = vmatprep.subr.bf16.mxu0 %v6946_v4  ;;  %v6951_v7 = vld [vmem:[#allocation6 + $0x38] ss:$24 sps:$4 sm:$0xff]   ;;  %v6954_v9 = vld [vmem:[#allocation6 + $0x6c] ss:$24 sps:$4 sm:$0xff]   ;;  %v6957_v11 = vld [vmem:[#allocation6 + $0x68] ss:$24 sps:$4 sm:$0xff]  }
  0x9b   : > { %1391 = vmatprep.subr.bf16.mxu1 %v6948_v5  ;;  %v6956_v10 = vld [vmem:[#allocation6 + $0x60] ss:$24 sps:$4 sm:$0xff]   ;;  %v6958_v12 = vld [vmem:[#allocation6 + $0x94] ss:$24 sps:$4 sm:$0xff]   ;;  %v6962_v14 = vld [vmem:[#allocation6 + $0x90] ss:$24 sps:$4 sm:$0xff]  }
  0x9c   : > { %v6960_v13 = vld [vmem:[#allocation6 + $0x9c] ss:$24 sps:$4 sm:$0xff]   ;;  %v6963_v15 = vld [vmem:[#allocation6 + $0x98] ss:$24 sps:$4 sm:$0xff]   ;;  %v6966_v17 = vld [vmem:[#allocation6 + $0xcc] ss:$24 sps:$4 sm:$0xff]  }
  0x9d   : > { %1199 = vmatpush1.bf16.msra.mxu0 %v6950_v6  ;;  %v6964_v16 = vld [vmem:[#allocation6 + $0xc4] ss:$24 sps:$4 sm:$0xff]   ;;  %v6968_v18 = vld [vmem:[#allocation6 + $0xc0] ss:$24 sps:$4 sm:$0xff]   ;;  %v6970_v20 = vld [vmem:[#allocation6 + $0xf4] ss:$24 sps:$4 sm:$0xff]  }
  0x9e   : > { %1392 = vmatpush1.bf16.msra.mxu1 %v6951_v7  ;;  %1200 = vmatprep.subr.bf16.mxu0 %v6952_v8  ;;  %v6969_v19 = vld [vmem:[#allocation6 + $0xc8] ss:$24 sps:$4 sm:$0xff]   ;;  %v6972_v21 = vld [vmem:[#allocation6 + $0xfc] ss:$24 sps:$4 sm:$0xff]   ;;  %v6975_v23 = vld [vmem:[#allocation6 + $0xf8] ss:$24 sps:$4 sm:$0xff]  }
  0x9f   : > { %1393 = vmatprep.subr.bf16.mxu1 %v6954_v9  ;;  %v6974_v22 = vld [vmem:[#allocation6 + $0xf0] ss:$24 sps:$4 sm:$0xff]   ;;  %v6976_v24 = vld [vmem:[#allocation6 + $0x124] ss:$24 sps:$4 sm:$0xff]   ;;  %v6980_v26 = vld [vmem:[#allocation6 + $0x120] ss:$24 sps:$4 sm:$0xff]  }
  0xa0   : > { %v6978_v25 = vld [vmem:[#allocation6 + $0x12c] ss:$24 sps:$4 sm:$0xff]   ;;  %v6981_v27 = vld [vmem:[#allocation6 + $0x128] ss:$24 sps:$4 sm:$0xff]   ;;  %v6984_v29 = vld [vmem:[#allocation6 + $0x15c] ss:$24 sps:$4 sm:$0xff]  }
  0xa1   : > { %1201 = vmatpush1.bf16.msra.mxu0 %v6956_v10  ;;  %v6982_v28 = vld [vmem:[#allocation6 + $0x154] ss:$24 sps:$4 sm:$0xff]   ;;  %v6986_v30 = vld [vmem:[#allocation6 + $0x150] ss:$24 sps:$4 sm:$0xff]   ;;  %v6988_v32 = vld [vmem:[#allocation6 + $0x184] ss:$24 sps:$4 sm:$0xff]  }
  0xa2   : > { %1394 = vmatpush1.bf16.msra.mxu1 %v6957_v11  ;;  %1202 = vmatprep.subr.bf16.mxu0 %v6958_v12  ;;  %v6987_v31 = vld [vmem:[#allocation6 + $0x158] ss:$24 sps:$4 sm:$0xff]   ;;  %v6990_v33 = vld [vmem:[#allocation6 + $0x18c] ss:$24 sps:$4 sm:$0xff]   ;;  %v6993_v35 = vld [vmem:[#allocation6 + $0x188] ss:$24 sps:$4 sm:$0xff]  }
  0xa3   : > { %1395 = vmatprep.subr.bf16.mxu1 %v6960_v13  ;;  %v6992_v34 = vld [vmem:[#allocation6 + $0x180] ss:$24 sps:$4 sm:$0xff]   ;;  %v6994_v36 = vld [vmem:[#allocation6 + $0x1b4] ss:$24 sps:$4 sm:$0xff]   ;;  %v6998_v38 = vld [vmem:[#allocation6 + $0x1b0] ss:$24 sps:$4 sm:$0xff]  }
  0xa4   : > { %v6996_v37 = vld [vmem:[#allocation6 + $0x1bc] ss:$24 sps:$4 sm:$0xff]   ;;  %v6999_v39 = vld [vmem:[#allocation6 + $0x1b8] ss:$24 sps:$4 sm:$0xff]   ;;  %v7002_v41 = vld [vmem:[#allocation6 + $0x1ec] ss:$24 sps:$4 sm:$0xff]  }
  0xa5   : > { %1203 = vmatpush1.bf16.msra.mxu0 %v6962_v14  ;;  %v7000_v40 = vld [vmem:[#allocation6 + $0x1e4] ss:$24 sps:$4 sm:$0xff]   ;;  %v7004_v42 = vld [vmem:[#allocation6 + $0x1e0] ss:$24 sps:$4 sm:$0xff]   ;;  %v7006_v44 = vld [vmem:[#allocation6 + $0x214] ss:$24 sps:$4 sm:$0xff]  }
  0xa6   : > { %1396 = vmatpush1.bf16.msra.mxu1 %v6963_v15  ;;  %1204 = vmatprep.subr.bf16.mxu0 %v6964_v16  ;;  %v7005_v43 = vld [vmem:[#allocation6 + $0x1e8] ss:$24 sps:$4 sm:$0xff]   ;;  %v7008_v45 = vld [vmem:[#allocation6 + $0x21c] ss:$24 sps:$4 sm:$0xff]   ;;  %v7011_v49 = vld [vmem:[#allocation6 + $0x218] ss:$24 sps:$4 sm:$0xff]  }
  0xa7   : > { %1397 = vmatprep.subr.bf16.mxu1 %v6966_v17  ;;  %v493_v46 = vld [vmem:[%s8128_s26 + $0x8] sm:$0xff]  ;;  %v495_v47 = vld [vmem:[%s8128_s26 + $0x18] sm:$0xff]  ;;  %v492_v3 = vld [vmem:[%s8128_s26] sm:$0xff]  ;;  %s8900_s11 = scalar_lea.vmem [#allocation12], %s8124_s9  ;;  %s12480_s28 = sld [smem:[#allocation69_spill]] }
  0xa8   : > { %v7010_v48 = vld [vmem:[#allocation6 + $0x210] ss:$24 sps:$4 sm:$0xff]   ;;  %v8144_v50 = vpack.c.bf16 %v495_v47, %v493_v46  ;;  %v7012_v51 = vld [vmem:[#allocation6 + $0x244] ss:$24 sps:$4 sm:$0xff]   ;;  %v7016_v53 = vld [vmem:[#allocation6 + $0x240] ss:$24 sps:$4 sm:$0xff]  }
  0xa9   : > { %1205 = vmatpush1.bf16.msra.mxu0 %v6968_v18  ;;  %v7014_v52 = vld [vmem:[#allocation6 + $0x24c] ss:$24 sps:$4 sm:$0xff]   ;;  %v7017_v54 = vld [vmem:[#allocation6 + $0x248] ss:$24 sps:$4 sm:$0xff]   ;;  %v7020_v56 = vld [vmem:[#allocation6 + $0x27c] ss:$24 sps:$4 sm:$0xff]  }
  0xaa   : > { %1398 = vmatpush1.bf16.msra.mxu1 %v6969_v19  ;;  %1206 = vmatprep.subr.bf16.mxu0 %v6970_v20  ;;  %v7018_v55 = vld [vmem:[#allocation6 + $0x274] ss:$24 sps:$4 sm:$0xff]   ;;  %v7022_v57 = vld [vmem:[#allocation6 + $0x270] ss:$24 sps:$4 sm:$0xff]   ;;  %v7024_v59 = vld [vmem:[#allocation6 + $0x2a4] ss:$24 sps:$4 sm:$0xff]  }
  0xab   : > { %1399 = vmatprep.subr.bf16.mxu1 %v6972_v21  ;;  %1228 = vmatprep.mubr.bf16.mxu0 %v8144_v50  ;;  %v7023_v58 = vld [vmem:[#allocation6 + $0x278] ss:$24 sps:$4 sm:$0xff]   ;;  %v7026_v60 = vld [vmem:[#allocation6 + $0x2ac] ss:$24 sps:$4 sm:$0xff]   ;;  %v7029_v62 = vld [vmem:[#allocation6 + $0x2a8] ss:$24 sps:$4 sm:$0xff]  }
  0xac   : > { %1421 = vmatprep.mubr.bf16.mxu1 %v8144_v50  ;;  %v7028_v61 = vld [vmem:[#allocation6 + $0x2a0] ss:$24 sps:$4 sm:$0xff]   ;;  %v7030_v63 = vld [vmem:[#allocation6 + $0x2d4] ss:$24 sps:$4 sm:$0xff]   ;;  %v7034_v1 = vld [vmem:[#allocation6 + $0x2d0] ss:$24 sps:$4 sm:$0xff]  }
  0xad   : > { %1207 = vmatpush1.bf16.msra.mxu0 %v6974_v22  ;;  %v7032_v0 = vld [vmem:[#allocation6 + $0x2dc] ss:$24 sps:$4 sm:$0xff]   ;;  %v7035_v2 = vld [vmem:[#allocation6 + $0x2d8] ss:$24 sps:$4 sm:$0xff]   ;;  %v497_v5 = vld [vmem:[%s8128_s26 + $0x28] sm:$0xff]  ;;  %s11281_s13 = scalar_lea.vmem [#allocation11], %s8124_s9 }
  0xae   : > { %1400 = vmatpush1.bf16.msra.mxu1 %v6975_v23  ;;  %1208 = vmatprep.subr.bf16.mxu0 %v6976_v24  ;;  %v494_v4 = vld [vmem:[%s8128_s26 + $0x10] sm:$0xff]  ;;  %v499_v6 = vld [vmem:[%s8128_s26 + $0x38] sm:$0xff]  ;;  %v496_v12 = vld [vmem:[%s8128_s26 + $0x20] sm:$0xff]  ;;  %s6429_s9 = sshll.u32 %s7952_s25, 13  ;;  %s12509_s15 = sld [smem:[#allocation71_spill]] }
  0xaf   : > { %1401 = vmatprep.subr.bf16.mxu1 %v6978_v25  ;;  %v7038_v7 = vld [vmem:[#allocation6 + $0x14] ss:$24 sps:$4 sm:$0xff]   ;;  %v8152_v8 = vpack.c.bf16 %v494_v4, %v492_v3  ;;  %v8154_v9 = vpack.c.bf16 %v499_v6, %v497_v5  ;;  %v7036_v10 = vld [vmem:[#allocation6 + $0x10] ss:$24 sps:$4 sm:$0xff]   ;;  %v7041_v11 = vld [vmem:[#allocation6 + $0x44] ss:$24 sps:$4 sm:$0xff]  }
  0xb0   : > { %v498_v13 = vld [vmem:[%s8128_s26 + $0x30] sm:$0xff]  ;;  %v501_v14 = vld [vmem:[%s8128_s26 + $0x48] sm:$0xff]  ;;  %v503_v15 = vld [vmem:[%s8128_s26 + $0x58] sm:$0xff]  ;;  %s6057_s10 = sshll.u32 %s8900_s11, 4  ;;  %s6026_s12 = scalar_lea.sflag [#allocation13], %s8121_s1  ;;  %s11687_s10 = int_to_ptr.vmem [resolvable:$true] %s6057_s10 }
  0xb1   : > { %1209 = vmatpush1.bf16.msra.mxu0 %v6980_v26  ;;  %v7039_v16 = vld [vmem:[#allocation6 + $0x40] ss:$24 sps:$4 sm:$0xff]   ;;  %v7044_v17 = vld [vmem:[#allocation6 + $0x74] ss:$24 sps:$4 sm:$0xff]   ;;  %v8164_v18 = vpack.c.bf16 %v498_v13, %v496_v12  ;;  %v8166_v19 = vpack.c.bf16 %v503_v15, %v501_v14  ;;  %v7042_v20 = vld [vmem:[#allocation6 + $0x70] ss:$24 sps:$4 sm:$0xff]  }
  0xb2   : > { %1402 = vmatpush1.bf16.msra.mxu1 %v6981_v27  ;;  %1210 = vmatprep.subr.bf16.mxu0 %v6982_v28  ;;  %v7047_v21 = vld [vmem:[#allocation6 + $0xa4] ss:$24 sps:$4 sm:$0xff]   ;;  %v502_v23 = vld [vmem:[%s8128_s26 + $0x50] sm:$0xff]  ;;  %v505_v24 = vld [vmem:[%s8128_s26 + $0x68] sm:$0xff]  ;;  %s7742_s21 = scalar_lea.vmem %s11687_s10, 8192  ;;  %s7860_s20 = smov [#allocation12]  }
  0xb3   : > { %1403 = vmatprep.subr.bf16.mxu1 %v6984_v29  ;;  %v500_v22 = vld [vmem:[%s8128_s26 + $0x40] sm:$0xff]  ;;  %v507_v25 = vld [vmem:[%s8128_s26 + $0x78] sm:$0xff]  ;;  %v7050_v27 = vld [vmem:[#allocation6 + $0xd4] ss:$24 sps:$4 sm:$0xff]   ;;  %p7743_p10 = scmp.ne.s32.totalorder %s11687_s10, %s7742_s21 }
  0xb4   : > { %v7045_v26 = vld [vmem:[#allocation6 + $0xa0] ss:$24 sps:$4 sm:$0xff]   ;;  %v8176_v28 = vpack.c.bf16 %v502_v23, %v500_v22  ;;  %v8178_v29 = vpack.c.bf16 %v507_v25, %v505_v24  ;;  %v7062_v47 = vld [vmem:[#allocation6 + $0x194] ss:$24 sps:$4 sm:$0xff]   ;;  %v7083_v22 = vld [vmem:[#allocation6 + $0x2e4] ss:$24 sps:$4 sm:$0xff]   ;;  %s11684_s17 = scalar_lea.hbm %s12509_s15, %s6429_s9 }
  0xb5   : > { %1211 = vmatpush1.bf16.msra.mxu0 %v6986_v30  ;;  %v7048_v30 = vld [vmem:[#allocation6 + $0xd0] ss:$24 sps:$4 sm:$0xff]   ;;  %v7057_v46 = vld [vmem:[#allocation6 + $0x160] ss:$24 sps:$4 sm:$0xff]   ;;  %v7074_v4 = vld [vmem:[#allocation6 + $0x254] ss:$24 sps:$4 sm:$0xff]   ;;  %p7744_p3 = pnand %p7743_p10, %p8073_p5 }
  0xb6   : > { %1404 = vmatpush1.bf16.msra.mxu1 %v6987_v31  ;;  %1212 = vmatprep.subr.bf16.mxu0 %v6988_v32  ;;  %v504_v31 = vld [vmem:[%s8128_s26 + $0x60] sm:$0xff]  ;;  %v506_v32 = vld [vmem:[%s8128_s26 + $0x70] sm:$0xff]  ;;  %v525_v13 = vld [vmem:[%s8128_s26 + $0x108] sm:$0xff] }
  0xb7   : > { %1405 = vmatprep.subr.bf16.mxu1 %v6990_v33  ;;  %v7053_v33 = vld [vmem:[#allocation6 + $0x104] ss:$24 sps:$4 sm:$0xff]   ;;  %v7069_v3 = vld [vmem:[#allocation6 + $0x220] ss:$24 sps:$4 sm:$0xff]   ;;  %v522_v12 = vld [vmem:[%s8128_s26 + $0xf0] sm:$0xff]  ;;  %p7745_p7 = pneg %p7744_p3 }
  0xb8   : > { %v527_v14 = vld [vmem:[%s8128_s26 + $0x118] sm:$0xff]  ;;  %v524_v23 = vld [vmem:[%s8128_s26 + $0x100] sm:$0xff]  ;;  %v526_v24 = vld [vmem:[%s8128_s26 + $0x110] sm:$0xff] }
  0xb9   : > { %1213 = vmatpush1.bf16.msra.mxu0 %v6992_v34  ;;  %v509_v34 = vld [vmem:[%s8128_s26 + $0x88] sm:$0xff]  ;;  %v7075_v15 = vld [vmem:[#allocation6 + $0x280] ss:$24 sps:$4 sm:$0xff]  }
  0xba   : > { %1406 = vmatpush1.bf16.msra.mxu1 %v6993_v35  ;;  %1214 = vmatprep.subr.bf16.mxu0 %v6994_v36  ;;  %v511_v35 = vld [vmem:[%s8128_s26 + $0x98] sm:$0xff]  ;;  %v529_v25 = vld [vmem:[%s8128_s26 + $0x128] sm:$0xff] }
  0xbb   : > { %1407 = vmatprep.subr.bf16.mxu1 %v6996_v37  ;;  %v7051_v36 = vld [vmem:[#allocation6 + $0x100] ss:$24 sps:$4 sm:$0xff]   ;;  %v7056_v37 = vld [vmem:[#allocation6 + $0x134] ss:$24 sps:$4 sm:$0xff]  }
  0xbd   : > { %1215 = vmatpush1.bf16.msra.mxu0 %v6998_v38  ;;  %v8188_v38 = vpack.c.bf16 %v506_v32, %v504_v31  ;;  %v528_v32 = vld [vmem:[%s8128_s26 + $0x120] sm:$0xff] }
  0xbe   : > { %1408 = vmatpush1.bf16.msra.mxu1 %v6999_v39  ;;  %1216 = vmatprep.subr.bf16.mxu0 %v7000_v40  ;;  %v7054_v39 = vld [vmem:[#allocation6 + $0x130] ss:$24 sps:$4 sm:$0xff]   ;;  %v8190_v40 = vpack.c.bf16 %v511_v35, %v509_v34  ;;  %v535_v35 = vld [vmem:[%s8128_s26 + $0x158] sm:$0xff] }
  0xbf   : > { %1409 = vmatprep.subr.bf16.mxu1 %v7002_v41  ;;  %v7059_v41 = vld [vmem:[#allocation6 + $0x164] ss:$24 sps:$4 sm:$0xff]   ;;  %v533_v34 = vld [vmem:[%s8128_s26 + $0x148] sm:$0xff] }
  0xc1   : > { %1217 = vmatpush1.bf16.msra.mxu0 %v7004_v42  ;;  %v508_v42 = vld [vmem:[%s8128_s26 + $0x80] sm:$0xff] }
  0xc2   : > { %1410 = vmatpush1.bf16.msra.mxu1 %v7005_v43  ;;  %1218 = vmatprep.subr.bf16.mxu0 %v7006_v44  ;;  %v510_v43 = vld [vmem:[%s8128_s26 + $0x90] sm:$0xff]  ;;  %v513_v44 = vld [vmem:[%s8128_s26 + $0xa8] sm:$0xff] }
  0xc3   : > { %1411 = vmatprep.subr.bf16.mxu1 %v7008_v45  ;;  %v515_v45 = vld [vmem:[%s8128_s26 + $0xb8] sm:$0xff] }
  0xc5   : > { %1219 = vmatpush1.bf16.msra.mxu0 %v7010_v48  ;;  %v8200_v48 = vpack.c.bf16 %v510_v43, %v508_v42  ;;  %v537_v42 = vld [vmem:[%s8128_s26 + $0x168] sm:$0xff]  ;;  %v539_v43 = vld [vmem:[%s8128_s26 + $0x178] sm:$0xff] }
  0xc6   : > { %1412 = vmatpush1.bf16.msra.mxu1 %v7011_v49  ;;  %1220 = vmatprep.subr.bf16.mxu0 %v7012_v51  ;;  %v7060_v49 = vld [vmem:[#allocation6 + $0x190] ss:$24 sps:$4 sm:$0xff]   ;;  %v8202_v51 = vpack.c.bf16 %v515_v45, %v513_v44  ;;  %v8274_v45 = vpack.c.bf16 %v539_v43, %v537_v42 }
  0xc7   : > { %1413 = vmatprep.subr.bf16.mxu1 %v7014_v52  ;;  %v7065_v52 = vld [vmem:[#allocation6 + $0x1c4] ss:$24 sps:$4 sm:$0xff]  }
  0xc9   : > { %1221 = vmatpush1.bf16.msra.mxu0 %v7016_v53  ;;  %v512_v53 = vld [vmem:[%s8128_s26 + $0xa0] sm:$0xff] }
  0xca   : > { %1414 = vmatpush1.bf16.msra.mxu1 %v7017_v54  ;;  %1222 = vmatprep.subr.bf16.mxu0 %v7018_v55  ;;  %v514_v54 = vld [vmem:[%s8128_s26 + $0xb0] sm:$0xff]  ;;  %v517_v55 = vld [vmem:[%s8128_s26 + $0xc8] sm:$0xff] }
  0xcb   : > { %1415 = vmatprep.subr.bf16.mxu1 %v7020_v56  ;;  %v519_v56 = vld [vmem:[%s8128_s26 + $0xd8] sm:$0xff] }
  0xcd   : > { %1223 = vmatpush1.bf16.msra.mxu0 %v7022_v57  ;;  %v7063_v57 = vld [vmem:[#allocation6 + $0x1c0] ss:$24 sps:$4 sm:$0xff]  }
  0xce   : > { %1416 = vmatpush1.bf16.msra.mxu1 %v7023_v58  ;;  %1224 = vmatprep.subr.bf16.mxu0 %v7024_v59  ;;  %v7068_v58 = vld [vmem:[#allocation6 + $0x1f4] ss:$24 sps:$4 sm:$0xff]   ;;  %v8212_v59 = vpack.c.bf16 %v514_v54, %v512_v53 }
  0xcf   : > { %1417 = vmatprep.subr.bf16.mxu1 %v7026_v60  ;;  %v7066_v60 = vld [vmem:[#allocation6 + $0x1f0] ss:$24 sps:$4 sm:$0xff]  }
  0xd1   : > { %1225 = vmatpush1.bf16.msra.mxu0 %v7028_v61  ;;  %v8214_v61 = vpack.c.bf16 %v519_v56, %v517_v55  ;;  %v540_v55 = vld [vmem:[%s8128_s26 + $0x180] sm:$0xff]  ;;  %v542_v56 = vld [vmem:[%s8128_s26 + $0x190] sm:$0xff] }
  0xd2   : > { %1418 = vmatpush1.bf16.msra.mxu1 %v7029_v62  ;;  %1226 = vmatprep.subr.bf16.mxu0 %v7030_v63  ;;  %v7071_v62 = vld [vmem:[#allocation6 + $0x224] ss:$24 sps:$4 sm:$0xff]  }
  0xd3   : > { %1419 = vmatprep.subr.bf16.mxu1 %v7032_v0  ;;  %v516_v63 = vld [vmem:[%s8128_s26 + $0xc0] sm:$0xff]  ;;  %v518_v0 = vld [vmem:[%s8128_s26 + $0xd0] sm:$0xff] }
  0xd4   : > { %v8224_v5 = vpack.c.bf16 %v518_v0, %v516_v63  ;;  %v544_v63 = vld [vmem:[%s8128_s26 + $0x1a0] sm:$0xff]  ;;  %v546_v0 = vld [vmem:[%s8128_s26 + $0x1b0] sm:$0xff] }
  0xd5   : > { %1227 = vmatpush1.bf16.msra.mxu0 %v7034_v1  ;;  %v521_v1 = vld [vmem:[%s8128_s26 + $0xe8] sm:$0xff] }
  0xd6   : > { %1420 = vmatpush1.bf16.msra.mxu1 %v7035_v2  ;;  %1582 = vmatprep.subr.bf16.mxu0 %v7038_v7  ;;  %v523_v2 = vld [vmem:[%s8128_s26 + $0xf8] sm:$0xff]  ;;  %v7072_v7 = vld [vmem:[#allocation6 + $0x250] ss:$24 sps:$4 sm:$0xff]  }
  0xd7   : > { %v8226_v6 = vpack.c.bf16 %v523_v2, %v521_v1  ;;  %v549_v1 = vld [vmem:[%s8128_s26 + $0x1c8] sm:$0xff]  ;;  %v551_v2 = vld [vmem:[%s8128_s26 + $0x1d8] sm:$0xff] }
  0xd8   : > { %1229 = vmatmul.mubr.bf16.vlgmr.msra.gmra.mrb[0].mxu0 %v8152_v8 }
  0xd9   : > { %1422 = vmatmul.mubr.bf16.vlgmr.msra.gmra.mrb[0].mxu1 %v8152_v8  ;;  %1238 = vmatprep.mubr.bf16.mxu0 %v8154_v9 }
  0xda   : > { %1431 = vmatprep.mubr.bf16.mxu1 %v8154_v9  ;;  %1583 = vmatpush1.bf16.msra.mxu0 %v7036_v10  ;;  %v7077_v10 = vld [vmem:[#allocation6 + $0x284] ss:$24 sps:$4 sm:$0xff]  }
  0xdb   : > { %1584 = vmatprep.subr.bf16.mxu0 %v7041_v11  ;;  %v520_v11 = vld [vmem:[%s8128_s26 + $0xe0] sm:$0xff] }
  0xde   : > { %1585 = vmatpush1.bf16.msra.mxu0 %v7039_v16  ;;  %v7080_v16 = vld [vmem:[#allocation6 + $0x2b4] ss:$24 sps:$4 sm:$0xff]  }
  0xdf   : > { %1586 = vmatprep.subr.bf16.mxu0 %v7044_v17  ;;  %v8236_v17 = vpack.c.bf16 %v522_v12, %v520_v11  ;;  %v553_v11 = vld [vmem:[%s8128_s26 + $0x1e8] sm:$0xff]  ;;  %v555_v12 = vld [vmem:[%s8128_s26 + $0x1f8] sm:$0xff] }
  0xe0   : > { %1239 = vmatmul.mubr.bf16.gmra.mrb[4].mxu0 %v8164_v18 }
  0xe1   : > { %1432 = vmatmul.mubr.bf16.gmra.mrb[4].mxu1 %v8164_v18  ;;  %1248 = vmatprep.mubr.bf16.mxu0 %v8166_v19 }
  0xe2   : > { %1441 = vmatprep.mubr.bf16.mxu1 %v8166_v19  ;;  %1587 = vmatpush1.bf16.msra.mxu0 %v7042_v20  ;;  %v8238_v20 = vpack.c.bf16 %v527_v14, %v525_v13  ;;  %v8322_v14 = vpack.c.bf16 %v555_v12, %v553_v11 }
  0xe3   : > { %1588 = vmatprep.subr.bf16.mxu0 %v7047_v21  ;;  %v7078_v21 = vld [vmem:[#allocation6 + $0x2b0] ss:$24 sps:$4 sm:$0xff]  }
  0xe6   : > { %1589 = vmatpush1.bf16.msra.mxu0 %v7045_v26  ;;  %v531_v26 = vld [vmem:[%s8128_s26 + $0x138] sm:$0xff] }
  0xe7   : > { %1590 = vmatprep.subr.bf16.mxu0 %v7050_v27  ;;  %v7081_v27 = vld [vmem:[#allocation6 + $0x2e0] ss:$24 sps:$4 sm:$0xff]   ;;  %v8250_v31 = vpack.c.bf16 %v531_v26, %v529_v25 }
  0xe8   : > { %1249 = vmatmul.mubr.bf16.gmra.mrb[8].mxu0 %v8176_v28 }
  0xe9   : > { %1442 = vmatmul.mubr.bf16.gmra.mrb[8].mxu1 %v8176_v28  ;;  %1258 = vmatprep.mubr.bf16.mxu0 %v8178_v29 }
  0xea   : > { %1451 = vmatprep.mubr.bf16.mxu1 %v8178_v29  ;;  %1591 = vmatpush1.bf16.msra.mxu0 %v7048_v30  ;;  %v8248_v30 = vpack.c.bf16 %v526_v24, %v524_v23 }
  0xeb   : > { %1592 = vmatprep.subr.bf16.mxu0 %v7053_v33  ;;  %v530_v33 = vld [vmem:[%s8128_s26 + $0x130] sm:$0xff] }
  0xee   : > { %1593 = vmatpush1.bf16.msra.mxu0 %v7051_v36  ;;  %v8260_v36 = vpack.c.bf16 %v530_v33, %v528_v32 }
  0xef   : > { %1594 = vmatprep.subr.bf16.mxu0 %v7056_v37  ;;  %v8262_v37 = vpack.c.bf16 %v535_v35, %v533_v34 }
  0xf0   : > { %1259 = vmatmul.mubr.bf16.gmra.mrb[12].mxu0 %v8188_v38 }
  0xf1   : > { %1452 = vmatmul.mubr.bf16.gmra.mrb[12].mxu1 %v8188_v38  ;;  %1268 = vmatprep.mubr.bf16.mxu0 %v8190_v40 }
  0xf2   : > { %1461 = vmatprep.mubr.bf16.mxu1 %v8190_v40  ;;  %1595 = vmatpush1.bf16.msra.mxu0 %v7054_v39  ;;  %v532_v39 = vld [vmem:[%s8128_s26 + $0x140] sm:$0xff] }
  0xf3   : > { %1596 = vmatprep.subr.bf16.mxu0 %v7059_v41  ;;  %v534_v41 = vld [vmem:[%s8128_s26 + $0x150] sm:$0xff] }
  0xf4   : > { %v8272_v44 = vpack.c.bf16 %v534_v41, %v532_v39 }
  0xf6   : > { %1597 = vmatpush1.bf16.msra.mxu0 %v7057_v46  ;;  %v536_v46 = vld [vmem:[%s8128_s26 + $0x160] sm:$0xff] }
  0xf7   : > { %1598 = vmatprep.subr.bf16.mxu0 %v7062_v47  ;;  %v538_v47 = vld [vmem:[%s8128_s26 + $0x170] sm:$0xff] }
  0xf8   : > { %1269 = vmatmul.mubr.bf16.gmra.mrb[16].mxu0 %v8200_v48  ;;  %v8284_v53 = vpack.c.bf16 %v538_v47, %v536_v46 }
  0xf9   : > { %1462 = vmatmul.mubr.bf16.gmra.mrb[16].mxu1 %v8200_v48  ;;  %1278 = vmatprep.mubr.bf16.mxu0 %v8202_v51 }
  0xfa   : > { %1471 = vmatprep.mubr.bf16.mxu1 %v8202_v51  ;;  %1599 = vmatpush1.bf16.msra.mxu0 %v7060_v49  ;;  %v541_v49 = vld [vmem:[%s8128_s26 + $0x188] sm:$0xff] }
  0xfb   : > { %1600 = vmatprep.subr.bf16.mxu0 %v7065_v52  ;;  %v543_v52 = vld [vmem:[%s8128_s26 + $0x198] sm:$0xff] }
  0xfc   : > { %v8286_v54 = vpack.c.bf16 %v543_v52, %v541_v49 }
  0xfe   : > { %1601 = vmatpush1.bf16.msra.mxu0 %v7063_v57  ;;  %v545_v57 = vld [vmem:[%s8128_s26 + $0x1a8] sm:$0xff] }
  0xff   : > { %1602 = vmatprep.subr.bf16.mxu0 %v7068_v58  ;;  %v547_v58 = vld [vmem:[%s8128_s26 + $0x1b8] sm:$0xff] }
 0x100   : > { %1279 = vmatmul.mubr.bf16.gmra.mrb[20].mxu0 %v8212_v59 }
 0x101   : > { %1472 = vmatmul.mubr.bf16.gmra.mrb[20].mxu1 %v8212_v59  ;;  %1288 = vmatprep.mubr.bf16.mxu0 %v8214_v61 }
 0x102   : > { %1481 = vmatprep.mubr.bf16.mxu1 %v8214_v61  ;;  %1603 = vmatpush1.bf16.msra.mxu0 %v7066_v60  ;;  %v8296_v60 = vpack.c.bf16 %v542_v56, %v540_v55 }
 0x103   : > { %1604 = vmatprep.subr.bf16.mxu0 %v7071_v62  ;;  %v8298_v62 = vpack.c.bf16 %v547_v58, %v545_v57 }
 0x106   : > { %1605 = vmatpush1.bf16.msra.mxu0 %v7069_v3  ;;  %v8308_v3 = vpack.c.bf16 %v546_v0, %v544_v63 }
 0x107   : > { %1606 = vmatprep.subr.bf16.mxu0 %v7074_v4  ;;  %v8310_v4 = vpack.c.bf16 %v551_v2, %v549_v1 }
 0x108   : > { %1289 = vmatmul.mubr.bf16.gmra.mrb[24].mxu0 %v8224_v5 }
 0x109   : > { %1482 = vmatmul.mubr.bf16.gmra.mrb[24].mxu1 %v8224_v5  ;;  %1298 = vmatprep.mubr.bf16.mxu0 %v8226_v6 }
 0x10a   : > { %1491 = vmatprep.mubr.bf16.mxu1 %v8226_v6  ;;  %1607 = vmatpush1.bf16.msra.mxu0 %v7072_v7  ;;  %v548_v7 = vld [vmem:[%s8128_s26 + $0x1c0] sm:$0xff] }
 0x10b   : > { %1608 = vmatprep.subr.bf16.mxu0 %v7077_v10  ;;  %v550_v10 = vld [vmem:[%s8128_s26 + $0x1d0] sm:$0xff] }
 0x10c   : > { %v8320_v13 = vpack.c.bf16 %v550_v10, %v548_v7 }
 0x10e   : > { %1609 = vmatpush1.bf16.msra.mxu0 %v7075_v15  ;;  %v552_v15 = vld [vmem:[%s8128_s26 + $0x1e0] sm:$0xff] }
 0x10f   : > { %1610 = vmatprep.subr.bf16.mxu0 %v7080_v16  ;;  %v554_v16 = vld [vmem:[%s8128_s26 + $0x1f0] sm:$0xff] }
 0x110   : > { %1299 = vmatmul.mubr.bf16.gmra.mrb[28].mxu0 %v8236_v17 }
 0x111   : > { %1492 = vmatmul.mubr.bf16.gmra.mrb[28].mxu1 %v8236_v17  ;;  %1308 = vmatprep.mubr.bf16.mxu0 %v8238_v20 }
 0x112   : > { %1501 = vmatprep.mubr.bf16.mxu1 %v8238_v20  ;;  %1611 = vmatpush1.bf16.msra.mxu0 %v7078_v21  ;;  %v8330_v21 = vpack.c.bf16 %v554_v16, %v552_v15 }
 0x113   : > { %1612 = vmatprep.subr.bf16.mxu0 %v7083_v22 }
 0x116   : > { %1613 = vmatpush1.bf16.msra.mxu0 %v7081_v27 }
 0x118   : > { %1309 = vmatmul.mubr.bf16.gmra.mrb[32].mxu0 %v8248_v30 }
 0x119   : > { %1502 = vmatmul.mubr.bf16.gmra.mrb[32].mxu1 %v8248_v30  ;;  %1318 = vmatprep.mubr.bf16.mxu0 %v8250_v31 }
 0x11a   : > { %1511 = vmatprep.mubr.bf16.mxu1 %v8250_v31 }
 0x120   : > { %1319 = vmatmul.mubr.bf16.gmra.mrb[36].mxu0 %v8260_v36 }
 0x121   : > { %1512 = vmatmul.mubr.bf16.gmra.mrb[36].mxu1 %v8260_v36  ;;  %1328 = vmatprep.mubr.bf16.mxu0 %v8262_v37 }
 0x122   : > { %1521 = vmatprep.mubr.bf16.mxu1 %v8262_v37 }
 0x128   : > { %1329 = vmatmul.mubr.bf16.gmra.mrb[40].mxu0 %v8272_v44 }
 0x129   : > { %1522 = vmatmul.mubr.bf16.gmra.mrb[40].mxu1 %v8272_v44  ;;  %1338 = vmatprep.mubr.bf16.mxu0 %v8274_v45 }
 0x12a   : > { %1531 = vmatprep.mubr.bf16.mxu1 %v8274_v45 }
 0x130   : > { %1339 = vmatmul.mubr.bf16.gmra.mrb[44].mxu0 %v8284_v53 }
 0x131   : > { %1532 = vmatmul.mubr.bf16.gmra.mrb[44].mxu1 %v8284_v53  ;;  %1348 = vmatprep.mubr.bf16.mxu0 %v8286_v54 }
 0x132   : > { %1541 = vmatprep.mubr.bf16.mxu1 %v8286_v54 }
 0x138   : > { %1349 = vmatmul.mubr.bf16.gmra.mrb[48].mxu0 %v8296_v60 }
 0x139   : > { %1542 = vmatmul.mubr.bf16.gmra.mrb[48].mxu1 %v8296_v60  ;;  %1358 = vmatprep.mubr.bf16.mxu0 %v8298_v62 }
 0x13a   : > { %1551 = vmatprep.mubr.bf16.mxu1 %v8298_v62 }
 0x140   : > { %1359 = vmatmul.mubr.bf16.gmra.mrb[52].mxu0 %v8308_v3 }
 0x141   : > { %1552 = vmatmul.mubr.bf16.gmra.mrb[52].mxu1 %v8308_v3  ;;  %1368 = vmatprep.mubr.bf16.mxu0 %v8310_v4 }
 0x142   : > { %1561 = vmatprep.mubr.bf16.mxu1 %v8310_v4 }
 0x148   : > { %1369 = vmatmul.mubr.bf16.gmra.mrb[56].mxu0 %v8320_v13 }
 0x149   : > { %1562 = vmatmul.mubr.bf16.gmra.mrb[56].mxu1 %v8320_v13  ;;  %1378 = vmatprep.mubr.bf16.mxu0 %v8322_v14 }
 0x14a   : > { %1571 = vmatprep.mubr.bf16.mxu1 %v8322_v14 }
 0x150   : > { %1379 = vmatmul.mubr.bf16.gmra.mrb[60].mxu0 %v8330_v21 }
 0x151   : > { %1572 = vmatmul.mubr.bf16.gmra.mrb[60].mxu1 %v8330_v21  ;;  %1614 = vmatprep.mubr.bf16.mxu0 %v8144_v50  ;;  %v686_v50 = vlaneseq }
 0x158   : > { %1615 = vmatmul.mubr.bf16.vlgmr.msra.gmra.mrb[64].mxu0 %v8152_v8  ;;  %v8355_v8 = vshrl.u32 %v686_v50, 7 }
 0x159   : > { %1624 = vmatprep.mubr.bf16.mxu0 %v8154_v9 }
 0x15a   : > { %v8358_v9 = vsub.s32 0, %v8355_v8 }
 0x15c   : > { %12147 = vst [vmem:[#allocation21_spill] sm:$0xff] %v8358_v9 }
 0x160   : > { %1625 = vmatmul.mubr.bf16.gmra.mrb[68].mxu0 %v8164_v18  ;;  %v8361_v18 = vsub.s32 1, %v8355_v8 }
 0x161   : > { %1634 = vmatprep.mubr.bf16.mxu0 %v8166_v19  ;;  %v696_v19 = vsub.s32 2, %v8355_v8 }
 0x162   : > { %12148 = vst [vmem:[#allocation22_spill] sm:$0xff] %v8361_v18 }
 0x168   : > { %1635 = vmatmul.mubr.bf16.gmra.mrb[72].mxu0 %v8176_v28  ;;  %v8367_v28 = vld [vmem:[%s11959_s2] sm:$0x3f] }
 0x169   : > { %1644 = vmatprep.mubr.bf16.mxu0 %v8178_v29  ;;  %v700_v29 = vsub.s32 3, %v8355_v8 }
 0x170   : > { %1645 = vmatmul.mubr.bf16.gmra.mrb[76].mxu0 %v8188_v38  ;;  %v8372_v38 = vrot.slane %v8367_v28, %v8358_v9 }
 0x171   : > { %1654 = vmatprep.mubr.bf16.mxu0 %v8190_v40  ;;  %v8377_v40 = vrot.slane %v8367_v28, %v8361_v18 }
 0x178   : > { %1655 = vmatmul.mubr.bf16.gmra.mrb[80].mxu0 %v8200_v48  ;;  %v8381_v48 = vrot.slane %v8367_v28, %v696_v19 }
 0x179   : > { %1664 = vmatprep.mubr.bf16.mxu0 %v8202_v51 }
 0x180   : > { %1665 = vmatmul.mubr.bf16.gmra.mrb[84].mxu0 %v8212_v59  ;;  %v8384_v59 = vrot.slane %v8367_v28, %v700_v29 }
 0x181   : > { %1674 = vmatprep.mubr.bf16.mxu0 %v8214_v61 }
 0x188   : > { %1675 = vmatmul.mubr.bf16.gmra.mrb[88].mxu0 %v8224_v5 }
 0x189   : > { %1684 = vmatprep.mubr.bf16.mxu0 %v8226_v6 }
 0x190   : > { %1685 = vmatmul.mubr.bf16.gmra.mrb[92].mxu0 %v8236_v17 }
 0x191   : > { %1694 = vmatprep.mubr.bf16.mxu0 %v8238_v20 }
 0x198   : > { %1695 = vmatmul.mubr.bf16.gmra.mrb[96].mxu0 %v8248_v30 }
 0x199   : > { %1704 = vmatprep.mubr.bf16.mxu0 %v8250_v31 }
 0x1a0   : > { %1705 = vmatmul.mubr.bf16.gmra.mrb[100].mxu0 %v8260_v36 }
 0x1a1   : > { %1714 = vmatprep.mubr.bf16.mxu0 %v8262_v37 }
 0x1a8   : > { %1715 = vmatmul.mubr.bf16.gmra.mrb[104].mxu0 %v8272_v44 }
 0x1a9   : > { %1724 = vmatprep.mubr.bf16.mxu0 %v8274_v45 }
 0x1ab   : > { %v1230_v61 = vpop.f32.mrb[0].mxu0 }
 0x1ac   : > { %v1423_v51 = vpop.f32.mrb[0].mxu1  ;;  %v1231_v6 = vadd.f32 %v1230_v61, %v8372_v38  ;;  %v1232_v17 = vpop.f32.mrb[1].mxu0 }
 0x1ad   : > { %v1425_v5 = vpop.f32.mrb[1].mxu1  ;;  %v8388_v22 = vadd.f32 %v1232_v17, %v8377_v40  ;;  %v1234_v23 = vpop.f32.mrb[2].mxu0  ;;  %v1424_v24 = vadd.f32 %v1423_v51, %v8381_v48 }
 0x1ae   : > { %v1427_v20 = vpop.f32.mrb[2].mxu1  ;;  %v1235_v27 = vadd.f32 %v1234_v23, %v8372_v38  ;;  %v1236_v30 = vpop.f32.mrb[3].mxu0  ;;  %v1426_v31 = vadd.f32 %v1425_v5, %v8384_v59 }
 0x1af   : > { %v1428_v25 = vadd.f32 %v1427_v20, %v8381_v48  ;;  %v1429_v26 = vpop.f32.mrb[3].mxu1  ;;  %v8396_v33 = vadd.f32 %v1236_v30, %v8377_v40 }
 0x1b0   : > { %v1430_v32 = vadd.f32 %v1429_v26, %v8384_v59  ;;  %v1775_v35 = vpack.c.bf16 %v1235_v27, %v1231_v6  ;;  %1725 = vmatmul.mubr.bf16.gmra.mrb[108].mxu0 %v8284_v53 }
 0x1b1   : > { %v1777_v34 = vpack.c.bf16 %v1428_v25, %v1424_v24  ;;  %1734 = vmatprep.mubr.bf16.mxu0 %v8286_v54 }
 0x1b2   : > { %v8399_v36 = vpack.c.bf16 %v1430_v32, %v1426_v31  ;;  %6576 = vmatprep.mubr.bf16.mxu1 %v1775_v35 }
 0x1b3   : > { %6560 = vmatprep.subr.bf16.mxu1 %v1777_v34  ;;  %v1240_v41 = vpop.f32.mrb[4].mxu0 }
 0x1b4   : > { %v1433_v39 = vpop.f32.mrb[4].mxu1  ;;  %6561 = vmatpush3.bf16.xpose.msra.mxu1 %v1777_v34  ;;  %v8405_v43 = vadd.f32 %v1240_v41, %v8372_v38  ;;  %v1242_v44 = vpop.f32.mrb[5].mxu0 }
 0x1b5   : > { %v1435_v42 = vpop.f32.mrb[5].mxu1  ;;  %v8408_v46 = vadd.f32 %v1242_v44, %v8377_v40  ;;  %v1244_v47 = vpop.f32.mrb[6].mxu0  ;;  %v1434_v49 = vadd.f32 %v1433_v39, %v8381_v48 }
 0x1b6   : > { %v1437_v45 = vpop.f32.mrb[6].mxu1  ;;  %v8413_v54 = vadd.f32 %v1244_v47, %v8372_v38  ;;  %v1246_v55 = vpop.f32.mrb[7].mxu0  ;;  %v1436_v56 = vadd.f32 %v1435_v42, %v8384_v59 }
 0x1b7   : > { %v1438_v52 = vadd.f32 %v1437_v45, %v8381_v48  ;;  %v1439_v53 = vpop.f32.mrb[7].mxu1  ;;  %v8418_v58 = vadd.f32 %v1246_v55, %v8377_v40 }
 0x1b8   : > { %v1440_v57 = vadd.f32 %v1439_v53, %v8384_v59  ;;  %v1781_v0 = vpack.c.bf16 %v8413_v54, %v8405_v43  ;;  %1735 = vmatmul.mubr.bf16.gmra.mrb[112].mxu0 %v8296_v60 }
 0x1b9   : > { %v1783_v63 = vpack.c.bf16 %v1438_v52, %v1434_v49  ;;  %1744 = vmatprep.mubr.bf16.mxu0 %v8298_v62 }
 0x1ba   : > { %v8423_v1 = vpack.c.bf16 %v1440_v57, %v1436_v56 }
 0x1bb   : > { %6562 = vmatprep.subr.bf16.mxu1 %v1783_v63  ;;  %v1250_v10 = vpop.f32.mrb[8].mxu0 }
 0x1bc   : > { %v1443_v7 = vpop.f32.mrb[8].mxu1  ;;  %6563 = vmatpush3.bf16.xpose.msra.mxu1 %v1783_v63  ;;  %v8429_v12 = vadd.f32 %v1250_v10, %v8372_v38  ;;  %v1252_v15 = vpop.f32.mrb[9].mxu0 }
 0x1bd   : > { %v1445_v11 = vpop.f32.mrb[9].mxu1  ;;  %v8432_v50 = vadd.f32 %v1252_v15, %v8377_v40  ;;  %v1254_v60 = vpop.f32.mrb[10].mxu0  ;;  %v1444_v19 = vadd.f32 %v1443_v7, %v8381_v48 }
 0x1be   : > { %v1447_v16 = vpop.f32.mrb[10].mxu1  ;;  %v8437_v62 = vadd.f32 %v1254_v60, %v8372_v38  ;;  %v1256_v61 = vpop.f32.mrb[11].mxu0  ;;  %v1446_v5 = vadd.f32 %v1445_v11, %v8384_v59 }
 0x1bf   : > { %v1448_v29 = vadd.f32 %v1447_v16, %v8381_v48  ;;  %v1449_v51 = vpop.f32.mrb[11].mxu1  ;;  %v8442_v17 = vadd.f32 %v1256_v61, %v8377_v40 }
 0x1c0   : > { %v1450_v6 = vadd.f32 %v1449_v51, %v8384_v59  ;;  %v1787_v23 = vpack.c.bf16 %v8437_v62, %v8429_v12  ;;  %1745 = vmatmul.mubr.bf16.gmra.mrb[116].mxu0 %v8308_v3 }
 0x1c1   : > { %v1789_v20 = vpack.c.bf16 %v1448_v29, %v1444_v19  ;;  %1754 = vmatprep.mubr.bf16.mxu0 %v8310_v4 }
 0x1c2   : > { %v8447_v24 = vpack.c.bf16 %v1450_v6, %v1446_v5 }
 0x1c3   : > { %6564 = vmatprep.subr.bf16.mxu1 %v1789_v20  ;;  %v1260_v27 = vpop.f32.mrb[12].mxu0 }
 0x1c4   : > { %v1453_v26 = vpop.f32.mrb[12].mxu1  ;;  %6565 = vmatpush3.bf16.xpose.msra.mxu1 %v1789_v20  ;;  %v8453_v31 = vadd.f32 %v1260_v27, %v8372_v38  ;;  %v1262_v32 = vpop.f32.mrb[13].mxu0 }
 0x1c5   : > { %v1455_v30 = vpop.f32.mrb[13].mxu1  ;;  %v8456_v35 = vadd.f32 %v1262_v32, %v8377_v40  ;;  %v1264_v3 = vpop.f32.mrb[14].mxu0  ;;  %v1454_v39 = vadd.f32 %v1453_v26, %v8381_v48 }
 0x1c6   : > { %v1457_v34 = vpop.f32.mrb[14].mxu1  ;;  %v8461_v4 = vadd.f32 %v1264_v3, %v8372_v38  ;;  %v1266_v44 = vpop.f32.mrb[15].mxu0  ;;  %v1456_v45 = vadd.f32 %v1455_v30, %v8384_v59 }
 0x1c7   : > { %v1458_v41 = vadd.f32 %v1457_v34, %v8381_v48  ;;  %v1459_v42 = vpop.f32.mrb[15].mxu1  ;;  %v8466_v49 = vadd.f32 %v1266_v44, %v8377_v40 }
 0x1c8   : > { %v1460_v47 = vadd.f32 %v1459_v42, %v8384_v59  ;;  %1755 = vmatmul.mubr.bf16.gmra.mrb[120].mxu0 %v8320_v13 }
 0x1c9   : > { %v1795_v52 = vpack.c.bf16 %v1458_v41, %v1454_v39  ;;  %1764 = vmatprep.mubr.bf16.mxu0 %v8322_v14 }
 0x1ca   : > { %v8471_v55 = vpack.c.bf16 %v1460_v47, %v1456_v45 }
 0x1cb   : > { %6566 = vmatprep.subr.bf16.mxu1 %v1795_v52  ;;  %v1270_v63 = vpop.f32.mrb[16].mxu0 }
 0x1cc   : > { %v1463_v57 = vpop.f32.mrb[16].mxu1  ;;  %6567 = vmatpush3.bf16.xpose.msra.mxu1 %v1795_v52  ;;  %v8477_v10 = vadd.f32 %v1270_v63, %v8372_v38  ;;  %v1272_v11 = vpop.f32.mrb[17].mxu0 }
 0x1cd   : > { %v1465_v7 = vpop.f32.mrb[17].mxu1  ;;  %v8480_v16 = vadd.f32 %v1272_v11, %v8377_v40  ;;  %v1274_v13 = vpop.f32.mrb[18].mxu0  ;;  %v1464_v60 = vadd.f32 %v1463_v57, %v8381_v48 }
 0x1ce   : > { %v1467_v15 = vpop.f32.mrb[18].mxu1  ;;  %v8485_v14 = vadd.f32 %v1274_v13, %v8372_v38  ;;  %v1276_v51 = vpop.f32.mrb[19].mxu0  ;;  %v1466_v61 = vadd.f32 %v1465_v7, %v8384_v59 }
 0x1cf   : > { %v1468_v19 = vadd.f32 %v1467_v15, %v8381_v48  ;;  %v1469_v29 = vpop.f32.mrb[19].mxu1  ;;  %v8490_v6 = vadd.f32 %v1276_v51, %v8377_v40 }
 0x1d0   : > { %v1470_v5 = vadd.f32 %v1469_v29, %v8384_v59  ;;  %1765 = vmatmul.mubr.bf16.gmra.mrb[124].mxu0 %v8330_v21 }
 0x1d1   : > { %v1801_v20 = vpack.c.bf16 %v1468_v19, %v1464_v60 }
 0x1d2   : > { %v8495_v27 = vpack.c.bf16 %v1470_v5, %v1466_v61 }
 0x1d3   : > { %6568 = vmatprep.subr.bf16.mxu1 %v1801_v20  ;;  %v1280_v34 = vpop.f32.mrb[20].mxu0 }
 0x1d4   : > { %v1473_v32 = vpop.f32.mrb[20].mxu1  ;;  %6569 = vmatpush3.bf16.xpose.msra.mxu1 %v1801_v20  ;;  %v8500_v39 = vadd.f32 %v1280_v34, %v8372_v38  ;;  %v1282_v41 = vpop.f32.mrb[21].mxu0 }
 0x1d5   : > { %v1475_v3 = vpop.f32.mrb[21].mxu1  ;;  %v8503_v44 = vadd.f32 %v1282_v41, %v8377_v40  ;;  %v1284_v45 = vpop.f32.mrb[22].mxu0  ;;  %v1474_v21 = vadd.f32 %v1473_v32, %v8381_v48 }
 0x1d6   : > { %v1477_v42 = vpop.f32.mrb[22].mxu1  ;;  %v8508_v57 = vadd.f32 %v1284_v45, %v8372_v38  ;;  %v1286_v63 = vpop.f32.mrb[23].mxu0  ;;  %v1476_v7 = vadd.f32 %v1475_v3, %v8384_v59 }
 0x1d7   : > { %v1478_v47 = vadd.f32 %v1477_v42, %v8381_v48  ;;  %v1479_v52 = vpop.f32.mrb[23].mxu1  ;;  %v8513_v15 = vadd.f32 %v1286_v63, %v8377_v40 }
 0x1d8   : > { %v1480_v11 = vadd.f32 %v1479_v52, %v8384_v59 }
 0x1d9   : > { %v1807_v13 = vpack.c.bf16 %v1478_v47, %v1474_v21 }
 0x1da   : > { %v8517_v19 = vpack.c.bf16 %v1480_v11, %v1476_v7 }
 0x1db   : > { %6570 = vmatprep.subr.bf16.mxu1 %v1807_v13  ;;  %v1290_v61 = vpop.f32.mrb[24].mxu0 }
 0x1dc   : > { %v1483_v51 = vpop.f32.mrb[24].mxu1  ;;  %6571 = vmatpush3.bf16.xpose.msra.mxu1 %v1807_v13  ;;  %v8522_v20 = vadd.f32 %v1290_v61, %v8372_v38  ;;  %v1292_v32 = vpop.f32.mrb[25].mxu0 }
 0x1dd   : > { %v1485_v5 = vpop.f32.mrb[25].mxu1  ;;  %v8525_v3 = vadd.f32 %v1292_v32, %v8377_v40  ;;  %v1294_v41 = vpop.f32.mrb[26].mxu0  ;;  %v1484_v42 = vadd.f32 %v1483_v51, %v8381_v48 }
 0x1de   : > { %v1487_v34 = vpop.f32.mrb[26].mxu1  ;;  %v8530_v47 = vadd.f32 %v1294_v41, %v8372_v38  ;;  %v1296_v52 = vpop.f32.mrb[27].mxu0  ;;  %v1486_v63 = vadd.f32 %v1485_v5, %v8384_v59 }
 0x1df   : > { %v1488_v45 = vadd.f32 %v1487_v34, %v8381_v48  ;;  %v1489_v21 = vpop.f32.mrb[27].mxu1  ;;  %v8535_v11 = vadd.f32 %v1296_v52, %v8377_v40 }
 0x1e0   : > { %v1490_v7 = vadd.f32 %v1489_v21, %v8384_v59 }
 0x1e1   : > { %v1813_v13 = vpack.c.bf16 %v1488_v45, %v1484_v42 }
 0x1e2   : > { %v8539_v32 = vpack.c.bf16 %v1490_v7, %v1486_v63 }
 0x1e3   : > { %6572 = vmatprep.subr.bf16.mxu1 %v1813_v13  ;;  %v1300_v41 = vpop.f32.mrb[28].mxu0 }
 0x1e4   : > { %v1493_v34 = vpop.f32.mrb[28].mxu1  ;;  %6573 = vmatpush3.bf16.xpose.msra.mxu1 %v1813_v13  ;;  %v8544_v5 = vadd.f32 %v1300_v41, %v8372_v38  ;;  %v1302_v21 = vpop.f32.mrb[29].mxu0 }
 0x1e5   : > { %v1495_v29 = vpop.f32.mrb[29].mxu1  ;;  %v8547_v42 = vadd.f32 %v1302_v21, %v8377_v40  ;;  %v1304_v45 = vpop.f32.mrb[30].mxu0  ;;  %v1494_v63 = vadd.f32 %v1493_v34, %v8381_v48 }
 0x1e6   : > { %v1497_v52 = vpop.f32.mrb[30].mxu1  ;;  %v8552_v51 = vadd.f32 %v1304_v45, %v8372_v38  ;;  %v1306_v13 = vpop.f32.mrb[31].mxu0  ;;  %v1496_v56 = vadd.f32 %v1495_v29, %v8384_v59 }
 0x1e7   : > { %v1498_v7 = vadd.f32 %v1497_v52, %v8381_v48  ;;  %v1499_v30 = vpop.f32.mrb[31].mxu1  ;;  %v8557_v25 = vadd.f32 %v1306_v13, %v8377_v40 }
 0x1e8   : > { %v1500_v41 = vadd.f32 %v1499_v30, %v8384_v59 }
 0x1e9   : > { %v1819_v2 = vpack.c.bf16 %v1498_v7, %v1494_v63 }
 0x1ea   : > { %v8561_v37 = vpack.c.bf16 %v1500_v41, %v1496_v56 }
 0x1eb   : > { %6574 = vmatprep.subr.bf16.mxu1 %v1819_v2  ;;  %v1310_v52 = vpop.f32.mrb[32].mxu0 }
 0x1ec   : > { %6575 = vmatpush3.bf16.xpose.msra.mxu1 %v1819_v2  ;;  %v8566_v45 = vadd.f32 %v1310_v52, %v8372_v38  ;;  %v1312_v29 = vpop.f32.mrb[33].mxu0  ;;  %v1503_v30 = vpop.f32.mrb[32].mxu1 }
 0x1ed   : > { %v8569_v13 = vadd.f32 %v1312_v29, %v8377_v40  ;;  %v1314_v63 = vpop.f32.mrb[34].mxu0  ;;  %v1504_v7 = vadd.f32 %v1503_v30, %v8381_v48  ;;  %v1505_v21 = vpop.f32.mrb[33].mxu1 }
 0x1ee   : > { %12149 = vst [vmem:[#allocation23_spill] sm:$0xff] %v8566_v45  ;;  %v8573_v56 = vadd.f32 %v1314_v63, %v8372_v38  ;;  %v1316_v41 = vpop.f32.mrb[35].mxu0  ;;  %v1506_v34 = vadd.f32 %v1505_v21, %v8384_v59  ;;  %v1507_v2 = vpop.f32.mrb[34].mxu1 }
 0x1ef   : > { %12150 = vst [vmem:[#allocation24_spill] sm:$0xff] %v8569_v13  ;;  %v8577_v61 = vadd.f32 %v1316_v41, %v8377_v40  ;;  %v1508_v52 = vadd.f32 %v1507_v2, %v8381_v48  ;;  %v1509_v60 = vpop.f32.mrb[35].mxu1 }
 0x1f0   : > { %v1510_v26 = vadd.f32 %v1509_v60, %v8384_v59 }
 0x1f1   : > { %12151 = vst [vmem:[#allocation25_spill] sm:$0xff] %v8577_v61  ;;  %v8585_v63 = vpack.c.bf16 %v1508_v52, %v1504_v7 }
 0x1f2   : > { %v8590_v21 = vpack.c.bf16 %v1510_v26, %v1506_v34 }
 0x1f3   : > { %6577 = vmatmul.mubr.bf16.vlgmr.msra.gmra.mrb[64].mxu1 %v1781_v0  ;;  %v1320_v41 = vpop.f32.mrb[36].mxu0 }
 0x1f4   : > { %12152 = vst [vmem:[#allocation26_spill] sm:$0xff] %v8590_v21  ;;  %6580 = vmatprep.mubr.bf16.mxu1 %v1787_v23  ;;  %v1513_v2 = vpop.f32.mrb[36].mxu1  ;;  %v8596_v29 = vadd.f32 %v1320_v41, %v8372_v38  ;;  %v1322_v60 = vpop.f32.mrb[37].mxu0 }
 0x1f5   : > { %v1514_v30 = vadd.f32 %v1513_v2, %v8381_v48  ;;  %v1515_v7 = vpop.f32.mrb[37].mxu1  ;;  %v8600_v52 = vadd.f32 %v1322_v60, %v8377_v40  ;;  %v1324_v43 = vpop.f32.mrb[38].mxu0 }
 0x1f6   : > { %12153 = vst [vmem:[#allocation27_spill] sm:$0xff] %v8596_v29  ;;  %v1516_v54 = vadd.f32 %v1515_v7, %v8384_v59  ;;  %v1517_v0 = vpop.f32.mrb[38].mxu1  ;;  %v8604_v26 = vadd.f32 %v1324_v43, %v8372_v38  ;;  %v1326_v12 = vpop.f32.mrb[39].mxu0  ;;  %v12158_v43 = vpack.c.bf16 %v8461_v4, %v8453_v31 }
 0x1f7   : > { %12154 = vst [vmem:[#allocation28_spill] sm:$0xff] %v8600_v52  ;;  %v1518_v62 = vadd.f32 %v1517_v0, %v8381_v48  ;;  %v1519_v23 = vpop.f32.mrb[39].mxu1  ;;  %v8608_v34 = vadd.f32 %v1326_v12, %v8377_v40  ;;  %v12159_v0 = vpack.c.bf16 %v8485_v14, %v8477_v10 }
 0x1f8   : > { %12155 = vst [vmem:[#allocation29_spill] sm:$0xff] %v8604_v26  ;;  %v1520_v41 = vadd.f32 %v1519_v23, %v8384_v59 }
 0x1f9   : > { %12156 = vst [vmem:[#allocation30_spill] sm:$0xff] %v8608_v34  ;;  %v8613_v60 = vpack.c.bf16 %v1518_v62, %v1514_v30 }
 0x1fa   : > { %v8617_v53 = vpack.c.bf16 %v1520_v41, %v1516_v54 }
 0x1fb   : > { %6581 = vmatmul.mubr.bf16.gmra.mrb[68].mxu1 %v12158_v43  ;;  %v1330_v12 = vpop.f32.mrb[40].mxu0 }
 0x1fc   : > { %12157 = vst [vmem:[#allocation31_spill] sm:$0xff] %v8617_v53  ;;  %6584 = vmatprep.mubr.bf16.mxu1 %v12159_v0  ;;  %v1523_v23 = vpop.f32.mrb[40].mxu1  ;;  %v8626_v18 = vadd.f32 %v1330_v12, %v8372_v38  ;;  %v1332_v30 = vpop.f32.mrb[41].mxu0 }
 0x1fd   : > { %v1524_v62 = vadd.f32 %v1523_v23, %v8381_v48  ;;  %v1525_v2 = vpop.f32.mrb[41].mxu1  ;;  %v8630_v54 = vadd.f32 %v1332_v30, %v8377_v40  ;;  %v1334_v41 = vpop.f32.mrb[42].mxu0 }
 0x1fe   : > { %12160 = vst [vmem:[#allocation32_spill] sm:$0xff] %v8626_v18  ;;  %v1526_v31 = vadd.f32 %v1525_v2, %v8384_v59  ;;  %v1527_v4 = vpop.f32.mrb[42].mxu1  ;;  %v8634_v43 = vadd.f32 %v1334_v41, %v8372_v38  ;;  %v1336_v10 = vpop.f32.mrb[43].mxu0  ;;  %v12165_v41 = vpack.c.bf16 %v8508_v57, %v8500_v39 }
 0x1ff   : > { %12161 = vst [vmem:[#allocation33_spill] sm:$0xff] %v8630_v54  ;;  %v1528_v14 = vadd.f32 %v1527_v4, %v8381_v48  ;;  %v1529_v0 = vpop.f32.mrb[43].mxu1  ;;  %v8638_v12 = vadd.f32 %v1336_v10, %v8377_v40  ;;  %v12166_v4 = vpack.c.bf16 %v8530_v47, %v8522_v20 }
 0x200   : > { %12162 = vst [vmem:[#allocation34_spill] sm:$0xff] %v8634_v43  ;;  %v1530_v23 = vadd.f32 %v1529_v0, %v8384_v59 }
 0x201   : > { %12163 = vst [vmem:[#allocation35_spill] sm:$0xff] %v8638_v12  ;;  %v8643_v7 = vpack.c.bf16 %v1528_v14, %v1524_v62 }
 0x202   : > { %v8647_v9 = vpack.c.bf16 %v1530_v23, %v1526_v31 }
 0x203   : > { %6585 = vmatmul.mubr.bf16.gmra.mrb[72].mxu1 %v12165_v41  ;;  %v1340_v10 = vpop.f32.mrb[44].mxu0 }
 0x204   : > { %12164 = vst [vmem:[#allocation36_spill] sm:$0xff] %v8647_v9  ;;  %6588 = vmatprep.mubr.bf16.mxu1 %v12166_v4  ;;  %v1533_v0 = vpop.f32.mrb[44].mxu1  ;;  %v8656_v52 = vadd.f32 %v1340_v10, %v8372_v38  ;;  %v1342_v62 = vpop.f32.mrb[45].mxu0 }
 0x205   : > { %v1534_v14 = vadd.f32 %v1533_v0, %v8381_v48  ;;  %v1535_v30 = vpop.f32.mrb[45].mxu1  ;;  %v8660_v31 = vadd.f32 %v1342_v62, %v8377_v40  ;;  %v1344_v23 = vpop.f32.mrb[46].mxu0 }
 0x206   : > { %12167 = vst [vmem:[#allocation37_spill] sm:$0xff] %v8656_v52  ;;  %v1536_v39 = vadd.f32 %v1535_v30, %v8384_v59  ;;  %v1537_v57 = vpop.f32.mrb[46].mxu1  ;;  %v8664_v41 = vadd.f32 %v1344_v23, %v8372_v38  ;;  %v1346_v20 = vpop.f32.mrb[47].mxu0  ;;  %v12172_v23 = vpack.c.bf16 %v8552_v51, %v8544_v5 }
 0x207   : > { %12168 = vst [vmem:[#allocation38_spill] sm:$0xff] %v8660_v31  ;;  %v1538_v47 = vadd.f32 %v1537_v57, %v8381_v48  ;;  %v1539_v4 = vpop.f32.mrb[47].mxu1  ;;  %v8668_v10 = vadd.f32 %v1346_v20, %v8377_v40 }
 0x208   : > { %12169 = vst [vmem:[#allocation39_spill] sm:$0xff] %v8664_v41  ;;  %v1540_v0 = vadd.f32 %v1539_v4, %v8384_v59 }
 0x209   : > { %12170 = vst [vmem:[#allocation40_spill] sm:$0xff] %v8668_v10  ;;  %v8673_v2 = vpack.c.bf16 %v1538_v47, %v1534_v14 }
 0x20a   : > { %v8677_v54 = vpack.c.bf16 %v1540_v0, %v1536_v39 }
 0x20b   : > { %6589 = vmatmul.mubr.bf16.gmra.mrb[76].mxu1 %v12172_v23  ;;  %v1350_v57 = vpop.f32.mrb[48].mxu0 }
 0x20c   : > { %12171 = vst [vmem:[#allocation41_spill] sm:$0xff] %v8677_v54  ;;  %v1543_v12 = vpop.f32.mrb[48].mxu1  ;;  %v8683_v20 = vadd.f32 %v1350_v57, %v8372_v38  ;;  %v1352_v4 = vpop.f32.mrb[49].mxu0 }
 0x20d   : > { %v1544_v34 = vadd.f32 %v1543_v12, %v8381_v48  ;;  %v1545_v62 = vpop.f32.mrb[49].mxu1  ;;  %v8687_v14 = vadd.f32 %v1352_v4, %v8377_v40  ;;  %v1354_v47 = vpop.f32.mrb[50].mxu0 }
 0x20e   : > { %12173 = vst [vmem:[#allocation42_spill] sm:$0xff] %v8683_v20  ;;  %v1546_v39 = vadd.f32 %v1545_v62, %v8384_v59  ;;  %v1547_v0 = vpop.f32.mrb[50].mxu1  ;;  %v8691_v30 = vadd.f32 %v1354_v47, %v8372_v38  ;;  %v1356_v51 = vpop.f32.mrb[51].mxu0 }
 0x20f   : > { %12174 = vst [vmem:[#allocation43_spill] sm:$0xff] %v8687_v14  ;;  %v1548_v5 = vadd.f32 %v1547_v0, %v8381_v48  ;;  %v1549_v23 = vpop.f32.mrb[51].mxu1  ;;  %v8695_v57 = vadd.f32 %v1356_v51, %v8377_v40 }
 0x210   : > { %12175 = vst [vmem:[#allocation44_spill] sm:$0xff] %v8691_v30  ;;  %v1550_v12 = vadd.f32 %v1549_v23, %v8384_v59 }
 0x211   : > { %12176 = vst [vmem:[#allocation45_spill] sm:$0xff] %v8695_v57  ;;  %v8700_v31 = vpack.c.bf16 %v1548_v5, %v1544_v34 }
 0x212   : > { %v8704_v10 = vpack.c.bf16 %v1550_v12, %v1546_v39 }
 0x213   : > { %12177 = vst [vmem:[#allocation46_spill] sm:$0xff] %v8700_v31  ;;  %v1360_v47 = vpop.f32.mrb[52].mxu0 }
 0x214   : > { %12178 = vst [vmem:[#allocation47_spill] sm:$0xff] %v8704_v10  ;;  %v1553_v13 = vpop.f32.mrb[52].mxu1  ;;  %v8707_v0 = vadd.f32 %v1360_v47, %v8372_v38  ;;  %v1362_v61 = vpop.f32.mrb[53].mxu0 }
 0x215   : > { %v1554_v51 = vadd.f32 %v1553_v13, %v8381_v48  ;;  %v1555_v54 = vpop.f32.mrb[53].mxu1  ;;  %v8711_v23 = vadd.f32 %v1362_v61, %v8377_v40  ;;  %v1364_v4 = vpop.f32.mrb[54].mxu0 }
 0x216   : > { %12179 = vst [vmem:[#allocation48_spill] sm:$0xff] %v8707_v0  ;;  %v1556_v34 = vadd.f32 %v1555_v54, %v8384_v59  ;;  %v1557_v5 = vpop.f32.mrb[54].mxu1  ;;  %v8715_v62 = vadd.f32 %v1364_v4, %v8372_v38  ;;  %v1366_v39 = vpop.f32.mrb[55].mxu0 }
 0x217   : > { %12180 = vst [vmem:[#allocation49_spill] sm:$0xff] %v8711_v23  ;;  %v1558_v12 = vadd.f32 %v1557_v5, %v8381_v48  ;;  %v1559_v14 = vpop.f32.mrb[55].mxu1  ;;  %v8719_v47 = vadd.f32 %v1366_v39, %v8377_v40 }
 0x218   : > { %12181 = vst [vmem:[#allocation50_spill] sm:$0xff] %v8715_v62  ;;  %v1560_v13 = vadd.f32 %v1559_v14, %v8384_v59 }
 0x219   : > { %12182 = vst [vmem:[#allocation51_spill] sm:$0xff] %v8719_v47  ;;  %v8724_v57 = vpack.c.bf16 %v1558_v12, %v1554_v51 }
 0x21a   : > { %v8728_v10 = vpack.c.bf16 %v1560_v13, %v1556_v34 }
 0x21b   : > { %12183 = vst [vmem:[#allocation52_spill] sm:$0xff] %v8724_v57  ;;  %v1370_v4 = vpop.f32.mrb[56].mxu0 }
 0x21c   : > { %12184 = vst [vmem:[#allocation53_spill] sm:$0xff] %v8728_v10  ;;  %v1563_v9 = vpop.f32.mrb[56].mxu1  ;;  %v8731_v5 = vadd.f32 %v1370_v4, %v8372_v38  ;;  %v1372_v53 = vpop.f32.mrb[57].mxu0 }
 0x21d   : > { %v1564_v39 = vadd.f32 %v1563_v9, %v8381_v48  ;;  %v1565_v21 = vpop.f32.mrb[57].mxu1  ;;  %v8735_v14 = vadd.f32 %v1372_v53, %v8377_v40  ;;  %v1374_v61 = vpop.f32.mrb[58].mxu0 }
 0x21e   : > { %12185 = vst [vmem:[#allocation54_spill] sm:$0xff] %v8731_v5  ;;  %v1566_v51 = vadd.f32 %v1565_v21, %v8384_v59  ;;  %v1567_v12 = vpop.f32.mrb[58].mxu1  ;;  %v8739_v54 = vadd.f32 %v1374_v61, %v8372_v38  ;;  %v1376_v34 = vpop.f32.mrb[59].mxu0 }
 0x21f   : > { %12186 = vst [vmem:[#allocation55_spill] sm:$0xff] %v8735_v14  ;;  %v1568_v13 = vadd.f32 %v1567_v12, %v8381_v48  ;;  %v1569_v23 = vpop.f32.mrb[59].mxu1  ;;  %v8743_v4 = vadd.f32 %v1376_v34, %v8377_v40  ;;  %v704_v34 = vsub.s32 4, %v8355_v8 }
 0x220   : > { %12187 = vst [vmem:[#allocation56_spill] sm:$0xff] %v8739_v54  ;;  %v1570_v9 = vadd.f32 %v1569_v23, %v8384_v59 }
 0x221   : > { %12188 = vst [vmem:[#allocation57_spill] sm:$0xff] %v8743_v4  ;;  %v8748_v47 = vpack.c.bf16 %v1568_v13, %v1564_v39  ;;  %v708_v13 = vsub.s32 5, %v8355_v8  ;;  %v8775_v8 = vrot.slane %v8367_v28, %v704_v34 }
 0x222   : > { %v8752_v10 = vpack.c.bf16 %v1570_v9, %v1566_v51 }
 0x223   : > { %12189 = vst [vmem:[#allocation58_spill] sm:$0xff] %v8748_v47  ;;  %v1380_v61 = vpop.f32.mrb[60].mxu0  ;;  %12195 = vst [vmem:[#allocation64_spill] sm:$0xff] %v8775_v8 }
 0x224   : > { %12190 = vst [vmem:[#allocation59_spill] sm:$0xff] %v8752_v10  ;;  %v1573_v0 = vpop.f32.mrb[60].mxu1  ;;  %v8755_v12 = vadd.f32 %v1380_v61, %v8372_v38  ;;  %v1382_v62 = vpop.f32.mrb[61].mxu0 }
 0x225   : > { %v1574_v23 = vadd.f32 %v1573_v0, %v8381_v48  ;;  %v1575_v20 = vpop.f32.mrb[61].mxu1  ;;  %v8760_v53 = vadd.f32 %v1382_v62, %v8377_v40  ;;  %v1384_v39 = vpop.f32.mrb[62].mxu0 }
 0x226   : > { %12191 = vst [vmem:[#allocation60_spill] sm:$0xff] %v8755_v12  ;;  %v1576_v51 = vadd.f32 %v1575_v20, %v8384_v59  ;;  %v1577_v9 = vpop.f32.mrb[62].mxu1  ;;  %v8765_v21 = vadd.f32 %v1384_v39, %v8372_v38  ;;  %v1386_v61 = vpop.f32.mrb[63].mxu0  ;;  %v8782_v39 = vrot.slane %v8367_v28, %v708_v13 }
 0x227   : > { %12192 = vst [vmem:[#allocation61_spill] sm:$0xff] %v8760_v53  ;;  %v1578_v14 = vadd.f32 %v1577_v9, %v8381_v48  ;;  %v1579_v4 = vpop.f32.mrb[63].mxu1  ;;  %v8769_v10 = vadd.f32 %v1386_v61, %v8377_v40 }
 0x228   : > { %12193 = vst [vmem:[#allocation62_spill] sm:$0xff] %v8765_v21  ;;  %v1580_v0 = vadd.f32 %v1579_v4, %v8384_v59 }
 0x229   : > { %12194 = vst [vmem:[#allocation63_spill] sm:$0xff] %v8769_v10  ;;  %v8777_v20 = vpack.c.bf16 %v1578_v14, %v1574_v23 }
 0x22a   : > { %v8784_v48 = vpack.c.bf16 %v1580_v0, %v1576_v51 }
 0x22b   : > { %12196 = vst [vmem:[#allocation65_spill] sm:$0xff] %v8777_v20  ;;  %v1616_v40 = vpop.f32.mrb[64].mxu0 }
 0x22c   : > { %12197 = vst [vmem:[#allocation66_spill] sm:$0xff] %v8784_v48  ;;  %v1617_v9 = vadd.f32 %v1616_v40, %v8775_v8  ;;  %v1618_v59 = vpop.f32.mrb[65].mxu0 }
 0x22d   : > { %v1619_v4 = vadd.f32 %v1618_v59, %v8782_v39  ;;  %v1620_v61 = vpop.f32.mrb[66].mxu0 }
 0x22e   : > { %v1621_v34 = vadd.f32 %v1620_v61, %v8775_v8  ;;  %v1622_v62 = vpop.f32.mrb[67].mxu0 }
 0x22f   : > { %v1623_v14 = vadd.f32 %v1622_v62, %v8782_v39 }
 0x230   : > { %v1779_v23 = vpack.c.bf16 %v1621_v34, %v1617_v9 }
 0x231   : > { %v1780_v12 = vpack.c.bf16 %v1623_v14, %v1619_v4 }
 0x232   : > { %6592 = vmatprep.subr.bf16.mxu1 %v1779_v23 }
 0x233   : > { %v1626_v38 = vpop.f32.mrb[68].mxu0  ;;  %6593 = vmatpush3.bf16.msra.mxu1 %v1779_v23  ;;  %6656 = vmatprep.subr.bf16.mxu0 %v1780_v12 }
 0x234   : > { %v1627_v28 = vadd.f32 %v1626_v38, %v8775_v8  ;;  %v1628_v13 = vpop.f32.mrb[69].mxu0  ;;  %6657 = vmatpush3.bf16.msra.mxu0 %v1780_v12 }
 0x235   : > { %v1629_v51 = vadd.f32 %v1628_v13, %v8782_v39  ;;  %v1630_v0 = vpop.f32.mrb[70].mxu0 }
 0x236   : > { %v1631_v40 = vadd.f32 %v1630_v0, %v8775_v8  ;;  %v1632_v59 = vpop.f32.mrb[71].mxu0 }
 0x237   : > { %v1633_v61 = vadd.f32 %v1632_v59, %v8782_v39 }
 0x238   : > { %v1785_v53 = vpack.c.bf16 %v1631_v40, %v1627_v28 }
 0x239   : > { %v1786_v62 = vpack.c.bf16 %v1633_v61, %v1629_v51 }
 0x23a   : > { %6594 = vmatprep.subr.bf16.mxu1 %v1785_v53 }
 0x23b   : > { %v1636_v9 = vpop.f32.mrb[72].mxu0  ;;  %6595 = vmatpush3.bf16.msra.mxu1 %v1785_v53  ;;  %6658 = vmatprep.subr.bf16.mxu0 %v1786_v62 }
 0x23c   : > { %v1637_v4 = vadd.f32 %v1636_v9, %v8775_v8  ;;  %v1638_v34 = vpop.f32.mrb[73].mxu0  ;;  %6659 = vmatpush3.bf16.msra.mxu0 %v1786_v62 }
 0x23d   : > { %v1639_v12 = vadd.f32 %v1638_v34, %v8782_v39  ;;  %v1640_v38 = vpop.f32.mrb[74].mxu0 }
 0x23e   : > { %v1641_v14 = vadd.f32 %v1640_v38, %v8775_v8  ;;  %v1642_v23 = vpop.f32.mrb[75].mxu0 }
 0x23f   : > { %v1643_v13 = vadd.f32 %v1642_v23, %v8782_v39 }
 0x240   : > { %v1791_v0 = vpack.c.bf16 %v1641_v14, %v1637_v4 }
 0x241   : > { %v1792_v59 = vpack.c.bf16 %v1643_v13, %v1639_v12 }
 0x242   : > { %6596 = vmatprep.subr.bf16.mxu1 %v1791_v0 }
 0x243   : > { %v1646_v28 = vpop.f32.mrb[76].mxu0  ;;  %6597 = vmatpush3.bf16.msra.mxu1 %v1791_v0  ;;  %6660 = vmatprep.subr.bf16.mxu0 %v1792_v59 }
 0x244   : > { %v1647_v53 = vadd.f32 %v1646_v28, %v8775_v8  ;;  %v1648_v51 = vpop.f32.mrb[77].mxu0  ;;  %6661 = vmatpush3.bf16.msra.mxu0 %v1792_v59 }
 0x245   : > { %v1649_v40 = vadd.f32 %v1648_v51, %v8782_v39  ;;  %v1650_v61 = vpop.f32.mrb[78].mxu0 }
 0x246   : > { %v1651_v62 = vadd.f32 %v1650_v61, %v8775_v8  ;;  %v1652_v9 = vpop.f32.mrb[79].mxu0 }
 0x247   : > { %v1653_v34 = vadd.f32 %v1652_v9, %v8782_v39 }
 0x248   : > { %v1797_v38 = vpack.c.bf16 %v1651_v62, %v1647_v53 }
 0x249   : > { %v1798_v23 = vpack.c.bf16 %v1653_v34, %v1649_v40 }
 0x24a   : > { %6598 = vmatprep.subr.bf16.mxu1 %v1797_v38 }
 0x24b   : > { %v1656_v4 = vpop.f32.mrb[80].mxu0  ;;  %6599 = vmatpush3.bf16.msra.mxu1 %v1797_v38  ;;  %6662 = vmatprep.subr.bf16.mxu0 %v1798_v23 }
 0x24c   : > { %v1657_v12 = vadd.f32 %v1656_v4, %v8775_v8  ;;  %v1658_v14 = vpop.f32.mrb[81].mxu0  ;;  %6663 = vmatpush3.bf16.msra.mxu0 %v1798_v23 }
 0x24d   : > { %v1659_v13 = vadd.f32 %v1658_v14, %v8782_v39  ;;  %v1660_v0 = vpop.f32.mrb[82].mxu0 }
 0x24e   : > { %v1661_v59 = vadd.f32 %v1660_v0, %v8775_v8  ;;  %v1662_v28 = vpop.f32.mrb[83].mxu0 }
 0x24f   : > { %v1663_v51 = vadd.f32 %v1662_v28, %v8782_v39 }
 0x250   : > { %v1803_v61 = vpack.c.bf16 %v1661_v59, %v1657_v12 }
 0x251   : > { %v1804_v9 = vpack.c.bf16 %v1663_v51, %v1659_v13 }
 0x252   : > { %6600 = vmatprep.subr.bf16.mxu1 %v1803_v61 }
 0x253   : > { %v1666_v53 = vpop.f32.mrb[84].mxu0  ;;  %6601 = vmatpush3.bf16.msra.mxu1 %v1803_v61  ;;  %6664 = vmatprep.subr.bf16.mxu0 %v1804_v9 }
 0x254   : > { %v1667_v40 = vadd.f32 %v1666_v53, %v8775_v8  ;;  %v1668_v62 = vpop.f32.mrb[85].mxu0  ;;  %6665 = vmatpush3.bf16.msra.mxu0 %v1804_v9 }
 0x255   : > { %v1669_v34 = vadd.f32 %v1668_v62, %v8782_v39  ;;  %v1670_v38 = vpop.f32.mrb[86].mxu0 }
 0x256   : > { %v1671_v23 = vadd.f32 %v1670_v38, %v8775_v8  ;;  %v1672_v4 = vpop.f32.mrb[87].mxu0 }
 0x257   : > { %v1673_v14 = vadd.f32 %v1672_v4, %v8782_v39 }
 0x258   : > { %v1809_v0 = vpack.c.bf16 %v1671_v23, %v1667_v40 }
 0x259   : > { %v1810_v28 = vpack.c.bf16 %v1673_v14, %v1669_v34 }
 0x25a   : > { %6602 = vmatprep.subr.bf16.mxu1 %v1809_v0 }
 0x25b   : > { %v1676_v12 = vpop.f32.mrb[88].mxu0  ;;  %6603 = vmatpush3.bf16.msra.mxu1 %v1809_v0  ;;  %6666 = vmatprep.subr.bf16.mxu0 %v1810_v28 }
 0x25c   : > { %v1677_v13 = vadd.f32 %v1676_v12, %v8775_v8  ;;  %v1678_v59 = vpop.f32.mrb[89].mxu0  ;;  %6667 = vmatpush3.bf16.msra.mxu0 %v1810_v28 }
 0x25d   : > { %v1679_v51 = vadd.f32 %v1678_v59, %v8782_v39  ;;  %v1680_v61 = vpop.f32.mrb[90].mxu0 }
 0x25e   : > { %v1681_v9 = vadd.f32 %v1680_v61, %v8775_v8  ;;  %v1682_v53 = vpop.f32.mrb[91].mxu0 }
 0x25f   : > { %v1683_v62 = vadd.f32 %v1682_v53, %v8782_v39 }
 0x260   : > { %v1815_v38 = vpack.c.bf16 %v1681_v9, %v1677_v13 }
 0x261   : > { %v1816_v4 = vpack.c.bf16 %v1683_v62, %v1679_v51 }
 0x262   : > { %6604 = vmatprep.subr.bf16.mxu1 %v1815_v38 }
 0x263   : > { %v1686_v40 = vpop.f32.mrb[92].mxu0  ;;  %6605 = vmatpush3.bf16.msra.mxu1 %v1815_v38  ;;  %6668 = vmatprep.subr.bf16.mxu0 %v1816_v4 }
 0x264   : > { %v1687_v34 = vadd.f32 %v1686_v40, %v8775_v8  ;;  %v8815_v23 = vpop.f32.mrb[93].mxu0  ;;  %6669 = vmatpush3.bf16.msra.mxu0 %v1816_v4 }
 0x265   : > { %v1690_v14 = vpop.f32.mrb[94].mxu0 }
 0x266   : > { %v1691_v0 = vadd.f32 %v1690_v14, %v8775_v8 }
 0x268   : > { %v1821_v28 = vpack.c.bf16 %v1691_v0, %v1687_v34 }
 0x26a   : > { %6606 = vmatprep.subr.bf16.mxu1 %v1821_v28 }
 0x26b   : > { %6607 = vmatpush3.bf16.msra.mxu1 %v1821_v28 }
 0x26c   : > { %6624 = vmatprep.subr.bf16.mxu1 %v8399_v36 }
 0x2c6   : > { %v6578_v12 = vpop.f32.mrb[64].mxu1 }
 0x2c7   : > { %v1970_v13 = vmul.f32 0.088388346, %v6578_v12  ;;  %v1905_v59 = vpop.f32.mrb[65].mxu1 }
 0x2c8   : > { %v1968_v51 = vmul.f32 0.088388346, %v1905_v59  ;;  %v6579_v61 = vpop.f32.mrb[66].mxu1 }
 0x2c9   : > { %1988 = vmax.xlane.f32.xlu1 %v1970_v13  ;;  %v1908_v9 = vpop.f32.mrb[67].mxu1  ;;  %v1971_v53 = vmul.f32 0.088388346, %v6579_v61 }
 0x2ca   : > { %1984 = vmax.xlane.f32.xlu0 %v1968_v51  ;;  %v1969_v62 = vmul.f32 0.088388346, %v1908_v9 }
 0x2cd   : > { %1990 = vmax.xlane.f32.xlu1 %v1971_v53 }
 0x2ce   : > { %1986 = vmax.xlane.f32.xlu0 %v1969_v62  ;;  %v6582_v38 = vpop.f32.mrb[68].mxu1 }
 0x2cf   : > { %v1921_v4 = vpop.f32.mrb[69].mxu1  ;;  %v1974_v0 = vmul.f32 0.088388346, %v6582_v38 }
 0x2d0   : > { %v1972_v40 = vmul.f32 0.088388346, %v1921_v4  ;;  %v6583_v34 = vpop.f32.mrb[70].mxu1 }
 0x2d1   : > { %v1924_v14 = vpop.f32.mrb[71].mxu1  ;;  %v1975_v10 = vmul.f32 0.088388346, %v6583_v34 }
 0x2d2   : > { %v1973_v28 = vmul.f32 0.088388346, %v1924_v14  ;;  %1992 = vmax.xlane.f32.xlu0 %v1972_v40 }
 0x2d4   : > { %1994 = vmax.xlane.f32.xlu1 %v1973_v28 }
 0x2d6   : > { %1996 = vmax.xlane.f32.xlu0 %v1974_v0  ;;  %v6586_v12 = vpop.f32.mrb[72].mxu1 }
 0x2d7   : > { %v1937_v59 = vpop.f32.mrb[73].mxu1  ;;  %v8819_v9 = vmul.f32 0.088388346, %v6586_v12 }
 0x2d8   : > { %v1976_v48 = vmul.f32 0.088388346, %v1937_v59  ;;  %1998 = vmax.xlane.f32.xlu1 %v1975_v10  ;;  %v6587_v8 = vpop.f32.mrb[74].mxu1 }
 0x2d9   : > { %v1940_v61 = vpop.f32.mrb[75].mxu1  ;;  %v8823_v4 = vmul.f32 0.088388346, %v6587_v8 }
 0x2da   : > { %v8821_v21 = vmul.f32 0.088388346, %v1940_v61  ;;  %2000 = vmax.xlane.f32.xlu0 %v1976_v48 }
 0x2dc   : > { %2002 = vmax.xlane.f32.xlu1 %v8821_v21 }
 0x2de   : > { %2004 = vmax.xlane.f32.xlu0 %v8819_v9  ;;  %v6590_v38 = vpop.f32.mrb[76].mxu1 }
 0x2df   : > { %v1953_v34 = vpop.f32.mrb[77].mxu1  ;;  %v8830_v54 = vmul.f32 0.088388346, %v6590_v38 }
 0x2e0   : > { %v8827_v14 = vmul.f32 0.088388346, %v1953_v34  ;;  %2006 = vmax.xlane.f32.xlu1 %v8823_v4  ;;  %v6591_v59 = vpop.f32.mrb[78].mxu1 }
 0x2e1   : > { %v1956_v5 = vpop.f32.mrb[79].mxu1  ;;  %v8835_v8 = vmul.f32 0.088388346, %v6591_v59 }
 0x2e2   : > { %v8832_v12 = vmul.f32 0.088388346, %v1956_v5  ;;  %2008 = vmax.xlane.f32.xlu0 %v8827_v14 }
 0x2e4   : > { %2010 = vmax.xlane.f32.xlu1 %v8832_v12 }
 0x2e6   : > { %2012 = vmax.xlane.f32.xlu0 %v8830_v54 }
 0x2e8   : > { %2014 = vmax.xlane.f32.xlu1 %v8835_v8 }
 0x356   : > { %v1989_v61 = vpop.xlane.xlu1 %1988 }
 0x357   : > { %v2018_v34 = vsub.f32 %v1970_v13, %v1989_v61  ;;  %v1985_v30 = vpop.xlane.xlu0 %1984 }
 0x358   : > { %v2016_v52 = vsub.f32 %v1968_v51, %v1985_v30 }
 0x359   : > { %v2036_v38 = vmul.f32 1.442695, %v2018_v34 }
 0x35a   : > { %v2032_v41 = vmul.f32 1.442695, %v2016_v52  ;;  %v1991_v18 = vpop.xlane.xlu1 %1990 }
 0x35b   : > { %v2019_v43 = vsub.f32 %v1971_v53, %v1991_v18  ;;  %v1987_v5 = vpop.xlane.xlu0 %1986 }
 0x35c   : > { %7180 = vpow2.f32 %v2032_v41  ;;  %v2017_v29 = vsub.f32 %v1969_v62, %v1987_v5 }
 0x35d   : > { %7182 = vpow2.f32 %v2036_v38  ;;  %v2038_v59 = vmul.f32 1.442695, %v2019_v43 }
 0x35e   : > { %v2034_v26 = vmul.f32 1.442695, %v2017_v29 }
 0x35f   : > { %v1993_v20 = vpop.xlane.xlu0 %1992 }
 0x360   : > { %7184 = vpow2.f32 %v2034_v26  ;;  %v2020_v47 = vsub.f32 %v1972_v40, %v1993_v20 }
 0x361   : > { %v1995_v57 = vpop.xlane.xlu1 %1994  ;;  %7186 = vpow2.f32 %v2038_v59 }
 0x362   : > { %v2040_v31 = vmul.f32 1.442695, %v2020_v47  ;;  %v2021_v45 = vsub.f32 %v1973_v28, %v1995_v57 }
 0x363   : > { %v1997_v13 = vpop.xlane.xlu0 %1996 }
 0x364   : > { %7188 = vpow2.f32 %v2040_v31  ;;  %v2042_v30 = vmul.f32 1.442695, %v2021_v45  ;;  %v2022_v52 = vsub.f32 %v1974_v0, %v1997_v13 }
 0x365   : > { %v1999_v51 = vpop.xlane.xlu1 %1998 }
 0x366   : > { %v8840_v61 = vpop.eup %7180  ;;  %v2044_v18 = vmul.f32 1.442695, %v2022_v52  ;;  %v2023_v41 = vsub.f32 %v1975_v10, %v1999_v51  ;;  %7190 = vpow2.f32 %v2042_v30 }
 0x367   : > { %v2001_v29 = vpop.xlane.xlu0 %2000  ;;  %2064 = vadd.xlane.f32.xlu0 %v8840_v61  ;;  %v8843_v20 = vpop.eup %7182 }
 0x368   : > { %7192 = vpow2.f32 %v2044_v18  ;;  %v2046_v26 = vmul.f32 1.442695, %v2023_v41  ;;  %v2024_v43 = vsub.f32 %v1976_v48, %v2001_v29 }
 0x369   : > { %v2003_v57 = vpop.xlane.xlu1 %2002 }
 0x36a   : > { %v8845_v47 = vpop.eup %7184  ;;  %v2048_v31 = vmul.f32 1.442695, %v2024_v43  ;;  %v2025_v45 = vsub.f32 %v8821_v21, %v2003_v57  ;;  %7194 = vpow2.f32 %v2046_v26 }
 0x36b   : > { %v2005_v53 = vpop.xlane.xlu0 %2004  ;;  %2068 = vadd.xlane.f32.xlu0 %v8843_v20  ;;  %2066 = vadd.xlane.f32.xlu1 %v8845_v47  ;;  %v8851_v40 = vpop.eup %7186 }
 0x36c   : > { %7196 = vpow2.f32 %v2048_v31  ;;  %v2050_v10 = vmul.f32 1.442695, %v2025_v45  ;;  %v2026_v62 = vsub.f32 %v8819_v9, %v2005_v53 }
 0x36d   : > { %v2007_v48 = vpop.xlane.xlu1 %2006 }
 0x36e   : > { %v8853_v0 = vpop.eup %7188  ;;  %v2052_v28 = vmul.f32 1.442695, %v2026_v62  ;;  %v2027_v34 = vsub.f32 %v8823_v4, %v2007_v48  ;;  %7198 = vpow2.f32 %v2050_v10 }
 0x36f   : > { %2072 = vadd.xlane.f32.xlu0 %v8853_v0  ;;  %v2009_v21 = vpop.xlane.xlu0 %2008  ;;  %2070 = vadd.xlane.f32.xlu1 %v8851_v40 }
 0x370   : > { %7200 = vpow2.f32 %v2052_v28  ;;  %v2054_v38 = vmul.f32 1.442695, %v2027_v34  ;;  %v2028_v5 = vsub.f32 %v8827_v14, %v2009_v21  ;;  %v8859_v59 = vpop.eup %7190 }
 0x371   : > { %v2011_v9 = vpop.xlane.xlu1 %2010 }
 0x372   : > { %v8861_v13 = vpop.eup %7192  ;;  %v2056_v30 = vmul.f32 1.442695, %v2028_v5  ;;  %v2029_v52 = vsub.f32 %v8832_v12, %v2011_v9  ;;  %7202 = vpow2.f32 %v2054_v38 }
 0x373   : > { %2076 = vadd.xlane.f32.xlu0 %v8861_v13  ;;  %v2013_v4 = vpop.xlane.xlu0 %2012  ;;  %2074 = vadd.xlane.f32.xlu1 %v8859_v59 }
 0x374   : > { %7204 = vpow2.f32 %v2056_v30  ;;  %v2058_v51 = vmul.f32 1.442695, %v2029_v52  ;;  %v2030_v18 = vsub.f32 %v8830_v54, %v2013_v4  ;;  %v8867_v41 = vpop.eup %7194  ;;  %v1689_v54 = vadd.f32 %v8815_v23, %v8782_v39 }
 0x375   : > { %v2015_v14 = vpop.xlane.xlu1 %2014 }
 0x376   : > { %v8869_v29 = vpop.eup %7196  ;;  %v2060_v26 = vmul.f32 1.442695, %v2030_v18  ;;  %v2031_v43 = vsub.f32 %v8835_v8, %v2015_v14  ;;  %7206 = vpow2.f32 %v2058_v51  ;;  %v1692_v8 = vpop.f32.mrb[95].mxu0 }
 0x377   : > { %2080 = vadd.xlane.f32.xlu0 %v8869_v29  ;;  %2078 = vadd.xlane.f32.xlu1 %v8867_v41  ;;  %v1693_v53 = vadd.f32 %v1692_v8, %v8782_v39 }
 0x378   : > { %7208 = vpow2.f32 %v2060_v26  ;;  %v2062_v12 = vmul.f32 1.442695, %v2031_v43  ;;  %v8874_v57 = vpop.eup %7198 }
 0x379   : > { %v1822_v62 = vpack.c.bf16 %v1693_v53, %v1689_v54 }
 0x37a   : > { %v8876_v31 = vpop.eup %7200  ;;  %7210 = vpow2.f32 %v2062_v12 }
 0x37b   : > { %2084 = vadd.xlane.f32.xlu0 %v8876_v31  ;;  %2082 = vadd.xlane.f32.xlu1 %v8874_v57 }
 0x37c   : > { %v8882_v45 = vpop.eup %7202  ;;  %6670 = vmatprep.subr.bf16.mxu0 %v1822_v62 }
 0x37d   : > { %6671 = vmatpush3.bf16.msra.mxu0 %v1822_v62 }
 0x37e   : > { %v8885_v10 = vpop.eup %7204 }
 0x37f   : > { %2088 = vadd.xlane.f32.xlu0 %v8885_v10  ;;  %2086 = vadd.xlane.f32.xlu1 %v8882_v45 }
 0x380   : > { %v8889_v48 = vpop.eup %7206 }
 0x382   : > { %v8891_v23 = vpop.eup %7208 }
 0x383   : > { %2092 = vadd.xlane.f32.xlu0 %v8891_v23  ;;  %2090 = vadd.xlane.f32.xlu1 %v8889_v48 }
 0x384   : > { %v8895_v28 = vpop.eup %7210 }
 0x387   : > { %2094 = vadd.xlane.f32.xlu1 %v8895_v28 }
 0x3f4   : > { %v2065_v34 = vpop.xlane.xlu0 %2064 }
 0x3f5   : > { %7212 = vrcp.f32 %v2065_v34 }
 0x3f8   : > { %v2069_v21 = vpop.xlane.xlu0 %2068  ;;  %v2067_v38 = vpop.xlane.xlu1 %2066 }
 0x3f9   : > { %7214 = vrcp.f32 %v2069_v21 }
 0x3fa   : > { %7216 = vrcp.f32 %v2067_v38 }
 0x3fc   : > { %v2073_v5 = vpop.xlane.xlu0 %2072  ;;  %v2071_v9 = vpop.xlane.xlu1 %2070 }
 0x3fd   : > { %7218 = vrcp.f32 %v2073_v5 }
 0x3fe   : > { %7220 = vrcp.f32 %v2071_v9 }
 0x3ff   : > { %v7213_v30 = vpop.eup %7212 }
 0x400   : > { %v2077_v52 = vpop.xlane.xlu0 %2076  ;;  %v2075_v4 = vpop.xlane.xlu1 %2074  ;;  %v2097_v51 = vmul.f32 %v7213_v30, %v8840_v61 }
 0x401   : > { %7222 = vrcp.f32 %v2077_v52 }
 0x402   : > { %7224 = vrcp.f32 %v2075_v4  ;;  %2128 = vst [vmem:[%s8900_s11] sm:$0xff] %v2097_v51 }
 0x403   : > { %v7215_v18 = vpop.eup %7214 }
 0x404   : > { %v7217_v14 = vpop.eup %7216  ;;  %v2101_v26 = vmul.f32 %v7215_v18, %v8843_v20  ;;  %v2081_v43 = vpop.xlane.xlu0 %2080 }
 0x405   : > { %v2079_v12 = vpop.xlane.xlu1 %2078  ;;  %7226 = vrcp.f32 %v2081_v43  ;;  %v2099_v54 = vmul.f32 %v7217_v14, %v8845_v47 }
 0x406   : > { %2130 = vst [vmem:[%s8900_s11 + $0x10] sm:$0xff] %v2101_v26  ;;  %7228 = vrcp.f32 %v2079_v12 }
 0x407   : > { %v7219_v61 = vpop.eup %7218  ;;  %2129 = vst [vmem:[%s8900_s11 + $0x8] sm:$0xff] %v2099_v54  ;;  %v2144_v8 = vpack.c.bf16 %v2099_v54, %v2097_v51 }
 0x408   : > { %v7221_v53 = vpop.eup %7220  ;;  %v2085_v62 = vpop.xlane.xlu0 %2084  ;;  %v2105_v21 = vmul.f32 %v7219_v61, %v8853_v0 }
 0x409   : > { %v2083_v34 = vpop.xlane.xlu1 %2082  ;;  %v2103_v38 = vmul.f32 %v7221_v53, %v8851_v40  ;;  %7230 = vrcp.f32 %v2085_v62  ;;  %6608 = vmatprep.mubr.bf16.mxu1 %v2144_v8 }
 0x40a   : > { %7232 = vrcp.f32 %v2083_v34  ;;  %2132 = vst [vmem:[%s8900_s11 + $0x20] sm:$0xff] %v2105_v21 }
 0x40b   : > { %v7223_v20 = vpop.eup %7222  ;;  %2131 = vst [vmem:[%s8900_s11 + $0x18] sm:$0xff] %v2103_v38  ;;  %v2145_v47 = vpack.c.bf16 %v2103_v38, %v2101_v26 }
 0x40c   : > { %v7225_v5 = vpop.eup %7224  ;;  %v2089_v9 = vpop.xlane.xlu0 %2088  ;;  %v2109_v52 = vmul.f32 %v7223_v20, %v8861_v13 }
 0x40d   : > { %v2087_v30 = vpop.xlane.xlu1 %2086  ;;  %7234 = vrcp.f32 %v2089_v9  ;;  %6609 = vmatmul.mubr.bf16.vlgmr.msra.gmra.mrb[80].mxu1 %v2145_v47  ;;  %v2107_v0 = vmul.f32 %v7225_v5, %v8859_v59  ;;  %v12228_v47 = vld [vmem:[#allocation54_spill] sm:$0xff] }
 0x40e   : > { %6625 = vmatpush3.bf16.xpose.msra.mxu1 %v8399_v36  ;;  %7236 = vrcp.f32 %v2087_v30  ;;  %2134 = vst [vmem:[%s8900_s11 + $0x30] sm:$0xff] %v2109_v52  ;;  %v12230_v9 = vld [vmem:[#allocation62_spill] sm:$0xff]  ;;  %v12231_v30 = vld [vmem:[#allocation60_spill] sm:$0xff] }
 0x40f   : > { %v7227_v40 = vpop.eup %7226  ;;  %6626 = vmatprep.subr.bf16.mxu1 %v8423_v1  ;;  %2133 = vst [vmem:[%s8900_s11 + $0x28] sm:$0xff] %v2107_v0  ;;  %v2146_v4 = vpack.c.bf16 %v2107_v0, %v2105_v21 }
 0x410   : > { %v7229_v51 = vpop.eup %7228  ;;  %v2093_v18 = vpop.xlane.xlu0 %2092  ;;  %v2113_v13 = vmul.f32 %v7227_v40, %v8869_v29 }
 0x411   : > { %v2091_v14 = vpop.xlane.xlu1 %2090  ;;  %7238 = vrcp.f32 %v2093_v18  ;;  %6612 = vmatprep.mubr.bf16.mxu1 %v2146_v4  ;;  %v2111_v59 = vmul.f32 %v7229_v51, %v8867_v41 }
 0x412   : > { %7240 = vrcp.f32 %v2091_v14  ;;  %2136 = vst [vmem:[%s8900_s11 + $0x40] sm:$0xff] %v2113_v13 }
 0x413   : > { %v7231_v36 = vpop.eup %7230  ;;  %2135 = vst [vmem:[%s8900_s11 + $0x38] sm:$0xff] %v2111_v59  ;;  %v2147_v26 = vpack.c.bf16 %v2111_v59, %v2109_v52  ;;  %v12232_v52 = vpack.c.bf16 %v12230_v9, %v12231_v30 }
 0x414   : > { %v7233_v43 = vpop.eup %7232  ;;  %v2117_v54 = vmul.f32 %v7231_v36, %v8876_v31 }
 0x415   : > { %v2095_v12 = vpop.xlane.xlu1 %2094  ;;  %6613 = vmatmul.mubr.bf16.gmra.mrb[84].mxu1 %v2147_v26  ;;  %v2115_v29 = vmul.f32 %v7233_v43, %v8874_v57 }
 0x416   : > { %7242 = vrcp.f32 %v2095_v12  ;;  %6627 = vmatpush3.bf16.xpose.msra.mxu1 %v8423_v1  ;;  %2138 = vst [vmem:[%s8900_s11 + $0x50] sm:$0xff] %v2117_v54 }
 0x417   : > { %v7235_v41 = vpop.eup %7234  ;;  %6628 = vmatprep.subr.bf16.mxu1 %v8447_v24  ;;  %2137 = vst [vmem:[%s8900_s11 + $0x48] sm:$0xff] %v2115_v29  ;;  %v2148_v61 = vpack.c.bf16 %v2115_v29, %v2113_v13 }
 0x418   : > { %v7237_v8 = vpop.eup %7236  ;;  %v2121_v53 = vmul.f32 %v7235_v41, %v8885_v10 }
 0x419   : > { %6616 = vmatprep.mubr.bf16.mxu1 %v2148_v61  ;;  %v2119_v31 = vmul.f32 %v7237_v8, %v8882_v45 }
 0x41a   : > { %2140 = vst [vmem:[%s8900_s11 + $0x60] sm:$0xff] %v2121_v53 }
 0x41b   : > { %v7239_v62 = vpop.eup %7238  ;;  %2139 = vst [vmem:[%s8900_s11 + $0x58] sm:$0xff] %v2119_v31  ;;  %v2149_v57 = vpack.c.bf16 %v2119_v31, %v2117_v54 }
 0x41c   : > { %v7241_v1 = vpop.eup %7240  ;;  %v2125_v34 = vmul.f32 %v7239_v62, %v8891_v23  ;;  %v12198_v23 = vpack.c.bf16 %v8396_v33, %v8388_v22  ;;  %v12199_v22 = vpack.c.bf16 %v8418_v58, %v8408_v46  ;;  %v12200_v33 = vpack.c.bf16 %v8442_v17, %v8432_v50  ;;  %v12206_v17 = vld [vmem:[#allocation23_spill] sm:$0xff] }
 0x41d   : > { %6617 = vmatmul.mubr.bf16.gmra.mrb[88].mxu1 %v2149_v57  ;;  %v2123_v21 = vmul.f32 %v7241_v1, %v8889_v48  ;;  %v12203_v46 = vpack.c.bf16 %v8513_v15, %v8503_v44  ;;  %v12204_v58 = vpack.c.bf16 %v8535_v11, %v8525_v3  ;;  %v12205_v50 = vpack.c.bf16 %v8557_v25, %v8547_v42  ;;  %v12211_v25 = vld [vmem:[#allocation65_spill] sm:$0xff]  ;;  %v12215_v15 = vld [vmem:[#allocation34_spill] sm:$0xff]  ;;  %v12218_v11 = vld [vmem:[#allocation39_spill] sm:$0xff] }
 0x41e   : > { %6629 = vmatpush3.bf16.xpose.msra.mxu1 %v8447_v24  ;;  %2142 = vst [vmem:[%s8900_s11 + $0x70] sm:$0xff] %v2125_v34  ;;  %v12201_v24 = vpack.c.bf16 %v8466_v49, %v8456_v35  ;;  %v12207_v35 = vpack.c.bf16 %v8573_v56, %v12206_v17  ;;  %v12208_v49 = vld [vmem:[#allocation46_spill] sm:$0xff]  ;;  %v12221_v56 = vld [vmem:[#allocation44_spill] sm:$0xff] }
 0x41f   : > { %6630 = vmatprep.subr.bf16.mxu1 %v8471_v55  ;;  %2141 = vst [vmem:[%s8900_s11 + $0x68] sm:$0xff] %v2123_v21  ;;  %v2150_v10 = vpack.c.bf16 %v2123_v21, %v2121_v53 }
 0x420   : > { %v7243_v38 = vpop.eup %7242 }
 0x421   : > { %v2127_v45 = vmul.f32 %v7243_v38, %v8895_v28  ;;  %6620 = vmatprep.mubr.bf16.mxu1 %v2150_v10  ;;  %v12227_v28 = vld [vmem:[#allocation56_spill] sm:$0xff] }
 0x422   : > { %v12229_v5 = vpack.c.bf16 %v12227_v28, %v12228_v47 }
 0x423   : > { %2143 = vst [vmem:[%s8900_s11 + $0x78] sm:$0xff] %v2127_v45  ;;  %v2151_v20 = vpack.c.bf16 %v2127_v45, %v2125_v34 }
 0x425   : > { %6621 = vmatmul.mubr.bf16.gmra.mrb[92].mxu1 %v2151_v20 }
 0x426   : > { %6631 = vmatpush3.bf16.xpose.msra.mxu1 %v8471_v55  ;;  %6640 = vmatprep.mubr.bf16.mxu1 %v12198_v23  ;;  %v12209_v55 = vld [vmem:[#allocation52_spill] sm:$0xff] }
 0x427   : > { %6632 = vmatprep.subr.bf16.mxu1 %v8495_v27 }
 0x42e   : > { %6633 = vmatpush3.bf16.xpose.msra.mxu1 %v8495_v27  ;;  %v12213_v27 = vld [vmem:[#allocation27_spill] sm:$0xff] }
 0x42f   : > { %6634 = vmatprep.subr.bf16.mxu1 %v8517_v19 }
 0x436   : > { %6635 = vmatpush3.bf16.xpose.msra.mxu1 %v8517_v19  ;;  %v12216_v19 = vld [vmem:[#allocation32_spill] sm:$0xff] }
 0x437   : > { %6636 = vmatprep.subr.bf16.mxu1 %v8539_v32  ;;  %v12217_v3 = vpack.c.bf16 %v12215_v15, %v12216_v19 }
 0x43e   : > { %6637 = vmatpush3.bf16.xpose.msra.mxu1 %v8539_v32  ;;  %v12219_v32 = vld [vmem:[#allocation37_spill] sm:$0xff] }
 0x43f   : > { %6638 = vmatprep.subr.bf16.mxu1 %v8561_v37  ;;  %v12220_v42 = vpack.c.bf16 %v12218_v11, %v12219_v32 }
 0x446   : > { %6639 = vmatpush3.bf16.xpose.msra.mxu1 %v8561_v37  ;;  %v12202_v37 = vpack.c.bf16 %v8490_v6, %v8480_v16  ;;  %v12210_v16 = vld [vmem:[#allocation58_spill] sm:$0xff]  ;;  %v12212_v6 = vld [vmem:[#allocation29_spill] sm:$0xff] }
 0x447   : > { %6688 = vmatprep.subr.bf16.mxu1 %v8585_v63  ;;  %v12214_v44 = vpack.c.bf16 %v12212_v6, %v12213_v27 }
 0x44d   : > { %6641 = vmatmul.mubr.bf16.vlgmr.msra.gmra.mrb[96].mxu1 %v12199_v22 }
 0x44e   : > { %6644 = vmatprep.mubr.bf16.mxu1 %v12200_v33  ;;  %6689 = vmatpush3.bf16.xpose.msra.mxu1 %v8585_v63  ;;  %v12222_v63 = vld [vmem:[#allocation42_spill] sm:$0xff] }
 0x44f   : > { %6690 = vmatprep.subr.bf16.mxu1 %v8613_v60 }
 0x455   : > { %6645 = vmatmul.mubr.bf16.gmra.mrb[100].mxu1 %v12201_v24 }
 0x456   : > { %6648 = vmatprep.mubr.bf16.mxu1 %v12202_v37  ;;  %6691 = vmatpush3.bf16.xpose.msra.mxu1 %v8613_v60  ;;  %v12223_v60 = vpack.c.bf16 %v12221_v56, %v12222_v63 }
 0x457   : > { %6692 = vmatprep.subr.bf16.mxu1 %v8643_v7 }
 0x45d   : > { %6649 = vmatmul.mubr.bf16.gmra.mrb[104].mxu1 %v12203_v46 }
 0x45e   : > { %6652 = vmatprep.mubr.bf16.mxu1 %v12204_v58  ;;  %6693 = vmatpush3.bf16.xpose.msra.mxu1 %v8643_v7  ;;  %v12224_v7 = vld [vmem:[#allocation50_spill] sm:$0xff] }
 0x45f   : > { %6694 = vmatprep.subr.bf16.mxu1 %v8673_v2 }
 0x465   : > { %6653 = vmatmul.mubr.bf16.gmra.mrb[108].mxu1 %v12205_v50 }
 0x466   : > { %6695 = vmatpush3.bf16.xpose.msra.mxu1 %v8673_v2  ;;  %6704 = vmatprep.mubr.bf16.mxu1 %v12207_v35  ;;  %v12225_v2 = vld [vmem:[#allocation48_spill] sm:$0xff] }
 0x467   : > { %6696 = vmatprep.subr.bf16.mxu1 %v12208_v49  ;;  %v12226_v48 = vpack.c.bf16 %v12224_v7, %v12225_v2 }
 0x46e   : > { %6697 = vmatpush3.bf16.xpose.msra.mxu1 %v12208_v49 }
 0x46f   : > { %6698 = vmatprep.subr.bf16.mxu1 %v12209_v55 }
 0x476   : > { %6699 = vmatpush3.bf16.xpose.msra.mxu1 %v12209_v55 }
 0x477   : > { %6700 = vmatprep.subr.bf16.mxu1 %v12210_v16 }
 0x47e   : > { %6701 = vmatpush3.bf16.xpose.msra.mxu1 %v12210_v16 }
 0x47f   : > { %6702 = vmatprep.subr.bf16.mxu1 %v12211_v25 }
 0x486   : > { %6703 = vmatpush3.bf16.xpose.msra.mxu1 %v12211_v25 }
 0x48d   : > { %6705 = vmatmul.mubr.bf16.vlgmr.msra.gmra.mrb[112].mxu1 %v12214_v44 }
 0x48e   : > { %6708 = vmatprep.mubr.bf16.mxu1 %v12217_v3 }
 0x495   : > { %6709 = vmatmul.mubr.bf16.gmra.mrb[116].mxu1 %v12220_v42 }
 0x496   : > { %6712 = vmatprep.mubr.bf16.mxu1 %v12223_v60 }
 0x49d   : > { %6713 = vmatmul.mubr.bf16.gmra.mrb[120].mxu1 %v12226_v48 }
 0x49e   : > { %6716 = vmatprep.mubr.bf16.mxu1 %v12229_v5 }
 0x4a5   : > { %6717 = vmatmul.mubr.bf16.gmra.mrb[124].mxu1 %v12232_v52 }
 0x4e0   : > { %v9012_v0 = vpop.f32.mrb[80].mxu1 }
 0x4e1   : > { %v9014_v40 = vpop.f32.mrb[81].mxu1 }
 0x4e2   : > { %v9016_v4 = vpop.f32.mrb[82].mxu1 }
 0x4e3   : > { %v9020_v18 = vpop.f32.mrb[83].mxu1 }
 0x4e8   : > { %v9024_v13 = vpop.f32.mrb[84].mxu1 }
 0x4e9   : > { %v9026_v59 = vpop.f32.mrb[85].mxu1 }
 0x4ea   : > { %v9028_v36 = vpop.f32.mrb[86].mxu1 }
 0x4eb   : > { %v9032_v43 = vpop.f32.mrb[87].mxu1 }
 0x4f0   : > { %v9036_v54 = vpop.f32.mrb[88].mxu1 }
 0x4f1   : > { %12233 = vst [vmem:[#allocation23_spill] sm:$0xff] %v9036_v54  ;;  %v9038_v29 = vpop.f32.mrb[89].mxu1 }
 0x4f2   : > { %12234 = vst [vmem:[#allocation46_spill] sm:$0xff] %v9038_v29  ;;  %v9040_v41 = vpop.f32.mrb[90].mxu1 }
 0x4f3   : > { %12235 = vst [vmem:[#allocation52_spill] sm:$0xff] %v9040_v41  ;;  %v9044_v8 = vpop.f32.mrb[91].mxu1 }
 0x4f4   : > { %12236 = vst [vmem:[#allocation58_spill] sm:$0xff] %v9044_v8 }
 0x4f8   : > { %v9048_v31 = vpop.f32.mrb[92].mxu1 }
 0x4f9   : > { %12237 = vst [vmem:[#allocation65_spill] sm:$0xff] %v9048_v31  ;;  %v9050_v62 = vpop.f32.mrb[93].mxu1 }
 0x4fa   : > { %12238 = vst [vmem:[#allocation29_spill] sm:$0xff] %v9050_v62  ;;  %v9052_v57 = vpop.f32.mrb[94].mxu1 }
 0x4fb   : > { %12239 = vst [vmem:[#allocation27_spill] sm:$0xff] %v9052_v57  ;;  %v9056_v34 = vpop.f32.mrb[95].mxu1 }
 0x4fc   : > { %12240 = vst [vmem:[#allocation34_spill] sm:$0xff] %v9056_v34 }
 0x520   : > { %v6642_v38 = vpop.f32.mrb[96].mxu1 }
 0x521   : > { %v2299_v10 = vpop.f32.mrb[97].mxu1  ;;  %v9065_v33 = vmul.f32 0.088388346, %v6642_v38 }
 0x522   : > { %v9060_v45 = vmul.f32 0.088388346, %v2299_v10  ;;  %v6643_v20 = vpop.f32.mrb[98].mxu1 }
 0x523   : > { %v2302_v23 = vpop.f32.mrb[99].mxu1  ;;  %v9068_v24 = vmul.f32 0.088388346, %v6643_v20 }
 0x524   : > { %v9062_v22 = vmul.f32 0.088388346, %v2302_v23  ;;  %2378 = vmax.xlane.f32.xlu0 %v9060_v45 }
 0x526   : > { %2380 = vmax.xlane.f32.xlu1 %v9062_v22 }
 0x528   : > { %2382 = vmax.xlane.f32.xlu0 %v9065_v33  ;;  %v6646_v37 = vpop.f32.mrb[100].mxu1 }
 0x529   : > { %v2315_v46 = vpop.f32.mrb[101].mxu1  ;;  %v9077_v49 = vmul.f32 0.088388346, %v6646_v37 }
 0x52a   : > { %v9071_v58 = vmul.f32 0.088388346, %v2315_v46  ;;  %2384 = vmax.xlane.f32.xlu1 %v9068_v24  ;;  %v6647_v50 = vpop.f32.mrb[102].mxu1 }
 0x52b   : > { %v2318_v17 = vpop.f32.mrb[103].mxu1  ;;  %v9080_v55 = vmul.f32 0.088388346, %v6647_v50 }
 0x52c   : > { %v9074_v35 = vmul.f32 0.088388346, %v2318_v17  ;;  %2386 = vmax.xlane.f32.xlu0 %v9071_v58 }
 0x52e   : > { %2388 = vmax.xlane.f32.xlu1 %v9074_v35 }
 0x530   : > { %2390 = vmax.xlane.f32.xlu0 %v9077_v49  ;;  %v6650_v16 = vpop.f32.mrb[104].mxu1 }
 0x531   : > { %v2331_v25 = vpop.f32.mrb[105].mxu1  ;;  %v9089_v19 = vmul.f32 0.088388346, %v6650_v16 }
 0x532   : > { %v9083_v6 = vmul.f32 0.088388346, %v2331_v25  ;;  %2392 = vmax.xlane.f32.xlu1 %v9080_v55  ;;  %v6651_v27 = vpop.f32.mrb[106].mxu1 }
 0x533   : > { %v2334_v44 = vpop.f32.mrb[107].mxu1  ;;  %v9092_v3 = vmul.f32 0.088388346, %v6651_v27 }
 0x534   : > { %v9086_v15 = vmul.f32 0.088388346, %v2334_v44  ;;  %2394 = vmax.xlane.f32.xlu0 %v9083_v6 }
 0x536   : > { %2396 = vmax.xlane.f32.xlu1 %v9086_v15 }
 0x538   : > { %2398 = vmax.xlane.f32.xlu0 %v9089_v19  ;;  %v6654_v11 = vpop.f32.mrb[108].mxu1 }
 0x539   : > { %v2347_v32 = vpop.f32.mrb[109].mxu1  ;;  %v9101_v7 = vmul.f32 0.088388346, %v6654_v11 }
 0x53a   : > { %v9095_v42 = vmul.f32 0.088388346, %v2347_v32  ;;  %2400 = vmax.xlane.f32.xlu1 %v9092_v3  ;;  %v6655_v56 = vpop.f32.mrb[110].mxu1 }
 0x53b   : > { %v2350_v63 = vpop.f32.mrb[111].mxu1  ;;  %v9104_v2 = vmul.f32 0.088388346, %v6655_v56 }
 0x53c   : > { %v9098_v60 = vmul.f32 0.088388346, %v2350_v63  ;;  %2402 = vmax.xlane.f32.xlu0 %v9095_v42 }
 0x53e   : > { %2404 = vmax.xlane.f32.xlu1 %v9098_v60 }
 0x540   : > { %2406 = vmax.xlane.f32.xlu0 %v9101_v7 }
 0x542   : > { %2408 = vmax.xlane.f32.xlu1 %v9104_v2 }
 0x560   : > { %v6706_v48 = vpop.f32.mrb[112].mxu1 }
 0x561   : > { %v2694_v28 = vpop.f32.mrb[113].mxu1  ;;  %v9113_v52 = vmul.f32 0.088388346, %v6706_v48 }
 0x562   : > { %v9108_v47 = vmul.f32 0.088388346, %v2694_v28  ;;  %v6707_v5 = vpop.f32.mrb[114].mxu1 }
 0x563   : > { %v2697_v9 = vpop.f32.mrb[115].mxu1  ;;  %v9116_v38 = vmul.f32 0.088388346, %v6707_v5 }
 0x564   : > { %v9110_v30 = vmul.f32 0.088388346, %v2697_v9  ;;  %2773 = vmax.xlane.f32.xlu0 %v9108_v47 }
 0x566   : > { %2775 = vmax.xlane.f32.xlu1 %v9110_v30 }
 0x568   : > { %2777 = vmax.xlane.f32.xlu0 %v9113_v52  ;;  %v6710_v10 = vpop.f32.mrb[116].mxu1 }
 0x569   : > { %v9119_v20 = vmul.f32 0.088388346, %v6710_v10  ;;  %v2710_v23 = vpop.f32.mrb[117].mxu1 }
 0x56a   : > { %v6711_v37 = vpop.f32.mrb[118].mxu1  ;;  %2779 = vmax.xlane.f32.xlu1 %v9116_v38  ;;  %v9125_v17 = vmul.f32 0.088388346, %v2710_v23 }
 0x56b   : > { %v9122_v46 = vmul.f32 0.088388346, %v6711_v37  ;;  %v2713_v50 = vpop.f32.mrb[119].mxu1 }
 0x56c   : > { %2785 = vmax.xlane.f32.xlu0 %v9119_v20  ;;  %v9128_v16 = vmul.f32 0.088388346, %v2713_v50 }
 0x56e   : > { %2787 = vmax.xlane.f32.xlu1 %v9122_v46 }
 0x570   : > { %2781 = vmax.xlane.f32.xlu0 %v9125_v17  ;;  %v6714_v25 = vpop.f32.mrb[120].mxu1 }
 0x571   : > { %v9131_v27 = vmul.f32 0.088388346, %v6714_v25  ;;  %v2726_v44 = vpop.f32.mrb[121].mxu1 }
 0x572   : > { %v6715_v11 = vpop.f32.mrb[122].mxu1  ;;  %2783 = vmax.xlane.f32.xlu1 %v9128_v16  ;;  %v9137_v63 = vmul.f32 0.088388346, %v2726_v44 }
 0x573   : > { %v9134_v32 = vmul.f32 0.088388346, %v6715_v11  ;;  %v2729_v56 = vpop.f32.mrb[123].mxu1 }
 0x574   : > { %2793 = vmax.xlane.f32.xlu0 %v9131_v27  ;;  %v9140_v48 = vmul.f32 0.088388346, %v2729_v56 }
 0x576   : > { %2795 = vmax.xlane.f32.xlu1 %v9134_v32 }
 0x578   : > { %2789 = vmax.xlane.f32.xlu0 %v9137_v63  ;;  %v6718_v28 = vpop.f32.mrb[124].mxu1 }
 0x579   : > { %v2742_v5 = vpop.f32.mrb[125].mxu1 }
 0x57a   : > { %v6719_v9 = vpop.f32.mrb[126].mxu1  ;;  %2791 = vmax.xlane.f32.xlu1 %v9140_v48 }
 0x57b   : > { %v2745_v10 = vpop.f32.mrb[127].mxu1 }
 0x5b1   : > { %v2379_v23 = vpop.xlane.xlu0 %2378 }
 0x5b2   : > { %v2410_v25 = vsub.f32 %v9060_v45, %v2379_v23 }
 0x5b3   : > { %v2381_v37 = vpop.xlane.xlu1 %2380 }
 0x5b4   : > { %v2411_v1 = vsub.f32 %v9062_v22, %v2381_v37  ;;  %v2426_v53 = vmul.f32 1.442695, %v2410_v25  ;;  %v9164_v25 = vmul.f32 0.088388346, %v2742_v5 }
 0x5b5   : > { %v2383_v50 = vpop.xlane.xlu0 %2382 }
 0x5b6   : > { %v2412_v44 = vsub.f32 %v9065_v33, %v2383_v50  ;;  %v2428_v51 = vmul.f32 1.442695, %v2411_v1 }
 0x5b7   : > { %v2385_v11 = vpop.xlane.xlu1 %2384 }
 0x5b8   : > { %v2430_v56 = vmul.f32 1.442695, %v2412_v44  ;;  %v2413_v21 = vsub.f32 %v9068_v24, %v2385_v11  ;;  %v9168_v44 = vmul.f32 0.088388346, %v2745_v10 }
 0x5b9   : > { %v2387_v61 = vpop.xlane.xlu0 %2386 }
 0x5ba   : > { %7244 = vpow2.f32 %v2430_v56  ;;  %v2432_v26 = vmul.f32 1.442695, %v2413_v21  ;;  %v2414_v33 = vsub.f32 %v9071_v58, %v2387_v61  ;;  %v9172_v56 = vmul.f32 0.088388346, %v6718_v28 }
 0x5bb   : > { %v2389_v12 = vpop.xlane.xlu1 %2388 }
 0x5bc   : > { %7246 = vpow2.f32 %v2432_v26  ;;  %v2415_v22 = vsub.f32 %v9074_v35, %v2389_v12  ;;  %v2434_v21 = vmul.f32 1.442695, %v2414_v33  ;;  %v9176_v33 = vmul.f32 0.088388346, %v6719_v9 }
 0x5bd   : > { %v2391_v14 = vpop.xlane.xlu0 %2390  ;;  %7248 = vpow2.f32 %v2426_v53 }
 0x5be   : > { %7250 = vpow2.f32 %v2428_v51  ;;  %v2416_v1 = vsub.f32 %v9077_v49, %v2391_v14  ;;  %v2436_v51 = vmul.f32 1.442695, %v2415_v22 }
 0x5bf   : > { %v2393_v31 = vpop.xlane.xlu1 %2392  ;;  %7252 = vpow2.f32 %v2434_v21 }
 0x5c0   : > { %v2417_v61 = vsub.f32 %v9080_v55, %v2393_v31  ;;  %v2438_v12 = vmul.f32 1.442695, %v2416_v1  ;;  %7254 = vpow2.f32 %v2436_v51 }
 0x5c1   : > { %v2395_v45 = vpop.xlane.xlu0 %2394 }
 0x5c2   : > { %v2418_v35 = vsub.f32 %v9083_v6, %v2395_v45  ;;  %v2440_v14 = vmul.f32 1.442695, %v2417_v61  ;;  %7256 = vpow2.f32 %v2438_v12 }
 0x5c3   : > { %v2397_v23 = vpop.xlane.xlu1 %2396 }
 0x5c4   : > { %v9149_v50 = vpop.eup %7244  ;;  %v2419_v49 = vsub.f32 %v9086_v15, %v2397_v23  ;;  %v2442_v55 = vmul.f32 1.442695, %v2418_v35  ;;  %7258 = vpow2.f32 %v2440_v14  ;;  %v1696_v35 = vpop.f32.mrb[96].mxu0 }
 0x5c5   : > { %2462 = vadd.xlane.f32.xlu0 %v9149_v50  ;;  %v2399_v26 = vpop.xlane.xlu0 %2398 }
 0x5c6   : > { %v9153_v24 = vpop.eup %7246  ;;  %v2420_v11 = vsub.f32 %v9089_v19, %v2399_v26  ;;  %v2444_v5 = vmul.f32 1.442695, %v2419_v49  ;;  %7260 = vpow2.f32 %v2442_v55  ;;  %v1698_v49 = vpop.f32.mrb[97].mxu0  ;;  %v12241_v55 = vld [vmem:[#allocation64_spill] sm:$0xff] }
 0x5c7   : > { %2464 = vadd.xlane.f32.xlu1 %v9153_v24  ;;  %v9157_v53 = vpop.eup %7248  ;;  %v2401_v58 = vpop.xlane.xlu1 %2400 }
 0x5c8   : > { %v9161_v37 = vpop.eup %7250  ;;  %v2421_v45 = vsub.f32 %v9092_v3, %v2401_v58  ;;  %v2446_v15 = vmul.f32 1.442695, %v2420_v11  ;;  %7262 = vpow2.f32 %v2444_v5  ;;  %v1697_v11 = vadd.f32 %v1696_v35, %v12241_v55 }
 0x5c9   : > { %2458 = vadd.xlane.f32.xlu0 %v9157_v53  ;;  %v2403_v31 = vpop.xlane.xlu0 %2402  ;;  %v9181_v19 = vpop.eup %7252  ;;  %v1699_v5 = vadd.f32 %v1698_v49, %v8782_v39 }
 0x5ca   : > { %v2422_v10 = vsub.f32 %v9095_v42, %v2403_v31  ;;  %v2448_v28 = vmul.f32 1.442695, %v2421_v45  ;;  %v9185_v3 = vpop.eup %7254  ;;  %7264 = vpow2.f32 %v2446_v15 }
 0x5cb   : > { %2460 = vadd.xlane.f32.xlu1 %v9161_v37  ;;  %v2405_v6 = vpop.xlane.xlu1 %2404 }
 0x5cc   : > { %v2423_v22 = vsub.f32 %v9098_v60, %v2405_v6  ;;  %v2450_v9 = vmul.f32 1.442695, %v2422_v10  ;;  %v9189_v42 = vpop.eup %7256  ;;  %7266 = vpow2.f32 %v2448_v28  ;;  %v1700_v6 = vpop.f32.mrb[98].mxu0 }
 0x5cd   : > { %2797 = vmax.xlane.f32.xlu0 %v9164_v25  ;;  %v2407_v23 = vpop.xlane.xlu0 %2406  ;;  %v1701_v45 = vadd.f32 %v1700_v6, %v12241_v55  ;;  %v1702_v15 = vpop.f32.mrb[99].mxu0 }
 0x5ce   : > { %v2424_v1 = vsub.f32 %v9101_v7, %v2407_v23  ;;  %v2452_v26 = vmul.f32 1.442695, %v2423_v22  ;;  %v9193_v60 = vpop.eup %7258  ;;  %7268 = vpow2.f32 %v2450_v9  ;;  %v1703_v23 = vadd.f32 %v1702_v15, %v8782_v39  ;;  %v1706_v28 = vpop.f32.mrb[100].mxu0 }
 0x5cf   : > { %2799 = vmax.xlane.f32.xlu1 %v9168_v44  ;;  %v2409_v21 = vpop.xlane.xlu1 %2408  ;;  %v9218_v22 = vpack.c.bf16 %v1701_v45, %v1697_v11  ;;  %v1708_v9 = vpop.f32.mrb[101].mxu0 }
 0x5d0   : > { %v2425_v51 = vsub.f32 %v9104_v2, %v2409_v21  ;;  %v2454_v61 = vmul.f32 1.442695, %v2424_v1  ;;  %v9196_v58 = vpop.eup %7260  ;;  %7270 = vpow2.f32 %v2452_v26  ;;  %v1707_v21 = vadd.f32 %v1706_v28, %v12241_v55 }
 0x5d1   : > { %2801 = vmax.xlane.f32.xlu0 %v9172_v56  ;;  %v1828_v26 = vpack.c.bf16 %v1703_v23, %v1699_v5  ;;  %6720 = vmatprep.subr.bf16.mxu0 %v9218_v22 }
 0x5d2   : > { %v2456_v7 = vmul.f32 1.442695, %v2425_v51  ;;  %v9199_v12 = vpop.eup %7262  ;;  %7272 = vpow2.f32 %v2454_v61  ;;  %v1709_v51 = vadd.f32 %v1708_v9, %v8782_v39  ;;  %v1710_v61 = vpop.f32.mrb[102].mxu0 }
 0x5d3   : > { %2803 = vmax.xlane.f32.xlu1 %v9176_v33  ;;  %v1712_v35 = vpop.f32.mrb[103].mxu0  ;;  %6784 = vmatprep.subr.bf16.mxu1 %v1828_v26 }
 0x5d4   : > { %v9202_v2 = vpop.eup %7264  ;;  %7274 = vpow2.f32 %v2456_v7  ;;  %v1711_v7 = vadd.f32 %v1710_v61, %v12241_v55  ;;  %v1713_v11 = vadd.f32 %v1712_v35, %v8782_v39  ;;  %v1716_v6 = vpop.f32.mrb[104].mxu0  ;;  %6785 = vmatpush3.bf16.msra.mxu1 %v1828_v26 }
 0x5d5   : > { %2466 = vadd.xlane.f32.xlu0 %v9181_v19  ;;  %v1717_v5 = vadd.f32 %v1716_v6, %v12241_v55  ;;  %v1718_v15 = vpop.f32.mrb[105].mxu0 }
 0x5d6   : > { %v9205_v14 = vpop.eup %7266  ;;  %v9231_v45 = vpack.c.bf16 %v1711_v7, %v1707_v21  ;;  %v1834_v23 = vpack.c.bf16 %v1713_v11, %v1709_v51  ;;  %v1719_v28 = vadd.f32 %v1718_v15, %v8782_v39  ;;  %v1720_v9 = vpop.f32.mrb[106].mxu0 }
 0x5d7   : > { %2468 = vadd.xlane.f32.xlu1 %v9185_v3  ;;  %v1721_v61 = vadd.f32 %v1720_v9, %v12241_v55  ;;  %v1722_v57 = vpop.f32.mrb[107].mxu0 }
 0x5d8   : > { %v9208_v31 = vpop.eup %7268  ;;  %v1723_v62 = vadd.f32 %v1722_v57, %v8782_v39  ;;  %v1726_v35 = vpop.f32.mrb[108].mxu0  ;;  %6786 = vmatprep.subr.bf16.mxu1 %v1834_v23 }
 0x5d9   : > { %2470 = vadd.xlane.f32.xlu0 %v9189_v42  ;;  %v9237_v34 = vpack.c.bf16 %v1721_v61, %v1717_v5  ;;  %v1727_v21 = vadd.f32 %v1726_v35, %v12241_v55  ;;  %v1728_v7 = vpop.f32.mrb[109].mxu0  ;;  %6787 = vmatpush3.bf16.msra.mxu1 %v1834_v23 }
 0x5da   : > { %v9214_v10 = vpop.eup %7270  ;;  %v1840_v6 = vpack.c.bf16 %v1723_v62, %v1719_v28  ;;  %v1729_v26 = vadd.f32 %v1728_v7, %v8782_v39  ;;  %v1730_v51 = vpop.f32.mrb[110].mxu0 }
 0x5db   : > { %2472 = vadd.xlane.f32.xlu1 %v9193_v60  ;;  %v1731_v15 = vadd.f32 %v1730_v51, %v12241_v55  ;;  %v1732_v54 = vpop.f32.mrb[111].mxu0 }
 0x5dc   : > { %v9221_v1 = vpop.eup %7272  ;;  %v1733_v57 = vadd.f32 %v1732_v54, %v8782_v39  ;;  %v1736_v41 = vpop.f32.mrb[112].mxu0  ;;  %6788 = vmatprep.subr.bf16.mxu1 %v1840_v6 }
 0x5dd   : > { %2474 = vadd.xlane.f32.xlu0 %v9196_v58  ;;  %v9244_v61 = vpack.c.bf16 %v1731_v15, %v1727_v21  ;;  %v1737_v35 = vadd.f32 %v1736_v41, %v12241_v55  ;;  %v1738_v23 = vpop.f32.mrb[113].mxu0  ;;  %6789 = vmatpush3.bf16.msra.mxu1 %v1840_v6 }
 0x5de   : > { %v9227_v49 = vpop.eup %7274  ;;  %v1846_v7 = vpack.c.bf16 %v1733_v57, %v1729_v26  ;;  %v1739_v51 = vadd.f32 %v1738_v23, %v8782_v39  ;;  %v1740_v29 = vpop.f32.mrb[114].mxu0 }
 0x5df   : > { %2476 = vadd.xlane.f32.xlu1 %v9199_v12  ;;  %v1742_v54 = vpop.f32.mrb[115].mxu0 }
 0x5e0   : > { %v1743_v15 = vadd.f32 %v1742_v54, %v8782_v39  ;;  %v1746_v41 = vpop.f32.mrb[116].mxu0  ;;  %6790 = vmatprep.subr.bf16.mxu1 %v1846_v7 }
 0x5e1   : > { %2478 = vadd.xlane.f32.xlu0 %v9202_v2  ;;  %v1748_v26 = vpop.f32.mrb[117].mxu0  ;;  %6791 = vmatpush3.bf16.msra.mxu1 %v1846_v7 }
 0x5e2   : > { %v1750_v23 = vpop.f32.mrb[118].mxu0 }
 0x5e3   : > { %2480 = vadd.xlane.f32.xlu1 %v9205_v14 }
 0x5e5   : > { %2482 = vadd.xlane.f32.xlu0 %v9208_v31 }
 0x5e7   : > { %2484 = vadd.xlane.f32.xlu1 %v9214_v10 }
 0x5e9   : > { %2486 = vadd.xlane.f32.xlu0 %v9221_v1 }
 0x5eb   : > { %2488 = vadd.xlane.f32.xlu1 %v9227_v49 }
 0x5f1   : > { %v2774_v11 = vpop.xlane.xlu0 %2773 }
 0x5f2   : > { %v2805_v9 = vsub.f32 %v9108_v47, %v2774_v11  ;;  %v1741_v47 = vadd.f32 %v1740_v29, %v12241_v55 }
 0x5f3   : > { %v2776_v5 = vpop.xlane.xlu1 %2775 }
 0x5f4   : > { %v2821_v62 = vmul.f32 1.442695, %v2805_v9  ;;  %v2806_v28 = vsub.f32 %v9110_v30, %v2776_v5  ;;  %v9252_v9 = vpack.c.bf16 %v1741_v47, %v1737_v35  ;;  %v1747_v30 = vadd.f32 %v1746_v41, %v12241_v55 }
 0x5f5   : > { %v2778_v8 = vpop.xlane.xlu0 %2777  ;;  %v1852_v5 = vpack.c.bf16 %v1743_v15, %v1739_v51 }
 0x5f6   : > { %7276 = vpow2.f32 %v2821_v62  ;;  %v2823_v11 = vmul.f32 1.442695, %v2806_v28  ;;  %v2807_v21 = vsub.f32 %v9113_v52, %v2778_v8  ;;  %v1749_v8 = vadd.f32 %v1748_v26, %v8782_v39  ;;  %v1752_v28 = vpop.f32.mrb[119].mxu0 }
 0x5f7   : > { %v2780_v6 = vpop.xlane.xlu1 %2779  ;;  %v1751_v52 = vadd.f32 %v1750_v23, %v12241_v55  ;;  %v1753_v35 = vadd.f32 %v1752_v28, %v8782_v39  ;;  %v1756_v47 = vpop.f32.mrb[120].mxu0  ;;  %6792 = vmatprep.subr.bf16.mxu1 %v1852_v5 }
 0x5f8   : > { %7278 = vpow2.f32 %v2823_v11  ;;  %v2825_v57 = vmul.f32 1.442695, %v2807_v21  ;;  %v2808_v29 = vsub.f32 %v9116_v38, %v2780_v6  ;;  %v1757_v11 = vadd.f32 %v1756_v47, %v12241_v55  ;;  %v1758_v38 = vpop.f32.mrb[121].mxu0  ;;  %6793 = vmatpush3.bf16.msra.mxu1 %v1852_v5 }
 0x5f9   : > { %v2786_v62 = vpop.xlane.xlu0 %2785  ;;  %v9259_v7 = vpack.c.bf16 %v1751_v52, %v1747_v30  ;;  %v1858_v51 = vpack.c.bf16 %v1753_v35, %v1749_v8  ;;  %v1760_v21 = vpop.f32.mrb[122].mxu0  ;;  %v1759_v6 = vadd.f32 %v1758_v38, %v8782_v39 }
 0x5fa   : > { %7280 = vpow2.f32 %v2825_v57  ;;  %v2827_v54 = vmul.f32 1.442695, %v2808_v29  ;;  %v1761_v26 = vadd.f32 %v1760_v21, %v12241_v55  ;;  %v1762_v57 = vpop.f32.mrb[123].mxu0  ;;  %v2811_v29 = vsub.f32 %v9119_v20, %v2786_v62 }
 0x5fb   : > { %v2788_v41 = vpop.xlane.xlu1 %2787  ;;  %v1763_v30 = vadd.f32 %v1762_v57, %v8782_v39  ;;  %v1766_v52 = vpop.f32.mrb[124].mxu0  ;;  %6794 = vmatprep.subr.bf16.mxu1 %v1858_v51 }
 0x5fc   : > { %7282 = vpow2.f32 %v2827_v54  ;;  %v9267_v47 = vpack.c.bf16 %v1761_v26, %v1757_v11  ;;  %v1767_v5 = vadd.f32 %v1766_v52, %v12241_v55  ;;  %v1768_v8 = vpop.f32.mrb[125].mxu0  ;;  %6795 = vmatpush3.bf16.msra.mxu1 %v1858_v51  ;;  %v2812_v35 = vsub.f32 %v9122_v46, %v2788_v41 }
 0x5fd   : > { %v2782_v15 = vpop.xlane.xlu0 %2781  ;;  %v1864_v62 = vpack.c.bf16 %v1763_v30, %v1759_v6  ;;  %v2833_v26 = vmul.f32 1.442695, %v2811_v29 }
 0x5fe   : > { %v2809_v23 = vsub.f32 %v9125_v17, %v2782_v15  ;;  %v1770_v17 = vpop.f32.mrb[126].mxu0  ;;  %v2835_v41 = vmul.f32 1.442695, %v2812_v35 }
 0x5ff   : > { %v2784_v28 = vpop.xlane.xlu1 %2783  ;;  %v1771_v15 = vadd.f32 %v1770_v17, %v12241_v55  ;;  %6796 = vmatprep.subr.bf16.mxu1 %v1864_v62 }
 0x600   : > { %v9270_v54 = vpop.eup %7276  ;;  %v2829_v38 = vmul.f32 1.442695, %v2809_v23  ;;  %v2810_v20 = vsub.f32 %v9128_v16, %v2784_v28  ;;  %6797 = vmatpush3.bf16.msra.mxu1 %v1864_v62 }
 0x601   : > { %v2794_v21 = vpop.xlane.xlu0 %2793  ;;  %2853 = vadd.xlane.f32.xlu0 %v9270_v54  ;;  %v9279_v46 = vpack.c.bf16 %v1771_v15, %v1767_v5 }
 0x602   : > { %v9276_v11 = vpop.eup %7278  ;;  %7284 = vpow2.f32 %v2829_v38  ;;  %v2831_v57 = vmul.f32 1.442695, %v2810_v20  ;;  %v2815_v29 = vsub.f32 %v9131_v27, %v2794_v21 }
 0x603   : > { %2855 = vadd.xlane.f32.xlu1 %v9276_v11  ;;  %v2796_v51 = vpop.xlane.xlu1 %2795 }
 0x604   : > { %v9281_v16 = vpop.eup %7280  ;;  %7286 = vpow2.f32 %v2831_v57  ;;  %v2816_v52 = vsub.f32 %v9134_v32, %v2796_v51  ;;  %v2841_v35 = vmul.f32 1.442695, %v2815_v29  ;;  %v1772_v57 = vpop.f32.mrb[127].mxu0 }
 0x605   : > { %v2790_v6 = vpop.xlane.xlu0 %2789  ;;  %2857 = vadd.xlane.f32.xlu0 %v9281_v16  ;;  %7288 = vpow2.f32 %v2833_v26  ;;  %v1769_v26 = vadd.f32 %v1768_v8, %v8782_v39  ;;  %v1773_v51 = vadd.f32 %v1772_v57, %v8782_v39 }
 0x606   : > { %v9284_v55 = vpop.eup %7282  ;;  %v2813_v23 = vsub.f32 %v9137_v63, %v2790_v6  ;;  %7290 = vpow2.f32 %v2835_v41  ;;  %v2843_v62 = vmul.f32 1.442695, %v2816_v52 }
 0x607   : > { %2859 = vadd.xlane.f32.xlu1 %v9284_v55  ;;  %v2792_v30 = vpop.xlane.xlu1 %2791  ;;  %v1870_v41 = vpack.c.bf16 %v1773_v51, %v1769_v26 }
 0x608   : > { %v2837_v28 = vmul.f32 1.442695, %v2813_v23  ;;  %v2814_v5 = vsub.f32 %v9140_v48, %v2792_v30 }
 0x609   : > { %6798 = vmatprep.subr.bf16.mxu1 %v1870_v41 }
 0x60a   : > { %7292 = vpow2.f32 %v2837_v28  ;;  %v2839_v38 = vmul.f32 1.442695, %v2814_v5  ;;  %6799 = vmatpush3.bf16.msra.mxu1 %v1870_v41 }
 0x60c   : > { %v9291_v20 = vpop.eup %7284  ;;  %7294 = vpow2.f32 %v2839_v38 }
 0x60d   : > { %2861 = vadd.xlane.f32.xlu0 %v9291_v20  ;;  %7296 = vpow2.f32 %v2841_v35 }
 0x60e   : > { %v9294_v27 = vpop.eup %7286  ;;  %7298 = vpow2.f32 %v2843_v62 }
 0x60f   : > { %2863 = vadd.xlane.f32.xlu1 %v9294_v27  ;;  %v9297_v63 = vpop.eup %7288 }
 0x610   : > { %v9300_v32 = vpop.eup %7290 }
 0x611   : > { %2865 = vadd.xlane.f32.xlu0 %v9297_v63 }
 0x613   : > { %2867 = vadd.xlane.f32.xlu1 %v9300_v32 }
 0x614   : > { %v9303_v48 = vpop.eup %7292 }
 0x615   : > { %2869 = vadd.xlane.f32.xlu0 %v9303_v48 }
 0x616   : > { %v9306_v17 = vpop.eup %7294 }
 0x617   : > { %2871 = vadd.xlane.f32.xlu1 %v9306_v17  ;;  %v9309_v21 = vpop.eup %7296 }
 0x618   : > { %v9312_v15 = vpop.eup %7298 }
 0x619   : > { %2873 = vadd.xlane.f32.xlu0 %v9309_v21 }
 0x61b   : > { %2875 = vadd.xlane.f32.xlu1 %v9312_v15 }
 0x652   : > { %v2463_v6 = vpop.xlane.xlu0 %2462 }
 0x653   : > { %7300 = vrcp.f32 %v2463_v6 }
 0x654   : > { %v2465_v29 = vpop.xlane.xlu1 %2464 }
 0x655   : > { %7302 = vrcp.f32 %v2465_v29 }
 0x656   : > { %v2459_v23 = vpop.xlane.xlu0 %2458 }
 0x657   : > { %7304 = vrcp.f32 %v2459_v23 }
 0x658   : > { %v2461_v30 = vpop.xlane.xlu1 %2460 }
 0x659   : > { %7306 = vrcp.f32 %v2461_v30 }
 0x65a   : > { %v2798_v52 = vpop.xlane.xlu0 %2797 }
 0x65b   : > { %v2817_v28 = vsub.f32 %v9164_v25, %v2798_v52 }
 0x65c   : > { %v2800_v5 = vpop.xlane.xlu1 %2799 }
 0x65d   : > { %v7301_v8 = vpop.eup %7300  ;;  %v2845_v35 = vmul.f32 1.442695, %v2817_v28  ;;  %v2818_v39 = vsub.f32 %v9168_v44, %v2800_v5 }
 0x65e   : > { %v2495_v38 = vmul.f32 %v7301_v8, %v9149_v50  ;;  %v2802_v62 = vpop.xlane.xlu0 %2801 }
 0x65f   : > { %v7303_v26 = vpop.eup %7302  ;;  %7308 = vpow2.f32 %v2845_v35  ;;  %v2847_v57 = vmul.f32 1.442695, %v2818_v39  ;;  %v2819_v51 = vsub.f32 %v9172_v56, %v2802_v62 }
 0x660   : > { %6306 = vst [vmem:[%s8900_s11 + $0x90] sm:$0xff] %v2495_v38  ;;  %v2497_v41 = vmul.f32 %v7303_v26, %v9153_v24  ;;  %v2804_v6 = vpop.xlane.xlu1 %2803 }
 0x661   : > { %v7305_v25 = vpop.eup %7304  ;;  %7310 = vpow2.f32 %v2847_v57  ;;  %v2849_v29 = vmul.f32 1.442695, %v2819_v51  ;;  %v2820_v23 = vsub.f32 %v9176_v33, %v2804_v6 }
 0x662   : > { %6307 = vst [vmem:[%s8900_s11 + $0x98] sm:$0xff] %v2497_v41  ;;  %v2467_v44 = vpop.xlane.xlu0 %2466  ;;  %v2491_v50 = vmul.f32 %v7305_v25, %v9157_v53  ;;  %v2540_v8 = vpack.c.bf16 %v2497_v41, %v2495_v38 }
 0x663   : > { %v7307_v30 = vpop.eup %7306  ;;  %7312 = vpow2.f32 %v2849_v29  ;;  %v2851_v52 = vmul.f32 1.442695, %v2820_v23 }
 0x664   : > { %7314 = vrcp.f32 %v2467_v44  ;;  %v2469_v56 = vpop.xlane.xlu1 %2468  ;;  %v2493_v28 = vmul.f32 %v7307_v30, %v9161_v37  ;;  %6304 = vst [vmem:[%s8900_s11 + $0x80] sm:$0xff] %v2491_v50 }
 0x665   : > { %7316 = vpow2.f32 %v2851_v52 }
 0x666   : > { %7318 = vrcp.f32 %v2469_v56  ;;  %v2471_v24 = vpop.xlane.xlu0 %2470  ;;  %6305 = vst [vmem:[%s8900_s11 + $0x88] sm:$0xff] %v2493_v28  ;;  %v2539_v5 = vpack.c.bf16 %v2493_v28, %v2491_v50 }
 0x667   : > { %7320 = vrcp.f32 %v2471_v24 }
 0x668   : > { %6672 = vmatprep.mubr.bf16.mxu0 %v2539_v5  ;;  %v2473_v33 = vpop.xlane.xlu1 %2472 }
 0x669   : > { %v9329_v35 = vpop.eup %7308  ;;  %7322 = vrcp.f32 %v2473_v33  ;;  %6673 = vmatmul.mubr.bf16.vlgmr.msra.gmra.mrb[128].mxu0 %v2540_v8 }
 0x66a   : > { %6721 = vmatpush3.bf16.msra.mxu0 %v9218_v22  ;;  %2877 = vadd.xlane.f32.xlu0 %v9329_v35  ;;  %v2475_v53 = vpop.xlane.xlu0 %2474 }
 0x66b   : > { %v9333_v37 = vpop.eup %7310  ;;  %7324 = vrcp.f32 %v2475_v53  ;;  %6722 = vmatprep.subr.bf16.mxu0 %v9231_v45 }
 0x66c   : > { %2879 = vadd.xlane.f32.xlu1 %v9333_v37  ;;  %v2477_v39 = vpop.xlane.xlu1 %2476 }
 0x66d   : > { %v9337_v38 = vpop.eup %7312  ;;  %7326 = vrcp.f32 %v2477_v39 }
 0x66e   : > { %v7315_v62 = vpop.eup %7314  ;;  %6723 = vmatpush3.bf16.msra.mxu0 %v9231_v45  ;;  %2881 = vadd.xlane.f32.xlu0 %v9337_v38  ;;  %v2479_v22 = vpop.xlane.xlu0 %2478 }
 0x66f   : > { %v9341_v26 = vpop.eup %7316  ;;  %7328 = vrcp.f32 %v2479_v22  ;;  %6724 = vmatprep.subr.bf16.mxu0 %v9237_v34  ;;  %v2499_v57 = vmul.f32 %v7315_v62, %v9181_v19 }
 0x670   : > { %v7319_v51 = vpop.eup %7318  ;;  %2883 = vadd.xlane.f32.xlu1 %v9341_v26  ;;  %v2481_v41 = vpop.xlane.xlu1 %2480 }
 0x671   : > { %v7321_v6 = vpop.eup %7320  ;;  %7330 = vrcp.f32 %v2481_v41  ;;  %v2501_v45 = vmul.f32 %v7319_v51, %v9185_v3  ;;  %6308 = vst [vmem:[%s8900_s11 + $0xa0] sm:$0xff] %v2499_v57 }
 0x672   : > { %6725 = vmatpush3.bf16.msra.mxu0 %v9237_v34  ;;  %v2483_v25 = vpop.xlane.xlu0 %2482  ;;  %v2503_v29 = vmul.f32 %v7321_v6, %v9189_v42 }
 0x673   : > { %v7323_v23 = vpop.eup %7322  ;;  %7332 = vrcp.f32 %v2483_v25  ;;  %6309 = vst [vmem:[%s8900_s11 + $0xa8] sm:$0xff] %v2501_v45  ;;  %v2541_v19 = vpack.c.bf16 %v2501_v45, %v2499_v57  ;;  %6726 = vmatprep.subr.bf16.mxu0 %v9244_v61 }
 0x674   : > { %v2485_v44 = vpop.xlane.xlu1 %2484  ;;  %v2505_v50 = vmul.f32 %v7323_v23, %v9193_v60  ;;  %6310 = vst [vmem:[%s8900_s11 + $0xb0] sm:$0xff] %v2503_v29 }
 0x675   : > { %v7325_v30 = vpop.eup %7324  ;;  %6676 = vmatprep.mubr.bf16.mxu0 %v2541_v19  ;;  %7334 = vrcp.f32 %v2485_v44 }
 0x676   : > { %6727 = vmatpush3.bf16.msra.mxu0 %v9244_v61  ;;  %v2487_v34 = vpop.xlane.xlu0 %2486  ;;  %6311 = vst [vmem:[%s8900_s11 + $0xb8] sm:$0xff] %v2505_v50  ;;  %v2542_v3 = vpack.c.bf16 %v2505_v50, %v2503_v29  ;;  %v2507_v42 = vmul.f32 %v7325_v30, %v9196_v58 }
 0x677   : > { %v7327_v52 = vpop.eup %7326  ;;  %7336 = vrcp.f32 %v2487_v34  ;;  %6728 = vmatprep.subr.bf16.mxu0 %v9252_v9 }
 0x678   : > { %6677 = vmatmul.mubr.bf16.gmra.mrb[132].mxu0 %v2542_v3  ;;  %v2489_v60 = vpop.xlane.xlu1 %2488  ;;  %v2509_v56 = vmul.f32 %v7327_v52, %v9199_v12  ;;  %6312 = vst [vmem:[%s8900_s11 + $0xc0] sm:$0xff] %v2507_v42  ;;  %v12243_v3 = vld [vmem:[#allocation31_spill] sm:$0xff] }
 0x679   : > { %v7329_v28 = vpop.eup %7328  ;;  %7338 = vrcp.f32 %v2489_v60 }
 0x67a   : > { %6729 = vmatpush3.bf16.msra.mxu0 %v9252_v9  ;;  %6313 = vst [vmem:[%s8900_s11 + $0xc8] sm:$0xff] %v2509_v56  ;;  %v2543_v61 = vpack.c.bf16 %v2509_v56, %v2507_v42  ;;  %v2511_v58 = vmul.f32 %v7329_v28, %v9202_v2 }
 0x67b   : > { %v7331_v24 = vpop.eup %7330  ;;  %6730 = vmatprep.subr.bf16.mxu0 %v9259_v7 }
 0x67c   : > { %6680 = vmatprep.mubr.bf16.mxu0 %v2543_v61  ;;  %v2513_v5 = vmul.f32 %v7331_v24, %v9205_v14  ;;  %6314 = vst [vmem:[%s8900_s11 + $0xd0] sm:$0xff] %v2511_v58 }
 0x67d   : > { %v7333_v8 = vpop.eup %7332 }
 0x67e   : > { %6731 = vmatpush3.bf16.msra.mxu0 %v9259_v7  ;;  %6315 = vst [vmem:[%s8900_s11 + $0xd8] sm:$0xff] %v2513_v5  ;;  %v2544_v12 = vpack.c.bf16 %v2513_v5, %v2511_v58  ;;  %v2515_v9 = vmul.f32 %v7333_v8, %v9208_v31  ;;  %v12244_v8 = vld [vmem:[#allocation36_spill] sm:$0xff] }
 0x67f   : > { %v7335_v33 = vpop.eup %7334  ;;  %6732 = vmatprep.subr.bf16.mxu0 %v9267_v47 }
 0x680   : > { %6681 = vmatmul.mubr.bf16.gmra.mrb[136].mxu0 %v2544_v12  ;;  %v2517_v2 = vmul.f32 %v7335_v33, %v9214_v10  ;;  %6316 = vst [vmem:[%s8900_s11 + $0xe0] sm:$0xff] %v2515_v9  ;;  %v12242_v10 = vld [vmem:[#allocation26_spill] sm:$0xff] }
 0x681   : > { %v7337_v53 = vpop.eup %7336 }
 0x682   : > { %6733 = vmatpush3.bf16.msra.mxu0 %v9267_v47  ;;  %6317 = vst [vmem:[%s8900_s11 + $0xe8] sm:$0xff] %v2517_v2  ;;  %v2545_v14 = vpack.c.bf16 %v2517_v2, %v2515_v9  ;;  %v2519_v7 = vmul.f32 %v7337_v53, %v9221_v1 }
 0x683   : > { %v7339_v39 = vpop.eup %7338  ;;  %6734 = vmatprep.subr.bf16.mxu0 %v9279_v46 }
 0x684   : > { %6684 = vmatprep.mubr.bf16.mxu0 %v2545_v14  ;;  %v2521_v31 = vmul.f32 %v7339_v39, %v9227_v49  ;;  %6318 = vst [vmem:[%s8900_s11 + $0xf0] sm:$0xff] %v2519_v7  ;;  %v12247_v39 = vld [vmem:[#allocation53_spill] sm:$0xff] }
 0x686   : > { %6735 = vmatpush3.bf16.msra.mxu0 %v9279_v46  ;;  %6319 = vst [vmem:[%s8900_s11 + $0xf8] sm:$0xff] %v2521_v31  ;;  %v2546_v62 = vpack.c.bf16 %v2521_v31, %v2519_v7  ;;  %v12245_v7 = vld [vmem:[#allocation41_spill] sm:$0xff] }
 0x687   : > { %6752 = vmatprep.subr.bf16.mxu0 %v12242_v10 }
 0x688   : > { %6685 = vmatmul.mubr.bf16.gmra.mrb[140].mxu0 %v2546_v62 }
 0x68e   : > { %v2854_v47 = vpop.xlane.xlu0 %2853 }
 0x68f   : > { %7340 = vrcp.f32 %v2854_v47 }
 0x690   : > { %v2856_v22 = vpop.xlane.xlu1 %2855 }
 0x691   : > { %7342 = vrcp.f32 %v2856_v22 }
 0x692   : > { %v2858_v1 = vpop.xlane.xlu0 %2857 }
 0x693   : > { %7344 = vrcp.f32 %v2858_v1 }
 0x694   : > { %v2860_v57 = vpop.xlane.xlu1 %2859 }
 0x695   : > { %7346 = vrcp.f32 %v2860_v57 }
 0x699   : > { %v7341_v51 = vpop.eup %7340 }
 0x69a   : > { %v2862_v49 = vpop.xlane.xlu0 %2861  ;;  %v2886_v46 = vmul.f32 %v7341_v51, %v9270_v54 }
 0x69b   : > { %v7343_v41 = vpop.eup %7342  ;;  %7348 = vrcp.f32 %v2862_v49 }
 0x69c   : > { %v2864_v6 = vpop.xlane.xlu1 %2863  ;;  %v2888_v45 = vmul.f32 %v7343_v41, %v9276_v11  ;;  %6320 = vst [vmem:[%s8900_s11 + $0x100] sm:$0xff] %v2886_v46 }
 0x69d   : > { %v7345_v25 = vpop.eup %7344  ;;  %7350 = vrcp.f32 %v2864_v6 }
 0x69e   : > { %v2890_v29 = vmul.f32 %v7345_v25, %v9281_v16  ;;  %v2866_v23 = vpop.xlane.xlu0 %2865  ;;  %6321 = vst [vmem:[%s8900_s11 + $0x108] sm:$0xff] %v2888_v45  ;;  %v2934_v19 = vpack.c.bf16 %v2888_v45, %v2886_v46 }
 0x69f   : > { %v7347_v44 = vpop.eup %7346  ;;  %7352 = vrcp.f32 %v2866_v23  ;;  %v12251_v23 = vld [vmem:[#allocation24_spill] sm:$0xff] }
 0x6a0   : > { %6322 = vst [vmem:[%s8900_s11 + $0x110] sm:$0xff] %v2890_v29  ;;  %v2892_v50 = vmul.f32 %v7347_v44, %v9284_v55  ;;  %6736 = vmatprep.mubr.bf16.mxu0 %v2934_v19  ;;  %v2868_v54 = vpop.xlane.xlu1 %2867  ;;  %v12253_v19 = vld [vmem:[#allocation30_spill] sm:$0xff] }
 0x6a1   : > { %7354 = vrcp.f32 %v2868_v54  ;;  %v12257_v54 = vld [vmem:[#allocation33_spill] sm:$0xff] }
 0x6a2   : > { %6323 = vst [vmem:[%s8900_s11 + $0x118] sm:$0xff] %v2892_v50  ;;  %v2870_v30 = vpop.xlane.xlu0 %2869  ;;  %v2935_v11 = vpack.c.bf16 %v2892_v50, %v2890_v29  ;;  %v12250_v29 = vld [vmem:[#allocation25_spill] sm:$0xff]  ;;  %v12256_v50 = vld [vmem:[#allocation35_spill] sm:$0xff] }
 0x6a3   : > { %7356 = vrcp.f32 %v2870_v30  ;;  %v12258_v30 = vpack.c.bf16 %v12256_v50, %v12257_v54 }
 0x6a4   : > { %6737 = vmatmul.mubr.bf16.vlgmr.msra.gmra.mrb[144].mxu0 %v2935_v11  ;;  %v2872_v34 = vpop.xlane.xlu1 %2871  ;;  %v12260_v11 = vld [vmem:[#allocation38_spill] sm:$0xff] }
 0x6a5   : > { %v7349_v16 = vpop.eup %7348  ;;  %6753 = vmatpush3.bf16.xpose.msra.mxu0 %v12242_v10  ;;  %7358 = vrcp.f32 %v2872_v34 }
 0x6a6   : > { %6754 = vmatprep.subr.bf16.mxu0 %v12243_v3  ;;  %v2874_v42 = vpop.xlane.xlu0 %2873  ;;  %v2894_v55 = vmul.f32 %v7349_v16, %v9291_v20  ;;  %v12263_v16 = vld [vmem:[#allocation43_spill] sm:$0xff] }
 0x6a7   : > { %v7351_v52 = vpop.eup %7350  ;;  %7360 = vrcp.f32 %v2874_v42  ;;  %v12265_v42 = vld [vmem:[#allocation51_spill] sm:$0xff] }
 0x6a8   : > { %v2876_v60 = vpop.xlane.xlu1 %2875  ;;  %v2896_v56 = vmul.f32 %v7351_v52, %v9294_v27  ;;  %6324 = vst [vmem:[%s8900_s11 + $0x120] sm:$0xff] %v2894_v55 }
 0x6a9   : > { %v7353_v28 = vpop.eup %7352  ;;  %7362 = vrcp.f32 %v2876_v60  ;;  %v12268_v60 = vld [vmem:[#allocation57_spill] sm:$0xff] }
 0x6aa   : > { %6325 = vst [vmem:[%s8900_s11 + $0x128] sm:$0xff] %v2896_v56  ;;  %v2936_v61 = vpack.c.bf16 %v2896_v56, %v2894_v55  ;;  %v2898_v58 = vmul.f32 %v7353_v28, %v9297_v63  ;;  %v12266_v55 = vld [vmem:[#allocation49_spill] sm:$0xff]  ;;  %v12269_v56 = vld [vmem:[#allocation55_spill] sm:$0xff] }
 0x6ab   : > { %v7355_v24 = vpop.eup %7354  ;;  %v12267_v52 = vpack.c.bf16 %v12265_v42, %v12266_v55  ;;  %v12270_v28 = vpack.c.bf16 %v12268_v60, %v12269_v56 }
 0x6ac   : > { %6740 = vmatprep.mubr.bf16.mxu0 %v2936_v61  ;;  %v2900_v5 = vmul.f32 %v7355_v24, %v9300_v32  ;;  %6326 = vst [vmem:[%s8900_s11 + $0x130] sm:$0xff] %v2898_v58  ;;  %v12271_v61 = vld [vmem:[#allocation63_spill] sm:$0xff] }
 0x6ad   : > { %v7357_v20 = vpop.eup %7356  ;;  %6755 = vmatpush3.bf16.xpose.msra.mxu0 %v12243_v3 }
 0x6ae   : > { %6756 = vmatprep.subr.bf16.mxu0 %v12244_v8  ;;  %6327 = vst [vmem:[%s8900_s11 + $0x138] sm:$0xff] %v2900_v5  ;;  %v2937_v27 = vpack.c.bf16 %v2900_v5, %v2898_v58  ;;  %v2902_v12 = vmul.f32 %v7357_v20, %v9303_v48  ;;  %v12272_v58 = vld [vmem:[#allocation61_spill] sm:$0xff] }
 0x6af   : > { %v7359_v9 = vpop.eup %7358  ;;  %v12273_v24 = vpack.c.bf16 %v12271_v61, %v12272_v58 }
 0x6b0   : > { %6741 = vmatmul.mubr.bf16.gmra.mrb[148].mxu0 %v2937_v27  ;;  %v2904_v63 = vmul.f32 %v7359_v9, %v9306_v17  ;;  %6328 = vst [vmem:[%s8900_s11 + $0x140] sm:$0xff] %v2902_v12  ;;  %v12246_v17 = vld [vmem:[#allocation47_spill] sm:$0xff] }
 0x6b1   : > { %v7361_v33 = vpop.eup %7360 }
 0x6b2   : > { %6329 = vst [vmem:[%s8900_s11 + $0x148] sm:$0xff] %v2904_v63  ;;  %v2938_v32 = vpack.c.bf16 %v2904_v63, %v2902_v12  ;;  %v2906_v2 = vmul.f32 %v7361_v33, %v9309_v21  ;;  %v12248_v21 = vld [vmem:[#allocation59_spill] sm:$0xff] }
 0x6b3   : > { %v7363_v53 = vpop.eup %7362 }
 0x6b4   : > { %6744 = vmatprep.mubr.bf16.mxu0 %v2938_v32  ;;  %v2908_v14 = vmul.f32 %v7363_v53, %v9312_v15  ;;  %6330 = vst [vmem:[%s8900_s11 + $0x150] sm:$0xff] %v2906_v2  ;;  %v12249_v15 = vld [vmem:[#allocation66_spill] sm:$0xff] }
 0x6b5   : > { %6757 = vmatpush3.bf16.xpose.msra.mxu0 %v12244_v8 }
 0x6b6   : > { %6758 = vmatprep.subr.bf16.mxu0 %v12245_v7  ;;  %6331 = vst [vmem:[%s8900_s11 + $0x158] sm:$0xff] %v2908_v14  ;;  %v2939_v48 = vpack.c.bf16 %v2908_v14, %v2906_v2 }
 0x6b8   : > { %6745 = vmatmul.mubr.bf16.gmra.mrb[152].mxu0 %v2939_v48 }
 0x6bd   : > { %6759 = vmatpush3.bf16.xpose.msra.mxu0 %v12245_v7 }
 0x6be   : > { %6760 = vmatprep.subr.bf16.mxu0 %v12246_v17 }
 0x6c5   : > { %6761 = vmatpush3.bf16.xpose.msra.mxu0 %v12246_v17 }
 0x6c6   : > { %6762 = vmatprep.subr.bf16.mxu0 %v12247_v39 }
 0x6cd   : > { %6763 = vmatpush3.bf16.xpose.msra.mxu0 %v12247_v39 }
 0x6ce   : > { %6764 = vmatprep.subr.bf16.mxu0 %v12248_v21 }
 0x6d5   : > { %6765 = vmatpush3.bf16.xpose.msra.mxu0 %v12248_v21 }
 0x6d6   : > { %6766 = vmatprep.subr.bf16.mxu0 %v12249_v15 }
 0x6dd   : > { %6767 = vmatpush3.bf16.xpose.msra.mxu0 %v12249_v15 }
 0x6f7   : > { %v2878_v31 = vpop.xlane.xlu0 %2877 }
 0x6f8   : > { %7364 = vrcp.f32 %v2878_v31 }
 0x6f9   : > { %v2880_v62 = vpop.xlane.xlu1 %2879 }
 0x6fa   : > { %7366 = vrcp.f32 %v2880_v62 }
 0x6fb   : > { %v2882_v10 = vpop.xlane.xlu0 %2881 }
 0x6fc   : > { %7368 = vrcp.f32 %v2882_v10 }
 0x6fd   : > { %v2884_v47 = vpop.xlane.xlu1 %2883 }
 0x6fe   : > { %7370 = vrcp.f32 %v2884_v47 }
 0x702   : > { %v7365_v22 = vpop.eup %7364 }
 0x703   : > { %v2910_v1 = vmul.f32 %v7365_v22, %v9329_v35  ;;  %v12252_v35 = vpack.c.bf16 %v12250_v29, %v12251_v23 }
 0x704   : > { %v7367_v57 = vpop.eup %7366 }
 0x705   : > { %v2912_v51 = vmul.f32 %v7367_v57, %v9333_v37  ;;  %6332 = vst [vmem:[%s8900_s11 + $0x160] sm:$0xff] %v2910_v1  ;;  %v12254_v37 = vld [vmem:[#allocation28_spill] sm:$0xff] }
 0x706   : > { %v7369_v49 = vpop.eup %7368  ;;  %v12255_v44 = vpack.c.bf16 %v12253_v19, %v12254_v37 }
 0x707   : > { %6333 = vst [vmem:[%s8900_s11 + $0x168] sm:$0xff] %v2912_v51  ;;  %v2940_v46 = vpack.c.bf16 %v2912_v51, %v2910_v1  ;;  %v2914_v41 = vmul.f32 %v7369_v49, %v9337_v38  ;;  %v12259_v38 = vld [vmem:[#allocation40_spill] sm:$0xff] }
 0x708   : > { %v7371_v6 = vpop.eup %7370  ;;  %v12261_v34 = vpack.c.bf16 %v12259_v38, %v12260_v11 }
 0x709   : > { %6748 = vmatprep.mubr.bf16.mxu0 %v2940_v46  ;;  %v2916_v45 = vmul.f32 %v7371_v6, %v9341_v26  ;;  %6334 = vst [vmem:[%s8900_s11 + $0x170] sm:$0xff] %v2914_v41  ;;  %v12262_v26 = vld [vmem:[#allocation45_spill] sm:$0xff] }
 0x70a   : > { %v12264_v3 = vpack.c.bf16 %v12262_v26, %v12263_v16 }
 0x70b   : > { %6335 = vst [vmem:[%s8900_s11 + $0x178] sm:$0xff] %v2916_v45  ;;  %v2941_v25 = vpack.c.bf16 %v2916_v45, %v2914_v41 }
 0x70d   : > { %6749 = vmatmul.mubr.bf16.gmra.mrb[156].mxu0 %v2941_v25 }
 0x70e   : > { %6768 = vmatprep.mubr.bf16.mxu0 %v12252_v35 }
 0x715   : > { %6769 = vmatmul.mubr.bf16.vlgmr.msra.gmra.mrb[160].mxu0 %v12255_v44 }
 0x716   : > { %6772 = vmatprep.mubr.bf16.mxu0 %v12258_v30 }
 0x71d   : > { %6773 = vmatmul.mubr.bf16.gmra.mrb[164].mxu0 %v12261_v34 }
 0x71e   : > { %6776 = vmatprep.mubr.bf16.mxu0 %v12264_v3 }
 0x725   : > { %6777 = vmatmul.mubr.bf16.gmra.mrb[168].mxu0 %v12267_v52 }
 0x726   : > { %6780 = vmatprep.mubr.bf16.mxu0 %v12270_v28 }
 0x72d   : > { %6781 = vmatmul.mubr.bf16.gmra.mrb[172].mxu0 %v12273_v24 }
 0x73c   : > { %v9452_v5 = vpop.f32.mrb[128].mxu0 }
 0x73d   : > { %v9454_v20 = vpop.f32.mrb[129].mxu0 }
 0x73e   : > { %v9456_v8 = vpop.f32.mrb[130].mxu0 }
 0x73f   : > { %v9460_v12 = vpop.f32.mrb[131].mxu0 }
 0x74b   : > { %v9464_v63 = vpop.f32.mrb[132].mxu0 }
 0x74c   : > { %v9466_v33 = vpop.f32.mrb[133].mxu0 }
 0x74d   : > { %v9468_v32 = vpop.f32.mrb[134].mxu0 }
 0x74e   : > { %v9472_v53 = vpop.f32.mrb[135].mxu0 }
 0x753   : > { %v9476_v7 = vpop.f32.mrb[136].mxu0 }
 0x754   : > { %v9478_v48 = vpop.f32.mrb[137].mxu0 }
 0x755   : > { %v9480_v17 = vpop.f32.mrb[138].mxu0 }
 0x756   : > { %v9484_v21 = vpop.f32.mrb[139].mxu0 }
 0x75b   : > { %v9488_v31 = vpop.f32.mrb[140].mxu0 }
 0x75c   : > { %v9490_v62 = vpop.f32.mrb[141].mxu0 }
 0x75d   : > { %v9492_v10 = vpop.f32.mrb[142].mxu0 }
 0x75e   : > { %v9496_v22 = vpop.f32.mrb[143].mxu0 }
 0x777   : > { %v9500_v57 = vpop.f32.mrb[144].mxu0 }
 0x778   : > { %v9502_v51 = vpop.f32.mrb[145].mxu0 }
 0x779   : > { %v9504_v49 = vpop.f32.mrb[146].mxu0 }
 0x77a   : > { %v9508_v41 = vpop.f32.mrb[147].mxu0 }
 0x783   : > { %v9512_v45 = vpop.f32.mrb[148].mxu0 }
 0x784   : > { %12274 = vst [vmem:[#allocation32_spill] sm:$0xff] %v9512_v45  ;;  %v9514_v25 = vpop.f32.mrb[149].mxu0 }
 0x785   : > { %v9516_v29 = vpop.f32.mrb[150].mxu0 }
 0x786   : > { %v9520_v35 = vpop.f32.mrb[151].mxu0 }
 0x78b   : > { %v9524_v37 = vpop.f32.mrb[152].mxu0 }
 0x78c   : > { %12275 = vst [vmem:[#allocation39_spill] sm:$0xff] %v9524_v37  ;;  %v9526_v44 = vpop.f32.mrb[153].mxu0 }
 0x78d   : > { %12276 = vst [vmem:[#allocation37_spill] sm:$0xff] %v9526_v44  ;;  %v9528_v50 = vpop.f32.mrb[154].mxu0 }
 0x78e   : > { %12277 = vst [vmem:[#allocation44_spill] sm:$0xff] %v9528_v50  ;;  %v9532_v30 = vpop.f32.mrb[155].mxu0 }
 0x78f   : > { %12278 = vst [vmem:[#allocation42_spill] sm:$0xff] %v9532_v30 }
 0x7e0   : > { %v9536_v11 = vpop.f32.mrb[156].mxu0 }
 0x7e1   : > { %12279 = vst [vmem:[#allocation50_spill] sm:$0xff] %v9536_v11  ;;  %v9538_v34 = vpop.f32.mrb[157].mxu0 }
 0x7e2   : > { %12280 = vst [vmem:[#allocation48_spill] sm:$0xff] %v9538_v34  ;;  %v9540_v26 = vpop.f32.mrb[158].mxu0 }
 0x7e3   : > { %12281 = vst [vmem:[#allocation56_spill] sm:$0xff] %v9540_v26  ;;  %v9544_v3 = vpop.f32.mrb[159].mxu0 }
 0x7e4   : > { %12282 = vst [vmem:[#allocation54_spill] sm:$0xff] %v9544_v3 }
 0x7e8   : > { %v6770_v55 = vpop.f32.mrb[160].mxu0 }
 0x7e9   : > { %v3089_v52 = vpop.f32.mrb[161].mxu0  ;;  %v3154_v58 = vmul.f32 0.088388346, %v6770_v55 }
 0x7ea   : > { %v3152_v60 = vmul.f32 0.088388346, %v3089_v52  ;;  %v6771_v56 = vpop.f32.mrb[162].mxu0 }
 0x7eb   : > { %v3092_v28 = vpop.f32.mrb[163].mxu0  ;;  %v3155_v24 = vmul.f32 0.088388346, %v6771_v56 }
 0x7ec   : > { %v3153_v61 = vmul.f32 0.088388346, %v3092_v28  ;;  %3168 = vmax.xlane.f32.xlu0 %v3152_v60 }
 0x7ee   : > { %3170 = vmax.xlane.f32.xlu1 %v3153_v61 }
 0x7f0   : > { %3172 = vmax.xlane.f32.xlu0 %v3154_v58  ;;  %v6774_v54 = vpop.f32.mrb[164].mxu0 }
 0x7f1   : > { %v3105_v38 = vpop.f32.mrb[165].mxu0  ;;  %v3158_v42 = vmul.f32 0.088388346, %v6774_v54 }
 0x7f2   : > { %v3156_v23 = vmul.f32 0.088388346, %v3105_v38  ;;  %3174 = vmax.xlane.f32.xlu1 %v3155_v24  ;;  %v6775_v16 = vpop.f32.mrb[166].mxu0 }
 0x7f3   : > { %v3108_v19 = vpop.f32.mrb[167].mxu0  ;;  %v3159_v6 = vmul.f32 0.088388346, %v6775_v16 }
 0x7f4   : > { %v3157_v46 = vmul.f32 0.088388346, %v3108_v19  ;;  %3176 = vmax.xlane.f32.xlu0 %v3156_v23 }
 0x7f6   : > { %3178 = vmax.xlane.f32.xlu1 %v3157_v46 }
 0x7f8   : > { %3180 = vmax.xlane.f32.xlu0 %v3158_v42  ;;  %v6778_v52 = vpop.f32.mrb[168].mxu0 }
 0x7f9   : > { %v3121_v47 = vpop.f32.mrb[169].mxu0  ;;  %v9553_v38 = vmul.f32 0.088388346, %v6778_v52 }
 0x7fa   : > { %v9548_v28 = vmul.f32 0.088388346, %v3121_v47  ;;  %3182 = vmax.xlane.f32.xlu1 %v3159_v6  ;;  %v6779_v55 = vpop.f32.mrb[170].mxu0 }
 0x7fb   : > { %v3124_v56 = vpop.f32.mrb[171].mxu0  ;;  %v9556_v19 = vmul.f32 0.088388346, %v6779_v55 }
 0x7fc   : > { %v9550_v1 = vmul.f32 0.088388346, %v3124_v56  ;;  %3184 = vmax.xlane.f32.xlu0 %v9548_v28 }
 0x7fe   : > { %3186 = vmax.xlane.f32.xlu1 %v9550_v1 }
 0x800   : > { %3188 = vmax.xlane.f32.xlu0 %v9553_v38  ;;  %v6782_v54 = vpop.f32.mrb[172].mxu0 }
 0x801   : > { %v3137_v16 = vpop.f32.mrb[173].mxu0  ;;  %v9565_v52 = vmul.f32 0.088388346, %v6782_v54 }
 0x802   : > { %v9559_v39 = vmul.f32 0.088388346, %v3137_v16  ;;  %3190 = vmax.xlane.f32.xlu1 %v9556_v19  ;;  %v6783_v47 = vpop.f32.mrb[174].mxu0 }
 0x803   : > { %v3140_v15 = vpop.f32.mrb[175].mxu0  ;;  %v9568_v55 = vmul.f32 0.088388346, %v6783_v47 }
 0x804   : > { %v9562_v56 = vmul.f32 0.088388346, %v3140_v15  ;;  %3192 = vmax.xlane.f32.xlu0 %v9559_v39 }
 0x806   : > { %3194 = vmax.xlane.f32.xlu1 %v9562_v56 }
 0x808   : > { %3196 = vmax.xlane.f32.xlu0 %v9565_v52 }
 0x80a   : > { %3198 = vmax.xlane.f32.xlu1 %v9568_v55 }
 0x879   : > { %v3169_v16 = vpop.xlane.xlu0 %3168 }
 0x87a   : > { %v3200_v2 = vsub.f32 %v3152_v60, %v3169_v16 }
 0x87b   : > { %v3171_v14 = vpop.xlane.xlu1 %3170 }
 0x87c   : > { %v3216_v27 = vmul.f32 1.442695, %v3200_v2  ;;  %v3201_v9 = vsub.f32 %v3153_v61, %v3171_v14 }
 0x87d   : > { %v3173_v11 = vpop.xlane.xlu0 %3172 }
 0x87e   : > { %7372 = vpow2.f32 %v3216_v27  ;;  %v3218_v15 = vmul.f32 1.442695, %v3201_v9  ;;  %v3202_v26 = vsub.f32 %v3154_v58, %v3173_v11 }
 0x87f   : > { %v3175_v34 = vpop.xlane.xlu1 %3174 }
 0x880   : > { %7374 = vpow2.f32 %v3218_v15  ;;  %v3220_v54 = vmul.f32 1.442695, %v3202_v26  ;;  %v3203_v3 = vsub.f32 %v3155_v24, %v3175_v34 }
 0x881   : > { %v3177_v37 = vpop.xlane.xlu0 %3176 }
 0x882   : > { %7376 = vpow2.f32 %v3220_v54  ;;  %v3222_v47 = vmul.f32 1.442695, %v3203_v3  ;;  %v3204_v50 = vsub.f32 %v3156_v23, %v3177_v37 }
 0x883   : > { %v3179_v44 = vpop.xlane.xlu1 %3178 }
 0x884   : > { %7378 = vpow2.f32 %v3222_v47  ;;  %v3224_v30 = vmul.f32 1.442695, %v3204_v50  ;;  %v3205_v45 = vsub.f32 %v3157_v46, %v3179_v44 }
 0x885   : > { %v3181_v60 = vpop.xlane.xlu0 %3180 }
 0x886   : > { %7380 = vpow2.f32 %v3224_v30  ;;  %v3226_v2 = vmul.f32 1.442695, %v3205_v45  ;;  %v3206_v14 = vsub.f32 %v3158_v42, %v3181_v60 }
 0x887   : > { %v3183_v61 = vpop.xlane.xlu1 %3182 }
 0x888   : > { %v9572_v27 = vpop.eup %7372  ;;  %7382 = vpow2.f32 %v3226_v2  ;;  %v3228_v9 = vmul.f32 1.442695, %v3206_v14  ;;  %v3207_v11 = vsub.f32 %v3159_v6, %v3183_v61 }
 0x889   : > { %v3185_v26 = vpop.xlane.xlu0 %3184  ;;  %3248 = vadd.xlane.f32.xlu0 %v9572_v27 }
 0x88a   : > { %v9575_v34 = vpop.eup %7374  ;;  %7384 = vpow2.f32 %v3228_v9  ;;  %v3230_v23 = vmul.f32 1.442695, %v3207_v11  ;;  %v3208_v37 = vsub.f32 %v9548_v28, %v3185_v26 }
 0x88b   : > { %v3187_v46 = vpop.xlane.xlu1 %3186  ;;  %3250 = vadd.xlane.f32.xlu1 %v9575_v34 }
 0x88c   : > { %v9579_v45 = vpop.eup %7376  ;;  %7386 = vpow2.f32 %v3230_v23  ;;  %v3232_v44 = vmul.f32 1.442695, %v3208_v37  ;;  %v3209_v50 = vsub.f32 %v9550_v1, %v3187_v46 }
 0x88d   : > { %v3189_v30 = vpop.xlane.xlu0 %3188  ;;  %3252 = vadd.xlane.f32.xlu0 %v9579_v45 }
 0x88e   : > { %v9583_v6 = vpop.eup %7378  ;;  %7388 = vpow2.f32 %v3232_v44  ;;  %v3234_v3 = vmul.f32 1.442695, %v3209_v50  ;;  %v3210_v42 = vsub.f32 %v9553_v38, %v3189_v30 }
 0x88f   : > { %v3191_v58 = vpop.xlane.xlu1 %3190  ;;  %3254 = vadd.xlane.f32.xlu1 %v9583_v6 }
 0x890   : > { %v9587_v24 = vpop.eup %7380  ;;  %7390 = vpow2.f32 %v3234_v3  ;;  %v3236_v28 = vmul.f32 1.442695, %v3210_v42  ;;  %v3211_v16 = vsub.f32 %v9556_v19, %v3191_v58  ;;  %v7086_v42 = vld [vmem:[#allocation8 + $0x4] ss:$8 sps:$4 sm:$0xff]  }
 0x891   : > { %3256 = vadd.xlane.f32.xlu0 %v9587_v24  ;;  %v3193_v1 = vpop.xlane.xlu0 %3192  ;;  %3686 = vmatprep.subr.bf16.mxu1 %v7086_v42 }
 0x892   : > { %v9591_v15 = vpop.eup %7382  ;;  %7392 = vpow2.f32 %v3236_v28  ;;  %v3238_v54 = vmul.f32 1.442695, %v3211_v16  ;;  %v3212_v47 = vsub.f32 %v9559_v39, %v3193_v1 }
 0x893   : > { %3258 = vadd.xlane.f32.xlu1 %v9591_v15  ;;  %v3195_v38 = vpop.xlane.xlu1 %3194 }
 0x894   : > { %v9595_v60 = vpop.eup %7384  ;;  %7394 = vpow2.f32 %v3238_v54  ;;  %v3240_v2 = vmul.f32 1.442695, %v3212_v47  ;;  %v3213_v14 = vsub.f32 %v9562_v56, %v3195_v38 }
 0x895   : > { %3260 = vadd.xlane.f32.xlu0 %v9595_v60  ;;  %v3197_v19 = vpop.xlane.xlu0 %3196 }
 0x896   : > { %v9599_v61 = vpop.eup %7386  ;;  %7396 = vpow2.f32 %v3240_v2  ;;  %v3242_v9 = vmul.f32 1.442695, %v3213_v14  ;;  %v3214_v11 = vsub.f32 %v9565_v52, %v3197_v19 }
 0x897   : > { %3262 = vadd.xlane.f32.xlu1 %v9599_v61  ;;  %v3199_v39 = vpop.xlane.xlu1 %3198 }
 0x898   : > { %v9603_v26 = vpop.eup %7388  ;;  %7398 = vpow2.f32 %v3242_v9  ;;  %v3244_v23 = vmul.f32 1.442695, %v3214_v11  ;;  %v3215_v37 = vsub.f32 %v9568_v55, %v3199_v39 }
 0x899   : > { %3264 = vadd.xlane.f32.xlu0 %v9603_v26 }
 0x89a   : > { %v9607_v56 = vpop.eup %7390  ;;  %7400 = vpow2.f32 %v3244_v23  ;;  %v3246_v46 = vmul.f32 1.442695, %v3215_v37 }
 0x89b   : > { %3266 = vadd.xlane.f32.xlu1 %v9607_v56 }
 0x89c   : > { %v9610_v44 = vpop.eup %7392  ;;  %7402 = vpow2.f32 %v3246_v46 }
 0x89d   : > { %3268 = vadd.xlane.f32.xlu0 %v9610_v44 }
 0x89e   : > { %v9613_v52 = vpop.eup %7394 }
 0x89f   : > { %3270 = vadd.xlane.f32.xlu1 %v9613_v52 }
 0x8a0   : > { %v9616_v50 = vpop.eup %7396 }
 0x8a1   : > { %3272 = vadd.xlane.f32.xlu0 %v9616_v50 }
 0x8a2   : > { %v9619_v55 = vpop.eup %7398 }
 0x8a3   : > { %3274 = vadd.xlane.f32.xlu1 %v9619_v55 }
 0x8a4   : > { %v9622_v30 = vpop.eup %7400 }
 0x8a5   : > { %3276 = vadd.xlane.f32.xlu0 %v9622_v30 }
 0x8a6   : > { %v9625_v3 = vpop.eup %7402 }
 0x8a7   : > { %3278 = vadd.xlane.f32.xlu1 %v9625_v3 }
 0x916   : > { %v3249_v58 = vpop.xlane.xlu0 %3248 }
 0x917   : > { %7404 = vrcp.f32 %v3249_v58 }
 0x918   : > { %v3251_v28 = vpop.xlane.xlu1 %3250 }
 0x919   : > { %7406 = vrcp.f32 %v3251_v28 }
 0x91a   : > { %v3253_v16 = vpop.xlane.xlu0 %3252 }
 0x91b   : > { %7408 = vrcp.f32 %v3253_v16 }
 0x91c   : > { %v3255_v1 = vpop.xlane.xlu1 %3254 }
 0x91d   : > { %7410 = vrcp.f32 %v3255_v1 }
 0x91e   : > { %v3257_v54 = vpop.xlane.xlu0 %3256 }
 0x91f   : > { %7412 = vrcp.f32 %v3257_v54  ;;  %v7089_v54 = vld [vmem:[#allocation8 + $0x14] ss:$8 sps:$4 sm:$0xff]  }
 0x920   : > { %v3259_v47 = vpop.xlane.xlu1 %3258 }
 0x921   : > { %v7405_v38 = vpop.eup %7404  ;;  %7414 = vrcp.f32 %v3259_v47 }
 0x922   : > { %v3261_v2 = vpop.xlane.xlu0 %3260  ;;  %v3281_v14 = vmul.f32 %v7405_v38, %v9572_v27 }
 0x923   : > { %v7407_v19 = vpop.eup %7406  ;;  %7416 = vrcp.f32 %v3261_v2 }
 0x924   : > { %v3263_v9 = vpop.xlane.xlu1 %3262  ;;  %v3283_v11 = vmul.f32 %v7407_v19, %v9575_v34  ;;  %6336 = vst [vmem:[%s8900_s11 + $0x180] sm:$0xff] %v3281_v14  ;;  %v7084_v34 = vld [vmem:[#allocation8] ss:$8 sps:$4 sm:$0xff]  }
 0x925   : > { %v7409_v39 = vpop.eup %7408  ;;  %7418 = vrcp.f32 %v3263_v9 }
 0x926   : > { %v3285_v23 = vmul.f32 %v7409_v39, %v9579_v45  ;;  %v3265_v37 = vpop.xlane.xlu0 %3264  ;;  %6337 = vst [vmem:[%s8900_s11 + $0x188] sm:$0xff] %v3283_v11  ;;  %v3329_v46 = vpack.c.bf16 %v3283_v11, %v3281_v14  ;;  %v7087_v14 = vld [vmem:[#allocation8 + $0x10] ss:$8 sps:$4 sm:$0xff]   ;;  %v7092_v11 = vld [vmem:[#allocation8 + $0x24] ss:$8 sps:$4 sm:$0xff]  }
 0x927   : > { %v7411_v42 = vpop.eup %7410  ;;  %7420 = vrcp.f32 %v3265_v37 }
 0x928   : > { %6338 = vst [vmem:[%s8900_s11 + $0x190] sm:$0xff] %v3285_v23  ;;  %v3287_v58 = vmul.f32 %v7411_v42, %v9583_v6  ;;  %6800 = vmatprep.mubr.bf16.mxu1 %v3329_v46  ;;  %v3267_v27 = vpop.xlane.xlu1 %3266  ;;  %v7090_v46 = vld [vmem:[#allocation8 + $0x20] ss:$8 sps:$4 sm:$0xff]  }
 0x929   : > { %v7413_v28 = vpop.eup %7412  ;;  %7422 = vrcp.f32 %v3267_v27  ;;  %v7095_v27 = vld [vmem:[#allocation8 + $0x34] ss:$8 sps:$4 sm:$0xff]  }
 0x92a   : > { %6339 = vst [vmem:[%s8900_s11 + $0x198] sm:$0xff] %v3287_v58  ;;  %v3269_v16 = vpop.xlane.xlu0 %3268  ;;  %v3330_v1 = vpack.c.bf16 %v3287_v58, %v3285_v23  ;;  %v3289_v45 = vmul.f32 %v7413_v28, %v9587_v24 }
 0x92b   : > { %v7415_v47 = vpop.eup %7414  ;;  %7424 = vrcp.f32 %v3269_v16 }
 0x92c   : > { %6801 = vmatmul.mubr.bf16.vlgmr.msra.gmra.mrb[128].mxu1 %v3330_v1  ;;  %v3271_v38 = vpop.xlane.xlu1 %3270  ;;  %v3291_v2 = vmul.f32 %v7415_v47, %v9591_v15  ;;  %6340 = vst [vmem:[%s8900_s11 + $0x1a0] sm:$0xff] %v3289_v45  ;;  %v7093_v1 = vld [vmem:[#allocation8 + $0x30] ss:$8 sps:$4 sm:$0xff]  }
 0x92d   : > { %v7417_v6 = vpop.eup %7416  ;;  %3687 = vmatpush1.bf16.msra.mxu1 %v7084_v34  ;;  %7426 = vrcp.f32 %v3271_v38 }
 0x92e   : > { %v3273_v19 = vpop.xlane.xlu0 %3272  ;;  %3688 = vmatprep.subr.bf16.mxu1 %v7089_v54  ;;  %6341 = vst [vmem:[%s8900_s11 + $0x1a8] sm:$0xff] %v3291_v2  ;;  %v3331_v9 = vpack.c.bf16 %v3291_v2, %v3289_v45  ;;  %v3293_v24 = vmul.f32 %v7417_v6, %v9595_v60  ;;  %v7098_v45 = vld [vmem:[#allocation8 + $0x44] ss:$8 sps:$4 sm:$0xff]  }
 0x92f   : > { %v7419_v39 = vpop.eup %7418  ;;  %7428 = vrcp.f32 %v3273_v19 }
 0x930   : > { %6804 = vmatprep.mubr.bf16.mxu1 %v3331_v9  ;;  %v3275_v23 = vpop.xlane.xlu1 %3274  ;;  %v3295_v15 = vmul.f32 %v7419_v39, %v9599_v61  ;;  %6342 = vst [vmem:[%s8900_s11 + $0x1b0] sm:$0xff] %v3293_v24  ;;  %v7104_v39 = vld [vmem:[#allocation8 + $0x64] ss:$8 sps:$4 sm:$0xff]  }
 0x931   : > { %v7421_v37 = vpop.eup %7420  ;;  %3689 = vmatpush1.bf16.msra.mxu1 %v7087_v14  ;;  %7430 = vrcp.f32 %v3275_v23  ;;  %v7101_v14 = vld [vmem:[#allocation8 + $0x54] ss:$8 sps:$4 sm:$0xff]  }
 0x932   : > { %v3277_v42 = vpop.xlane.xlu0 %3276  ;;  %3690 = vmatprep.subr.bf16.mxu1 %v7092_v11  ;;  %6343 = vst [vmem:[%s8900_s11 + $0x1b8] sm:$0xff] %v3295_v15  ;;  %v3332_v58 = vpack.c.bf16 %v3295_v15, %v3293_v24  ;;  %v3297_v60 = vmul.f32 %v7421_v37, %v9603_v26  ;;  %v7102_v37 = vld [vmem:[#allocation8 + $0x60] ss:$8 sps:$4 sm:$0xff]  }
 0x933   : > { %v7423_v28 = vpop.eup %7422  ;;  %7432 = vrcp.f32 %v3277_v42  ;;  %v12283_v42 = vpack.c.bf16 %v9460_v12, %v9454_v20  ;;  %v7122_v20 = vld [vmem:[#allocation8 + $0xc4] ss:$8 sps:$4 sm:$0xff]   ;;  %v7120_v12 = vld [vmem:[#allocation8 + $0xc0] ss:$8 sps:$4 sm:$0xff]  }
 0x934   : > { %6805 = vmatmul.mubr.bf16.gmra.mrb[132].mxu1 %v3332_v58  ;;  %v3279_v34 = vpop.xlane.xlu1 %3278  ;;  %v3299_v61 = vmul.f32 %v7423_v28, %v9607_v56  ;;  %6344 = vst [vmem:[%s8900_s11 + $0x1c0] sm:$0xff] %v3297_v60  ;;  %v7096_v56 = vld [vmem:[#allocation8 + $0x40] ss:$8 sps:$4 sm:$0xff]   ;;  %v7105_v58 = vld [vmem:[#allocation8 + $0x70] ss:$8 sps:$4 sm:$0xff]  }
 0x935   : > { %v7425_v16 = vpop.eup %7424  ;;  %3691 = vmatpush1.bf16.msra.mxu1 %v7090_v46  ;;  %7434 = vrcp.f32 %v3279_v34  ;;  %v7107_v46 = vld [vmem:[#allocation8 + $0x74] ss:$8 sps:$4 sm:$0xff]   ;;  %v7116_v28 = vld [vmem:[#allocation8 + $0xa4] ss:$8 sps:$4 sm:$0xff]   ;;  %v7114_v34 = vld [vmem:[#allocation8 + $0xa0] ss:$8 sps:$4 sm:$0xff]  }
 0x936   : > { %3692 = vmatprep.subr.bf16.mxu1 %v7095_v27  ;;  %6345 = vst [vmem:[%s8900_s11 + $0x1c8] sm:$0xff] %v3299_v61  ;;  %v3333_v54 = vpack.c.bf16 %v3299_v61, %v3297_v60  ;;  %v3301_v47 = vmul.f32 %v7425_v16, %v9610_v44  ;;  %v7108_v27 = vld [vmem:[#allocation8 + $0x80] ss:$8 sps:$4 sm:$0xff]   ;;  %v7111_v60 = vld [vmem:[#allocation8 + $0x90] ss:$8 sps:$4 sm:$0xff]  }
 0x937   : > { %v7427_v26 = vpop.eup %7426  ;;  %v7119_v61 = vld [vmem:[#allocation8 + $0xb4] ss:$8 sps:$4 sm:$0xff]   ;;  %v7117_v16 = vld [vmem:[#allocation8 + $0xb0] ss:$8 sps:$4 sm:$0xff]  }
 0x938   : > { %6808 = vmatprep.mubr.bf16.mxu1 %v3333_v54  ;;  %v3303_v38 = vmul.f32 %v7427_v26, %v9613_v52  ;;  %6346 = vst [vmem:[%s8900_s11 + $0x1d0] sm:$0xff] %v3301_v47  ;;  %v7099_v52 = vld [vmem:[#allocation8 + $0x50] ss:$8 sps:$4 sm:$0xff]   ;;  %v7131_v26 = vld [vmem:[#allocation8 + $0xf4] ss:$8 sps:$4 sm:$0xff]  }
 0x939   : > { %v7429_v2 = vpop.eup %7428  ;;  %3693 = vmatpush1.bf16.msra.mxu1 %v7093_v1  ;;  %v7125_v1 = vld [vmem:[#allocation8 + $0xd4] ss:$8 sps:$4 sm:$0xff]   ;;  %v7123_v54 = vld [vmem:[#allocation8 + $0xd0] ss:$8 sps:$4 sm:$0xff]  }
 0x93a   : > { %3694 = vmatprep.subr.bf16.mxu1 %v7098_v45  ;;  %6347 = vst [vmem:[%s8900_s11 + $0x1d8] sm:$0xff] %v3303_v38  ;;  %v3334_v6 = vpack.c.bf16 %v3303_v38, %v3301_v47  ;;  %v3305_v19 = vmul.f32 %v7429_v2, %v9616_v50  ;;  %v7128_v45 = vld [vmem:[#allocation8 + $0xe4] ss:$8 sps:$4 sm:$0xff]   ;;  %v7126_v47 = vld [vmem:[#allocation8 + $0xe0] ss:$8 sps:$4 sm:$0xff]   ;;  %v12284_v2 = vpack.c.bf16 %v9020_v18, %v9014_v40 }
 0x93b   : > { %v7431_v9 = vpop.eup %7430  ;;  %v7129_v38 = vld [vmem:[#allocation8 + $0xf0] ss:$8 sps:$4 sm:$0xff]   ;;  %v12289_v40 = vpack.c.bf16 %v9468_v32, %v9464_v63  ;;  %v12290_v18 = vpack.c.bf16 %v9028_v36, %v9024_v13  ;;  %v12299_v13 = vpack.c.bf16 %v9496_v22, %v9490_v62  ;;  %v12300_v36 = vld [vmem:[#allocation34_spill] sm:$0xff]  ;;  %v12301_v32 = vld [vmem:[#allocation29_spill] sm:$0xff] }
 0x93c   : > { %6809 = vmatmul.mubr.bf16.gmra.mrb[136].mxu1 %v3334_v6  ;;  %v3307_v44 = vmul.f32 %v7431_v9, %v9619_v55  ;;  %6348 = vst [vmem:[%s8900_s11 + $0x1e0] sm:$0xff] %v3305_v19  ;;  %v12286_v6 = vpack.c.bf16 %v9016_v4, %v9012_v0  ;;  %v12291_v0 = vpack.c.bf16 %v9484_v21, %v9478_v48  ;;  %v12292_v4 = vld [vmem:[#allocation58_spill] sm:$0xff]  ;;  %v12304_v21 = vld [vmem:[#allocation27_spill] sm:$0xff]  ;;  %v12305_v9 = vld [vmem:[#allocation65_spill] sm:$0xff] }
 0x93d   : > { %v7433_v11 = vpop.eup %7432  ;;  %3695 = vmatpush1.bf16.msra.mxu1 %v7096_v56  ;;  %v12285_v56 = vpack.c.bf16 %v9456_v8, %v9452_v5  ;;  %v12293_v5 = vld [vmem:[#allocation46_spill] sm:$0xff]  ;;  %v12303_v48 = vpack.c.bf16 %v9492_v10, %v9488_v31 }
 0x93e   : > { %3696 = vmatprep.subr.bf16.mxu1 %v7101_v14  ;;  %6349 = vst [vmem:[%s8900_s11 + $0x1e8] sm:$0xff] %v3307_v44  ;;  %v3335_v24 = vpack.c.bf16 %v3307_v44, %v3305_v19  ;;  %v3309_v23 = vmul.f32 %v7433_v11, %v9622_v30  ;;  %v7110_v30 = vld [vmem:[#allocation8 + $0x84] ss:$8 sps:$4 sm:$0xff]   ;;  %v12287_v14 = vpack.c.bf16 %v9472_v53, %v9466_v33  ;;  %v12297_v33 = vld [vmem:[#allocation23_spill] sm:$0xff]  ;;  %v7132_v62 = vld [vmem:[#allocation9] ss:$8 sps:$4 sm:$0xff]  }
 0x93f   : > { %v7435_v15 = vpop.eup %7434  ;;  %v12288_v19 = vpack.c.bf16 %v9032_v43, %v9026_v59  ;;  %v12294_v8 = vpack.c.bf16 %v12292_v4, %v12293_v5  ;;  %v12295_v59 = vpack.c.bf16 %v9480_v17, %v9476_v7  ;;  %v12296_v43 = vld [vmem:[#allocation52_spill] sm:$0xff]  ;;  %v12302_v53 = vpack.c.bf16 %v12300_v36, %v12301_v32  ;;  %v7134_v22 = vld [vmem:[#allocation9 + $0x4] ss:$8 sps:$4 sm:$0xff]   ;;  %v12316_v5 = vld [vmem:[#allocation39_spill] sm:$0xff] }
 0x940   : > { %6812 = vmatprep.mubr.bf16.mxu1 %v3335_v24  ;;  %v3311_v50 = vmul.f32 %v7435_v15, %v9625_v3  ;;  %6350 = vst [vmem:[%s8900_s11 + $0x1f0] sm:$0xff] %v3309_v23  ;;  %v7113_v3 = vld [vmem:[#allocation8 + $0x94] ss:$8 sps:$4 sm:$0xff]   ;;  %v12298_v63 = vpack.c.bf16 %v12296_v43, %v12297_v33  ;;  %v12306_v7 = vpack.c.bf16 %v12304_v21, %v12305_v9  ;;  %v3514_v33 = vld [vmem:[%s11961_s4] sm:$0x3]  ;;  %v12322_v36 = vld [vmem:[#allocation22_spill] sm:$0xff] }
 0x941   : > { %3697 = vmatpush1.bf16.msra.mxu1 %v7099_v52  ;;  %v7137_v15 = vld [vmem:[#allocation9 + $0x14] ss:$8 sps:$4 sm:$0xff]   ;;  %4939 = vmatprep.subr.bf16.mxu0 %v7134_v22  ;;  %v9736_v32 = vrot.slane %v3514_v33, %v12322_v36 }
 0x942   : > { %3698 = vmatprep.subr.bf16.mxu1 %v7104_v39  ;;  %6351 = vst [vmem:[%s8900_s11 + $0x1f8] sm:$0xff] %v3311_v50  ;;  %v3336_v55 = vpack.c.bf16 %v3311_v50, %v3309_v23  ;;  %v12307_v23 = vpack.c.bf16 %v9508_v41, %v9502_v51  ;;  %4940 = vmatpush1.bf16.msra.mxu0 %v7132_v62  ;;  %v7135_v50 = vld [vmem:[#allocation9 + $0x10] ss:$8 sps:$4 sm:$0xff]   ;;  %v7143_v51 = vld [vmem:[#allocation9 + $0x34] ss:$8 sps:$4 sm:$0xff]  }
 0x943   : > { %4941 = vmatprep.subr.bf16.mxu0 %v7137_v15  ;;  %v12308_v41 = vpack.c.bf16 %v9504_v49, %v9500_v57  ;;  %v12309_v57 = vpack.c.bf16 %v9520_v35, %v9514_v25  ;;  %v12310_v25 = vld [vmem:[#allocation32_spill] sm:$0xff] }
 0x944   : > { %6813 = vmatmul.mubr.bf16.gmra.mrb[140].mxu1 %v3336_v55  ;;  %v7140_v55 = vld [vmem:[#allocation9 + $0x24] ss:$8 sps:$4 sm:$0xff]   ;;  %v12311_v35 = vpack.c.bf16 %v9516_v29, %v12310_v25  ;;  %v12315_v4 = vld [vmem:[#allocation44_spill] sm:$0xff] }
 0x945   : > { %3699 = vmatpush1.bf16.msra.mxu1 %v7102_v37  ;;  %3718 = vmatprep.mubr.bf16.mxu1 %v12283_v42  ;;  %v12318_v29 = vld [vmem:[#allocation54_spill] sm:$0xff] }
 0x946   : > { %3700 = vmatprep.subr.bf16.mxu1 %v7107_v46  ;;  %4942 = vmatpush1.bf16.msra.mxu0 %v7135_v50 }
 0x947   : > { %4943 = vmatprep.subr.bf16.mxu0 %v7140_v55 }
 0x949   : > { %3701 = vmatpush1.bf16.msra.mxu1 %v7105_v58 }
 0x94a   : > { %3702 = vmatprep.subr.bf16.mxu1 %v7110_v30  ;;  %v7138_v30 = vld [vmem:[#allocation9 + $0x20] ss:$8 sps:$4 sm:$0xff]  }
 0x94b   : > { %4944 = vmatpush1.bf16.msra.mxu0 %v7138_v30 }
 0x94c   : > { %4945 = vmatprep.subr.bf16.mxu0 %v7143_v51 }
 0x94d   : > { %3703 = vmatpush1.bf16.msra.mxu1 %v7108_v27 }
 0x94e   : > { %3704 = vmatprep.subr.bf16.mxu1 %v7113_v3 }
 0x951   : > { %3705 = vmatpush1.bf16.msra.mxu1 %v7111_v60  ;;  %v7141_v60 = vld [vmem:[#allocation9 + $0x30] ss:$8 sps:$4 sm:$0xff]  }
 0x952   : > { %3706 = vmatprep.subr.bf16.mxu1 %v7116_v28  ;;  %4946 = vmatpush1.bf16.msra.mxu0 %v7141_v60 }
 0x955   : > { %3707 = vmatpush1.bf16.msra.mxu1 %v7114_v34  ;;  %v7146_v34 = vld [vmem:[#allocation9 + $0x44] ss:$8 sps:$4 sm:$0xff]  }
 0x956   : > { %3708 = vmatprep.subr.bf16.mxu1 %v7119_v61  ;;  %4947 = vmatprep.subr.bf16.mxu0 %v7146_v34 }
 0x959   : > { %3709 = vmatpush1.bf16.msra.mxu1 %v7117_v16 }
 0x95a   : > { %3710 = vmatprep.subr.bf16.mxu1 %v7122_v20 }
 0x95d   : > { %3711 = vmatpush1.bf16.msra.mxu1 %v7120_v12  ;;  %v7144_v12 = vld [vmem:[#allocation9 + $0x40] ss:$8 sps:$4 sm:$0xff]  }
 0x95e   : > { %3712 = vmatprep.subr.bf16.mxu1 %v7125_v1  ;;  %v7149_v1 = vld [vmem:[#allocation9 + $0x54] ss:$8 sps:$4 sm:$0xff]   ;;  %4948 = vmatpush1.bf16.msra.mxu0 %v7144_v12 }
 0x95f   : > { %4949 = vmatprep.subr.bf16.mxu0 %v7149_v1 }
 0x961   : > { %3713 = vmatpush1.bf16.msra.mxu1 %v7123_v54 }
 0x962   : > { %3714 = vmatprep.subr.bf16.mxu1 %v7128_v45  ;;  %v7147_v45 = vld [vmem:[#allocation9 + $0x50] ss:$8 sps:$4 sm:$0xff]  }
 0x963   : > { %4950 = vmatpush1.bf16.msra.mxu0 %v7147_v45 }
 0x965   : > { %3715 = vmatpush1.bf16.msra.mxu1 %v7126_v47 }
 0x966   : > { %3716 = vmatprep.subr.bf16.mxu1 %v7131_v26  ;;  %v7152_v26 = vld [vmem:[#allocation9 + $0x64] ss:$8 sps:$4 sm:$0xff]  }
 0x967   : > { %4951 = vmatprep.subr.bf16.mxu0 %v7152_v26 }
 0x969   : > { %3717 = vmatpush1.bf16.msra.mxu1 %v7129_v38 }
 0x96a   : > { %6816 = vmatprep.subr.bf16.mxu1 %v7134_v22  ;;  %v7565_v22 = vld [vmem:[%s8128_s26 + $0x8] sm:$0xff] }
 0x96c   : > { %3719 = vmatmul.mubr.bf16.vlgmr.msra.gmra.mrb[144].mxu1 %v12284_v2 }
 0x96d   : > { %3728 = vmatprep.mubr.bf16.mxu1 %v12285_v56  ;;  %6832 = vmatpush1.bf16.msra.mxu1 %v7132_v62 }
 0x96e   : > { %6817 = vmatprep.subr.bf16.mxu1 %v7137_v15 }
 0x971   : > { %6833 = vmatpush1.bf16.msra.mxu1 %v7135_v50  ;;  %v7567_v50 = vld [vmem:[%s8128_s26 + $0x18] sm:$0xff] }
 0x972   : > { %6818 = vmatprep.subr.bf16.mxu1 %v7140_v55 }
 0x974   : > { %3729 = vmatmul.mubr.bf16.gmra.mrb[148].mxu1 %v12286_v6  ;;  %v7150_v6 = vld [vmem:[#allocation9 + $0x60] ss:$8 sps:$4 sm:$0xff]  }
 0x975   : > { %3738 = vmatprep.mubr.bf16.mxu1 %v12287_v14  ;;  %6834 = vmatpush1.bf16.msra.mxu1 %v7138_v30  ;;  %v7155_v14 = vld [vmem:[#allocation9 + $0x74] ss:$8 sps:$4 sm:$0xff]  }
 0x976   : > { %6819 = vmatprep.subr.bf16.mxu1 %v7143_v51  ;;  %4952 = vmatpush1.bf16.msra.mxu0 %v7150_v6 }
 0x977   : > { %4953 = vmatprep.subr.bf16.mxu0 %v7155_v14 }
 0x979   : > { %6835 = vmatpush1.bf16.msra.mxu1 %v7141_v60 }
 0x97a   : > { %6820 = vmatprep.subr.bf16.mxu1 %v7146_v34 }
 0x97c   : > { %3739 = vmatmul.mubr.bf16.gmra.mrb[152].mxu1 %v12288_v19  ;;  %v7153_v19 = vld [vmem:[#allocation9 + $0x70] ss:$8 sps:$4 sm:$0xff]  }
 0x97d   : > { %3748 = vmatprep.mubr.bf16.mxu1 %v12289_v40  ;;  %6836 = vmatpush1.bf16.msra.mxu1 %v7144_v12  ;;  %v12312_v40 = vld [vmem:[#allocation42_spill] sm:$0xff] }
 0x97e   : > { %6821 = vmatprep.subr.bf16.mxu1 %v7149_v1  ;;  %4954 = vmatpush1.bf16.msra.mxu0 %v7153_v19  ;;  %v7569_v1 = vld [vmem:[%s8128_s26 + $0x28] sm:$0xff] }
 0x981   : > { %6837 = vmatpush1.bf16.msra.mxu1 %v7147_v45  ;;  %v7570_v45 = vld [vmem:[%s8128_s26 + $0x30] sm:$0xff] }
 0x982   : > { %6822 = vmatprep.subr.bf16.mxu1 %v7152_v26  ;;  %v7571_v26 = vld [vmem:[%s8128_s26 + $0x38] sm:$0xff] }
 0x984   : > { %3749 = vmatmul.mubr.bf16.gmra.mrb[156].mxu1 %v12290_v18  ;;  %v12313_v18 = vld [vmem:[#allocation37_spill] sm:$0xff] }
 0x985   : > { %3758 = vmatprep.mubr.bf16.mxu1 %v12291_v0  ;;  %6838 = vmatpush1.bf16.msra.mxu1 %v7150_v6  ;;  %v12314_v0 = vpack.c.bf16 %v12312_v40, %v12313_v18 }
 0x986   : > { %6823 = vmatprep.subr.bf16.mxu1 %v7155_v14 }
 0x989   : > { %6839 = vmatpush1.bf16.msra.mxu1 %v7153_v19 }
 0x98c   : > { %3759 = vmatmul.mubr.bf16.gmra.mrb[160].mxu1 %v12294_v8  ;;  %v12317_v8 = vpack.c.bf16 %v12315_v4, %v12316_v5 }
 0x98d   : > { %3768 = vmatprep.mubr.bf16.mxu1 %v12295_v59  ;;  %v12319_v59 = vld [vmem:[#allocation48_spill] sm:$0xff] }
 0x98e   : > { %v12320_v43 = vpack.c.bf16 %v12318_v29, %v12319_v59 }
 0x994   : > { %3769 = vmatmul.mubr.bf16.gmra.mrb[164].mxu1 %v12298_v63  ;;  %v12321_v63 = vld [vmem:[#allocation21_spill] sm:$0xff] }
 0x995   : > { %3778 = vmatprep.mubr.bf16.mxu1 %v12299_v13  ;;  %v9733_v13 = vrot.slane %v3514_v33, %v12321_v63  ;;  %v7573_v33 = vld [vmem:[%s8128_s26 + $0x48] sm:$0xff] }
 0x99c   : > { %3779 = vmatmul.mubr.bf16.gmra.mrb[168].mxu1 %v12302_v53  ;;  %v12323_v53 = vld [vmem:[#allocation56_spill] sm:$0xff] }
 0x99d   : > { %3788 = vmatprep.mubr.bf16.mxu1 %v12303_v48  ;;  %v12324_v48 = vld [vmem:[#allocation50_spill] sm:$0xff] }
 0x99e   : > { %v12325_v21 = vpack.c.bf16 %v12323_v53, %v12324_v48 }
 0x9a4   : > { %3789 = vmatmul.mubr.bf16.gmra.mrb[172].mxu1 %v12306_v7 }
 0x9ff   : > { %v6802_v17 = vpop.f32.mrb[128].mxu1 }
 0xa00   : > { %v3371_v44 = vpop.f32.mrb[129].mxu1 }
 0xa01   : > { %v6803_v11 = vpop.f32.mrb[130].mxu1 }
 0xa02   : > { %v3435_v52 = vpack.c.bf16 %v6803_v11, %v6802_v17  ;;  %v3374_v24 = vpop.f32.mrb[131].mxu1 }
 0xa03   : > { %v3434_v39 = vpack.c.bf16 %v3374_v24, %v3371_v44 }
 0xa05   : > { %3798 = vmatprep.mubr.bf16.mxu1 %v3434_v39 }
 0xa06   : > { %3799 = vmatmul.mubr.bf16.gmra.mrb[176].mxu1 %v12307_v23 }
 0xa07   : > { %v6806_v31 = vpop.f32.mrb[132].mxu1  ;;  %3808 = vmatprep.mubr.bf16.mxu1 %v3435_v52  ;;  %v7564_v52 = vld [vmem:[%s8128_s26] sm:$0xff] }
 0xa08   : > { %v3387_v10 = vpop.f32.mrb[133].mxu1 }
 0xa09   : > { %v6807_v37 = vpop.f32.mrb[134].mxu1 }
 0xa0a   : > { %v3437_v46 = vpack.c.bf16 %v6807_v37, %v6806_v31  ;;  %v3390_v42 = vpop.f32.mrb[135].mxu1  ;;  %v7566_v31 = vld [vmem:[%s8128_s26 + $0x10] sm:$0xff] }
 0xa0b   : > { %v3436_v58 = vpack.c.bf16 %v3390_v42, %v3387_v10 }
 0xa0e   : > { %3809 = vmatmul.mubr.bf16.gmra.mrb[180].mxu1 %v12308_v41 }
 0xa0f   : > { %v6810_v27 = vpop.f32.mrb[136].mxu1  ;;  %3818 = vmatprep.mubr.bf16.mxu1 %v3436_v58 }
 0xa10   : > { %v3403_v3 = vpop.f32.mrb[137].mxu1 }
 0xa11   : > { %v6811_v28 = vpop.f32.mrb[138].mxu1 }
 0xa12   : > { %v3439_v61 = vpack.c.bf16 %v6811_v28, %v6810_v27  ;;  %v3406_v16 = vpop.f32.mrb[139].mxu1 }
 0xa13   : > { %v3438_v20 = vpack.c.bf16 %v3406_v16, %v3403_v3 }
 0xa16   : > { %3819 = vmatmul.mubr.bf16.gmra.mrb[184].mxu1 %v12309_v57 }
 0xa17   : > { %v6814_v49 = vpop.f32.mrb[140].mxu1  ;;  %3828 = vmatprep.mubr.bf16.mxu1 %v3437_v46 }
 0xa18   : > { %v3419_v54 = vpop.f32.mrb[141].mxu1 }
 0xa19   : > { %v6815_v47 = vpop.f32.mrb[142].mxu1 }
 0xa1a   : > { %v3441_v38 = vpack.c.bf16 %v6815_v47, %v6814_v49  ;;  %v3422_v2 = vpop.f32.mrb[143].mxu1 }
 0xa1b   : > { %v3440_v56 = vpack.c.bf16 %v3422_v2, %v3419_v54 }
 0xa1e   : > { %3829 = vmatmul.mubr.bf16.gmra.mrb[188].mxu1 %v12311_v35 }
 0xa1f   : > { %3838 = vmatprep.mubr.bf16.mxu1 %v3438_v20 }
 0xa26   : > { %3839 = vmatmul.mubr.bf16.gmra.mrb[192].mxu1 %v12314_v0 }
 0xa27   : > { %3848 = vmatprep.mubr.bf16.mxu1 %v3439_v61  ;;  %v7568_v61 = vld [vmem:[%s8128_s26 + $0x20] sm:$0xff] }
 0xa2e   : > { %3849 = vmatmul.mubr.bf16.gmra.mrb[196].mxu1 %v12317_v8  ;;  %v7572_v8 = vld [vmem:[%s8128_s26 + $0x40] sm:$0xff] }
 0xa2f   : > { %3858 = vmatprep.mubr.bf16.mxu1 %v3440_v56 }
 0xa36   : > { %3859 = vmatmul.mubr.bf16.gmra.mrb[200].mxu1 %v12320_v43 }
 0xa37   : > { %3868 = vmatprep.mubr.bf16.mxu1 %v3441_v38 }
 0xa3e   : > { %3869 = vmatmul.mubr.bf16.gmra.mrb[204].mxu1 %v12325_v21 }
 0xa3f   : > { %v3720_v9 = vpop.f32.mrb[144].mxu1 }
 0xa40   : > { %v3721_v7 = vadd.f32 %v3720_v9, %v9733_v13  ;;  %v3722_v17 = vpop.f32.mrb[145].mxu1  ;;  %v7574_v9 = vld [vmem:[%s8128_s26 + $0x50] sm:$0xff] }
 0xa41   : > { %v3723_v44 = vadd.f32 %v3722_v17, %v9736_v32  ;;  %v3724_v11 = vpop.f32.mrb[146].mxu1  ;;  %v7575_v17 = vld [vmem:[%s8128_s26 + $0x58] sm:$0xff] }
 0xa42   : > { %v9744_v24 = vadd.f32 %v7564_v52, %v3721_v7  ;;  %v3725_v39 = vadd.f32 %v3724_v11, %v9733_v13  ;;  %v3726_v62 = vpop.f32.mrb[147].mxu1 }
 0xa43   : > { %v9748_v23 = vadd.f32 %v7565_v22, %v3723_v44  ;;  %v3727_v15 = vadd.f32 %v3726_v62, %v9736_v32  ;;  %v7158_v62 = vld [vmem:[#allocation9 + $0x84] ss:$8 sps:$4 sm:$0xff]   ;;  %v7156_v22 = vld [vmem:[#allocation9 + $0x80] ss:$8 sps:$4 sm:$0xff]  }
 0xa44   : > { %v9752_v10 = vadd.f32 %v7566_v31, %v3725_v39  ;;  %v4041_v46 = vmul.f32 %v9744_v24, %v9744_v24  ;;  %4955 = vmatprep.subr.bf16.mxu0 %v7158_v62  ;;  %6824 = vmatprep.subr.bf16.mxu1 %v7158_v62  ;;  %v7165_v62 = vld [vmem:[#allocation9 + $0xb0] ss:$8 sps:$4 sm:$0xff]  }
 0xa45   : > { %v9755_v37 = vadd.f32 %v7567_v50, %v3727_v15  ;;  %v3945_v55 = vadd.f32 %v9748_v23, %v9744_v24  ;;  %v4042_v42 = vmul.f32 %v9748_v23, %v9748_v23  ;;  %4956 = vmatpush1.bf16.msra.mxu0 %v7156_v22  ;;  %6840 = vmatpush1.bf16.msra.mxu1 %v7156_v22  ;;  %v7582_v22 = vld [vmem:[%s8128_s26 + $0x90] sm:$0xff] }
 0xa46   : > { %v4043_v51 = vmul.f32 %v9752_v10, %v9752_v10 }
 0xa47   : > { %v3730_v58 = vpop.f32.mrb[148].mxu1  ;;  %3946 = vadd.xlane.f32.xlu0 %v3945_v55  ;;  %v3948_v30 = vadd.f32 %v9755_v37, %v9752_v10  ;;  %v4044_v41 = vmul.f32 %v9755_v37, %v9755_v37  ;;  %v4105_v34 = vadd.f32 %v4042_v42, %v4041_v46 }
 0xa48   : > { %v3731_v27 = vadd.f32 %v3730_v58, %v9733_v13  ;;  %v3732_v3 = vpop.f32.mrb[149].mxu1 }
 0xa49   : > { %v3733_v60 = vadd.f32 %v3732_v3, %v9736_v32  ;;  %v3734_v28 = vpop.f32.mrb[150].mxu1  ;;  %3949 = vadd.xlane.f32.xlu1 %v3948_v30  ;;  %v4108_v54 = vadd.f32 %v4044_v41, %v4043_v51  ;;  %v7161_v41 = vld [vmem:[#allocation9 + $0x94] ss:$8 sps:$4 sm:$0xff]  }
 0xa4a   : > { %v9772_v16 = vadd.f32 %v7568_v61, %v3731_v27  ;;  %v3735_v20 = vadd.f32 %v3734_v28, %v9733_v13  ;;  %v3736_v12 = vpop.f32.mrb[151].mxu1  ;;  %v7576_v27 = vld [vmem:[%s8128_s26 + $0x60] sm:$0xff]  ;;  %v7577_v61 = vld [vmem:[%s8128_s26 + $0x68] sm:$0xff]  ;;  %4957 = vmatprep.subr.bf16.mxu0 %v7161_v41  ;;  %6825 = vmatprep.subr.bf16.mxu1 %v7161_v41 }
 0xa4b   : > { %v9776_v57 = vadd.f32 %v7569_v1, %v3733_v60  ;;  %v3737_v49 = vadd.f32 %v3736_v12, %v9736_v32  ;;  %4106 = vadd.xlane.f32.xlu0 %v4105_v34  ;;  %v7159_v34 = vld [vmem:[#allocation9 + $0x90] ss:$8 sps:$4 sm:$0xff]  }
 0xa4c   : > { %v9780_v47 = vadd.f32 %v7570_v45, %v3735_v20  ;;  %v4045_v56 = vmul.f32 %v9772_v16, %v9772_v16  ;;  %4958 = vmatpush1.bf16.msra.mxu0 %v7159_v34  ;;  %6841 = vmatpush1.bf16.msra.mxu1 %v7159_v34  ;;  %v7168_v34 = vld [vmem:[#allocation9 + $0xc0] ss:$8 sps:$4 sm:$0xff]  }
 0xa4d   : > { %v9783_v38 = vadd.f32 %v7571_v26, %v3737_v49  ;;  %4109 = vadd.xlane.f32.xlu1 %v4108_v54  ;;  %v3951_v2 = vadd.f32 %v9776_v57, %v9772_v16  ;;  %v4046_v6 = vmul.f32 %v9776_v57, %v9776_v57  ;;  %v7578_v49 = vld [vmem:[%s8128_s26 + $0x70] sm:$0xff]  ;;  %v7579_v26 = vld [vmem:[%s8128_s26 + $0x78] sm:$0xff] }
 0xa4e   : > { %v4047_v35 = vmul.f32 %v9780_v47, %v9780_v47 }
 0xa4f   : > { %v3740_v14 = vpop.f32.mrb[152].mxu1  ;;  %3952 = vadd.xlane.f32.xlu0 %v3951_v2  ;;  %v3954_v25 = vadd.f32 %v9783_v38, %v9780_v47  ;;  %v4048_v19 = vmul.f32 %v9783_v38, %v9783_v38  ;;  %v4111_v5 = vadd.f32 %v4046_v6, %v4045_v56 }
 0xa50   : > { %v3741_v40 = vadd.f32 %v3740_v14, %v9733_v13  ;;  %v3742_v18 = vpop.f32.mrb[153].mxu1  ;;  %v7164_v14 = vld [vmem:[#allocation9 + $0xa4] ss:$8 sps:$4 sm:$0xff]  }
 0xa51   : > { %v3743_v0 = vadd.f32 %v3742_v18, %v9736_v32  ;;  %v3744_v4 = vpop.f32.mrb[154].mxu1  ;;  %3955 = vadd.xlane.f32.xlu1 %v3954_v25  ;;  %v4114_v21 = vadd.f32 %v4048_v19, %v4047_v35  ;;  %v7162_v18 = vld [vmem:[#allocation9 + $0xa0] ss:$8 sps:$4 sm:$0xff]   ;;  %4959 = vmatprep.subr.bf16.mxu0 %v7164_v14 }
 0xa52   : > { %v9800_v29 = vadd.f32 %v7572_v8, %v3741_v40  ;;  %v3745_v59 = vadd.f32 %v3744_v4, %v9733_v13  ;;  %v3746_v43 = vpop.f32.mrb[155].mxu1  ;;  %6826 = vmatprep.subr.bf16.mxu1 %v7164_v14  ;;  %4960 = vmatpush1.bf16.msra.mxu0 %v7162_v18 }
 0xa53   : > { %v9804_v53 = vadd.f32 %v7573_v33, %v3743_v0  ;;  %v3747_v48 = vadd.f32 %v3746_v43, %v9736_v32  ;;  %4112 = vadd.xlane.f32.xlu0 %v4111_v5  ;;  %v7580_v43 = vld [vmem:[%s8128_s26 + $0x80] sm:$0xff]  ;;  %6842 = vmatpush1.bf16.msra.mxu1 %v7162_v18  ;;  %v7587_v18 = vld [vmem:[%s8128_s26 + $0xb8] sm:$0xff] }
 0xa54   : > { %12326 = vst [vmem:[#allocation62_spill] sm:$0xff] %v9800_v29  ;;  %v9808_v7 = vadd.f32 %v7574_v9, %v3745_v59  ;;  %v4049_v52 = vmul.f32 %v9800_v29, %v9800_v29  ;;  %v7167_v9 = vld [vmem:[#allocation9 + $0xb4] ss:$8 sps:$4 sm:$0xff]  }
 0xa55   : > { %v9811_v44 = vadd.f32 %v7575_v17, %v3747_v48  ;;  %4115 = vadd.xlane.f32.xlu1 %v4114_v21  ;;  %v3957_v11 = vadd.f32 %v9804_v53, %v9800_v29  ;;  %v4050_v39 = vmul.f32 %v9804_v53, %v9804_v53  ;;  %v7581_v17 = vld [vmem:[%s8128_s26 + $0x88] sm:$0xff]  ;;  %4961 = vmatprep.subr.bf16.mxu0 %v7167_v9 }
 0xa56   : > { %12327 = vst [vmem:[#allocation60_spill] sm:$0xff] %v9808_v7  ;;  %v4051_v50 = vmul.f32 %v9808_v7, %v9808_v7  ;;  %6827 = vmatprep.subr.bf16.mxu1 %v7167_v9  ;;  %4962 = vmatpush1.bf16.msra.mxu0 %v7165_v62  ;;  %v7173_v9 = vld [vmem:[#allocation9 + $0xd4] ss:$8 sps:$4 sm:$0xff]  }
 0xa57   : > { %v3750_v15 = vpop.f32.mrb[156].mxu1  ;;  %3958 = vadd.xlane.f32.xlu0 %v3957_v11  ;;  %v3960_v31 = vadd.f32 %v9811_v44, %v9808_v7  ;;  %v4052_v55 = vmul.f32 %v9811_v44, %v9811_v44  ;;  %v4117_v51 = vadd.f32 %v4050_v39, %v4049_v52  ;;  %6843 = vmatpush1.bf16.msra.mxu1 %v7165_v62 }
 0xa58   : > { %v3751_v46 = vadd.f32 %v3750_v15, %v9733_v13  ;;  %v3752_v42 = vpop.f32.mrb[157].mxu1 }
 0xa59   : > { %v3753_v58 = vadd.f32 %v3752_v42, %v9736_v32  ;;  %v3754_v30 = vpop.f32.mrb[158].mxu1  ;;  %3961 = vadd.xlane.f32.xlu1 %v3960_v31  ;;  %v4120_v1 = vadd.f32 %v4052_v55, %v4051_v50  ;;  %v7583_v50 = vld [vmem:[%s8128_s26 + $0x98] sm:$0xff] }
 0xa5a   : > { %v9828_v3 = vadd.f32 %v7576_v27, %v3751_v46  ;;  %v3755_v60 = vadd.f32 %v3754_v30, %v9733_v13  ;;  %v3756_v28 = vpop.f32.mrb[159].mxu1  ;;  %v7170_v27 = vld [vmem:[#allocation9 + $0xc4] ss:$8 sps:$4 sm:$0xff]  }
 0xa5b   : > { %v9832_v20 = vadd.f32 %v7577_v61, %v3753_v58  ;;  %v3757_v12 = vadd.f32 %v3756_v28, %v9736_v32  ;;  %4118 = vadd.xlane.f32.xlu0 %v4117_v51  ;;  %4963 = vmatprep.subr.bf16.mxu0 %v7170_v27 }
 0xa5c   : > { %12328 = vst [vmem:[#allocation64_spill] sm:$0xff] %v9828_v3  ;;  %v9836_v54 = vadd.f32 %v7578_v49, %v3755_v60  ;;  %v4053_v45 = vmul.f32 %v9828_v3, %v9828_v3  ;;  %v7584_v49 = vld [vmem:[%s8128_s26 + $0xa0] sm:$0xff]  ;;  %4964 = vmatpush1.bf16.msra.mxu0 %v7168_v34  ;;  %6828 = vmatprep.subr.bf16.mxu1 %v7170_v27 }
 0xa5d   : > { %v9841_v2 = vadd.f32 %v7579_v26, %v3757_v12  ;;  %4121 = vadd.xlane.f32.xlu1 %v4120_v1  ;;  %v3963_v56 = vadd.f32 %v9832_v20, %v9828_v3  ;;  %v4054_v6 = vmul.f32 %v9832_v20, %v9832_v20  ;;  %6844 = vmatpush1.bf16.msra.mxu1 %v7168_v34  ;;  %v7174_v34 = vld [vmem:[#allocation9 + $0xe0] ss:$8 sps:$4 sm:$0xff]  }
 0xa5e   : > { %v4055_v19 = vmul.f32 %v9836_v54, %v9836_v54  ;;  %4965 = vmatprep.subr.bf16.mxu0 %v7173_v9  ;;  %6829 = vmatprep.subr.bf16.mxu1 %v7173_v9 }
 0xa5f   : > { %v3760_v25 = vpop.f32.mrb[160].mxu1  ;;  %3964 = vadd.xlane.f32.xlu0 %v3963_v56  ;;  %v3966_v35 = vadd.f32 %v9841_v2, %v9836_v54  ;;  %v4056_v40 = vmul.f32 %v9841_v2, %v9841_v2  ;;  %v4123_v59 = vadd.f32 %v4054_v6, %v4053_v45  ;;  %v7585_v6 = vld [vmem:[%s8128_s26 + $0xa8] sm:$0xff] }
 0xa60   : > { %v3761_v0 = vadd.f32 %v3760_v25, %v9733_v13  ;;  %v3762_v4 = vpop.f32.mrb[161].mxu1 }
 0xa61   : > { %v3763_v5 = vadd.f32 %v3762_v4, %v9736_v32  ;;  %v3764_v8 = vpop.f32.mrb[162].mxu1  ;;  %3967 = vadd.xlane.f32.xlu1 %v3966_v35  ;;  %v4126_v39 = vadd.f32 %v4056_v40, %v4055_v19  ;;  %v7586_v19 = vld [vmem:[%s8128_s26 + $0xb0] sm:$0xff] }
 0xa62   : > { %v9856_v33 = vadd.f32 %v7580_v43, %v3761_v0  ;;  %v3765_v48 = vadd.f32 %v3764_v8, %v9733_v13  ;;  %v3766_v21 = vpop.f32.mrb[163].mxu1 }
 0xa63   : > { %v9860_v11 = vadd.f32 %v7581_v17, %v3763_v5  ;;  %v3767_v52 = vadd.f32 %v3766_v21, %v9736_v32  ;;  %4124 = vadd.xlane.f32.xlu0 %v4123_v59 }
 0xa64   : > { %12329 = vst [vmem:[#allocation26_spill] sm:$0xff] %v9856_v33  ;;  %v9864_v15 = vadd.f32 %v7582_v22, %v3765_v48  ;;  %v4057_v31 = vmul.f32 %v9856_v33, %v9856_v33 }
 0xa65   : > { %v9869_v55 = vadd.f32 %v7583_v50, %v3767_v52  ;;  %4127 = vadd.xlane.f32.xlu1 %v4126_v39  ;;  %v3969_v46 = vadd.f32 %v9860_v11, %v9856_v33  ;;  %v4058_v42 = vmul.f32 %v9860_v11, %v9860_v11  ;;  %v7171_v39 = vld [vmem:[#allocation9 + $0xd0] ss:$8 sps:$4 sm:$0xff]   ;;  %v7588_v50 = vld [vmem:[%s8128_s26 + $0xc0] sm:$0xff] }
 0xa66   : > { %v4059_v51 = vmul.f32 %v9864_v15, %v9864_v15  ;;  %4966 = vmatpush1.bf16.msra.mxu0 %v7171_v39  ;;  %6845 = vmatpush1.bf16.msra.mxu1 %v7171_v39 }
 0xa67   : > { %v3770_v58 = vpop.f32.mrb[164].mxu1  ;;  %3970 = vadd.xlane.f32.xlu0 %v3969_v46  ;;  %v3972_v30 = vadd.f32 %v9869_v55, %v9864_v15  ;;  %v4060_v41 = vmul.f32 %v9869_v55, %v9869_v55  ;;  %v4129_v1 = vadd.f32 %v4058_v42, %v4057_v31 }
 0xa68   : > { %v3771_v60 = vadd.f32 %v3770_v58, %v9733_v13  ;;  %v3772_v28 = vpop.f32.mrb[165].mxu1 }
 0xa69   : > { %v3773_v61 = vadd.f32 %v3772_v28, %v9736_v32  ;;  %v3774_v12 = vpop.f32.mrb[166].mxu1  ;;  %3973 = vadd.xlane.f32.xlu1 %v3972_v30  ;;  %v4132_v35 = vadd.f32 %v4060_v41, %v4059_v51  ;;  %v7589_v30 = vld [vmem:[%s8128_s26 + $0xc8] sm:$0xff] }
 0xa6a   : > { %v9884_v45 = vadd.f32 %v7584_v49, %v3771_v60  ;;  %v3775_v26 = vadd.f32 %v3774_v12, %v9733_v13  ;;  %v3776_v56 = vpop.f32.mrb[167].mxu1  ;;  %v7590_v60 = vld [vmem:[%s8128_s26 + $0xd0] sm:$0xff]  ;;  %v7591_v12 = vld [vmem:[%s8128_s26 + $0xd8] sm:$0xff] }
 0xa6b   : > { %v9888_v14 = vadd.f32 %v7585_v6, %v3773_v61  ;;  %v3777_v25 = vadd.f32 %v3776_v56, %v9736_v32  ;;  %4130 = vadd.xlane.f32.xlu0 %v4129_v1  ;;  %v7176_v61 = vld [vmem:[#allocation9 + $0xe4] ss:$8 sps:$4 sm:$0xff]  }
 0xa6c   : > { %v9892_v40 = vadd.f32 %v7586_v19, %v3775_v26  ;;  %v4061_v5 = vmul.f32 %v9884_v45, %v9884_v45  ;;  %4967 = vmatprep.subr.bf16.mxu0 %v7176_v61  ;;  %6830 = vmatprep.subr.bf16.mxu1 %v7176_v61 }
 0xa6d   : > { %v9895_v0 = vadd.f32 %v7587_v18, %v3777_v25  ;;  %4133 = vadd.xlane.f32.xlu1 %v4132_v35  ;;  %v3975_v4 = vadd.f32 %v9888_v14, %v9884_v45  ;;  %v4062_v8 = vmul.f32 %v9888_v14, %v9888_v14  ;;  %4968 = vmatpush1.bf16.msra.mxu0 %v7174_v34 }
 0xa6e   : > { %v4063_v48 = vmul.f32 %v9892_v40, %v9892_v40  ;;  %6846 = vmatpush1.bf16.msra.mxu1 %v7174_v34 }
 0xa6f   : > { %3976 = vadd.xlane.f32.xlu0 %v3975_v4  ;;  %v3780_v59 = vpop.f32.mrb[168].mxu1  ;;  %v3978_v43 = vadd.f32 %v9895_v0, %v9892_v40  ;;  %v4064_v21 = vmul.f32 %v9895_v0, %v9895_v0  ;;  %v4135_v31 = vadd.f32 %v4062_v8, %v4061_v5 }
 0xa70   : > { %v3781_v17 = vadd.f32 %v3780_v59, %v9733_v13  ;;  %v3782_v52 = vpop.f32.mrb[169].mxu1 }
 0xa71   : > { %v3783_v62 = vadd.f32 %v3782_v52, %v9736_v32  ;;  %3979 = vadd.xlane.f32.xlu1 %v3978_v43  ;;  %v3784_v22 = vpop.f32.mrb[170].mxu1  ;;  %v4138_v27 = vadd.f32 %v4064_v21, %v4063_v48  ;;  %v7592_v43 = vld [vmem:[%s8128_s26 + $0xe0] sm:$0xff]  ;;  %v7593_v52 = vld [vmem:[%s8128_s26 + $0xe8] sm:$0xff] }
 0xa72   : > { %v9912_v46 = vadd.f32 %v7588_v50, %v3781_v17  ;;  %v3785_v42 = vadd.f32 %v3784_v22, %v9733_v13  ;;  %v3786_v58 = vpop.f32.mrb[171].mxu1  ;;  %v7179_v17 = vld [vmem:[#allocation9 + $0xf4] ss:$8 sps:$4 sm:$0xff]  }
 0xa73   : > { %v9916_v51 = vadd.f32 %v7589_v30, %v3783_v62  ;;  %v3787_v41 = vadd.f32 %v3786_v58, %v9736_v32  ;;  %4136 = vadd.xlane.f32.xlu0 %v4135_v31  ;;  %v7177_v31 = vld [vmem:[#allocation9 + $0xf0] ss:$8 sps:$4 sm:$0xff]   ;;  %4969 = vmatprep.subr.bf16.mxu0 %v7179_v17 }
 0xa74   : > { %v9920_v28 = vadd.f32 %v7590_v60, %v3785_v42  ;;  %v4065_v26 = vmul.f32 %v9912_v46, %v9912_v46  ;;  %v7594_v50 = vld [vmem:[%s8128_s26 + $0xf0] sm:$0xff]  ;;  %6831 = vmatprep.subr.bf16.mxu1 %v7179_v17  ;;  %v7595_v30 = vld [vmem:[%s8128_s26 + $0xf8] sm:$0xff]  ;;  %4970 = vmatpush1.bf16.msra.mxu0 %v7177_v31 }
 0xa75   : > { %12330 = vst [vmem:[#allocation31_spill] sm:$0xff] %v9916_v51  ;;  %v9923_v1 = vadd.f32 %v7591_v12, %v3787_v41  ;;  %4139 = vadd.xlane.f32.xlu1 %v4138_v27  ;;  %v3981_v49 = vadd.f32 %v9916_v51, %v9912_v46  ;;  %v4066_v56 = vmul.f32 %v9916_v51, %v9916_v51 }
 0xa76   : > { %12331 = vst [vmem:[#allocation36_spill] sm:$0xff] %v9920_v28  ;;  %v4067_v35 = vmul.f32 %v9920_v28, %v9920_v28  ;;  %6847 = vmatpush1.bf16.msra.mxu1 %v7177_v31  ;;  %v3944_v31 = vld [vmem:[%s11963_s6] sm:$0x3] }
 0xa77   : > { %12332 = vst [vmem:[#allocation41_spill] sm:$0xff] %v9923_v1  ;;  %v3790_v6 = vpop.f32.mrb[172].mxu1  ;;  %3982 = vadd.xlane.f32.xlu0 %v3981_v49  ;;  %v3984_v25 = vadd.f32 %v9923_v1, %v9920_v28  ;;  %v4068_v19 = vmul.f32 %v9923_v1, %v9923_v1  ;;  %v4141_v59 = vadd.f32 %v4066_v56, %v4065_v26  ;;  %v7606_v28 = vld [vmem:[%s8128_s26 + $0x150] sm:$0xff] }
 0xa78   : > { %v3791_v18 = vadd.f32 %v3790_v6, %v9733_v13  ;;  %v3792_v4 = vpop.f32.mrb[173].mxu1 }
 0xa79   : > { %v3793_v5 = vadd.f32 %v3792_v4, %v9736_v32  ;;  %v3794_v8 = vpop.f32.mrb[174].mxu1  ;;  %3985 = vadd.xlane.f32.xlu1 %v3984_v25  ;;  %v4144_v22 = vadd.f32 %v4068_v19, %v4067_v35 }
 0xa7a   : > { %v9940_v48 = vadd.f32 %v7592_v43, %v3791_v18  ;;  %v3795_v21 = vadd.f32 %v3794_v8, %v9733_v13  ;;  %v3796_v9 = vpop.f32.mrb[175].mxu1  ;;  %v3943_v8 = vld [vmem:[%s11962_s5] sm:$0x3] }
 0xa7b   : > { %v9944_v39 = vadd.f32 %v7593_v52, %v3793_v5  ;;  %v3797_v62 = vadd.f32 %v3796_v9, %v9736_v32  ;;  %4142 = vadd.xlane.f32.xlu0 %v4141_v59 }
 0xa7c   : > { %12333 = vst [vmem:[#allocation47_spill] sm:$0xff] %v9940_v48  ;;  %v9948_v42 = vadd.f32 %v7594_v50, %v3795_v21  ;;  %v4069_v58 = vmul.f32 %v9940_v48, %v9940_v48  ;;  %v7596_v50 = vld [vmem:[%s8128_s26 + $0x100] sm:$0xff] }
 0xa7d   : > { %12334 = vst [vmem:[#allocation53_spill] sm:$0xff] %v9944_v39  ;;  %v9953_v41 = vadd.f32 %v7595_v30, %v3797_v62  ;;  %4145 = vadd.xlane.f32.xlu1 %v4144_v22  ;;  %v3987_v27 = vadd.f32 %v9944_v39, %v9940_v48  ;;  %v4070_v60 = vmul.f32 %v9944_v39, %v9944_v39 }
 0xa7e   : > { %12335 = vst [vmem:[#allocation59_spill] sm:$0xff] %v9948_v42  ;;  %v4071_v61 = vmul.f32 %v9948_v42, %v9948_v42 }
 0xa7f   : > { %12336 = vst [vmem:[#allocation66_spill] sm:$0xff] %v9953_v41  ;;  %3988 = vadd.xlane.f32.xlu0 %v3987_v27  ;;  %v3990_v34 = vadd.f32 %v9953_v41, %v9948_v42  ;;  %v4072_v12 = vmul.f32 %v9953_v41, %v9953_v41  ;;  %v4147_v49 = vadd.f32 %v4070_v60, %v4069_v58 }
 0xa81   : > { %3991 = vadd.xlane.f32.xlu1 %v3990_v34  ;;  %v4150_v26 = vadd.f32 %v4072_v12, %v4071_v61  ;;  %v9986_v34 = vrot.slane %v3943_v8, %v12321_v63  ;;  %v9989_v61 = vrot.slane %v3943_v8, %v12322_v36  ;;  %v10003_v8 = vrot.slane %v3944_v31, %v12322_v36 }
 0xa83   : > { %4148 = vadd.xlane.f32.xlu0 %v4147_v49 }
 0xa85   : > { %4151 = vadd.xlane.f32.xlu1 %v4150_v26  ;;  %v7597_v26 = vld [vmem:[%s8128_s26 + $0x108] sm:$0xff] }
 0xad4   : > { %v3947_v56 = vpop.xlane.xlu0 %3946 }
 0xad5   : > { %v9965_v6 = vmul.f32 0.00390625, %v3947_v56 }
 0xad6   : > { %v3950_v25 = vpop.xlane.xlu1 %3949 }
 0xad7   : > { %v9967_v35 = vmul.f32 0.00390625, %v3950_v25  ;;  %v4265_v18 = vmul.f32 %v9965_v6, %v9965_v6  ;;  %v12345_v1 = vsub.f32 %v9744_v24, %v9965_v6 }
 0xad8   : > { %v4107_v19 = vpop.xlane.xlu0 %4106 }
 0xad9   : > { %v4233_v4 = vmul.f32 0.00390625, %v4107_v19  ;;  %v3800_v5 = vpop.f32.mrb[176].mxu1  ;;  %v4266_v17 = vmul.f32 %v9967_v35, %v9967_v35 }
 0xada   : > { %v4110_v59 = vpop.xlane.xlu1 %4109  ;;  %v3801_v43 = vadd.f32 %v3800_v5, %v9733_v13  ;;  %v3802_v21 = vpop.f32.mrb[177].mxu1  ;;  %v10000_v5 = vrot.slane %v3944_v31, %v12321_v63  ;;  %v7600_v63 = vld [vmem:[%s8128_s26 + $0x120] sm:$0xff] }
 0xadb   : > { %v4297_v9 = vsub.f32 %v4233_v4, %v4265_v18  ;;  %v4234_v52 = vmul.f32 0.00390625, %v4110_v59  ;;  %v3803_v62 = vadd.f32 %v3802_v21, %v9736_v32  ;;  %v3804_v22 = vpop.f32.mrb[178].mxu1 }
 0xadc   : > { %v9982_v58 = vadd.f32 %v7596_v50, %v3801_v43  ;;  %v3953_v30 = vpop.xlane.xlu0 %3952  ;;  %v3805_v27 = vadd.f32 %v3804_v22, %v9733_v13  ;;  %v3806_v60 = vpop.f32.mrb[179].mxu1 }
 0xadd   : > { %v4329_v12 = vmax.f32 %v4297_v9, 0.0  ;;  %v4298_v49 = vsub.f32 %v4234_v52, %v4266_v17  ;;  %v9992_v56 = vadd.f32 %v7597_v26, %v3803_v62  ;;  %v9994_v25 = vmul.f32 0.00390625, %v3953_v30  ;;  %v7598_v9 = vld [vmem:[%s8128_s26 + $0x110] sm:$0xff]  ;;  %v7599_v52 = vld [vmem:[%s8128_s26 + $0x118] sm:$0xff] }
 0xade   : > { %12337 = vst [vmem:[#allocation25_spill] sm:$0xff] %v9982_v58  ;;  %v3807_v18 = vadd.f32 %v3806_v60, %v9736_v32  ;;  %v3956_v4 = vpop.xlane.xlu1 %3955  ;;  %v10008_v17 = vadd.f32 %v7598_v9, %v3805_v27  ;;  %v4073_v31 = vmul.f32 %v9982_v58, %v9982_v58 }
 0xadf   : > { %12338 = vst [vmem:[#allocation24_spill] sm:$0xff] %v9992_v56  ;;  %v4425_v43 = vadd.f32 1e-05, %v4329_v12  ;;  %v4330_v21 = vmax.f32 %v4298_v49, 0.0  ;;  %v10013_v22 = vmul.f32 0.00390625, %v3956_v4  ;;  %v3993_v30 = vadd.f32 %v9992_v56, %v9982_v58 }
 0xae0   : > { %12339 = vst [vmem:[#allocation30_spill] sm:$0xff] %v10008_v17  ;;  %v10011_v62 = vadd.f32 %v7599_v52, %v3807_v18  ;;  %v4113_v50 = vpop.xlane.xlu0 %4112  ;;  %v4267_v12 = vmul.f32 %v9994_v25, %v9994_v25  ;;  %v4074_v26 = vmul.f32 %v9992_v56, %v9992_v56 }
 0xae1   : > { %v4426_v60 = vadd.f32 1e-05, %v4330_v21  ;;  %v4235_v49 = vmul.f32 0.00390625, %v4113_v50  ;;  %v3810_v27 = vpop.f32.mrb[180].mxu1  ;;  %7436 = vrsqrt.f32 %v4425_v43  ;;  %v4268_v4 = vmul.f32 %v10013_v22, %v10013_v22  ;;  %3994 = vadd.xlane.f32.xlu0 %v3993_v30 }
 0xae2   : > { %12340 = vst [vmem:[#allocation28_spill] sm:$0xff] %v10011_v62  ;;  %v4116_v9 = vpop.xlane.xlu1 %4115  ;;  %v3811_v52 = vadd.f32 %v3810_v27, %v9733_v13  ;;  %v3812_v21 = vpop.f32.mrb[181].mxu1  ;;  %v3996_v56 = vadd.f32 %v10011_v62, %v10008_v17  ;;  %v4153_v30 = vadd.f32 %v4074_v26, %v4073_v31  ;;  %v7602_v26 = vld [vmem:[%s8128_s26 + $0x130] sm:$0xff] }
 0xae3   : > { %7438 = vrsqrt.f32 %v4426_v60  ;;  %v4299_v59 = vsub.f32 %v4235_v49, %v4267_v12  ;;  %v4236_v50 = vmul.f32 0.00390625, %v4116_v9  ;;  %v3813_v19 = vadd.f32 %v3812_v21, %v9736_v32  ;;  %v3814_v36 = vpop.f32.mrb[182].mxu1  ;;  %v7601_v60 = vld [vmem:[%s8128_s26 + $0x128] sm:$0xff]  ;;  %v7603_v21 = vld [vmem:[%s8128_s26 + $0x138] sm:$0xff] }
 0xae4   : > { %v10030_v58 = vadd.f32 %v7600_v63, %v3811_v52  ;;  %v3959_v18 = vpop.xlane.xlu0 %3958  ;;  %v3815_v43 = vadd.f32 %v3814_v36, %v9733_v13  ;;  %v3816_v48 = vpop.f32.mrb[183].mxu1  ;;  %3997 = vadd.xlane.f32.xlu1 %v3996_v56  ;;  %v4075_v52 = vmul.f32 %v10008_v17, %v10008_v17 }
 0xae5   : > { %v4331_v27 = vmax.f32 %v4299_v59, 0.0  ;;  %v4300_v42 = vsub.f32 %v4236_v50, %v4268_v4  ;;  %v10036_v12 = vadd.f32 %v7601_v60, %v3813_v19  ;;  %v10038_v49 = vmul.f32 0.00390625, %v3959_v18  ;;  %4154 = vadd.xlane.f32.xlu0 %v4153_v30 }
 0xae6   : > { %12341 = vst [vmem:[#allocation35_spill] sm:$0xff] %v10030_v58  ;;  %v3817_v36 = vadd.f32 %v3816_v48, %v9736_v32  ;;  %v3962_v9 = vpop.xlane.xlu1 %3961  ;;  %v10050_v18 = vadd.f32 %v7602_v26, %v3815_v43  ;;  %v4076_v30 = vmul.f32 %v10011_v62, %v10011_v62  ;;  %v4077_v24 = vmul.f32 %v10030_v58, %v10030_v58 }
 0xae7   : > { %12342 = vst [vmem:[#allocation33_spill] sm:$0xff] %v10036_v12  ;;  %v4332_v31 = vmax.f32 %v4300_v42, 0.0  ;;  %v4427_v4 = vadd.f32 1e-05, %v4331_v27  ;;  %v10055_v48 = vmul.f32 0.00390625, %v3962_v9  ;;  %v4269_v59 = vmul.f32 %v10038_v49, %v10038_v49 }
 0xae8   : > { %12343 = vst [vmem:[#allocation40_spill] sm:$0xff] %v10050_v18  ;;  %v10053_v56 = vadd.f32 %v7603_v21, %v3817_v36  ;;  %v4119_v50 = vpop.xlane.xlu0 %4118  ;;  %v3999_v43 = vadd.f32 %v10036_v12, %v10030_v58  ;;  %v4156_v26 = vadd.f32 %v4076_v30, %v4075_v52 }
 0xae9   : > { %v4237_v42 = vmul.f32 0.00390625, %v4119_v50  ;;  %v3820_v19 = vpop.f32.mrb[184].mxu1  ;;  %v4428_v36 = vadd.f32 1e-05, %v4332_v31  ;;  %v4270_v60 = vmul.f32 %v10055_v48, %v10055_v48  ;;  %7440 = vrsqrt.f32 %v4427_v4 }
 0xaea   : > { %12344 = vst [vmem:[#allocation38_spill] sm:$0xff] %v10053_v56  ;;  %v4122_v21 = vpop.xlane.xlu1 %4121  ;;  %v3822_v63 = vpop.f32.mrb[185].mxu1  ;;  %v3821_v50 = vadd.f32 %v3820_v19, %v9733_v13  ;;  %4000 = vadd.xlane.f32.xlu0 %v3999_v43  ;;  %4157 = vadd.xlane.f32.xlu1 %v4156_v26  ;;  %v7605_v26 = vld [vmem:[%s8128_s26 + $0x148] sm:$0xff] }
 0xaeb   : > { %v4301_v62 = vsub.f32 %v4237_v42, %v4269_v59  ;;  %v4238_v17 = vmul.f32 0.00390625, %v4122_v21  ;;  %v3824_v41 = vpop.f32.mrb[186].mxu1  ;;  %v10072_v39 = vpop.eup %7436  ;;  %v3823_v52 = vadd.f32 %v3822_v63, %v9736_v32  ;;  %v4002_v59 = vadd.f32 %v10053_v56, %v10050_v18 }
 0xaec   : > { %v3965_v30 = vpop.xlane.xlu0 %3964  ;;  %v3826_v42 = vpop.f32.mrb[187].mxu1  ;;  %v3825_v4 = vadd.f32 %v3824_v41, %v9733_v13  ;;  %7442 = vrsqrt.f32 %v4428_v36  ;;  %v12346_v41 = vsub.f32 %v9752_v10, %v9967_v35  ;;  %v7604_v36 = vld [vmem:[%s8128_s26 + $0x140] sm:$0xff]  ;;  %v4078_v10 = vmul.f32 %v10036_v12, %v10036_v12 }
 0xaed   : > { %v10079_v21 = vpop.eup %7438  ;;  %v4333_v19 = vmax.f32 %v4301_v62, 0.0  ;;  %v4302_v43 = vsub.f32 %v4238_v17, %v4270_v60  ;;  %v10081_v9 = vmul.f32 0.00390625, %v3965_v30  ;;  %v3827_v31 = vadd.f32 %v3826_v42, %v9736_v32 }
 0xaee   : > { %v3968_v27 = vpop.xlane.xlu1 %3967  ;;  %v10093_v17 = vmul.f32 %v10072_v39, %v12345_v1  ;;  %v10099_v62 = vmul.f32 %v10079_v21, %v12346_v41  ;;  %v10102_v30 = vadd.f32 %v7604_v36, %v3821_v50  ;;  %v10105_v42 = vadd.f32 %v7605_v26, %v3823_v52  ;;  %4003 = vadd.xlane.f32.xlu1 %v4002_v59  ;;  %v7607_v59 = vld [vmem:[%s8128_s26 + $0x158] sm:$0xff] }
 0xaef   : > { %v4334_v60 = vmax.f32 %v4302_v43, 0.0  ;;  %v10107_v63 = vmul.f32 0.00390625, %v3968_v27  ;;  %v4429_v41 = vadd.f32 1e-05, %v4333_v19  ;;  %v10114_v43 = vadd.f32 %v7606_v28, %v3825_v4 }
 0xaf0   : > { %12347 = vst [vmem:[#allocation45_spill] sm:$0xff] %v10102_v30  ;;  %12348 = vst [vmem:[#allocation43_spill] sm:$0xff] %v10105_v42  ;;  %v4125_v1 = vpop.xlane.xlu0 %4124  ;;  %v4271_v50 = vmul.f32 %v10081_v9, %v10081_v9  ;;  %v10121_v26 = vadd.f32 %v7607_v59, %v3827_v31  ;;  %v4159_v58 = vadd.f32 %v4078_v10, %v4077_v24 }
 0xaf1   : > { %12349 = vst [vmem:[#allocation51_spill] sm:$0xff] %v10114_v43  ;;  %v4239_v36 = vmul.f32 0.00390625, %v4125_v1  ;;  %v3830_v52 = vpop.f32.mrb[188].mxu1  ;;  %v4079_v12 = vmul.f32 %v10050_v18, %v10050_v18  ;;  %v4430_v7 = vadd.f32 1e-05, %v4334_v60  ;;  %v4080_v4 = vmul.f32 %v10053_v56, %v10053_v56 }
 0xaf2   : > { %12350 = vst [vmem:[#allocation49_spill] sm:$0xff] %v10121_v26  ;;  %v4128_v51 = vpop.xlane.xlu1 %4127  ;;  %v3832_v19 = vpop.f32.mrb[189].mxu1  ;;  %v4272_v1 = vmul.f32 %v10107_v63, %v10107_v63  ;;  %4160 = vadd.xlane.f32.xlu0 %v4159_v58  ;;  %v3831_v31 = vadd.f32 %v3830_v52, %v9733_v13  ;;  %v4005_v24 = vadd.f32 %v10105_v42, %v10102_v30  ;;  %7444 = vrsqrt.f32 %v4429_v41 }
 0xaf3   : > { %v4303_v28 = vsub.f32 %v4239_v36, %v4271_v50  ;;  %v3834_v29 = vpop.f32.mrb[190].mxu1  ;;  %v4240_v27 = vmul.f32 0.00390625, %v4128_v51  ;;  %v3833_v10 = vadd.f32 %v3832_v19, %v9736_v32  ;;  %v4162_v56 = vadd.f32 %v4080_v4, %v4079_v12  ;;  %v10135_v18 = vpop.eup %7440  ;;  %v7608_v50 = vld [vmem:[%s8128_s26 + $0x160] sm:$0xff] }
 0xaf4   : > { %v3971_v59 = vpop.xlane.xlu0 %3970  ;;  %v3836_v60 = vpop.f32.mrb[191].mxu1  ;;  %v3835_v19 = vadd.f32 %v3834_v29, %v9733_v13  ;;  %7446 = vrsqrt.f32 %v4430_v7  ;;  %v4008_v12 = vadd.f32 %v10121_v26, %v10114_v43  ;;  %v12352_v7 = vsub.f32 %v9748_v23, %v9965_v6 }
 0xaf5   : > { %v4335_v36 = vmax.f32 %v4303_v28, 0.0  ;;  %v4304_v58 = vsub.f32 %v4240_v27, %v4272_v1  ;;  %v10139_v52 = vmul.f32 0.00390625, %v3971_v59  ;;  %4163 = vadd.xlane.f32.xlu1 %v4162_v56  ;;  %v10145_v28 = vadd.f32 %v7608_v50, %v3831_v31  ;;  %v7609_v1 = vld [vmem:[%s8128_s26 + $0x168] sm:$0xff] }
 0xaf6   : > { %v3974_v3 = vpop.xlane.xlu1 %3973  ;;  %v10149_v4 = vpop.eup %7442  ;;  %4006 = vadd.xlane.f32.xlu0 %v4005_v24  ;;  %v10152_v59 = vadd.f32 %v7609_v1, %v3833_v10  ;;  %v3837_v29 = vadd.f32 %v3836_v60, %v9736_v32  ;;  %v4490_v56 = vmul.f32 %v10072_v39, %v12352_v7  ;;  %v12353_v51 = vsub.f32 %v9755_v37, %v9967_v35  ;;  %v7610_v39 = vld [vmem:[%s8128_s26 + $0x170] sm:$0xff] }
 0xaf7   : > { %v4336_v27 = vmax.f32 %v4304_v58, 0.0  ;;  %v4431_v50 = vadd.f32 1e-05, %v4335_v36  ;;  %v4081_v24 = vmul.f32 %v10102_v30, %v10102_v30  ;;  %v4082_v10 = vmul.f32 %v10105_v42, %v10105_v42  ;;  %v7611_v42 = vld [vmem:[%s8128_s26 + $0x178] sm:$0xff] }
 0xaf8   : > { %12351 = vst [vmem:[#allocation57_spill] sm:$0xff] %v10152_v59  ;;  %v4131_v31 = vpop.xlane.xlu0 %4130  ;;  %v4492_v41 = vmul.f32 %v10079_v21, %v12353_v51  ;;  %v10170_v6 = vadd.f32 %v7610_v39, %v3835_v19  ;;  %v10172_v36 = vmul.f32 0.00390625, %v3974_v3  ;;  %v4565_v35 = vmul.f32 %v9989_v61, %v4490_v56 }
 0xaf9   : > { %v3840_v60 = vpop.f32.mrb[192].mxu1  ;;  %v4432_v58 = vadd.f32 1e-05, %v4336_v27  ;;  %4009 = vadd.xlane.f32.xlu1 %v4008_v12  ;;  %v4165_v51 = vadd.f32 %v4082_v10, %v4081_v24  ;;  %v4564_v1 = vmul.f32 %v9986_v34, %v10093_v17  ;;  %v10179_v30 = vadd.f32 %v7611_v42, %v3837_v29 }
 0xafa   : > { %v3842_v37 = vpop.f32.mrb[193].mxu1  ;;  %v4567_v21 = vmul.f32 %v9989_v61, %v4492_v41  ;;  %v4134_v7 = vpop.xlane.xlu1 %4133  ;;  %v4566_v19 = vmul.f32 %v9986_v34, %v10099_v62  ;;  %v4273_v3 = vmul.f32 %v10139_v52, %v10139_v52  ;;  %v4241_v12 = vmul.f32 0.00390625, %v4131_v31 }
 0xafb   : > { %v3844_v27 = vpop.f32.mrb[194].mxu1  ;;  %12354 = vst [vmem:[#allocation55_spill] sm:$0xff] %v10179_v30  ;;  %v10186_v56 = vadd.f32 %v10003_v8, %v4565_v35  ;;  %4166 = vadd.xlane.f32.xlu0 %v4165_v51  ;;  %v10192_v17 = vadd.f32 %v10000_v5, %v4564_v1  ;;  %v4083_v42 = vmul.f32 %v10114_v43, %v10114_v43  ;;  %v4242_v51 = vmul.f32 0.00390625, %v4134_v7 }
 0xafc   : > { %v3846_v39 = vpop.f32.mrb[195].mxu1  ;;  %v10189_v41 = vadd.f32 %v10003_v8, %v4567_v21  ;;  %v10197_v62 = vadd.f32 %v10000_v5, %v4566_v19  ;;  %v4305_v29 = vsub.f32 %v4241_v12, %v4273_v3  ;;  %v4084_v31 = vmul.f32 %v10121_v26, %v10121_v26  ;;  %v3977_v10 = vpop.xlane.xlu0 %3976 }
 0xafd   : > { %12355 = vst [vmem:[#allocation63_spill] sm:$0xff] %v10186_v56  ;;  %12357 = vst [vmem:[#allocation58_spill] sm:$0xff] %v10192_v17  ;;  %v4274_v24 = vmul.f32 %v10172_v36, %v10172_v36  ;;  %v10203_v35 = vpop.eup %7444  ;;  %v3841_v1 = vadd.f32 %v3840_v60, %v9733_v13  ;;  %v4011_v19 = vadd.f32 %v10152_v59, %v10145_v28  ;;  %v10217_v60 = vmul.f32 0.00390625, %v3977_v10  ;;  %v7612_v10 = vld [vmem:[%s8128_s26 + $0x180] sm:$0xff] }
 0xafe   : > { %12356 = vst [vmem:[#allocation61_spill] sm:$0xff] %v10189_v41  ;;  %12358 = vst [vmem:[#allocation46_spill] sm:$0xff] %v10197_v62  ;;  %v4704_v21 = vpack.c.bf16 %v10189_v41, %v10186_v56  ;;  %v4703_v3 = vpack.c.bf16 %v10197_v62, %v10192_v17  ;;  %v4337_v12 = vmax.f32 %v4305_v29, 0.0  ;;  %v4168_v23 = vadd.f32 %v4084_v31, %v4083_v42  ;;  %v10213_v43 = vpop.eup %7446  ;;  %v3980_v56 = vpop.xlane.xlu1 %3979 }
 0xaff   : > { %v3843_v26 = vadd.f32 %v3842_v37, %v9736_v32  ;;  %v4306_v41 = vsub.f32 %v4242_v51, %v4274_v24  ;;  %4012 = vadd.xlane.f32.xlu0 %v4011_v19  ;;  %v3845_v7 = vadd.f32 %v3844_v27, %v9733_v13  ;;  %7448 = vrsqrt.f32 %v4431_v50  ;;  %v7613_v19 = vld [vmem:[%s8128_s26 + $0x188] sm:$0xff] }
 0xb00   : > { %4971 = vmatprep.mubr.bf16.mxu0 %v4704_v21  ;;  %4169 = vadd.xlane.f32.xlu1 %v4168_v23  ;;  %v4014_v42 = vadd.f32 %v10179_v30, %v10170_v6  ;;  %v3847_v29 = vadd.f32 %v3846_v39, %v9736_v32  ;;  %7450 = vrsqrt.f32 %v4432_v58  ;;  %v10228_v50 = vadd.f32 %v7612_v10, %v3841_v1  ;;  %v4137_v37 = vpop.xlane.xlu0 %4136 }
 0xb01   : > { %v3850_v62 = vpop.f32.mrb[196].mxu1  ;;  %4972 = vmatmul.mubr.bf16.vlgmr.msra.gmra.mrb[176].mxu0 %v4703_v3  ;;  %v4338_v24 = vmax.f32 %v4306_v41, 0.0  ;;  %v4433_v51 = vadd.f32 1e-05, %v4337_v12  ;;  %v10231_v23 = vadd.f32 %v7613_v19, %v3843_v26  ;;  %v12360_v39 = vsub.f32 %v9776_v57, %v9994_v25  ;;  %v7614_v41 = vld [vmem:[%s8128_s26 + $0x190] sm:$0xff]  ;;  %v7615_v57 = vld [vmem:[%s8128_s26 + $0x198] sm:$0xff] }
 0xb02   : > { %v3852_v31 = vpop.f32.mrb[197].mxu1  ;;  %v10240_v33 = vadd.f32 %v7614_v41, %v3845_v7  ;;  %v12362_v1 = vsub.f32 %v9783_v38, %v10013_v22  ;;  %v4085_v26 = vmul.f32 %v10145_v28, %v10145_v28  ;;  %v4086_v10 = vmul.f32 %v10152_v59, %v10152_v59 }
 0xb03   : > { %v3854_v21 = vpop.f32.mrb[198].mxu1  ;;  %12359 = vst [vmem:[#allocation52_spill] sm:$0xff] %v10231_v23  ;;  %v4494_v58 = vmul.f32 %v10135_v18, %v12360_v39  ;;  %v10251_v19 = vadd.f32 %v7615_v57, %v3847_v29  ;;  %v10253_v39 = vmul.f32 0.00390625, %v3980_v56  ;;  %v12364_v41 = vsub.f32 %v9772_v16, %v9994_v25  ;;  %v4140_v29 = vpop.xlane.xlu1 %4139 }
 0xb04   : > { %v3856_v27 = vpop.f32.mrb[199].mxu1  ;;  %12361 = vst [vmem:[#allocation23_spill] sm:$0xff] %v10240_v33  ;;  %v4496_v12 = vmul.f32 %v10149_v4, %v12362_v1  ;;  %4015 = vadd.xlane.f32.xlu1 %v4014_v42  ;;  %v4434_v1 = vadd.f32 1e-05, %v4338_v24  ;;  %v4171_v17 = vadd.f32 %v4086_v10, %v4085_v26  ;;  %v12365_v59 = vsub.f32 %v9780_v47, %v10013_v22  ;;  %v3983_v26 = vpop.xlane.xlu0 %3982 }
 0xb05   : > { %12363 = vst [vmem:[#allocation34_spill] sm:$0xff] %v10251_v19  ;;  %v4569_v7 = vmul.f32 %v9989_v61, %v4494_v58  ;;  %v4493_v38 = vmul.f32 %v10135_v18, %v12364_v41  ;;  %v4275_v16 = vmul.f32 %v10217_v60, %v10217_v60  ;;  %v4243_v25 = vmul.f32 0.00390625, %v4137_v37 }
 0xb06   : > { %v4571_v3 = vmul.f32 %v9989_v61, %v4496_v12  ;;  %v4495_v42 = vmul.f32 %v10149_v4, %v12365_v59  ;;  %4172 = vadd.xlane.f32.xlu0 %v4171_v17  ;;  %v4087_v47 = vmul.f32 %v10170_v6, %v10170_v6  ;;  %v4088_v22 = vmul.f32 %v10179_v30, %v10179_v30 }
 0xb07   : > { %v10266_v56 = vadd.f32 %v10003_v8, %v4569_v7  ;;  %v4568_v58 = vmul.f32 %v9986_v34, %v4493_v38  ;;  %v4307_v12 = vsub.f32 %v4243_v25, %v4275_v16  ;;  %v4276_v37 = vmul.f32 %v10253_v39, %v10253_v39 }
 0xb08   : > { %v10272_v18 = vadd.f32 %v10003_v8, %v4571_v3  ;;  %v4570_v24 = vmul.f32 %v9986_v34, %v4495_v42  ;;  %v4244_v3 = vmul.f32 0.00390625, %v4140_v29  ;;  %v4174_v7 = vadd.f32 %v4088_v22, %v4087_v47 }
 0xb09   : > { %12366 = vst [vmem:[#allocation29_spill] sm:$0xff] %v10266_v56  ;;  %v10279_v4 = vpop.f32.mrb[200].mxu1  ;;  %v10282_v59 = vadd.f32 %v10000_v5, %v4568_v58  ;;  %v3851_v41 = vadd.f32 %v3850_v62, %v9733_v13  ;;  %v10296_v42 = vpop.eup %7448  ;;  %v4339_v58 = vmax.f32 %v4307_v12, 0.0  ;;  %v4017_v29 = vadd.f32 %v10231_v23, %v10228_v50 }
 0xb0a   : > { %12367 = vst [vmem:[#allocation27_spill] sm:$0xff] %v10272_v18  ;;  %v10286_v17 = vpop.f32.mrb[201].mxu1  ;;  %v4706_v10 = vpack.c.bf16 %v10272_v18, %v10266_v56  ;;  %v10291_v57 = vadd.f32 %v10000_v5, %v4570_v24  ;;  %v4308_v16 = vsub.f32 %v4244_v3, %v4276_v37  ;;  %v3853_v25 = vadd.f32 %v3852_v31, %v9736_v32  ;;  %v10303_v18 = vpop.eup %7450  ;;  %v7617_v24 = vld [vmem:[%s8128_s26 + $0x1a8] sm:$0xff] }
 0xb0b   : > { %12368 = vst [vmem:[#allocation65_spill] sm:$0xff] %v10282_v59  ;;  %v10294_v38 = vpop.f32.mrb[202].mxu1  ;;  %4175 = vadd.xlane.f32.xlu1 %v4174_v7  ;;  %v3855_v47 = vadd.f32 %v3854_v21, %v9733_v13  ;;  %v10310_v22 = vmul.f32 0.00390625, %v3983_v26  ;;  %7452 = vrsqrt.f32 %v4433_v51  ;;  %4018 = vadd.xlane.f32.xlu0 %v4017_v29  ;;  %v4020_v37 = vadd.f32 %v10251_v19, %v10240_v33  ;;  %v3986_v3 = vpop.xlane.xlu1 %3985  ;;  %v7616_v7 = vld [vmem:[%s8128_s26 + $0x1a0] sm:$0xff] }
 0xb0c   : > { %12369 = vst [vmem:[#allocation32_spill] sm:$0xff] %v10291_v57  ;;  %v10301_v30 = vpop.f32.mrb[203].mxu1  ;;  %4981 = vmatprep.mubr.bf16.mxu0 %v4706_v10  ;;  %v4705_v62 = vpack.c.bf16 %v10291_v57, %v10282_v59  ;;  %7454 = vrsqrt.f32 %v4434_v1  ;;  %v4435_v10 = vadd.f32 1e-05, %v4339_v58  ;;  %v10319_v21 = vadd.f32 %v7616_v7, %v3851_v41  ;;  %v7618_v58 = vld [vmem:[%s8128_s26 + $0x1b0] sm:$0xff]  ;;  %v12374_v59 = vld [vmem:[#allocation60_spill] sm:$0xff] }
 0xb0d   : > { %v3857_v51 = vadd.f32 %v3856_v27, %v9736_v32  ;;  %v4340_v26 = vmax.f32 %v4308_v16, 0.0  ;;  %v10323_v31 = vadd.f32 %v7617_v24, %v3853_v25  ;;  %v12370_v12 = vsub.f32 %v9804_v53, %v10038_v49 }
 0xb0e   : > { %4982 = vmatmul.mubr.bf16.gmra.mrb[180].mxu0 %v4705_v62  ;;  %v12371_v57 = vsub.f32 %v9811_v44, %v10055_v48  ;;  %v10334_v41 = vadd.f32 %v7618_v58, %v3855_v47  ;;  %v4089_v16 = vmul.f32 %v10228_v50, %v10228_v50  ;;  %v4090_v53 = vmul.f32 %v10231_v23, %v10231_v23  ;;  %v12372_v62 = vld [vmem:[#allocation62_spill] sm:$0xff]  ;;  %v7619_v58 = vld [vmem:[%s8128_s26 + $0x1b8] sm:$0xff] }
 0xb0f   : > { %v4498_v29 = vmul.f32 %v10203_v35, %v12370_v12  ;;  %4021 = vadd.xlane.f32.xlu1 %v4020_v37  ;;  %v12373_v47 = vsub.f32 %v12372_v62, %v10038_v49  ;;  %v4143_v37 = vpop.xlane.xlu0 %4142  ;;  %7456 = vrsqrt.f32 %v4435_v10  ;;  %v10355_v27 = vadd.f32 %v7619_v58, %v3857_v51  ;;  %v4146_v51 = vpop.xlane.xlu1 %4145 }
 0xb10   : > { %v4500_v1 = vmul.f32 %v10213_v43, %v12371_v57  ;;  %v10346_v57 = vmul.f32 0.00390625, %v3986_v3  ;;  %v4177_v56 = vadd.f32 %v4090_v53, %v4089_v16  ;;  %v4091_v10 = vmul.f32 %v10240_v33, %v10240_v33 }
 0xb11   : > { %v10342_v25 = vpop.f32.mrb[204].mxu1  ;;  %v4573_v44 = vmul.f32 %v9989_v61, %v4498_v29  ;;  %v4497_v12 = vmul.f32 %v10203_v35, %v12373_v47  ;;  %v12375_v29 = vsub.f32 %v12374_v59, %v10055_v48  ;;  %v4277_v59 = vmul.f32 %v10310_v22, %v10310_v22 }
 0xb12   : > { %v4575_v24 = vmul.f32 %v9989_v61, %v4500_v1  ;;  %v10352_v7 = vpop.f32.mrb[205].mxu1  ;;  %4178 = vadd.xlane.f32.xlu0 %v4177_v56  ;;  %v4245_v53 = vmul.f32 0.00390625, %v4143_v37  ;;  %v4278_v47 = vmul.f32 %v10346_v57, %v10346_v57  ;;  %v4023_v37 = vadd.f32 %v10323_v31, %v10319_v21 }
 0xb13   : > { %v4499_v1 = vmul.f32 %v10213_v43, %v12375_v29  ;;  %v10361_v3 = vpop.f32.mrb[206].mxu1  ;;  %v10364_v23 = vadd.f32 %v10003_v8, %v4573_v44  ;;  %v4572_v35 = vmul.f32 %v9986_v34, %v4497_v12  ;;  %v4092_v43 = vmul.f32 %v10251_v19, %v10251_v19  ;;  %v7622_v19 = vld [vmem:[%s8128_s26 + $0x1d0] sm:$0xff] }
 0xb14   : > { %v10367_v49 = vadd.f32 %v10003_v8, %v4575_v24  ;;  %v10372_v16 = vpop.f32.mrb[207].mxu1  ;;  %v4436_v44 = vadd.f32 1e-05, %v4340_v26  ;;  %v4309_v58 = vsub.f32 %v4245_v53, %v4277_v59  ;;  %v4246_v29 = vmul.f32 0.00390625, %v4146_v51  ;;  %v7620_v53 = vld [vmem:[%s8128_s26 + $0x1c0] sm:$0xff] }
 0xb15   : > { %12376 = vst [vmem:[#allocation42_spill] sm:$0xff] %v10364_v23  ;;  %v4574_v48 = vmul.f32 %v9986_v34, %v4499_v1  ;;  %v10382_v62 = vadd.f32 %v10000_v5, %v4572_v35  ;;  %v4180_v12 = vadd.f32 %v4092_v43, %v4091_v10  ;;  %v10389_v1 = vpop.eup %7452  ;;  %v3861_v26 = vadd.f32 %v10279_v4, %v9733_v13 }
 0xb16   : > { %12377 = vst [vmem:[#allocation37_spill] sm:$0xff] %v10367_v49  ;;  %v4708_v24 = vpack.c.bf16 %v10367_v49, %v10364_v23  ;;  %v3863_v35 = vadd.f32 %v10286_v17, %v9736_v32  ;;  %v3865_v49 = vadd.f32 %v10294_v38, %v9733_v13  ;;  %v10399_v23 = vpop.eup %7454  ;;  %v4341_v51 = vmax.f32 %v4309_v58, 0.0  ;;  %v12380_v17 = vld [vmem:[#allocation31_spill] sm:$0xff]  ;;  %v12381_v38 = vld [vmem:[#allocation36_spill] sm:$0xff]  ;;  %4024 = vadd.xlane.f32.xlu0 %v4023_v37 }
 0xb17   : > { %12378 = vst [vmem:[#allocation44_spill] sm:$0xff] %v10382_v62  ;;  %v10387_v56 = vadd.f32 %v10000_v5, %v4574_v48  ;;  %v3989_v48 = vpop.xlane.xlu0 %3988  ;;  %4181 = vadd.xlane.f32.xlu1 %v4180_v12  ;;  %v4310_v4 = vsub.f32 %v4246_v29, %v4278_v47  ;;  %v4026_v43 = vadd.f32 %v10355_v27, %v10334_v41  ;;  %7458 = vrsqrt.f32 %v4436_v44 }
 0xb18   : > { %4991 = vmatprep.mubr.bf16.mxu0 %v4708_v24  ;;  %v3867_v24 = vadd.f32 %v10301_v30, %v9736_v32  ;;  %v4437_v12 = vadd.f32 1e-05, %v4341_v51  ;;  %v12382_v58 = vsub.f32 %v9832_v20, %v10081_v9  ;;  %v12383_v29 = vsub.f32 %v9841_v2, %v10107_v63 }
 0xb19   : > { %12379 = vst [vmem:[#allocation39_spill] sm:$0xff] %v10387_v56  ;;  %v4707_v10 = vpack.c.bf16 %v10387_v56, %v10382_v62  ;;  %v3992_v56 = vpop.xlane.xlu1 %3991  ;;  %v4342_v47 = vmax.f32 %v4310_v4, 0.0  ;;  %v10420_v37 = vadd.f32 %v7620_v53, %v3861_v26  ;;  %v7621_v62 = vld [vmem:[%s8128_s26 + $0x1c8] sm:$0xff]  ;;  %v10428_v51 = vmul.f32 0.00390625, %v3989_v48  ;;  %v10430_v4 = vpop.eup %7456 }
 0xb1a   : > { %v4502_v44 = vmul.f32 %v10296_v42, %v12382_v58  ;;  %v4504_v59 = vmul.f32 %v10303_v18, %v12383_v29  ;;  %v10423_v30 = vadd.f32 %v7621_v62, %v3863_v35  ;;  %v7623_v58 = vld [vmem:[%s8128_s26 + $0x1d8] sm:$0xff]  ;;  %7460 = vrsqrt.f32 %v4437_v12 }
 0xb1b   : > { %4992 = vmatmul.mubr.bf16.gmra.mrb[184].mxu0 %v4707_v10  ;;  %v10426_v10 = vadd.f32 %v7622_v19, %v3865_v49  ;;  %v4438_v20 = vadd.f32 1e-05, %v4342_v47  ;;  %4027 = vadd.xlane.f32.xlu1 %v4026_v43  ;;  %v10433_v33 = vadd.f32 %v7623_v58, %v3867_v24  ;;  %v10437_v53 = vmul.f32 0.00390625, %v3992_v56  ;;  %v4149_v62 = vpop.xlane.xlu0 %4148  ;;  %v12384_v43 = vld [vmem:[#allocation64_spill] sm:$0xff] }
 0xb1c   : > { %v4577_v2 = vmul.f32 %v9989_v61, %v4502_v44  ;;  %v4579_v26 = vmul.f32 %v9989_v61, %v4504_v59  ;;  %v4093_v19 = vmul.f32 %v10319_v21, %v10319_v21  ;;  %v4094_v49 = vmul.f32 %v10323_v31, %v10323_v31 }
 0xb1d   : > { %7462 = vrsqrt.f32 %v4438_v20  ;;  %v12385_v59 = vsub.f32 %v12384_v43, %v10081_v9  ;;  %v12386_v12 = vsub.f32 %v9836_v54, %v10107_v63  ;;  %v4095_v44 = vmul.f32 %v10334_v41, %v10334_v41  ;;  %v4152_v20 = vpop.xlane.xlu1 %4151 }
 0xb1e   : > { %v10444_v35 = vadd.f32 %v10003_v8, %v4577_v2  ;;  %v10447_v48 = vadd.f32 %v10003_v8, %v4579_v26  ;;  %v4183_v24 = vadd.f32 %v4094_v49, %v4093_v19  ;;  %v4096_v29 = vmul.f32 %v10355_v27, %v10355_v27 }
 0xb1f   : > { %v4501_v56 = vmul.f32 %v10296_v42, %v12385_v59  ;;  %v4503_v47 = vmul.f32 %v10303_v18, %v12386_v12  ;;  %v4279_v42 = vmul.f32 %v10428_v51, %v10428_v51  ;;  %v4247_v2 = vmul.f32 0.00390625, %v4149_v62 }
 0xb20   : > { %v4710_v58 = vpack.c.bf16 %v10447_v48, %v10444_v35  ;;  %4184 = vadd.xlane.f32.xlu0 %v4183_v24  ;;  %v4186_v63 = vadd.f32 %v4096_v29, %v4095_v44  ;;  %v3871_v18 = vadd.f32 %v10342_v25, %v9733_v13  ;;  %v4280_v26 = vmul.f32 %v10437_v53, %v10437_v53  ;;  %v7624_v25 = vld [vmem:[%s8128_s26 + $0x1e0] sm:$0xff] }
 0xb21   : > { %v4576_v9 = vmul.f32 %v9986_v34, %v4501_v56  ;;  %v4578_v54 = vmul.f32 %v9986_v34, %v4503_v47  ;;  %v4311_v49 = vsub.f32 %v4247_v2, %v4279_v42  ;;  %v4248_v43 = vmul.f32 0.00390625, %v4152_v20  ;;  %v7459_v59 = vpop.eup %7458  ;;  %v7625_v42 = vld [vmem:[%s8128_s26 + $0x1e8] sm:$0xff] }
 0xb22   : > { %5001 = vmatprep.mubr.bf16.mxu0 %v4710_v58  ;;  %v4029_v62 = vadd.f32 %v10423_v30, %v10420_v37  ;;  %4187 = vadd.xlane.f32.xlu1 %v4186_v63  ;;  %v10480_v24 = vadd.f32 %v7624_v25, %v3871_v18  ;;  %v3873_v12 = vadd.f32 %v10352_v7, %v9736_v32 }
 0xb23   : > { %v10472_v19 = vadd.f32 %v10000_v5, %v4576_v9  ;;  %v10477_v56 = vadd.f32 %v10000_v5, %v4578_v54  ;;  %v3875_v47 = vadd.f32 %v10361_v3, %v9733_v13  ;;  %v4343_v44 = vmax.f32 %v4311_v49, 0.0  ;;  %v7626_v54 = vld [vmem:[%s8128_s26 + $0x1f0] sm:$0xff] }
 0xb24   : > { %v4312_v29 = vsub.f32 %v4248_v43, %v4280_v26  ;;  %v4032_v20 = vadd.f32 %v10433_v33, %v10426_v10  ;;  %v3877_v58 = vadd.f32 %v10372_v16, %v9736_v32  ;;  %4030 = vadd.xlane.f32.xlu0 %v4029_v62  ;;  %v10493_v2 = vadd.f32 %v7625_v42, %v3873_v12  ;;  %v7627_v26 = vld [vmem:[%s8128_s26 + $0x1f8] sm:$0xff]  ;;  %v7461_v43 = vpop.eup %7460  ;;  %s12477_s26 = sld [smem:[#allocation68_spill]] }
 0xb25   : > { %v4709_v9 = vpack.c.bf16 %v10477_v56, %v10472_v19  ;;  %v10496_v7 = vadd.f32 %v7626_v54, %v3875_v47  ;;  %v12387_v13 = vsub.f32 %v9860_v11, %v10139_v52  ;;  %v4439_v63 = vadd.f32 1e-05, %v4343_v44 }
 0xb26   : > { %v4344_v18 = vmax.f32 %v4312_v29, 0.0  ;;  %v10503_v49 = vadd.f32 %v7627_v26, %v3877_v58  ;;  %v12388_v32 = vsub.f32 %v9869_v55, %v10172_v36  ;;  %4033 = vadd.xlane.f32.xlu1 %v4032_v20  ;;  %v4097_v11 = vmul.f32 %v10420_v37, %v10420_v37  ;;  %v12389_v29 = vld [vmem:[#allocation26_spill] sm:$0xff] }
 0xb27   : > { %v4506_v3 = vmul.f32 %v10389_v1, %v12387_v13  ;;  %5002 = vmatmul.mubr.bf16.gmra.mrb[188].mxu0 %v4709_v9  ;;  %v4098_v25 = vmul.f32 %v10423_v30, %v10423_v30  ;;  %v7463_v12 = vpop.eup %7462  ;;  %7464 = vrsqrt.f32 %v4439_v63  ;;  %v12390_v55 = vsub.f32 %v12389_v29, %v10139_v52 }
 0xb28   : > { %v4508_v16 = vmul.f32 %v10399_v23, %v12388_v32  ;;  %v4440_v47 = vadd.f32 1e-05, %v4344_v18  ;;  %v12391_v42 = vsub.f32 %v9864_v15, %v10172_v36  ;;  %v4099_v13 = vmul.f32 %v10426_v10, %v10426_v10 }
 0xb29   : > { %v4581_v62 = vmul.f32 %v9989_v61, %v4506_v3  ;;  %v4505_v58 = vmul.f32 %v10389_v1, %v12390_v55  ;;  %v4189_v9 = vadd.f32 %v4098_v25, %v4097_v11  ;;  %v4100_v1 = vmul.f32 %v10433_v33, %v10433_v33 }
 0xb2a   : > { %v4583_v44 = vmul.f32 %v9989_v61, %v4508_v16  ;;  %v4507_v54 = vmul.f32 %v10399_v23, %v12391_v42  ;;  %7466 = vrsqrt.f32 %v4440_v47  ;;  %v4035_v15 = vadd.f32 %v10493_v2, %v10480_v24  ;;  %v12396_v42 = vld [vmem:[#allocation41_spill] sm:$0xff] }
 0xb2b   : > { %v10520_v20 = vadd.f32 %v10003_v8, %v4581_v62  ;;  %v4580_v52 = vmul.f32 %v9986_v34, %v4505_v58  ;;  %4190 = vadd.xlane.f32.xlu0 %v4189_v9  ;;  %v4038_v36 = vadd.f32 %v10503_v49, %v10496_v7  ;;  %v12392_v23 = vsub.f32 %v9888_v14, %v10217_v60 }
 0xb2c   : > { %v10529_v3 = vadd.f32 %v10003_v8, %v4583_v44  ;;  %v4582_v63 = vmul.f32 %v9986_v34, %v4507_v54  ;;  %v4192_v16 = vadd.f32 %v4100_v1, %v4099_v13  ;;  %v12393_v62 = vsub.f32 %v9895_v0, %v10253_v39 }
 0xb2d   : > { %v4510_v18 = vmul.f32 %v10430_v4, %v12392_v23  ;;  %v10546_v32 = vadd.f32 %v10000_v5, %v4580_v52  ;;  %v4101_v14 = vmul.f32 %v10480_v24, %v10480_v24  ;;  %v4102_v44 = vmul.f32 %v10493_v2, %v10493_v2 }
 0xb2e   : > { %v4712_v26 = vpack.c.bf16 %v10529_v3, %v10520_v20  ;;  %v4512_v11 = vmul.f32 %v7459_v59, %v12393_v62  ;;  %v10552_v25 = vadd.f32 %v10000_v5, %v4582_v63  ;;  %4193 = vadd.xlane.f32.xlu1 %v4192_v16  ;;  %v12394_v55 = vsub.f32 %v9884_v45, %v10217_v60  ;;  %v12399_v16 = vld [vmem:[#allocation53_spill] sm:$0xff] }
 0xb2f   : > { %v4585_v47 = vmul.f32 %v9989_v61, %v4510_v18  ;;  %v12395_v58 = vsub.f32 %v9892_v40, %v10253_v39  ;;  %v4388_v54 = vsub.f32 %v12396_v42, %v10346_v57  ;;  %4036 = vadd.xlane.f32.xlu0 %v4035_v15  ;;  %v4103_v1 = vmul.f32 %v10496_v7, %v10496_v7 }
 0xb30   : > { %5011 = vmatprep.mubr.bf16.mxu0 %v4712_v26  ;;  %v4587_v29 = vmul.f32 %v9989_v61, %v4512_v11  ;;  %v4509_v0 = vmul.f32 %v10430_v4, %v12394_v55  ;;  %v4711_v13 = vpack.c.bf16 %v10552_v25, %v10546_v32  ;;  %v4104_v39 = vmul.f32 %v10503_v49, %v10503_v49 }
 0xb31   : > { %v4511_v9 = vmul.f32 %v7459_v59, %v12395_v58  ;;  %v10572_v52 = vadd.f32 %v10003_v8, %v4585_v47  ;;  %v4195_v4 = vadd.f32 %v4102_v44, %v4101_v14  ;;  %v12397_v59 = vsub.f32 %v12380_v17, %v10310_v22  ;;  %v7465_v26 = vpop.eup %7464 }
 0xb32   : > { %v10577_v45 = vadd.f32 %v10003_v8, %v4587_v29  ;;  %v4584_v60 = vmul.f32 %v9986_v34, %v4509_v0  ;;  %5012 = vmatmul.mubr.bf16.gmra.mrb[192].mxu0 %v4711_v13  ;;  %v4516_v15 = vmul.f32 %v7463_v12, %v4388_v54  ;;  %v12398_v23 = vsub.f32 %v12381_v38, %v10346_v57 }
 0xb33   : > { %v4586_v40 = vmul.f32 %v9986_v34, %v4511_v9  ;;  %v4514_v63 = vmul.f32 %v7461_v43, %v12397_v59  ;;  %v4390_v62 = vsub.f32 %v12399_v16, %v10428_v51  ;;  %4039 = vadd.xlane.f32.xlu1 %v4038_v36  ;;  %4196 = vadd.xlane.f32.xlu0 %v4195_v4  ;;  %v12401_v36 = vld [vmem:[#allocation66_spill] sm:$0xff] }
 0xb34   : > { %v4515_v18 = vmul.f32 %v7463_v12, %v12398_v23  ;;  %v4714_v11 = vpack.c.bf16 %v10577_v45, %v10572_v52  ;;  %v10597_v17 = vadd.f32 %v10000_v5, %v4584_v60  ;;  %v4591_v57 = vmul.f32 %v9989_v61, %v4516_v15  ;;  %v7467_v44 = vpop.eup %7466 }
 0xb35   : > { %v10594_v47 = vadd.f32 %v10000_v5, %v4586_v40  ;;  %v4589_v14 = vmul.f32 %v9989_v61, %v4514_v63  ;;  %v12400_v38 = vsub.f32 %v9912_v46, %v10310_v22  ;;  %v4392_v29 = vsub.f32 %v12401_v36, %v10437_v53  ;;  %v12402_v22 = vld [vmem:[#allocation59_spill] sm:$0xff] }
 0xb36   : > { %5021 = vmatprep.mubr.bf16.mxu0 %v4714_v11  ;;  %v4198_v55 = vadd.f32 %v4104_v39, %v4103_v1  ;;  %v4518_v0 = vmul.f32 %v7465_v26, %v4390_v62  ;;  %v10612_v42 = vadd.f32 %v10003_v8, %v4591_v57  ;;  %v4590_v54 = vmul.f32 %v9986_v34, %v4515_v18  ;;  %v12403_v39 = vld [vmem:[#allocation47_spill] sm:$0xff] }
 0xb37   : > { %v4513_v12 = vmul.f32 %v7461_v43, %v12400_v38  ;;  %v4713_v58 = vpack.c.bf16 %v10594_v47, %v10597_v17  ;;  %v10609_v9 = vadd.f32 %v10003_v8, %v4589_v14  ;;  %v4520_v46 = vmul.f32 %v7467_v44, %v4392_v29 }
 0xb38   : > { %4199 = vadd.xlane.f32.xlu1 %v4198_v55  ;;  %v4391_v43 = vsub.f32 %v12402_v22, %v10437_v53  ;;  %v4593_v60 = vmul.f32 %v9989_v61, %v4518_v0  ;;  %v4389_v4 = vsub.f32 %v12403_v39, %v10428_v51  ;;  %v10625_v59 = vadd.f32 %v10000_v5, %v4590_v54 }
 0xb39   : > { %v4716_v13 = vpack.c.bf16 %v10612_v42, %v10609_v9  ;;  %v4588_v1 = vmul.f32 %v9986_v34, %v4513_v12  ;;  %v4595_v40 = vmul.f32 %v9989_v61, %v4520_v46 }
 0xb3a   : > { %5022 = vmatmul.mubr.bf16.gmra.mrb[196].mxu0 %v4713_v58  ;;  %v4519_v63 = vmul.f32 %v7467_v44, %v4391_v43  ;;  %v4517_v23 = vmul.f32 %v7465_v26, %v4389_v4  ;;  %v10634_v18 = vadd.f32 %v10003_v8, %v4593_v60 }
 0xb3b   : > { %5031 = vmatprep.mubr.bf16.mxu0 %v4716_v13  ;;  %v10628_v53 = vadd.f32 %v10003_v8, %v4595_v40  ;;  %v10631_v15 = vadd.f32 %v10000_v5, %v4588_v1 }
 0xb3c   : > { %v4594_v51 = vmul.f32 %v9986_v34, %v4519_v63  ;;  %v4592_v11 = vmul.f32 %v9986_v34, %v4517_v23 }
 0xb3d   : > { %12404 = vst [vmem:[#allocation54_spill] sm:$0xff] %v10628_v53  ;;  %v4715_v16 = vpack.c.bf16 %v10625_v59, %v10631_v15  ;;  %v4718_v62 = vpack.c.bf16 %v10628_v53, %v10634_v18 }
 0xb3e   : > { %v10643_v14 = vadd.f32 %v10000_v5, %v4594_v51  ;;  %v10646_v26 = vadd.f32 %v10000_v5, %v4592_v11 }
 0xb40   : > { %12405 = vst [vmem:[#allocation48_spill] sm:$0xff] %v10643_v14  ;;  %v4717_v57 = vpack.c.bf16 %v10643_v14, %v10646_v26 }
 0xb42   : > { %5032 = vmatmul.mubr.bf16.gmra.mrb[200].mxu0 %v4715_v16 }
 0xb43   : > { %5041 = vmatprep.mubr.bf16.mxu0 %v4718_v62 }
 0xb4a   : > { %5042 = vmatmul.mubr.bf16.gmra.mrb[204].mxu0 %v4717_v57 }
 0xb6e   : > { %v3995_v38 = vpop.xlane.xlu0 %3994 }
 0xb6f   : > { %v4217_v12 = vmul.f32 0.00390625, %v3995_v38 }
 0xb71   : > { %v3998_v44 = vpop.xlane.xlu1 %3997  ;;  %v4281_v29 = vmul.f32 %v4217_v12, %v4217_v12 }
 0xb72   : > { %v4155_v36 = vpop.xlane.xlu0 %4154  ;;  %v4218_v0 = vmul.f32 0.00390625, %v3998_v44 }
 0xb73   : > { %v4249_v55 = vmul.f32 0.00390625, %v4155_v36 }
 0xb74   : > { %v4282_v43 = vmul.f32 %v4218_v0, %v4218_v0 }
 0xb75   : > { %v4313_v58 = vsub.f32 %v4249_v55, %v4281_v29  ;;  %v12406_v55 = vld [vmem:[#allocation24_spill] sm:$0xff] }
 0xb77   : > { %v4345_v54 = vmax.f32 %v4313_v58, 0.0  ;;  %v4158_v46 = vpop.xlane.xlu1 %4157  ;;  %v4001_v1 = vpop.xlane.xlu0 %4000  ;;  %v4394_v58 = vsub.f32 %v12406_v55, %v4217_v12 }
 0xb78   : > { %v4250_v13 = vmul.f32 0.00390625, %v4158_v46  ;;  %v10650_v39 = vmul.f32 0.00390625, %v4001_v1 }
 0xb79   : > { %v4441_v22 = vadd.f32 1e-05, %v4345_v54 }
 0xb7a   : > { %v4314_v60 = vsub.f32 %v4250_v13, %v4282_v43  ;;  %v4283_v51 = vmul.f32 %v10650_v39, %v10650_v39  ;;  %v12407_v43 = vld [vmem:[#allocation25_spill] sm:$0xff] }
 0xb7b   : > { %7468 = vrsqrt.f32 %v4441_v22  ;;  %v4004_v4 = vpop.xlane.xlu1 %4003  ;;  %v4393_v13 = vsub.f32 %v12407_v43, %v4217_v12 }
 0xb7c   : > { %v4346_v40 = vmax.f32 %v4314_v60, 0.0  ;;  %v10652_v23 = vmul.f32 0.00390625, %v4004_v4 }
 0xb7e   : > { %v4442_v63 = vadd.f32 1e-05, %v4346_v40  ;;  %v4284_v38 = vmul.f32 %v10652_v23, %v10652_v23 }
 0xb7f   : > { %v4161_v16 = vpop.xlane.xlu0 %4160 }
 0xb80   : > { %7470 = vrsqrt.f32 %v4442_v63  ;;  %v4251_v62 = vmul.f32 0.00390625, %v4161_v16  ;;  %v12408_v63 = vld [vmem:[#allocation30_spill] sm:$0xff] }
 0xb81   : > { %v4395_v16 = vsub.f32 %v12408_v63, %v4218_v0 }
 0xb82   : > { %v4315_v11 = vsub.f32 %v4251_v62, %v4283_v51  ;;  %v4164_v57 = vpop.xlane.xlu1 %4163 }
 0xb83   : > { %v4252_v44 = vmul.f32 0.00390625, %v4164_v57  ;;  %v4007_v36 = vpop.xlane.xlu0 %4006  ;;  %v12409_v57 = vld [vmem:[#allocation28_spill] sm:$0xff] }
 0xb84   : > { %v4347_v54 = vmax.f32 %v4315_v11, 0.0  ;;  %v10659_v22 = vmul.f32 0.00390625, %v4007_v36  ;;  %v4396_v53 = vsub.f32 %v12409_v57, %v4218_v0 }
 0xb85   : > { %v7469_v29 = vpop.eup %7468  ;;  %v4316_v46 = vsub.f32 %v4252_v44, %v4284_v38 }
 0xb86   : > { %v4443_v1 = vadd.f32 1e-05, %v4347_v54  ;;  %v4522_v60 = vmul.f32 %v7469_v29, %v4394_v58  ;;  %v4010_v4 = vpop.xlane.xlu1 %4009  ;;  %v4521_v62 = vmul.f32 %v7469_v29, %v4393_v13  ;;  %v4285_v11 = vmul.f32 %v10659_v22, %v10659_v22 }
 0xb87   : > { %v4348_v40 = vmax.f32 %v4316_v46, 0.0  ;;  %v10666_v36 = vmul.f32 0.00390625, %v4010_v4 }
 0xb88   : > { %7472 = vrsqrt.f32 %v4443_v1  ;;  %v4167_v51 = vpop.xlane.xlu0 %4166  ;;  %v4597_v12 = vmul.f32 %v9989_v61, %v4522_v60  ;;  %v4596_v46 = vmul.f32 %v9986_v34, %v4521_v62  ;;  %v12413_v62 = vld [vmem:[#allocation35_spill] sm:$0xff] }
 0xb89   : > { %v4444_v14 = vadd.f32 1e-05, %v4348_v40  ;;  %v4253_v38 = vmul.f32 0.00390625, %v4167_v51  ;;  %v4286_v1 = vmul.f32 %v10666_v36, %v10666_v36  ;;  %v4397_v57 = vsub.f32 %v12413_v62, %v10650_v39 }
 0xb8a   : > { %v7471_v44 = vpop.eup %7470  ;;  %v10675_v60 = vadd.f32 %v10003_v8, %v4597_v12 }
 0xb8b   : > { %7474 = vrsqrt.f32 %v4444_v14  ;;  %v4317_v55 = vsub.f32 %v4253_v38, %v4285_v11  ;;  %v4524_v58 = vmul.f32 %v7471_v44, %v4396_v53  ;;  %v4523_v54 = vmul.f32 %v7471_v44, %v4395_v16  ;;  %v12414_v11 = vld [vmem:[#allocation33_spill] sm:$0xff] }
 0xb8c   : > { %v4013_v4 = vpop.xlane.xlu0 %4012  ;;  %12410 = vst [vmem:[#allocation56_spill] sm:$0xff] %v10675_v60  ;;  %v10681_v16 = vadd.f32 %v10000_v5, %v4596_v46  ;;  %v4398_v38 = vsub.f32 %v12414_v11, %v10650_v39 }
 0xb8d   : > { %v4349_v43 = vmax.f32 %v4317_v55, 0.0  ;;  %v4170_v29 = vpop.xlane.xlu1 %4169  ;;  %v4599_v0 = vmul.f32 %v9989_v61, %v4524_v58  ;;  %v4598_v13 = vmul.f32 %v9986_v34, %v4523_v54  ;;  %v10690_v44 = vmul.f32 0.00390625, %v4013_v4 }
 0xb8e   : > { %v4254_v40 = vmul.f32 0.00390625, %v4170_v29 }
 0xb8f   : > { %v4445_v63 = vadd.f32 1e-05, %v4349_v43  ;;  %v10678_v53 = vadd.f32 %v10003_v8, %v4599_v0  ;;  %v10684_v51 = vadd.f32 %v10000_v5, %v4598_v13  ;;  %v12415_v0 = vld [vmem:[#allocation40_spill] sm:$0xff]  ;;  %v4287_v62 = vmul.f32 %v10690_v44, %v10690_v44 }
 0xb90   : > { %v4318_v14 = vsub.f32 %v4254_v40, %v4286_v1  ;;  %v4399_v13 = vsub.f32 %v12415_v0, %v10652_v23  ;;  %v12416_v1 = vld [vmem:[#allocation38_spill] sm:$0xff] }
 0xb91   : > { %12411 = vst [vmem:[#allocation50_spill] sm:$0xff] %v10678_v53  ;;  %12412 = vst [vmem:[#allocation62_spill] sm:$0xff] %v10684_v51  ;;  %7476 = vrsqrt.f32 %v4445_v63  ;;  %v4016_v58 = vpop.xlane.xlu1 %4015  ;;  %v4720_v54 = vpack.c.bf16 %v10678_v53, %v10675_v60  ;;  %v4719_v46 = vpack.c.bf16 %v10684_v51, %v10681_v16  ;;  %v4400_v39 = vsub.f32 %v12416_v1, %v10652_v23 }
 0xb92   : > { %v7473_v12 = vpop.eup %7472  ;;  %v4350_v55 = vmax.f32 %v4318_v14, 0.0  ;;  %v10700_v14 = vmul.f32 0.00390625, %v4016_v58 }
 0xb93   : > { %v4526_v43 = vmul.f32 %v7473_v12, %v4398_v38  ;;  %v4525_v29 = vmul.f32 %v7473_v12, %v4397_v57  ;;  %v4173_v4 = vpop.xlane.xlu0 %4172  ;;  %5051 = vmatprep.mubr.bf16.mxu0 %v4720_v54 }
 0xb94   : > { %v4446_v40 = vadd.f32 1e-05, %v4350_v55  ;;  %v4255_v11 = vmul.f32 0.00390625, %v4173_v4  ;;  %5052 = vmatmul.mubr.bf16.gmra.mrb[208].mxu0 %v4719_v46  ;;  %v4288_v1 = vmul.f32 %v10700_v14, %v10700_v14 }
 0xb95   : > { %v7475_v63 = vpop.eup %7474  ;;  %v4601_v57 = vmul.f32 %v9989_v61, %v4526_v43  ;;  %v4600_v53 = vmul.f32 %v9986_v34, %v4525_v29 }
 0xb96   : > { %7478 = vrsqrt.f32 %v4446_v40  ;;  %v4528_v38 = vmul.f32 %v7475_v63, %v4400_v39  ;;  %v4527_v12 = vmul.f32 %v7475_v63, %v4399_v13  ;;  %v4319_v0 = vsub.f32 %v4255_v11, %v4287_v62  ;;  %v12419_v62 = vld [vmem:[#allocation45_spill] sm:$0xff] }
 0xb97   : > { %v10711_v46 = vadd.f32 %v10003_v8, %v4601_v57  ;;  %v10720_v63 = vadd.f32 %v10000_v5, %v4600_v53  ;;  %v4401_v11 = vsub.f32 %v12419_v62, %v10659_v22  ;;  %v12422_v62 = vld [vmem:[#allocation49_spill] sm:$0xff] }
 0xb98   : > { %v4176_v23 = vpop.xlane.xlu1 %4175  ;;  %v4603_v55 = vmul.f32 %v9989_v61, %v4528_v38  ;;  %v4602_v54 = vmul.f32 %v9986_v34, %v4527_v12  ;;  %v4351_v58 = vmax.f32 %v4319_v0, 0.0  ;;  %v4019_v4 = vpop.xlane.xlu0 %4018  ;;  %v12420_v38 = vld [vmem:[#allocation43_spill] sm:$0xff] }
 0xb99   : > { %v4256_v51 = vmul.f32 0.00390625, %v4176_v23  ;;  %v4402_v12 = vsub.f32 %v12420_v38, %v10659_v22  ;;  %v10726_v57 = vmul.f32 0.00390625, %v4019_v4  ;;  %v4404_v22 = vsub.f32 %v12422_v62, %v10666_v36 }
 0xb9a   : > { %v10714_v43 = vadd.f32 %v10003_v8, %v4603_v55  ;;  %v10717_v13 = vadd.f32 %v10000_v5, %v4602_v54  ;;  %v4447_v39 = vadd.f32 1e-05, %v4351_v58  ;;  %v12421_v58 = vld [vmem:[#allocation51_spill] sm:$0xff] }
 0xb9b   : > { %v7477_v29 = vpop.eup %7476  ;;  %v4320_v40 = vsub.f32 %v4256_v51, %v4288_v1  ;;  %v4403_v1 = vsub.f32 %v12421_v58, %v10666_v36 }
 0xb9c   : > { %12417 = vst [vmem:[#allocation60_spill] sm:$0xff] %v10714_v43  ;;  %12418 = vst [vmem:[#allocation31_spill] sm:$0xff] %v10717_v13  ;;  %v4722_v0 = vpack.c.bf16 %v10714_v43, %v10711_v46  ;;  %7480 = vrsqrt.f32 %v4447_v39  ;;  %v4022_v55 = vpop.xlane.xlu1 %4021  ;;  %v4721_v51 = vpack.c.bf16 %v10717_v13, %v10720_v63  ;;  %v4530_v53 = vmul.f32 %v7477_v29, %v4402_v12 }
 0xb9d   : > { %v4352_v23 = vmax.f32 %v4320_v40, 0.0  ;;  %v4529_v54 = vmul.f32 %v7477_v29, %v4401_v11  ;;  %v10736_v60 = vmul.f32 0.00390625, %v4022_v55  ;;  %v4289_v39 = vmul.f32 %v10726_v57, %v10726_v57 }
 0xb9e   : > { %5061 = vmatprep.mubr.bf16.mxu0 %v4722_v0  ;;  %v4605_v43 = vmul.f32 %v9989_v61, %v4530_v53 }
 0xb9f   : > { %v4448_v4 = vadd.f32 1e-05, %v4352_v23  ;;  %5062 = vmatmul.mubr.bf16.gmra.mrb[212].mxu0 %v4721_v51  ;;  %v4179_v40 = vpop.xlane.xlu0 %4178  ;;  %v4604_v12 = vmul.f32 %v9986_v34, %v4529_v54  ;;  %v4290_v55 = vmul.f32 %v10736_v60, %v10736_v60 }
 0xba0   : > { %v7479_v38 = vpop.eup %7478  ;;  %v4257_v29 = vmul.f32 0.00390625, %v4179_v40  ;;  %v10747_v62 = vadd.f32 %v10003_v8, %v4605_v43 }
 0xba1   : > { %7482 = vrsqrt.f32 %v4448_v4  ;;  %v4532_v11 = vmul.f32 %v7479_v38, %v4404_v22  ;;  %v4531_v0 = vmul.f32 %v7479_v38, %v4403_v1  ;;  %v10750_v53 = vadd.f32 %v10000_v5, %v4604_v12 }
 0xba2   : > { %v4321_v58 = vsub.f32 %v4257_v29, %v4289_v39  ;;  %v4405_v38 = vsub.f32 %v10145_v28, %v10690_v44  ;;  %v12425_v39 = vld [vmem:[#allocation57_spill] sm:$0xff]  ;;  %v4407_v28 = vsub.f32 %v10170_v6, %v10700_v14 }
 0xba3   : > { %v4607_v36 = vmul.f32 %v9989_v61, %v4532_v11  ;;  %v4606_v23 = vmul.f32 %v9986_v34, %v4531_v0  ;;  %v4406_v40 = vsub.f32 %v12425_v39, %v10690_v44  ;;  %v4025_v0 = vpop.xlane.xlu0 %4024  ;;  %v12426_v44 = vld [vmem:[#allocation55_spill] sm:$0xff] }
 0xba4   : > { %v4182_v51 = vpop.xlane.xlu1 %4181  ;;  %v4353_v54 = vmax.f32 %v4321_v58, 0.0 }
 0xba5   : > { %v4258_v4 = vmul.f32 0.00390625, %v4182_v51  ;;  %v10753_v22 = vadd.f32 %v10003_v8, %v4607_v36  ;;  %v10756_v1 = vadd.f32 %v10000_v5, %v4606_v23 }
 0xba6   : > { %v7481_v29 = vpop.eup %7480  ;;  %v4449_v43 = vadd.f32 1e-05, %v4353_v54  ;;  %v4408_v54 = vsub.f32 %v12426_v44, %v10700_v14 }
 0xba7   : > { %12423 = vst [vmem:[#allocation36_spill] sm:$0xff] %v10753_v22  ;;  %12424 = vst [vmem:[#allocation64_spill] sm:$0xff] %v10756_v1  ;;  %v4322_v11 = vsub.f32 %v4258_v4, %v4290_v55  ;;  %v4724_v12 = vpack.c.bf16 %v10753_v22, %v10747_v62  ;;  %v4723_v58 = vpack.c.bf16 %v10756_v1, %v10750_v53  ;;  %v10770_v55 = vmul.f32 0.00390625, %v4025_v0 }
 0xba8   : > { %v4028_v36 = vpop.xlane.xlu1 %4027  ;;  %v4534_v51 = vmul.f32 %v7481_v29, %v4406_v40  ;;  %7484 = vrsqrt.f32 %v4449_v43  ;;  %v4533_v13 = vmul.f32 %v7481_v29, %v4405_v38 }
 0xba9   : > { %v4354_v23 = vmax.f32 %v4322_v11, 0.0  ;;  %5071 = vmatprep.mubr.bf16.mxu0 %v4724_v12  ;;  %v10772_v22 = vmul.f32 0.00390625, %v4028_v36  ;;  %v4291_v6 = vmul.f32 %v10770_v55, %v10770_v55 }
 0xbaa   : > { %5072 = vmatmul.mubr.bf16.gmra.mrb[216].mxu0 %v4723_v58  ;;  %v4609_v1 = vmul.f32 %v9989_v61, %v4534_v51  ;;  %v4608_v38 = vmul.f32 %v9986_v34, %v4533_v13 }
 0xbab   : > { %v7483_v4 = vpop.eup %7482  ;;  %v4450_v39 = vadd.f32 1e-05, %v4354_v23  ;;  %v4292_v12 = vmul.f32 %v10772_v22, %v10772_v22 }
 0xbac   : > { %v4536_v40 = vmul.f32 %v7483_v4, %v4408_v54  ;;  %v4535_v43 = vmul.f32 %v7483_v4, %v4407_v28  ;;  %v10783_v36 = vadd.f32 %v10003_v8, %v4609_v1  ;;  %v10792_v54 = vadd.f32 %v10000_v5, %v4608_v38 }
 0xbad   : > { %7486 = vrsqrt.f32 %v4450_v39  ;;  %v4185_v11 = vpop.xlane.xlu0 %4184  ;;  %v4409_v1 = vsub.f32 %v10228_v50, %v10726_v57  ;;  %v12433_v50 = vld [vmem:[#allocation34_spill] sm:$0xff] }
 0xbae   : > { %v4259_v29 = vmul.f32 0.00390625, %v4185_v11  ;;  %v4611_v14 = vmul.f32 %v9989_v61, %v4536_v40  ;;  %v4610_v0 = vmul.f32 %v9986_v34, %v4535_v43  ;;  %12427 = vst [vmem:[#allocation26_spill] sm:$0xff] %v10783_v36  ;;  %12430 = vst [vmem:[#allocation66_spill] sm:$0xff] %v10792_v54  ;;  %v12431_v11 = vld [vmem:[#allocation52_spill] sm:$0xff] }
 0xbaf   : > { %v4188_v58 = vpop.xlane.xlu1 %4187 }
 0xbb0   : > { %v4323_v51 = vsub.f32 %v4259_v29, %v4291_v6  ;;  %v4260_v23 = vmul.f32 0.00390625, %v4188_v58  ;;  %v10786_v28 = vadd.f32 %v10003_v8, %v4611_v14  ;;  %v10789_v13 = vadd.f32 %v10000_v5, %v4610_v0 }
 0xbb1   : > { %v4031_v44 = vpop.xlane.xlu0 %4030  ;;  %v4410_v6 = vsub.f32 %v12431_v11, %v10726_v57 }
 0xbb2   : > { %12428 = vst [vmem:[#allocation41_spill] sm:$0xff] %v10786_v28  ;;  %12429 = vst [vmem:[#allocation53_spill] sm:$0xff] %v10789_v13  ;;  %v4355_v4 = vmax.f32 %v4323_v51, 0.0  ;;  %v4324_v39 = vsub.f32 %v4260_v23, %v4292_v12  ;;  %v4726_v40 = vpack.c.bf16 %v10786_v28, %v10783_v36  ;;  %v7485_v43 = vpop.eup %7484  ;;  %v10800_v29 = vmul.f32 0.00390625, %v4031_v44  ;;  %v12432_v23 = vld [vmem:[#allocation23_spill] sm:$0xff] }
 0xbb3   : > { %v4725_v14 = vpack.c.bf16 %v10789_v13, %v10792_v54  ;;  %v4034_v58 = vpop.xlane.xlu1 %4033  ;;  %v4538_v12 = vmul.f32 %v7485_v43, %v4410_v6  ;;  %v4537_v51 = vmul.f32 %v7485_v43, %v4409_v1  ;;  %v4411_v28 = vsub.f32 %v12432_v23, %v10736_v60 }
 0xbb4   : > { %v4451_v0 = vadd.f32 1e-05, %v4355_v4  ;;  %v4356_v38 = vmax.f32 %v4324_v39, 0.0  ;;  %5081 = vmatprep.mubr.bf16.mxu0 %v4726_v40  ;;  %v4412_v36 = vsub.f32 %v12433_v50, %v10736_v60  ;;  %v10808_v11 = vmul.f32 0.00390625, %v4034_v58 }
 0xbb5   : > { %5082 = vmatmul.mubr.bf16.gmra.mrb[220].mxu0 %v4725_v14  ;;  %v4293_v4 = vmul.f32 %v10800_v29, %v10800_v29  ;;  %v4613_v43 = vmul.f32 %v9989_v61, %v4538_v12  ;;  %v4612_v1 = vmul.f32 %v9986_v34, %v4537_v51 }
 0xbb6   : > { %7488 = vrsqrt.f32 %v4451_v0  ;;  %v4452_v57 = vadd.f32 1e-05, %v4356_v38  ;;  %v4294_v38 = vmul.f32 %v10808_v11, %v10808_v11 }
 0xbb7   : > { %v7487_v44 = vpop.eup %7486  ;;  %v10827_v51 = vadd.f32 %v10003_v8, %v4613_v43 }
 0xbb8   : > { %v4191_v39 = vpop.xlane.xlu0 %4190  ;;  %7490 = vrsqrt.f32 %v4452_v57  ;;  %v4540_v14 = vmul.f32 %v7487_v44, %v4412_v36  ;;  %v4539_v6 = vmul.f32 %v7487_v44, %v4411_v28  ;;  %v10830_v44 = vadd.f32 %v10000_v5, %v4612_v1 }
 0xbb9   : > { %v4261_v40 = vmul.f32 0.00390625, %v4191_v39  ;;  %12436 = vst [vmem:[#allocation24_spill] sm:$0xff] %v10827_v51  ;;  %v4414_v1 = vsub.f32 %v10323_v31, %v10770_v55 }
 0xbba   : > { %v4615_v60 = vmul.f32 %v9989_v61, %v4540_v14  ;;  %v4614_v0 = vmul.f32 %v9986_v34, %v4539_v6 }
 0xbbb   : > { %v4325_v23 = vsub.f32 %v4261_v40, %v4293_v4  ;;  %v4194_v13 = vpop.xlane.xlu1 %4193 }
 0xbbc   : > { %v4262_v58 = vmul.f32 0.00390625, %v4194_v13  ;;  %v4037_v50 = vpop.xlane.xlu0 %4036  ;;  %v10821_v36 = vadd.f32 %v10003_v8, %v4615_v60  ;;  %v10824_v28 = vadd.f32 %v10000_v5, %v4614_v0  ;;  %v4413_v13 = vsub.f32 %v10319_v21, %v10770_v55 }
 0xbbd   : > { %v4357_v54 = vmax.f32 %v4325_v23, 0.0  ;;  %v10818_v57 = vmul.f32 0.00390625, %v4037_v50  ;;  %v4415_v0 = vsub.f32 %v10334_v41, %v10772_v22 }
 0xbbe   : > { %12434 = vst [vmem:[#allocation59_spill] sm:$0xff] %v10821_v36  ;;  %12435 = vst [vmem:[#allocation47_spill] sm:$0xff] %v10824_v28  ;;  %v4326_v12 = vsub.f32 %v4262_v58, %v4294_v38  ;;  %v4728_v23 = vpack.c.bf16 %v10821_v36, %v10827_v51  ;;  %v4727_v60 = vpack.c.bf16 %v10824_v28, %v10830_v44 }
 0xbbf   : > { %v4453_v4 = vadd.f32 1e-05, %v4357_v54  ;;  %v4295_v21 = vmul.f32 %v10818_v57, %v10818_v57  ;;  %v4416_v38 = vsub.f32 %v10355_v27, %v10772_v22 }
 0xbc0   : > { %v4040_v39 = vpop.xlane.xlu1 %4039  ;;  %v4358_v40 = vmax.f32 %v4326_v12, 0.0  ;;  %v4197_v6 = vpop.xlane.xlu0 %4196  ;;  %5091 = vmatprep.mubr.bf16.mxu0 %v4728_v23 }
 0xbc1   : > { %v10834_v14 = vmul.f32 0.00390625, %v4040_v39  ;;  %v7489_v43 = vpop.eup %7488  ;;  %7492 = vrsqrt.f32 %v4453_v4  ;;  %v4263_v54 = vmul.f32 0.00390625, %v4197_v6  ;;  %5092 = vmatmul.mubr.bf16.gmra.mrb[224].mxu0 %v4727_v60 }
 0xbc2   : > { %v4454_v58 = vadd.f32 1e-05, %v4358_v40  ;;  %v7491_v50 = vpop.eup %7490  ;;  %v4542_v31 = vmul.f32 %v7489_v43, %v4414_v1  ;;  %v4541_v55 = vmul.f32 %v7489_v43, %v4413_v13  ;;  %v4417_v1 = vsub.f32 %v10420_v37, %v10800_v29 }
 0xbc3   : > { %v4327_v12 = vsub.f32 %v4263_v54, %v4295_v21  ;;  %v4296_v39 = vmul.f32 %v10834_v14, %v10834_v14  ;;  %v4544_v6 = vmul.f32 %v7491_v50, %v4416_v38  ;;  %v4543_v28 = vmul.f32 %v7491_v50, %v4415_v0 }
 0xbc4   : > { %7494 = vrsqrt.f32 %v4454_v58  ;;  %v4617_v41 = vmul.f32 %v9989_v61, %v4542_v31  ;;  %v4616_v27 = vmul.f32 %v9986_v34, %v4541_v55  ;;  %v4420_v37 = vsub.f32 %v10433_v33, %v10808_v11 }
 0xbc5   : > { %v4200_v36 = vpop.xlane.xlu1 %4199  ;;  %v4359_v51 = vmax.f32 %v4327_v12, 0.0  ;;  %v4619_v40 = vmul.f32 %v9989_v61, %v4544_v6  ;;  %v4618_v23 = vmul.f32 %v9986_v34, %v4543_v28  ;;  %v4418_v28 = vsub.f32 %v10423_v30, %v10800_v29  ;;  %v4767_v29 = vld [vmem:[%s11965_s8] sm:$0x3] }
 0xbc6   : > { %v4264_v4 = vmul.f32 0.00390625, %v4200_v36  ;;  %v10855_v54 = vadd.f32 %v10003_v8, %v4617_v41  ;;  %v10861_v36 = vadd.f32 %v10000_v5, %v4616_v27  ;;  %v4421_v33 = vsub.f32 %v10480_v24, %v10818_v57 }
 0xbc7   : > { %v4455_v21 = vadd.f32 1e-05, %v4359_v51  ;;  %v10858_v13 = vadd.f32 %v10003_v8, %v4619_v40  ;;  %v10864_v43 = vadd.f32 %v10000_v5, %v4618_v23  ;;  %v12438_v40 = vld [vmem:[#allocation22_spill] sm:$0xff]  ;;  %v4423_v24 = vsub.f32 %v10496_v7, %v10834_v14 }
 0xbc8   : > { %v4328_v22 = vsub.f32 %v4264_v4, %v4296_v39  ;;  %v4419_v39 = vsub.f32 %v10426_v10, %v10808_v11  ;;  %v12437_v10 = vld [vmem:[#allocation21_spill] sm:$0xff]  ;;  %v4422_v11 = vsub.f32 %v10493_v2, %v10818_v57  ;;  %v10893_v23 = vrot.slane %v4767_v29, %v12438_v40 }
 0xbc9   : > { %7496 = vrsqrt.f32 %v4455_v21  ;;  %v4730_v0 = vpack.c.bf16 %v10858_v13, %v10855_v54  ;;  %v4729_v38 = vpack.c.bf16 %v10864_v43, %v10861_v36 }
 0xbca   : > { %v4360_v60 = vmax.f32 %v4328_v22, 0.0  ;;  %v10886_v22 = vrot.slane %v4767_v29, %v12437_v10 }
 0xbcb   : > { %v7493_v58 = vpop.eup %7492  ;;  %5101 = vmatprep.mubr.bf16.mxu0 %v4730_v0 }
 0xbcc   : > { %v4456_v51 = vadd.f32 1e-05, %v4360_v60  ;;  %v4545_v50 = vmul.f32 %v7493_v58, %v4417_v1  ;;  %v4546_v12 = vmul.f32 %v7493_v58, %v4418_v28  ;;  %5102 = vmatmul.mubr.bf16.gmra.mrb[228].mxu0 %v4729_v38  ;;  %v4424_v38 = vsub.f32 %v10503_v49, %v10834_v14  ;;  %v12443_v49 = vld [vmem:[#allocation58_spill] sm:$0xff] }
 0xbce   : > { %7498 = vrsqrt.f32 %v4456_v51  ;;  %v7495_v30 = vpop.eup %7494  ;;  %v4621_v4 = vmul.f32 %v9989_v61, %v4546_v12  ;;  %v4620_v6 = vmul.f32 %v9986_v34, %v4545_v50 }
 0xbcf   : > { %v4547_v31 = vmul.f32 %v7495_v30, %v4419_v39  ;;  %v4548_v55 = vmul.f32 %v7495_v30, %v4420_v37 }
 0xbd0   : > { %v10896_v60 = vadd.f32 %v10003_v8, %v4621_v4  ;;  %v10902_v28 = vadd.f32 %v10000_v5, %v4620_v6 }
 0xbd1   : > { %v4623_v41 = vmul.f32 %v9989_v61, %v4548_v55  ;;  %v4622_v27 = vmul.f32 %v9986_v34, %v4547_v31 }
 0xbd2   : > { %12439 = vst [vmem:[#allocation25_spill] sm:$0xff] %v10896_v60  ;;  %12441 = vst [vmem:[#allocation28_spill] sm:$0xff] %v10902_v28 }
 0xbd3   : > { %v7497_v21 = vpop.eup %7496  ;;  %v10899_v1 = vadd.f32 %v10003_v8, %v4623_v41  ;;  %v10905_v51 = vadd.f32 %v10000_v5, %v4622_v27  ;;  %v12444_v27 = vld [vmem:[#allocation63_spill] sm:$0xff] }
 0xbd4   : > { %v4550_v2 = vmul.f32 %v7497_v21, %v4422_v11  ;;  %v4973_v57 = vpop.f32.mrb[176].mxu0  ;;  %v4549_v0 = vmul.f32 %v7497_v21, %v4421_v33 }
 0xbd5   : > { %12440 = vst [vmem:[#allocation30_spill] sm:$0xff] %v10899_v1  ;;  %12442 = vst [vmem:[#allocation35_spill] sm:$0xff] %v10905_v51  ;;  %v4732_v58 = vpack.c.bf16 %v10899_v1, %v10896_v60  ;;  %v4731_v50 = vpack.c.bf16 %v10905_v51, %v10902_v28  ;;  %v4974_v12 = vadd.f32 %v4973_v57, %v10886_v22  ;;  %v4975_v39 = vpop.f32.mrb[177].mxu0  ;;  %v12445_v57 = vld [vmem:[#allocation46_spill] sm:$0xff] }
 0xbd6   : > { %v4625_v30 = vmul.f32 %v9989_v61, %v4550_v2  ;;  %v4624_v7 = vmul.f32 %v9986_v34, %v4549_v0  ;;  %v4976_v29 = vadd.f32 %v4975_v39, %v10893_v23  ;;  %v4977_v31 = vpop.f32.mrb[178].mxu0 }
 0xbd7   : > { %5111 = vmatprep.mubr.bf16.mxu1 %v4732_v58  ;;  %v10920_v14 = vadd.f32 %v4974_v12, %v12443_v49  ;;  %v4978_v6 = vadd.f32 %v4977_v31, %v10886_v22  ;;  %v4979_v41 = vpop.f32.mrb[179].mxu0 }
 0xbd8   : > { %v7499_v37 = vpop.eup %7498  ;;  %5112 = vmatmul.mubr.bf16.vlgmr.msra.gmra.mrb[208].mxu1 %v4731_v50  ;;  %v10924_v33 = vadd.f32 %v4976_v29, %v12444_v27  ;;  %v4980_v11 = vadd.f32 %v4979_v41, %v10893_v23  ;;  %v10942_v39 = vadd.f32 %v10003_v8, %v4625_v30 }
 0xbd9   : > { %v4552_v55 = vmul.f32 %v7499_v37, %v4424_v38  ;;  %v4551_v4 = vmul.f32 %v7499_v37, %v4423_v24  ;;  %v10930_v0 = vadd.f32 %v4978_v6, %v12445_v57  ;;  %v12446_v38 = vld [vmem:[#allocation61_spill] sm:$0xff]  ;;  %v5294_v50 = vmul.f32 %v10920_v14, %v10920_v14 }
 0xbda   : > { %v10933_v58 = vadd.f32 %v4980_v11, %v12446_v38  ;;  %v5198_v24 = vadd.f32 %v10924_v33, %v10920_v14  ;;  %v5295_v12 = vmul.f32 %v10924_v33, %v10924_v33  ;;  %12447 = vst [vmem:[#allocation33_spill] sm:$0xff] %v10942_v39  ;;  %v12451_v11 = vld [vmem:[#allocation65_spill] sm:$0xff] }
 0xbdb   : > { %v4627_v21 = vmul.f32 %v9989_v61, %v4552_v55  ;;  %v4626_v2 = vmul.f32 %v9986_v34, %v4551_v4  ;;  %v10948_v61 = vadd.f32 %v10000_v5, %v4624_v7  ;;  %v5296_v31 = vmul.f32 %v10930_v0, %v10930_v0  ;;  %v12452_v38 = vld [vmem:[#allocation29_spill] sm:$0xff] }
 0xbdc   : > { %5199 = vadd.xlane.f32.xlu0 %v5198_v24  ;;  %v5201_v29 = vadd.f32 %v10933_v58, %v10930_v0  ;;  %v5297_v30 = vmul.f32 %v10933_v58, %v10933_v58  ;;  %v5358_v55 = vadd.f32 %v5295_v12, %v5294_v50  ;;  %v12453_v12 = vld [vmem:[#allocation32_spill] sm:$0xff] }
 0xbdd   : > { %v10945_v34 = vadd.f32 %v10003_v8, %v4627_v21  ;;  %12449 = vst [vmem:[#allocation38_spill] sm:$0xff] %v10948_v61  ;;  %v10951_v37 = vadd.f32 %v10000_v5, %v4626_v2 }
 0xbde   : > { %5202 = vadd.xlane.f32.xlu1 %v5201_v29  ;;  %v5361_v5 = vadd.f32 %v5297_v30, %v5296_v31  ;;  %v12454_v31 = vld [vmem:[#allocation27_spill] sm:$0xff] }
 0xbdf   : > { %12448 = vst [vmem:[#allocation40_spill] sm:$0xff] %v10945_v34  ;;  %12450 = vst [vmem:[#allocation45_spill] sm:$0xff] %v10951_v37  ;;  %v4734_v8 = vpack.c.bf16 %v10945_v34, %v10942_v39  ;;  %v4733_v7 = vpack.c.bf16 %v10951_v37, %v10948_v61  ;;  %v12456_v34 = vld [vmem:[#allocation42_spill] sm:$0xff] }
 0xbe0   : > { %5359 = vadd.xlane.f32.xlu0 %v5358_v55 }
 0xbe1   : > { %5121 = vmatprep.mubr.bf16.mxu1 %v4734_v8  ;;  %v4983_v49 = vpop.f32.mrb[180].mxu0 }
 0xbe2   : > { %5122 = vmatmul.mubr.bf16.gmra.mrb[212].mxu1 %v4733_v7  ;;  %v4984_v4 = vadd.f32 %v4983_v49, %v10886_v22  ;;  %v4985_v6 = vpop.f32.mrb[181].mxu0  ;;  %5362 = vadd.xlane.f32.xlu1 %v5361_v5 }
 0xbe3   : > { %v4986_v41 = vadd.f32 %v4985_v6, %v10893_v23  ;;  %v4987_v27 = vpop.f32.mrb[182].mxu0 }
 0xbe4   : > { %v10966_v21 = vadd.f32 %v4984_v4, %v12451_v11  ;;  %v4988_v2 = vadd.f32 %v4987_v27, %v10886_v22  ;;  %v4989_v57 = vpop.f32.mrb[183].mxu0 }
 0xbe5   : > { %v10970_v24 = vadd.f32 %v4986_v41, %v12452_v38  ;;  %v4990_v50 = vadd.f32 %v4989_v57, %v10893_v23 }
 0xbe6   : > { %v10974_v29 = vadd.f32 %v4988_v2, %v12453_v12  ;;  %v5298_v7 = vmul.f32 %v10966_v21, %v10966_v21 }
 0xbe7   : > { %v10977_v30 = vadd.f32 %v4990_v50, %v12454_v31  ;;  %v5204_v8 = vadd.f32 %v10970_v24, %v10966_v21  ;;  %v5299_v55 = vmul.f32 %v10970_v24, %v10970_v24  ;;  %v12455_v50 = vld [vmem:[#allocation44_spill] sm:$0xff] }
 0xbe8   : > { %v5300_v49 = vmul.f32 %v10974_v29, %v10974_v29 }
 0xbe9   : > { %5205 = vadd.xlane.f32.xlu0 %v5204_v8  ;;  %v5207_v5 = vadd.f32 %v10977_v30, %v10974_v29  ;;  %v5301_v4 = vmul.f32 %v10977_v30, %v10977_v30  ;;  %v5364_v6 = vadd.f32 %v5299_v55, %v5298_v7  ;;  %v12457_v55 = vld [vmem:[#allocation39_spill] sm:$0xff] }
 0xbeb   : > { %5208 = vadd.xlane.f32.xlu1 %v5207_v5  ;;  %v5367_v27 = vadd.f32 %v5301_v4, %v5300_v49  ;;  %v12458_v49 = vld [vmem:[#allocation37_spill] sm:$0xff] }
 0xbed   : > { %5365 = vadd.xlane.f32.xlu0 %v5364_v6 }
 0xbee   : > { %v4993_v41 = vpop.f32.mrb[184].mxu0 }
 0xbef   : > { %v4994_v11 = vadd.f32 %v4993_v41, %v10886_v22  ;;  %v4995_v2 = vpop.f32.mrb[185].mxu0  ;;  %5368 = vadd.xlane.f32.xlu1 %v5367_v27 }
 0xbf0   : > { %v4996_v57 = vadd.f32 %v4995_v2, %v10893_v23  ;;  %v4997_v38 = vpop.f32.mrb[186].mxu0 }
 0xbf1   : > { %v10994_v12 = vadd.f32 %v4994_v11, %v12455_v50  ;;  %v4998_v31 = vadd.f32 %v4997_v38, %v10886_v22  ;;  %v4999_v8 = vpop.f32.mrb[187].mxu0 }
 0xbf2   : > { %v10998_v37 = vadd.f32 %v4996_v57, %v12456_v34  ;;  %v5000_v7 = vadd.f32 %v4999_v8, %v10893_v23 }
 0xbf3   : > { %v11002_v5 = vadd.f32 %v4998_v31, %v12457_v55  ;;  %v5302_v41 = vmul.f32 %v10994_v12, %v10994_v12 }
 0xbf4   : > { %v11005_v4 = vadd.f32 %v5000_v7, %v12458_v49  ;;  %v5210_v6 = vadd.f32 %v10998_v37, %v10994_v12  ;;  %v5303_v27 = vmul.f32 %v10998_v37, %v10998_v37 }
 0xbf5   : > { %v5304_v11 = vmul.f32 %v11002_v5, %v11002_v5 }
 0xbf6   : > { %5211 = vadd.xlane.f32.xlu0 %v5210_v6  ;;  %v5213_v34 = vadd.f32 %v11005_v4, %v11002_v5  ;;  %v5305_v2 = vmul.f32 %v11005_v4, %v11005_v4  ;;  %v5370_v57 = vadd.f32 %v5303_v27, %v5302_v41 }
 0xbf8   : > { %5214 = vadd.xlane.f32.xlu1 %v5213_v34  ;;  %v5373_v38 = vadd.f32 %v5305_v2, %v5304_v11 }
 0xbfa   : > { %5371 = vadd.xlane.f32.xlu0 %v5370_v57  ;;  %v5003_v50 = vpop.f32.mrb[188].mxu0 }
 0xbfb   : > { %v5004_v31 = vadd.f32 %v5003_v50, %v10886_v22  ;;  %v5005_v8 = vpop.f32.mrb[189].mxu0 }
 0xbfc   : > { %5374 = vadd.xlane.f32.xlu1 %v5373_v38  ;;  %v5006_v7 = vadd.f32 %v5005_v8, %v10893_v23  ;;  %v5007_v55 = vpop.f32.mrb[190].mxu0 }
 0xbfd   : > { %v11022_v49 = vadd.f32 %v5004_v31, %v10472_v19  ;;  %v5008_v6 = vadd.f32 %v5007_v55, %v10886_v22  ;;  %v5009_v39 = vpop.f32.mrb[191].mxu0 }
 0xbfe   : > { %v11026_v61 = vadd.f32 %v5006_v7, %v10444_v35  ;;  %v5010_v41 = vadd.f32 %v5009_v39, %v10893_v23 }
 0xbff   : > { %v11030_v27 = vadd.f32 %v5008_v6, %v10477_v56  ;;  %v5306_v19 = vmul.f32 %v11022_v49, %v11022_v49 }
 0xc00   : > { %v11033_v34 = vadd.f32 %v5010_v41, %v10447_v48  ;;  %v5216_v11 = vadd.f32 %v11026_v61, %v11022_v49  ;;  %v5307_v2 = vmul.f32 %v11026_v61, %v11026_v61 }
 0xc01   : > { %v5308_v56 = vmul.f32 %v11030_v27, %v11030_v27 }
 0xc02   : > { %5217 = vadd.xlane.f32.xlu0 %v5216_v11  ;;  %v5219_v35 = vadd.f32 %v11033_v34, %v11030_v27  ;;  %v5309_v48 = vmul.f32 %v11033_v34, %v11033_v34  ;;  %v5376_v57 = vadd.f32 %v5307_v2, %v5306_v19 }
 0xc04   : > { %5220 = vadd.xlane.f32.xlu1 %v5219_v35  ;;  %v5379_v7 = vadd.f32 %v5309_v48, %v5308_v56 }
 0xc05   : > { %v5013_v39 = vpop.f32.mrb[192].mxu0 }
 0xc06   : > { %v5014_v38 = vadd.f32 %v5013_v39, %v10886_v22  ;;  %v5015_v50 = vpop.f32.mrb[193].mxu0  ;;  %5377 = vadd.xlane.f32.xlu0 %v5376_v57 }
 0xc07   : > { %v5016_v31 = vadd.f32 %v5015_v50, %v10893_v23  ;;  %v5017_v8 = vpop.f32.mrb[194].mxu0 }
 0xc08   : > { %v11050_v55 = vadd.f32 %v5014_v38, %v10546_v32  ;;  %v5018_v6 = vadd.f32 %v5017_v8, %v10886_v22  ;;  %v5019_v41 = vpop.f32.mrb[195].mxu0  ;;  %5380 = vadd.xlane.f32.xlu1 %v5379_v7 }
 0xc09   : > { %v11054_v11 = vadd.f32 %v5016_v31, %v10520_v20  ;;  %v5020_v35 = vadd.f32 %v5019_v41, %v10893_v23 }
 0xc0a   : > { %v11058_v19 = vadd.f32 %v5018_v6, %v10552_v25  ;;  %v5310_v32 = vmul.f32 %v11050_v55, %v11050_v55 }
 0xc0b   : > { %v11061_v2 = vadd.f32 %v5020_v35, %v10529_v3  ;;  %v5222_v56 = vadd.f32 %v11054_v11, %v11050_v55  ;;  %v5311_v48 = vmul.f32 %v11054_v11, %v11054_v11 }
 0xc0c   : > { %v5312_v25 = vmul.f32 %v11058_v19, %v11058_v19 }
 0xc0d   : > { %v5023_v20 = vpop.f32.mrb[196].mxu0  ;;  %5223 = vadd.xlane.f32.xlu0 %v5222_v56  ;;  %v5225_v39 = vadd.f32 %v11061_v2, %v11058_v19  ;;  %v5313_v3 = vmul.f32 %v11061_v2, %v11061_v2  ;;  %v5382_v8 = vadd.f32 %v5311_v48, %v5310_v32 }
 0xc0e   : > { %v5024_v57 = vadd.f32 %v5023_v20, %v10886_v22  ;;  %v5025_v38 = vpop.f32.mrb[197].mxu0 }
 0xc0f   : > { %v5026_v50 = vadd.f32 %v5025_v38, %v10893_v23  ;;  %v5027_v31 = vpop.f32.mrb[198].mxu0  ;;  %5226 = vadd.xlane.f32.xlu1 %v5225_v39  ;;  %v5385_v1 = vadd.f32 %v5313_v3, %v5312_v25 }
 0xc10   : > { %v11078_v7 = vadd.f32 %v5024_v57, %v10597_v17  ;;  %v5028_v6 = vadd.f32 %v5027_v31, %v10886_v22  ;;  %v5029_v41 = vpop.f32.mrb[199].mxu0 }
 0xc11   : > { %v11082_v35 = vadd.f32 %v5026_v50, %v10572_v52  ;;  %v5030_v56 = vadd.f32 %v5029_v41, %v10893_v23  ;;  %5383 = vadd.xlane.f32.xlu0 %v5382_v8 }
 0xc12   : > { %v11086_v20 = vadd.f32 %v5028_v6, %v10594_v47  ;;  %v5314_v32 = vmul.f32 %v11078_v7, %v11078_v7 }
 0xc13   : > { %v11089_v38 = vadd.f32 %v5030_v56, %v10577_v45  ;;  %5386 = vadd.xlane.f32.xlu1 %v5385_v1  ;;  %v5228_v17 = vadd.f32 %v11082_v35, %v11078_v7  ;;  %v5315_v52 = vmul.f32 %v11082_v35, %v11082_v35 }
 0xc14   : > { %v5316_v47 = vmul.f32 %v11086_v20, %v11086_v20 }
 0xc15   : > { %5229 = vadd.xlane.f32.xlu0 %v5228_v17  ;;  %v5033_v48 = vpop.f32.mrb[200].mxu0  ;;  %v5231_v39 = vadd.f32 %v11089_v38, %v11086_v20  ;;  %v5317_v45 = vmul.f32 %v11089_v38, %v11089_v38  ;;  %v5388_v50 = vadd.f32 %v5315_v52, %v5314_v32 }
 0xc16   : > { %v5034_v1 = vadd.f32 %v5033_v48, %v10886_v22  ;;  %v5035_v25 = vpop.f32.mrb[201].mxu0 }
 0xc17   : > { %v5036_v3 = vadd.f32 %v5035_v25, %v10893_v23  ;;  %5232 = vadd.xlane.f32.xlu1 %v5231_v39  ;;  %v5037_v57 = vpop.f32.mrb[202].mxu0  ;;  %v5391_v17 = vadd.f32 %v5317_v45, %v5316_v47 }
 0xc18   : > { %v11106_v31 = vadd.f32 %v5034_v1, %v10631_v15  ;;  %v5038_v8 = vadd.f32 %v5037_v57, %v10886_v22  ;;  %v5039_v6 = vpop.f32.mrb[203].mxu0 }
 0xc19   : > { %v11110_v41 = vadd.f32 %v5036_v3, %v10609_v9  ;;  %v5040_v56 = vadd.f32 %v5039_v6, %v10893_v23  ;;  %5389 = vadd.xlane.f32.xlu0 %v5388_v50 }
 0xc1a   : > { %v11114_v48 = vadd.f32 %v5038_v8, %v10625_v59  ;;  %v5318_v32 = vmul.f32 %v11106_v31, %v11106_v31 }
 0xc1b   : > { %v11117_v39 = vadd.f32 %v5040_v56, %v10612_v42  ;;  %5392 = vadd.xlane.f32.xlu1 %v5391_v17  ;;  %v5234_v15 = vadd.f32 %v11110_v41, %v11106_v31  ;;  %v5319_v9 = vmul.f32 %v11110_v41, %v11110_v41 }
 0xc1c   : > { %v5320_v59 = vmul.f32 %v11114_v48, %v11114_v48 }
 0xc1d   : > { %12459 = vst [vmem:[#allocation43_spill] sm:$0xff] %v11117_v39  ;;  %5235 = vadd.xlane.f32.xlu0 %v5234_v15  ;;  %v5043_v52 = vpop.f32.mrb[204].mxu0  ;;  %v5237_v47 = vadd.f32 %v11117_v39, %v11114_v48  ;;  %v5321_v42 = vmul.f32 %v11117_v39, %v11117_v39  ;;  %v5394_v57 = vadd.f32 %v5319_v9, %v5318_v32 }
 0xc1e   : > { %v5044_v45 = vadd.f32 %v5043_v52, %v10886_v22  ;;  %v5045_v1 = vpop.f32.mrb[205].mxu0  ;;  %v12462_v52 = vld [vmem:[#allocation48_spill] sm:$0xff] }
 0xc1f   : > { %v5046_v25 = vadd.f32 %v5045_v1, %v10893_v23  ;;  %5238 = vadd.xlane.f32.xlu1 %v5237_v47  ;;  %v5047_v3 = vpop.f32.mrb[206].mxu0  ;;  %v5397_v15 = vadd.f32 %v5321_v42, %v5320_v59  ;;  %v12464_v1 = vld [vmem:[#allocation54_spill] sm:$0xff] }
 0xc20   : > { %v11134_v50 = vadd.f32 %v5044_v45, %v10646_v26  ;;  %v5048_v8 = vadd.f32 %v5047_v3, %v10886_v22  ;;  %v5049_v6 = vpop.f32.mrb[207].mxu0 }
 0xc21   : > { %v11138_v56 = vadd.f32 %v5046_v25, %v10634_v18  ;;  %v5050_v17 = vadd.f32 %v5049_v6, %v10893_v23  ;;  %5395 = vadd.xlane.f32.xlu0 %v5394_v57 }
 0xc22   : > { %12460 = vst [vmem:[#allocation51_spill] sm:$0xff] %v11134_v50  ;;  %v11142_v51 = vadd.f32 %v5048_v8, %v12462_v52  ;;  %v5322_v32 = vmul.f32 %v11134_v50, %v11134_v50 }
 0xc23   : > { %12461 = vst [vmem:[#allocation49_spill] sm:$0xff] %v11138_v56  ;;  %v11145_v47 = vadd.f32 %v5050_v17, %v12464_v1  ;;  %5398 = vadd.xlane.f32.xlu1 %v5397_v15  ;;  %v5240_v26 = vadd.f32 %v11138_v56, %v11134_v50  ;;  %v5323_v18 = vmul.f32 %v11138_v56, %v11138_v56 }
 0xc24   : > { %12463 = vst [vmem:[#allocation57_spill] sm:$0xff] %v11142_v51  ;;  %v5324_v59 = vmul.f32 %v11142_v51, %v11142_v51 }
 0xc25   : > { %12465 = vst [vmem:[#allocation55_spill] sm:$0xff] %v11145_v47  ;;  %5241 = vadd.xlane.f32.xlu0 %v5240_v26  ;;  %v5243_v9 = vadd.f32 %v11145_v47, %v11142_v51  ;;  %v5325_v42 = vmul.f32 %v11145_v47, %v11145_v47  ;;  %v5400_v45 = vadd.f32 %v5323_v18, %v5322_v32  ;;  %v12467_v18 = vld [vmem:[#allocation56_spill] sm:$0xff] }
 0xc27   : > { %5244 = vadd.xlane.f32.xlu1 %v5243_v9  ;;  %v5403_v25 = vadd.f32 %v5325_v42, %v5324_v59 }
 0xc29   : > { %5401 = vadd.xlane.f32.xlu0 %v5400_v45 }
 0xc2b   : > { %5404 = vadd.xlane.f32.xlu1 %v5403_v25 }
 0xc67   : > { %v5053_v57 = vpop.f32.mrb[208].mxu0 }
 0xc68   : > { %v5054_v6 = vadd.f32 %v5053_v57, %v10886_v22  ;;  %v5055_v17 = vpop.f32.mrb[209].mxu0  ;;  %v12469_v57 = vld [vmem:[#allocation62_spill] sm:$0xff] }
 0xc69   : > { %v5200_v3 = vpop.xlane.xlu0 %5199  ;;  %v5056_v52 = vadd.f32 %v5055_v17, %v10893_v23  ;;  %v5057_v1 = vpop.f32.mrb[210].mxu0 }
 0xc6a   : > { %v11159_v8 = vmul.f32 0.00390625, %v5200_v3  ;;  %v5059_v51 = vpop.f32.mrb[211].mxu0  ;;  %v11166_v32 = vadd.f32 %v5054_v6, %v10681_v16  ;;  %v5058_v59 = vadd.f32 %v5057_v1, %v10886_v22 }
 0xc6b   : > { %v5203_v15 = vpop.xlane.xlu1 %5202  ;;  %v11169_v9 = vadd.f32 %v5056_v52, %v12467_v18  ;;  %v5060_v42 = vadd.f32 %v5059_v51, %v10893_v23 }
 0xc6c   : > { %v11163_v26 = vmul.f32 0.00390625, %v5203_v15  ;;  %12466 = vst [vmem:[#allocation52_spill] sm:$0xff] %v11166_v32  ;;  %v5518_v45 = vmul.f32 %v11159_v8, %v11159_v8  ;;  %v11176_v17 = vadd.f32 %v5058_v59, %v12469_v57  ;;  %v12471_v15 = vld [vmem:[#allocation50_spill] sm:$0xff]  ;;  %v5326_v6 = vmul.f32 %v11166_v32, %v11166_v32 }
 0xc6d   : > { %v5360_v47 = vpop.xlane.xlu0 %5359  ;;  %12468 = vst [vmem:[#allocation23_spill] sm:$0xff] %v11169_v9  ;;  %v11179_v56 = vadd.f32 %v5060_v42, %v12471_v15  ;;  %v5246_v16 = vadd.f32 %v11169_v9, %v11166_v32 }
 0xc6e   : > { %v5486_v25 = vmul.f32 0.00390625, %v5360_v47  ;;  %12470 = vst [vmem:[#allocation34_spill] sm:$0xff] %v11176_v17  ;;  %v5519_v51 = vmul.f32 %v11163_v26, %v11163_v26  ;;  %v5327_v47 = vmul.f32 %v11169_v9, %v11169_v9  ;;  %v5328_v59 = vmul.f32 %v11176_v17, %v11176_v17 }
 0xc6f   : > { %v5363_v3 = vpop.xlane.xlu1 %5362  ;;  %12472 = vst [vmem:[#allocation21_spill] sm:$0xff] %v11179_v56  ;;  %5247 = vadd.xlane.f32.xlu0 %v5246_v16  ;;  %v5249_v18 = vadd.f32 %v11179_v56, %v11176_v17  ;;  %v5329_v42 = vmul.f32 %v11179_v56, %v11179_v56 }
 0xc70   : > { %v5550_v52 = vsub.f32 %v5486_v25, %v5518_v45  ;;  %v5487_v1 = vmul.f32 0.00390625, %v5363_v3  ;;  %v5406_v25 = vadd.f32 %v5327_v47, %v5326_v6 }
 0xc71   : > { %5250 = vadd.xlane.f32.xlu1 %v5249_v18  ;;  %v5409_v28 = vadd.f32 %v5329_v42, %v5328_v59  ;;  %v12475_v18 = vld [vmem:[#allocation31_spill] sm:$0xff]  ;;  %v5197_v42 = vld [vmem:[%s12480_s28] sm:$0x3] }
 0xc72   : > { %v5582_v57 = vmax.f32 %v5550_v52, 0.0  ;;  %v5551_v15 = vsub.f32 %v5487_v1, %v5519_v51  ;;  %v5063_v45 = vpop.f32.mrb[212].mxu0 }
 0xc73   : > { %v5064_v50 = vadd.f32 %v5063_v45, %v10886_v22  ;;  %v5065_v9 = vpop.f32.mrb[213].mxu0  ;;  %5407 = vadd.xlane.f32.xlu0 %v5406_v25 }
 0xc74   : > { %v5678_v32 = vadd.f32 1e-05, %v5582_v57  ;;  %v5583_v3 = vmax.f32 %v5551_v15, 0.0  ;;  %v5066_v16 = vadd.f32 %v5065_v9, %v10893_v23  ;;  %v5067_v60 = vpop.f32.mrb[214].mxu0 }
 0xc75   : > { %v11198_v56 = vadd.f32 %v5064_v50, %v10720_v63  ;;  %v5068_v52 = vadd.f32 %v5067_v60, %v10886_v22  ;;  %v5069_v51 = vpop.f32.mrb[215].mxu0  ;;  %5410 = vadd.xlane.f32.xlu1 %v5409_v28  ;;  %v5196_v63 = vld [vmem:[%s12477_s26] sm:$0x3]  ;;  %s7746_s26 = sshll.u32 %s7860_s20, 4  ;;  %s7747_s26 = int_to_ptr.vmem [resolvable:$false] %s7746_s26 }
 0xc76   : > { %7500 = vrsqrt.f32 %v5678_v32  ;;  %v5679_v17 = vadd.f32 1e-05, %v5583_v3  ;;  %v5206_v39 = vpop.xlane.xlu0 %5205  ;;  %v11204_v1 = vadd.f32 %v5066_v16, %v10711_v46  ;;  %v5070_v47 = vadd.f32 %v5069_v51, %v10893_v23  ;;  %s7748_s27 = scalar_lea.vmem %s7747_s26, 16384  ;;  %p7749_p12 = scmp.lt.s32.totalorder %s11687_s10, %s7747_s26 }
 0xc77   : > { %12473 = vst [vmem:[#allocation22_spill] sm:$0xff] %v11198_v56  ;;  %v11201_v6 = vmul.f32 0.00390625, %v5206_v39  ;;  %v11208_v32 = vadd.f32 %v5068_v52, %v12475_v18  ;;  %v12478_v39 = vld [vmem:[#allocation60_spill] sm:$0xff]  ;;  %v5330_v28 = vmul.f32 %v11198_v56, %v11198_v56  ;;  %v11230_v45 = vrot.slane %v5196_v63, %v12437_v10  ;;  %p7750_p2 = scmp.lt.s32.totalorder %s7748_s27, %s7742_s21 }
 0xc78   : > { %12474 = vst [vmem:[#allocation58_spill] sm:$0xff] %v11204_v1  ;;  %7502 = vrsqrt.f32 %v5679_v17  ;;  %v5209_v9 = vpop.xlane.xlu1 %5208  ;;  %v11216_v59 = vadd.f32 %v5070_v47, %v12478_v39  ;;  %v5252_v46 = vadd.f32 %v11204_v1, %v11198_v56  ;;  %v5331_v17 = vmul.f32 %v11204_v1, %v11204_v1 }
 0xc79   : > { %12476 = vst [vmem:[#allocation63_spill] sm:$0xff] %v11208_v32  ;;  %v11213_v50 = vmul.f32 0.00390625, %v5209_v9  ;;  %v5520_v57 = vmul.f32 %v11201_v6, %v11201_v6  ;;  %v5332_v16 = vmul.f32 %v11208_v32, %v11208_v32  ;;  %v11239_v51 = vrot.slane %v5196_v63, %v12438_v40  ;;  %p7751_p1 = por %p7750_p2, %p7749_p12 }
 0xc7a   : > { %v5366_v60 = vpop.xlane.xlu0 %5365  ;;  %12479 = vst [vmem:[#allocation46_spill] sm:$0xff] %v11216_v59  ;;  %5253 = vadd.xlane.f32.xlu0 %v5252_v46  ;;  %v5255_v3 = vadd.f32 %v11216_v59, %v11208_v32  ;;  %v5333_v52 = vmul.f32 %v11216_v59, %v11216_v59  ;;  %v11246_v39 = vrot.slane %v5197_v42, %v12437_v10 }
 0xc7b   : > { %v5488_v15 = vmul.f32 0.00390625, %v5366_v60  ;;  %v5521_v9 = vmul.f32 %v11213_v50, %v11213_v50  ;;  %v5614_v60 = vsub.f32 %v10920_v14, %v11159_v8  ;;  %v11249_v46 = vrot.slane %v5197_v42, %v12438_v40  ;;  %p7752_p4 = pnand %p7751_p1, %p7745_p7 }
 0xc7c   : > { %v5369_v25 = vpop.xlane.xlu1 %5368  ;;  %5256 = vadd.xlane.f32.xlu1 %v5255_v3  ;;  %v5412_v59 = vadd.f32 %v5331_v17, %v5330_v28  ;;  %v5615_v63 = vsub.f32 %v10924_v33, %v11159_v8  ;;  %v5616_v14 = vsub.f32 %v10930_v0, %v11163_v26  ;;  %v5617_v10 = vsub.f32 %v10933_v58, %v11163_v26 }
 0xc7d   : > { %v5552_v47 = vsub.f32 %v5488_v15, %v5520_v57  ;;  %v5489_v18 = vmul.f32 0.00390625, %v5369_v25  ;;  %v5073_v32 = vpop.f32.mrb[216].mxu0  ;;  %v5415_v28 = vadd.f32 %v5333_v52, %v5332_v16 }
 0xc7e   : > { %v5074_v1 = vadd.f32 %v5073_v32, %v10886_v22  ;;  %v5075_v25 = vpop.f32.mrb[217].mxu0  ;;  %5413 = vadd.xlane.f32.xlu0 %v5412_v59 }
 0xc7f   : > { %v5584_v57 = vmax.f32 %v5552_v47, 0.0  ;;  %v5553_v15 = vsub.f32 %v5489_v18, %v5521_v9  ;;  %v5076_v40 = vadd.f32 %v5075_v25, %v10893_v23  ;;  %v5077_v42 = vpop.f32.mrb[218].mxu0 }
 0xc80   : > { %v7501_v56 = vpop.eup %7500  ;;  %v5079_v47 = vpop.f32.mrb[219].mxu0  ;;  %v11260_v18 = vadd.f32 %v5074_v1, %v10750_v53  ;;  %v5078_v58 = vadd.f32 %v5077_v42, %v10886_v22  ;;  %5416 = vadd.xlane.f32.xlu1 %v5415_v28 }
 0xc81   : > { %v5742_v17 = vmul.f32 %v7501_v56, %v5614_v60  ;;  %v5743_v3 = vmul.f32 %v7501_v56, %v5615_v63  ;;  %v5680_v33 = vadd.f32 1e-05, %v5584_v57  ;;  %v5585_v8 = vmax.f32 %v5553_v15, 0.0 }
 0xc82   : > { %v7503_v9 = vpop.eup %7502  ;;  %v11263_v0 = vadd.f32 %v5076_v40, %v10747_v62  ;;  %v5080_v53 = vadd.f32 %v5079_v47, %v10893_v23 }
 0xc83   : > { %v5212_v32 = vpop.xlane.xlu0 %5211  ;;  %v5817_v26 = vmul.f32 %v11230_v45, %v5742_v17  ;;  %v5818_v59 = vmul.f32 %v11239_v51, %v5743_v3  ;;  %v5744_v56 = vmul.f32 %v7503_v9, %v5616_v14  ;;  %v5745_v16 = vmul.f32 %v7503_v9, %v5617_v10  ;;  %v12481_v10 = vld [vmem:[#allocation64_spill] sm:$0xff] }
 0xc84   : > { %7504 = vrsqrt.f32 %v5680_v33  ;;  %v5681_v52 = vadd.f32 1e-05, %v5585_v8  ;;  %v11268_v60 = vmul.f32 0.00390625, %v5212_v32  ;;  %v11278_v40 = vadd.f32 %v5078_v58, %v12481_v10  ;;  %v12482_v9 = vld [vmem:[#allocation36_spill] sm:$0xff] }
 0xc85   : > { %v5215_v63 = vpop.xlane.xlu1 %5214  ;;  %v5892_v62 = vadd.f32 %v11246_v39, %v5817_v26  ;;  %v5893_v1 = vadd.f32 %v11249_v46, %v5818_v59  ;;  %v5819_v57 = vmul.f32 %v11230_v45, %v5744_v56  ;;  %v5820_v15 = vmul.f32 %v11239_v51, %v5745_v16 }
 0xc86   : > { %7506 = vrsqrt.f32 %v5681_v52  ;;  %v11275_v25 = vmul.f32 0.00390625, %v5215_v63  ;;  %v5522_v17 = vmul.f32 %v11268_v60, %v11268_v60  ;;  %v5618_v33 = vsub.f32 %v10966_v21, %v11201_v6 }
 0xc87   : > { %v5372_v14 = vpop.xlane.xlu0 %5371  ;;  %5956 = vst [vmem:[%s11281_s13] sm:$0xff] %v5892_v62  ;;  %5957 = vst [vmem:[%s11281_s13 + $0x8] sm:$0xff] %v5893_v1  ;;  %v5894_v42 = vadd.f32 %v11246_v39, %v5819_v57  ;;  %v5895_v28 = vadd.f32 %v11249_v46, %v5820_v15  ;;  %v11294_v32 = vadd.f32 %v5080_v53, %v12482_v9 }
 0xc88   : > { %v5490_v3 = vmul.f32 0.00390625, %v5372_v14  ;;  %v5523_v8 = vmul.f32 %v11275_v25, %v11275_v25  ;;  %v5258_v59 = vadd.f32 %v11263_v0, %v11260_v18  ;;  %v5083_v56 = vpop.f32.mrb[220].mxu0  ;;  %v5334_v16 = vmul.f32 %v11260_v18, %v11260_v18 }
 0xc89   : > { %v5375_v47 = vpop.xlane.xlu1 %5374  ;;  %12483 = vst [vmem:[#allocation61_spill] sm:$0xff] %v11294_v32  ;;  %5958 = vst [vmem:[%s11281_s13 + $0x10] sm:$0xff] %v5894_v42  ;;  %v5084_v21 = vadd.f32 %v5083_v56, %v10886_v22  ;;  %v5085_v52 = vpop.f32.mrb[221].mxu0  ;;  %v5261_v63 = vadd.f32 %v11294_v32, %v11278_v40  ;;  %v5335_v53 = vmul.f32 %v11263_v0, %v11263_v0 }
 0xc8a   : > { %5959 = vst [vmem:[%s11281_s13 + $0x18] sm:$0xff] %v5895_v28  ;;  %v5554_v58 = vsub.f32 %v5490_v3, %v5522_v17  ;;  %v5491_v26 = vmul.f32 0.00390625, %v5375_v47  ;;  %v5336_v62 = vmul.f32 %v11278_v40, %v11278_v40  ;;  %5259 = vadd.xlane.f32.xlu0 %v5258_v59  ;;  %v5086_v15 = vadd.f32 %v5085_v52, %v10893_v23  ;;  %v5087_v14 = vpop.f32.mrb[222].mxu0  ;;  %v12484_v28 = vld [vmem:[#allocation66_spill] sm:$0xff] }
 0xc8b   : > { %v5337_v10 = vmul.f32 %v11294_v32, %v11294_v32  ;;  %v5619_v42 = vsub.f32 %v10970_v24, %v11201_v6  ;;  %v11315_v17 = vadd.f32 %v5084_v21, %v12484_v28  ;;  %5262 = vadd.xlane.f32.xlu1 %v5261_v63  ;;  %v5088_v3 = vadd.f32 %v5087_v14, %v10886_v22  ;;  %v5089_v47 = vpop.f32.mrb[223].mxu0  ;;  %v12487_v28 = vld [vmem:[#allocation41_spill] sm:$0xff] }
 0xc8c   : > { %v5586_v1 = vmax.f32 %v5554_v58, 0.0  ;;  %v5555_v57 = vsub.f32 %v5491_v26, %v5523_v8  ;;  %v5418_v9 = vadd.f32 %v5335_v53, %v5334_v16  ;;  %v12485_v26 = vld [vmem:[#allocation26_spill] sm:$0xff]  ;;  %v5090_v56 = vadd.f32 %v5089_v47, %v10893_v23 }
 0xc8d   : > { %v11319_v59 = vadd.f32 %v5086_v15, %v12485_v26  ;;  %v5620_v32 = vsub.f32 %v10974_v29, %v11213_v50  ;;  %v5621_v24 = vsub.f32 %v10977_v30, %v11213_v50  ;;  %v5421_v6 = vadd.f32 %v5337_v10, %v5336_v62 }
 0xc8e   : > { %v5682_v58 = vadd.f32 1e-05, %v5586_v1  ;;  %v5587_v8 = vmax.f32 %v5555_v57, 0.0  ;;  %v7505_v52 = vpop.eup %7504  ;;  %5419 = vadd.xlane.f32.xlu0 %v5418_v9  ;;  %v12486_v57 = vld [vmem:[#allocation53_spill] sm:$0xff]  ;;  %v11332_v47 = vadd.f32 %v5090_v56, %v12487_v28 }
 0xc8f   : > { %v5746_v21 = vmul.f32 %v7505_v52, %v5618_v33  ;;  %v5747_v63 = vmul.f32 %v7505_v52, %v5619_v42  ;;  %v5218_v16 = vpop.xlane.xlu0 %5217  ;;  %v11329_v15 = vadd.f32 %v5088_v3, %v12486_v57  ;;  %5422 = vadd.xlane.f32.xlu1 %v5421_v6  ;;  %v5264_v29 = vadd.f32 %v11319_v59, %v11315_v17 }
 0xc90   : > { %7508 = vrsqrt.f32 %v5682_v58  ;;  %v5683_v14 = vadd.f32 1e-05, %v5587_v8  ;;  %v7507_v53 = vpop.eup %7506  ;;  %v11326_v1 = vmul.f32 0.00390625, %v5218_v16  ;;  %v5338_v3 = vmul.f32 %v11315_v17, %v11315_v17 }
 0xc91   : > { %v5821_v30 = vmul.f32 %v11230_v45, %v5746_v21  ;;  %v5822_v50 = vmul.f32 %v11239_v51, %v5747_v63  ;;  %v5748_v33 = vmul.f32 %v7507_v53, %v5620_v32  ;;  %v5749_v62 = vmul.f32 %v7507_v53, %v5621_v24  ;;  %v5221_v10 = vpop.xlane.xlu1 %5220 }
 0xc92   : > { %7510 = vrsqrt.f32 %v5683_v14  ;;  %v11338_v42 = vmul.f32 0.00390625, %v5221_v10  ;;  %v5339_v9 = vmul.f32 %v11319_v59, %v11319_v59  ;;  %5265 = vadd.xlane.f32.xlu0 %v5264_v29  ;;  %v5524_v52 = vmul.f32 %v11326_v1, %v11326_v1 }
 0xc93   : > { %v5896_v58 = vadd.f32 %v11246_v39, %v5821_v30  ;;  %v5897_v8 = vadd.f32 %v11249_v46, %v5822_v50  ;;  %v5823_v26 = vmul.f32 %v11230_v45, %v5748_v33  ;;  %v5824_v32 = vmul.f32 %v11239_v51, %v5749_v62  ;;  %v5378_v56 = vpop.xlane.xlu0 %5377 }
 0xc94   : > { %v5492_v24 = vmul.f32 0.00390625, %v5378_v56  ;;  %v5525_v63 = vmul.f32 %v11338_v42, %v11338_v42  ;;  %v5267_v16 = vadd.f32 %v11332_v47, %v11329_v15  ;;  %v5093_v28 = vpop.f32.mrb[224].mxu0  ;;  %v5424_v29 = vadd.f32 %v5339_v9, %v5338_v3 }
 0xc95   : > { %5960 = vst [vmem:[%s11281_s13 + $0x20] sm:$0xff] %v5896_v58  ;;  %5961 = vst [vmem:[%s11281_s13 + $0x28] sm:$0xff] %v5897_v8  ;;  %v5898_v6 = vadd.f32 %v11246_v39, %v5823_v26  ;;  %v5899_v21 = vadd.f32 %v11249_v46, %v5824_v32  ;;  %v5381_v14 = vpop.xlane.xlu1 %5380  ;;  %v5340_v30 = vmul.f32 %v11329_v15, %v11329_v15  ;;  %v5095_v10 = vpop.f32.mrb[225].mxu0 }
 0xc96   : > { %v5556_v53 = vsub.f32 %v5492_v24, %v5524_v52  ;;  %v5493_v57 = vmul.f32 0.00390625, %v5381_v14  ;;  %v5622_v50 = vsub.f32 %v10994_v12, %v11268_v60  ;;  %v5623_v33 = vsub.f32 %v10998_v37, %v11268_v60  ;;  %5268 = vadd.xlane.f32.xlu1 %v5267_v16  ;;  %v5097_v32 = vpop.f32.mrb[226].mxu0  ;;  %5425 = vadd.xlane.f32.xlu0 %v5424_v29 }
 0xc97   : > { %5962 = vst [vmem:[%s11281_s13 + $0x30] sm:$0xff] %v5898_v6  ;;  %5963 = vst [vmem:[%s11281_s13 + $0x38] sm:$0xff] %v5899_v21  ;;  %v5094_v62 = vadd.f32 %v5093_v28, %v10886_v22  ;;  %v5341_v58 = vmul.f32 %v11332_v47, %v11332_v47  ;;  %v5624_v3 = vsub.f32 %v11002_v5, %v11275_v25  ;;  %v5099_v24 = vpop.f32.mrb[227].mxu0 }
 0xc98   : > { %v5588_v9 = vmax.f32 %v5556_v53, 0.0  ;;  %v5557_v8 = vsub.f32 %v5493_v57, %v5525_v63  ;;  %v5096_v26 = vadd.f32 %v5095_v10, %v10893_v23  ;;  %v5625_v37 = vsub.f32 %v11005_v4, %v11275_v25  ;;  %v12488_v25 = vld [vmem:[#allocation24_spill] sm:$0xff] }
 0xc99   : > { %v5626_v60 = vsub.f32 %v11022_v49, %v11326_v1  ;;  %v5098_v52 = vadd.f32 %v5097_v32, %v10886_v22  ;;  %v5427_v6 = vadd.f32 %v5341_v58, %v5340_v30  ;;  %v5627_v16 = vsub.f32 %v11026_v61, %v11326_v1 }
 0xc9a   : > { %v7509_v12 = vpop.eup %7508  ;;  %v5224_v56 = vpop.xlane.xlu0 %5223  ;;  %v5684_v14 = vadd.f32 1e-05, %v5588_v9  ;;  %v5589_v63 = vmax.f32 %v5557_v8, 0.0  ;;  %v11382_v4 = vadd.f32 %v5094_v62, %v10830_v44  ;;  %v11385_v28 = vadd.f32 %v5096_v26, %v12488_v25  ;;  %v12489_v8 = vld [vmem:[#allocation47_spill] sm:$0xff] }
 0xc9b   : > { %v5750_v21 = vmul.f32 %v7509_v12, %v5622_v50  ;;  %v5751_v5 = vmul.f32 %v7509_v12, %v5623_v33  ;;  %v11379_v53 = vmul.f32 0.00390625, %v5224_v56  ;;  %5428 = vadd.xlane.f32.xlu1 %v5427_v6  ;;  %v11390_v32 = vadd.f32 %v5098_v52, %v12489_v8 }
 0xc9c   : > { %v5227_v57 = vpop.xlane.xlu1 %5226  ;;  %v7511_v29 = vpop.eup %7510  ;;  %7512 = vrsqrt.f32 %v5684_v14  ;;  %v5685_v33 = vadd.f32 1e-05, %v5589_v63  ;;  %v5100_v44 = vadd.f32 %v5099_v24, %v10893_v23  ;;  %v5628_v52 = vsub.f32 %v11030_v27, %v11338_v42 }
 0xc9d   : > { %v5825_v30 = vmul.f32 %v11230_v45, %v5750_v21  ;;  %v5826_v50 = vmul.f32 %v11239_v51, %v5751_v5  ;;  %v5752_v10 = vmul.f32 %v7511_v29, %v5624_v3  ;;  %v5753_v58 = vmul.f32 %v7511_v29, %v5625_v37 }
 0xc9e   : > { %v5384_v9 = vpop.xlane.xlu0 %5383  ;;  %7514 = vrsqrt.f32 %v5685_v33  ;;  %v11395_v12 = vmul.f32 0.00390625, %v5227_v57  ;;  %v5526_v3 = vmul.f32 %v11379_v53, %v11379_v53  ;;  %v5629_v24 = vsub.f32 %v11033_v34, %v11338_v42 }
 0xc9f   : > { %v5900_v62 = vadd.f32 %v11246_v39, %v5825_v30  ;;  %v5901_v26 = vadd.f32 %v11249_v46, %v5826_v50  ;;  %v5827_v56 = vmul.f32 %v11230_v45, %v5752_v10  ;;  %v5828_v6 = vmul.f32 %v11239_v51, %v5753_v58  ;;  %v5103_v63 = vpop.f32.mrb[228].mxu0  ;;  %v12490_v50 = vld [vmem:[#allocation59_spill] sm:$0xff] }
 0xca0   : > { %v5494_v37 = vmul.f32 0.00390625, %v5384_v9  ;;  %v5387_v21 = vpop.xlane.xlu1 %5386  ;;  %v5527_v5 = vmul.f32 %v11395_v12, %v11395_v12  ;;  %v11412_v33 = vadd.f32 %v5100_v44, %v12490_v50  ;;  %v5105_v27 = vpop.f32.mrb[229].mxu0  ;;  %v5630_v10 = vsub.f32 %v11050_v55, %v11379_v53 }
 0xca1   : > { %5964 = vst [vmem:[%s11281_s13 + $0x40] sm:$0xff] %v5900_v62  ;;  %5965 = vst [vmem:[%s11281_s13 + $0x48] sm:$0xff] %v5901_v26  ;;  %v5495_v14 = vmul.f32 0.00390625, %v5387_v21  ;;  %v5902_v57 = vadd.f32 %v11246_v39, %v5827_v56  ;;  %v5903_v25 = vadd.f32 %v11249_v46, %v5828_v6  ;;  %v5270_v58 = vadd.f32 %v11385_v28, %v11382_v4  ;;  %v5107_v9 = vpop.f32.mrb[230].mxu0 }
 0xca2   : > { %v5558_v29 = vsub.f32 %v5494_v37, %v5526_v3  ;;  %v5230_v30 = vpop.xlane.xlu0 %5229  ;;  %v5631_v8 = vsub.f32 %v11054_v11, %v11379_v53  ;;  %v5104_v44 = vadd.f32 %v5103_v63, %v10886_v22  ;;  %v5273_v56 = vadd.f32 %v11412_v33, %v11390_v32  ;;  %v5109_v6 = vpop.f32.mrb[231].mxu0 }
 0xca3   : > { %v5559_v34 = vsub.f32 %v5495_v14, %v5527_v5  ;;  %v11416_v42 = vmul.f32 0.00390625, %v5230_v30  ;;  %5966 = vst [vmem:[%s11281_s13 + $0x50] sm:$0xff] %v5902_v57  ;;  %5967 = vst [vmem:[%s11281_s13 + $0x58] sm:$0xff] %v5903_v25  ;;  %5271 = vadd.xlane.f32.xlu0 %v5270_v58  ;;  %v5106_v63 = vadd.f32 %v5105_v27, %v10893_v23 }
 0xca4   : > { %v5590_v62 = vmax.f32 %v5558_v29, 0.0  ;;  %v5233_v26 = vpop.xlane.xlu1 %5232  ;;  %5274 = vadd.xlane.f32.xlu1 %v5273_v56  ;;  %v5108_v29 = vadd.f32 %v5107_v9, %v10886_v22  ;;  %v11448_v9 = vadd.f32 %v5104_v44, %v10861_v36 }
 0xca5   : > { %v5591_v21 = vmax.f32 %v5559_v34, 0.0  ;;  %v11431_v5 = vmul.f32 0.00390625, %v5233_v26  ;;  %v5528_v34 = vmul.f32 %v11416_v42, %v11416_v42  ;;  %v11455_v36 = vadd.f32 %v5106_v63, %v10855_v54 }
 0xca6   : > { %v5686_v14 = vadd.f32 1e-05, %v5590_v62  ;;  %v5390_v25 = vpop.xlane.xlu0 %5389  ;;  %v7513_v30 = vpop.eup %7512 }
 0xca7   : > { %v5687_v50 = vadd.f32 1e-05, %v5591_v21  ;;  %v5496_v26 = vmul.f32 0.00390625, %v5390_v25  ;;  %v5754_v58 = vmul.f32 %v7513_v30, %v5626_v60  ;;  %v5755_v27 = vmul.f32 %v7513_v30, %v5627_v16 }
 0xca8   : > { %7516 = vrsqrt.f32 %v5686_v14  ;;  %v5393_v62 = vpop.xlane.xlu1 %5392  ;;  %v7515_v56 = vpop.eup %7514  ;;  %v5529_v3 = vmul.f32 %v11431_v5, %v11431_v5 }
 0xca9   : > { %7518 = vrsqrt.f32 %v5687_v50  ;;  %v5560_v21 = vsub.f32 %v5496_v26, %v5528_v34  ;;  %v5497_v25 = vmul.f32 0.00390625, %v5393_v62  ;;  %v5829_v57 = vmul.f32 %v11230_v45, %v5754_v58 }
 0xcaa   : > { %v5830_v49 = vmul.f32 %v11239_v51, %v5755_v27  ;;  %v5756_v60 = vmul.f32 %v7515_v56, %v5628_v52  ;;  %v5757_v37 = vmul.f32 %v7515_v56, %v5629_v24  ;;  %v5236_v61 = vpop.xlane.xlu0 %5235  ;;  %v5636_v26 = vsub.f32 %v11086_v20, %v11431_v5 }
 0xcab   : > { %v5592_v1 = vmax.f32 %v5560_v21, 0.0  ;;  %v5561_v16 = vsub.f32 %v5497_v25, %v5529_v3  ;;  %v11457_v44 = vmul.f32 0.00390625, %v5236_v61  ;;  %v5904_v14 = vadd.f32 %v11246_v39, %v5829_v57  ;;  %v5113_v24 = vpop.f32.mrb[208].mxu1 }
 0xcac   : > { %v5905_v30 = vadd.f32 %v11249_v46, %v5830_v49  ;;  %v5831_v50 = vmul.f32 %v11230_v45, %v5756_v60  ;;  %v5832_v34 = vmul.f32 %v11239_v51, %v5757_v37  ;;  %v5239_v52 = vpop.xlane.xlu1 %5238  ;;  %v5637_v3 = vsub.f32 %v11089_v38, %v11431_v5  ;;  %v5115_v58 = vpop.f32.mrb[209].mxu1 }
 0xcad   : > { %v5688_v54 = vadd.f32 1e-05, %v5592_v1  ;;  %v5593_v63 = vmax.f32 %v5561_v16, 0.0  ;;  %5968 = vst [vmem:[%s11281_s13 + $0x60] sm:$0xff] %v5904_v14  ;;  %v5110_v37 = vadd.f32 %v5109_v6, %v10893_v23  ;;  %v11472_v62 = vmul.f32 0.00390625, %v5239_v52  ;;  %v5117_v21 = vpop.f32.mrb[210].mxu1 }
 0xcae   : > { %5969 = vst [vmem:[%s11281_s13 + $0x68] sm:$0xff] %v5905_v30  ;;  %v5906_v57 = vadd.f32 %v11246_v39, %v5831_v50  ;;  %v5907_v27 = vadd.f32 %v11249_v46, %v5832_v34  ;;  %v5396_v56 = vpop.xlane.xlu0 %5395  ;;  %v5342_v49 = vmul.f32 %v11382_v4, %v11382_v4  ;;  %v5343_v60 = vmul.f32 %v11385_v28, %v11385_v28  ;;  %v5119_v61 = vpop.f32.mrb[211].mxu1 }
 0xcaf   : > { %7520 = vrsqrt.f32 %v5688_v54  ;;  %v5689_v25 = vadd.f32 1e-05, %v5593_v63  ;;  %v11481_v1 = vadd.f32 %v5108_v29, %v10864_v43  ;;  %v5344_v16 = vmul.f32 %v11390_v32, %v11390_v32 }
 0xcb0   : > { %5970 = vst [vmem:[%s11281_s13 + $0x70] sm:$0xff] %v5906_v57  ;;  %5971 = vst [vmem:[%s11281_s13 + $0x78] sm:$0xff] %v5907_v27  ;;  %v5345_v14 = vmul.f32 %v11412_v33, %v11412_v33  ;;  %v5399_v30 = vpop.xlane.xlu1 %5398  ;;  %v5430_v50 = vadd.f32 %v5343_v60, %v5342_v49  ;;  %v5530_v34 = vmul.f32 %v11457_v44, %v11457_v44  ;;  %v5498_v52 = vmul.f32 0.00390625, %v5396_v56 }
 0xcb1   : > { %7522 = vrsqrt.f32 %v5689_v25  ;;  %v11492_v43 = vadd.f32 %v5110_v37, %v10858_v13  ;;  %v5531_v63 = vmul.f32 %v11472_v62, %v11472_v62  ;;  %v5499_v57 = vmul.f32 0.00390625, %v5399_v30 }
 0xcb2   : > { %v7517_v54 = vpop.eup %7516  ;;  %v5433_v29 = vadd.f32 %v5345_v14, %v5344_v16  ;;  %5431 = vadd.xlane.f32.xlu0 %v5430_v50  ;;  %v5562_v56 = vsub.f32 %v5498_v52, %v5530_v34  ;;  %v5276_v13 = vadd.f32 %v11455_v36, %v11448_v9  ;;  %v12491_v37 = vsub.f32 %v11058_v19, %v11395_v12  ;;  %v5242_v52 = vpop.xlane.xlu0 %5241 }
 0xcb3   : > { %v7519_v27 = vpop.eup %7518  ;;  %v5758_v6 = vmul.f32 %v7517_v54, %v5630_v10  ;;  %v5759_v25 = vmul.f32 %v7517_v54, %v5631_v8  ;;  %v12492_v60 = vsub.f32 %v11061_v2, %v11395_v12  ;;  %v5639_v55 = vsub.f32 %v11110_v41, %v11457_v44 }
 0xcb4   : > { %v5760_v49 = vmul.f32 %v7519_v27, %v12491_v37  ;;  %5434 = vadd.xlane.f32.xlu1 %v5433_v29  ;;  %v5563_v10 = vsub.f32 %v5499_v57, %v5531_v63  ;;  %v5594_v14 = vmax.f32 %v5562_v56, 0.0  ;;  %v5114_v30 = vadd.f32 %v5113_v24, %v10886_v22  ;;  %v5245_v57 = vpop.xlane.xlu1 %5244 }
 0xcb5   : > { %v5761_v16 = vmul.f32 %v7519_v27, %v12492_v60  ;;  %v11512_v11 = vpop.f32.mrb[212].mxu1  ;;  %v5833_v53 = vmul.f32 %v11230_v45, %v5758_v6  ;;  %v5834_v8 = vmul.f32 %v11239_v51, %v5759_v25  ;;  %v5116_v34 = vadd.f32 %v5115_v58, %v10893_v23  ;;  %v12493_v60 = vld [vmem:[#allocation43_spill] sm:$0xff] }
 0xcb6   : > { %v11517_v19 = vpop.f32.mrb[213].mxu1  ;;  %v5835_v50 = vmul.f32 %v11230_v45, %v5760_v49  ;;  %v5595_v12 = vmax.f32 %v5563_v10, 0.0  ;;  %v5690_v63 = vadd.f32 1e-05, %v5594_v14  ;;  %5277 = vadd.xlane.f32.xlu0 %v5276_v13  ;;  %v5279_v24 = vadd.f32 %v11492_v43, %v11481_v1 }
 0xcb7   : > { %v5836_v2 = vmul.f32 %v11239_v51, %v5761_v16  ;;  %v11522_v54 = vpop.f32.mrb[214].mxu1  ;;  %v5908_v6 = vadd.f32 %v11246_v39, %v5833_v53  ;;  %v5909_v29 = vadd.f32 %v11249_v46, %v5834_v8  ;;  %v5118_v37 = vadd.f32 %v5117_v21, %v10886_v22 }
 0xcb8   : > { %v11528_v27 = vpop.f32.mrb[215].mxu1  ;;  %v5910_v58 = vadd.f32 %v11246_v39, %v5835_v50  ;;  %v5691_v56 = vadd.f32 1e-05, %v5595_v12  ;;  %v5640_v13 = vsub.f32 %v11114_v48, %v11472_v62  ;;  %v5641_v16 = vsub.f32 %v12493_v60, %v11472_v62  ;;  %5280 = vadd.xlane.f32.xlu1 %v5279_v24  ;;  %v12496_v50 = vld [vmem:[#allocation28_spill] sm:$0xff]  ;;  %v12497_v62 = vld [vmem:[#allocation25_spill] sm:$0xff]  ;;  %v12499_v24 = vld [vmem:[#allocation30_spill] sm:$0xff] }
 0xcb9   : > { %v5911_v25 = vadd.f32 %v11249_v46, %v5836_v2  ;;  %v7521_v49 = vpop.eup %7520  ;;  %5972 = vst [vmem:[%s11281_s13 + $0x80] sm:$0xff] %v5908_v6  ;;  %5973 = vst [vmem:[%s11281_s13 + $0x88] sm:$0xff] %v5909_v29  ;;  %7524 = vrsqrt.f32 %v5690_v63  ;;  %v5120_v10 = vadd.f32 %v5119_v61, %v10893_v23  ;;  %v12494_v53 = vsub.f32 %v11078_v7, %v11416_v42  ;;  %v12498_v6 = vld [vmem:[#allocation35_spill] sm:$0xff] }
 0xcba   : > { %5974 = vst [vmem:[%s11281_s13 + $0x90] sm:$0xff] %v5910_v58  ;;  %v12495_v21 = vsub.f32 %v11082_v35, %v11416_v42  ;;  %7526 = vrsqrt.f32 %v5691_v56  ;;  %v11549_v48 = vadd.f32 %v5114_v30, %v12496_v50  ;;  %v11552_v12 = vadd.f32 %v5116_v34, %v12497_v62  ;;  %v5402_v34 = vpop.xlane.xlu0 %5401 }
 0xcbb   : > { %5975 = vst [vmem:[%s11281_s13 + $0x98] sm:$0xff] %v5911_v25  ;;  %v5762_v8 = vmul.f32 %v7521_v49, %v12494_v53  ;;  %v7523_v2 = vpop.eup %7522  ;;  %v11555_v61 = vadd.f32 %v5118_v37, %v12498_v6  ;;  %v11557_v29 = vmul.f32 0.00390625, %v5242_v52  ;;  %v11559_v63 = vmul.f32 0.00390625, %v5245_v57 }
 0xcbc   : > { %v5763_v14 = vmul.f32 %v7521_v49, %v12495_v21  ;;  %v5764_v42 = vmul.f32 %v7523_v2, %v5636_v26  ;;  %v5765_v30 = vmul.f32 %v7523_v2, %v5637_v3  ;;  %v11570_v52 = vadd.f32 %v5120_v10, %v12499_v24  ;;  %v5405_v26 = vpop.xlane.xlu1 %5404  ;;  %v12500_v24 = vld [vmem:[#allocation38_spill] sm:$0xff] }
 0xcbd   : > { %v5837_v7 = vmul.f32 %v11230_v45, %v5762_v8  ;;  %v5346_v57 = vmul.f32 %v11448_v9, %v11448_v9  ;;  %v5347_v58 = vmul.f32 %v11455_v36, %v11455_v36  ;;  %v5348_v20 = vmul.f32 %v11481_v1, %v11481_v1 }
 0xcbe   : > { %v5838_v35 = vmul.f32 %v11239_v51, %v5763_v14  ;;  %v5839_v5 = vmul.f32 %v11230_v45, %v5764_v42  ;;  %v5840_v3 = vmul.f32 %v11239_v51, %v5765_v30  ;;  %v5349_v37 = vmul.f32 %v11492_v43, %v11492_v43 }
 0xcbf   : > { %v5912_v25 = vadd.f32 %v11246_v39, %v5837_v7  ;;  %v5436_v56 = vadd.f32 %v5347_v58, %v5346_v57  ;;  %v5532_v49 = vmul.f32 %v11557_v29, %v11557_v29  ;;  %v5500_v60 = vmul.f32 0.00390625, %v5402_v34 }
 0xcc0   : > { %v5913_v38 = vadd.f32 %v11249_v46, %v5838_v35  ;;  %v5914_v10 = vadd.f32 %v11246_v39, %v5839_v5  ;;  %v5915_v53 = vadd.f32 %v11249_v46, %v5840_v3  ;;  %v5533_v8 = vmul.f32 %v11559_v63, %v11559_v63 }
 0xcc1   : > { %5976 = vst [vmem:[%s11281_s13 + $0xa0] sm:$0xff] %v5912_v25  ;;  %v5501_v21 = vmul.f32 0.00390625, %v5405_v26  ;;  %5437 = vadd.xlane.f32.xlu0 %v5436_v56  ;;  %v5439_v14 = vadd.f32 %v5349_v37, %v5348_v20  ;;  %v5564_v50 = vsub.f32 %v5500_v60, %v5532_v49  ;;  %v5282_v2 = vadd.f32 %v11552_v12, %v11549_v48  ;;  %v12502_v25 = vld [vmem:[#allocation33_spill] sm:$0xff]  ;;  %v12504_v60 = vld [vmem:[#allocation40_spill] sm:$0xff] }
 0xcc2   : > { %5977 = vst [vmem:[%s11281_s13 + $0xa8] sm:$0xff] %v5913_v38  ;;  %v5124_v62 = vadd.f32 %v11512_v11, %v10886_v22  ;;  %5978 = vst [vmem:[%s11281_s13 + $0xb0] sm:$0xff] %v5914_v10  ;;  %v5126_v7 = vadd.f32 %v11517_v19, %v10893_v23  ;;  %v5285_v35 = vadd.f32 %v11570_v52, %v11555_v61 }
 0xcc3   : > { %5979 = vst [vmem:[%s11281_s13 + $0xb8] sm:$0xff] %v5915_v53  ;;  %v5565_v6 = vsub.f32 %v5501_v21, %v5533_v8  ;;  %v5128_v42 = vadd.f32 %v11522_v54, %v10886_v22  ;;  %v7525_v30 = vpop.eup %7524  ;;  %5440 = vadd.xlane.f32.xlu1 %v5439_v14  ;;  %v5596_v34 = vmax.f32 %v5564_v50, 0.0  ;;  %v5130_v11 = vadd.f32 %v11528_v27, %v10893_v23  ;;  %v12503_v23 = vld [vmem:[#allocation45_spill] sm:$0xff] }
 0xcc4   : > { %v11605_v57 = vadd.f32 %v5124_v62, %v12500_v24  ;;  %v5350_v58 = vmul.f32 %v11549_v48, %v11549_v48  ;;  %v7527_v20 = vpop.eup %7526  ;;  %v12501_v19 = vsub.f32 %v11106_v31, %v11457_v44  ;;  %v5767_v22 = vmul.f32 %v7525_v30, %v5639_v55 }
 0xcc5   : > { %v5597_v54 = vmax.f32 %v5565_v6, 0.0  ;;  %v11618_v38 = vadd.f32 %v5126_v7, %v12502_v25  ;;  %v5768_v5 = vmul.f32 %v7527_v20, %v5640_v13  ;;  %v5769_v3 = vmul.f32 %v7527_v20, %v5641_v16  ;;  %5283 = vadd.xlane.f32.xlu0 %v5282_v2 }
 0xcc6   : > { %v5766_v26 = vmul.f32 %v7525_v30, %v12501_v19  ;;  %v5692_v56 = vadd.f32 1e-05, %v5596_v34  ;;  %v11621_v27 = vadd.f32 %v5128_v42, %v12503_v23  ;;  %v5842_v31 = vmul.f32 %v11239_v51, %v5767_v22  ;;  %v12505_v34 = vld [vmem:[#allocation51_spill] sm:$0xff]  ;;  %v12507_v19 = vld [vmem:[#allocation57_spill] sm:$0xff] }
 0xcc7   : > { %v5693_v49 = vadd.f32 1e-05, %v5597_v54  ;;  %v11626_v41 = vadd.f32 %v5130_v11, %v12504_v60  ;;  %v5843_v44 = vmul.f32 %v11230_v45, %v5768_v5  ;;  %v5844_v55 = vmul.f32 %v11239_v51, %v5769_v3  ;;  %5286 = vadd.xlane.f32.xlu1 %v5285_v35  ;;  %v12506_v11 = vld [vmem:[#allocation49_spill] sm:$0xff]  ;;  %v12508_v22 = vld [vmem:[#allocation55_spill] sm:$0xff] }
 0xcc8   : > { %v5841_v37 = vmul.f32 %v11230_v45, %v5766_v26  ;;  %7528 = vrsqrt.f32 %v5692_v56  ;;  %v5351_v13 = vmul.f32 %v11552_v12, %v11552_v12  ;;  %v5917_v10 = vadd.f32 %v11249_v46, %v5842_v31 }
 0xcc9   : > { %7530 = vrsqrt.f32 %v5693_v49  ;;  %v5352_v53 = vmul.f32 %v11555_v61, %v11555_v61  ;;  %v5918_v8 = vadd.f32 %v11246_v39, %v5843_v44  ;;  %v5919_v21 = vadd.f32 %v11249_v46, %v5844_v55 }
 0xcca   : > { %v5916_v16 = vadd.f32 %v11246_v39, %v5841_v37  ;;  %v5442_v14 = vadd.f32 %v5351_v13, %v5350_v58  ;;  %v5353_v50 = vmul.f32 %v11570_v52, %v11570_v52  ;;  %5981 = vst [vmem:[%s11281_s13 + $0xc8] sm:$0xff] %v5917_v10  ;;  %v5288_v62 = vadd.f32 %v11618_v38, %v11605_v57 }
 0xccb   : > { %5982 = vst [vmem:[%s11281_s13 + $0xd0] sm:$0xff] %v5918_v8  ;;  %5983 = vst [vmem:[%s11281_s13 + $0xd8] sm:$0xff] %v5919_v21  ;;  %v5291_v6 = vadd.f32 %v11626_v41, %v11621_v27  ;;  %v5354_v7 = vmul.f32 %v11605_v57, %v11605_v57  ;;  %v5355_v35 = vmul.f32 %v11618_v38, %v11618_v38 }
 0xccc   : > { %5980 = vst [vmem:[%s11281_s13 + $0xc0] sm:$0xff] %v5916_v16  ;;  %5443 = vadd.xlane.f32.xlu0 %v5442_v14  ;;  %v5445_v2 = vadd.f32 %v5353_v50, %v5352_v53  ;;  %v5356_v42 = vmul.f32 %v11621_v27, %v11621_v27  ;;  %v5357_v30 = vmul.f32 %v11626_v41, %v11626_v41 }
 0xccd   : > { %v5642_v24 = vsub.f32 %v12505_v34, %v11557_v29  ;;  %v5643_v58 = vsub.f32 %v12506_v11, %v11557_v29  ;;  %v5644_v26 = vsub.f32 %v12507_v19, %v11559_v63  ;;  %v5645_v54 = vsub.f32 %v12508_v22, %v11559_v63 }
 0xcce   : > { %5446 = vadd.xlane.f32.xlu1 %v5445_v2  ;;  %v5448_v25 = vadd.f32 %v5355_v35, %v5354_v7  ;;  %v5451_v29 = vadd.f32 %v5357_v30, %v5356_v42 }
 0xcd0   : > { %5289 = vadd.xlane.f32.xlu0 %v5288_v62 }
 0xcd2   : > { %v7529_v20 = vpop.eup %7528  ;;  %5292 = vadd.xlane.f32.xlu1 %v5291_v6 }
 0xcd3   : > { %v7531_v5 = vpop.eup %7530  ;;  %v5770_v3 = vmul.f32 %v7529_v20, %v5642_v24  ;;  %v5771_v56 = vmul.f32 %v7529_v20, %v5643_v58 }
 0xcd4   : > { %v5772_v23 = vmul.f32 %v7531_v5, %v5644_v26  ;;  %v5773_v37 = vmul.f32 %v7531_v5, %v5645_v54  ;;  %5449 = vadd.xlane.f32.xlu0 %v5448_v25 }
 0xcd5   : > { %v5845_v31 = vmul.f32 %v11230_v45, %v5770_v3  ;;  %v5846_v49 = vmul.f32 %v11239_v51, %v5771_v56 }
 0xcd6   : > { %v5847_v63 = vmul.f32 %v11230_v45, %v5772_v23  ;;  %v5848_v60 = vmul.f32 %v11239_v51, %v5773_v37  ;;  %5452 = vadd.xlane.f32.xlu1 %v5451_v29 }
 0xcd7   : > { %v5920_v44 = vadd.f32 %v11246_v39, %v5845_v31  ;;  %v5921_v55 = vadd.f32 %v11249_v46, %v5846_v49 }
 0xcd8   : > { %v5922_v13 = vadd.f32 %v11246_v39, %v5847_v63  ;;  %v5923_v16 = vadd.f32 %v11249_v46, %v5848_v60 }
 0xcd9   : > { %5984 = vst [vmem:[%s11281_s13 + $0xe0] sm:$0xff] %v5920_v44  ;;  %5985 = vst [vmem:[%s11281_s13 + $0xe8] sm:$0xff] %v5921_v55 }
 0xcda   : > { %5986 = vst [vmem:[%s11281_s13 + $0xf0] sm:$0xff] %v5922_v13  ;;  %5987 = vst [vmem:[%s11281_s13 + $0xf8] sm:$0xff] %v5923_v16 }
 0xcfc   : > { %v5248_v10 = vpop.xlane.xlu0 %5247 }
 0xcfd   : > { %v11677_v53 = vmul.f32 0.00390625, %v5248_v10 }
 0xcfe   : > { %v5251_v8 = vpop.xlane.xlu1 %5250 }
 0xcff   : > { %v11689_v21 = vmul.f32 0.00390625, %v5251_v8 }
 0xd00   : > { %v5408_v14 = vpop.xlane.xlu0 %5407 }
 0xd01   : > { %7755 = shalt.err (!%p7752_p4)
}
 0xd02   : > { %s7756_s11 = scalar_lea.hbm %s11684_s17, 8192  ;;  %s7760_s16 = scalar_lea.hbm %s12509_s15, 16384 }
 0xd03   : > { %p7757_p9 = scmp.ne.s32.totalorder %s11684_s17, %s7756_s11  ;;  %p7761_p8 = scmp.lt.u32.totalorder %s11684_s17, %s12509_s15 }
 0xd04   : > { %p7762_p13 = scmp.lt.u32.totalorder %s7760_s16, %s7756_s11  ;;  %p7764_p10 = scmp.lt.u32.totalorder %s7756_s11, %s11684_s17 }
 0xd05   : > { %p7758_p0 = pnand %p7757_p9, %p8073_p5 }
 0xd06   : > { %p7763_p6 = por %p7762_p13, %p7761_p8 }
 0xd07   : > { %p7759_p11 = pneg %p7758_p0 }
 0xd08   : > { %p7765_p3 = por %p7764_p10, %p7763_p6 }
 0xd0a   : > { %p7766_p7 = pnand %p7765_p3, %p7759_p11 }
 0xd0c   : > { %7769 = shalt.err (!%p7766_p7)
}
 0xd0d   : > { %s7861_s21 = smov 128   ;;  %s7862_s26 = smov 8   ;;  %v5534_v50 = vmul.f32 %v11677_v53, %v11677_v53  ;;  %v5502_v2 = vmul.f32 0.00390625, %v5408_v14  ;;  %v5411_v62 = vpop.xlane.xlu1 %5410  ;;  %v5535_v7 = vmul.f32 %v11689_v21, %v11689_v21  ;;  %v5254_v11 = vpop.xlane.xlu0 %5253  ;;  %v12510_v31 = vld [vmem:[#allocation52_spill] sm:$0xff]  ;;  %v12511_v63 = vld [vmem:[#allocation23_spill] sm:$0xff]  ;;  %v12512_v16 = vld [vmem:[#allocation34_spill] sm:$0xff] }
 0xd0e   : > { %6863 = dma.vmem_to_hbm [thread:$0]  (%p8073_p5), %s11687_s10, 8192, %s11684_s17, %s6026_s12, %s7861_s21, %s7861_s21, %s7862_s26   ;;  %v5503_v35 = vmul.f32 0.00390625, %v5411_v62  ;;  %v5472_v58 = vmul.f32 0.00390625, %v5254_v11  ;;  %v5646_v49 = vsub.f32 %v12510_v31, %v11677_v53  ;;  %v5647_v60 = vsub.f32 %v12511_v63, %v11677_v53  ;;  %v12513_v8 = vld [vmem:[#allocation21_spill] sm:$0xff]  ;;  %v12514_v31 = vld [vmem:[#allocation22_spill] sm:$0xff] }
 0xd0f   : > { %v5566_v6 = vsub.f32 %v5502_v2, %v5534_v50  ;;  %v5648_v10 = vsub.f32 %v12512_v16, %v11689_v21  ;;  %v5649_v14 = vsub.f32 %v12513_v8, %v11689_v21  ;;  %v12515_v63 = vld [vmem:[#allocation58_spill] sm:$0xff]  ;;  %s6040_s17 = sshll.u32 %s11281_s13, 4  ;;  %s12519_s27 = sld [smem:[#allocation70_spill]]  ;;  %s11907_s17 = int_to_ptr.vmem [resolvable:$true] %s6040_s17 }
 0xd10   : > { %v5567_v30 = vsub.f32 %v5503_v35, %v5535_v7  ;;  %v5536_v54 = vmul.f32 %v5472_v58, %v5472_v58  ;;  %s6021_s29 = scalar_lea.sflag [#allocation5], %s8121_s1  ;;  %s7770_s25 = scalar_lea.vmem %s11907_s17, 8192 }
 0xd11   : > { %v5598_v42 = vmax.f32 %v5566_v6, 0.0  ;;  %v5257_v19 = vpop.xlane.xlu1 %5256  ;;  %v5414_v22 = vpop.xlane.xlu0 %5413  ;;  %p7771_p12 = scmp.ne.s32.totalorder %s11907_s17, %s7770_s25 }
 0xd12   : > { %v5599_v24 = vmax.f32 %v5567_v30, 0.0  ;;  %v11719_v26 = vmul.f32 0.00390625, %v5257_v19  ;;  %v5504_v25 = vmul.f32 0.00390625, %v5414_v22 }
 0xd13   : > { %v5694_v34 = vadd.f32 1e-05, %v5598_v42  ;;  %p7772_p2 = pnand %p7771_p12, %p8073_p5 }
 0xd14   : > { %v5695_v20 = vadd.f32 1e-05, %v5599_v24  ;;  %v5568_v3 = vsub.f32 %v5504_v25, %v5536_v54  ;;  %v5537_v56 = vmul.f32 %v11719_v26, %v11719_v26 }
 0xd15   : > { %7532 = vrsqrt.f32 %v5694_v34  ;;  %v5417_v5 = vpop.xlane.xlu1 %5416  ;;  %s11905_s11 = scalar_lea.hbm %s12519_s27, %s6429_s9  ;;  %p7773_p1 = pneg %p7772_p2 }
 0xd16   : > { %7534 = vrsqrt.f32 %v5695_v20  ;;  %v5505_v23 = vmul.f32 0.00390625, %v5417_v5  ;;  %v5600_v37 = vmax.f32 %v5568_v3, 0.0  ;;  %s7863_s9 = smov [#allocation11]  }
 0xd17   : > { %v5260_v30 = vpop.xlane.xlu0 %5259  ;;  %s7774_s28 = sshll.u32 %s7863_s9, 4  ;;  %s7775_s28 = int_to_ptr.vmem [resolvable:$false] %s7774_s28 }
 0xd18   : > { %v5569_v29 = vsub.f32 %v5505_v23, %v5537_v56  ;;  %v5696_v44 = vadd.f32 1e-05, %v5600_v37  ;;  %v11733_v34 = vmul.f32 0.00390625, %v5260_v30  ;;  %s7776_s16 = scalar_lea.vmem %s7775_s28, 16384  ;;  %p7777_p4 = scmp.lt.s32.totalorder %s11907_s17, %s7775_s28 }
 0xd19   : > { %v5263_v21 = vpop.xlane.xlu1 %5262  ;;  %p7778_p9 = scmp.lt.s32.totalorder %s7776_s16, %s7770_s25 }
 0xd1a   : > { %v5601_v55 = vmax.f32 %v5569_v29, 0.0  ;;  %7536 = vrsqrt.f32 %v5696_v44  ;;  %v11739_v22 = vmul.f32 0.00390625, %v5263_v21  ;;  %v5538_v3 = vmul.f32 %v11733_v34, %v11733_v34 }
 0xd1b   : > { %v5420_v5 = vpop.xlane.xlu0 %5419  ;;  %p7779_p0 = por %p7778_p9, %p7777_p4 }
 0xd1c   : > { %v5697_v62 = vadd.f32 1e-05, %v5601_v55  ;;  %v5506_v56 = vmul.f32 0.00390625, %v5420_v5  ;;  %v5539_v37 = vmul.f32 %v11739_v22, %v11739_v22 }
 0xd1d   : > { %v5423_v23 = vpop.xlane.xlu1 %5422  ;;  %p7780_p11 = pnand %p7779_p0, %p7773_p1 }
 0xd1e   : > { %7538 = vrsqrt.f32 %v5697_v62  ;;  %v5507_v29 = vmul.f32 0.00390625, %v5423_v23  ;;  %v5570_v44 = vsub.f32 %v5506_v56, %v5538_v3  ;;  %v12517_v62 = vld [vmem:[#allocation46_spill] sm:$0xff] }
 0xd1f   : > { %v7533_v13 = vpop.eup %7532  ;;  %v5266_v16 = vpop.xlane.xlu0 %5265 }
 0xd20   : > { %v5774_v50 = vmul.f32 %v7533_v13, %v5646_v49  ;;  %v5775_v2 = vmul.f32 %v7533_v13, %v5647_v60  ;;  %v7535_v6 = vpop.eup %7534  ;;  %v5650_v49 = vsub.f32 %v12514_v31, %v5472_v58  ;;  %v5651_v60 = vsub.f32 %v12515_v63, %v5472_v58 }
 0xd21   : > { %v5776_v35 = vmul.f32 %v7535_v6, %v5648_v10  ;;  %v5777_v42 = vmul.f32 %v7535_v6, %v5649_v14  ;;  %v5571_v13 = vsub.f32 %v5507_v29, %v5539_v37  ;;  %v5602_v14 = vmax.f32 %v5570_v44, 0.0 }
 0xd22   : > { %v5849_v7 = vmul.f32 %v11230_v45, %v5774_v50  ;;  %v5850_v53 = vmul.f32 %v11239_v51, %v5775_v2  ;;  %v12516_v50 = vld [vmem:[#allocation63_spill] sm:$0xff]  ;;  %v5653_v6 = vsub.f32 %v12517_v62, %v11719_v26  ;;  %v5476_v30 = vmul.f32 0.00390625, %v5266_v16 }
 0xd23   : > { %v5851_v20 = vmul.f32 %v11230_v45, %v5776_v35  ;;  %v5852_v19 = vmul.f32 %v11239_v51, %v5777_v42  ;;  %v5652_v2 = vsub.f32 %v12516_v50, %v11719_v26  ;;  %v5698_v42 = vadd.f32 1e-05, %v5602_v14 }
 0xd24   : > { %v5924_v24 = vadd.f32 %v11246_v39, %v5849_v7  ;;  %v5925_v11 = vadd.f32 %v11249_v46, %v5850_v53  ;;  %v7537_v55 = vpop.eup %7536  ;;  %v5603_v7 = vmax.f32 %v5571_v13, 0.0  ;;  %v5540_v56 = vmul.f32 %v5476_v30, %v5476_v30 }
 0xd25   : > { %v5926_v54 = vadd.f32 %v11246_v39, %v5851_v20  ;;  %v5927_v25 = vadd.f32 %v11249_v46, %v5852_v19  ;;  %v5778_v10 = vmul.f32 %v7537_v55, %v5650_v49  ;;  %v5779_v8 = vmul.f32 %v7537_v55, %v5651_v60  ;;  %v5269_v20 = vpop.xlane.xlu1 %5268 }
 0xd26   : > { %5988 = vst [vmem:[%s11281_s13 + $0x100] sm:$0xff] %v5924_v24  ;;  %5989 = vst [vmem:[%s11281_s13 + $0x108] sm:$0xff] %v5925_v11  ;;  %v5699_v11 = vadd.f32 1e-05, %v5603_v7  ;;  %7540 = vrsqrt.f32 %v5698_v42  ;;  %v5477_v26 = vmul.f32 0.00390625, %v5269_v20  ;;  %v5656_v50 = vsub.f32 %v11278_v40, %v11739_v22 }
 0xd27   : > { %5990 = vst [vmem:[%s11281_s13 + $0x110] sm:$0xff] %v5926_v54  ;;  %5991 = vst [vmem:[%s11281_s13 + $0x118] sm:$0xff] %v5927_v25  ;;  %v5853_v35 = vmul.f32 %v11230_v45, %v5778_v10  ;;  %v5854_v58 = vmul.f32 %v11239_v51, %v5779_v8  ;;  %v5426_v25 = vpop.xlane.xlu0 %5425  ;;  %v5654_v10 = vsub.f32 %v11260_v18, %v11733_v34 }
 0xd28   : > { %v7539_v53 = vpop.eup %7538  ;;  %7542 = vrsqrt.f32 %v5699_v11  ;;  %v5508_v23 = vmul.f32 0.00390625, %v5426_v25  ;;  %v5541_v63 = vmul.f32 %v5477_v26, %v5477_v26  ;;  %v5655_v8 = vsub.f32 %v11263_v0, %v11733_v34 }
 0xd29   : > { %v5780_v21 = vmul.f32 %v7539_v53, %v5652_v2  ;;  %v5781_v24 = vmul.f32 %v7539_v53, %v5653_v6  ;;  %v5928_v19 = vadd.f32 %v11246_v39, %v5853_v35  ;;  %v5929_v54 = vadd.f32 %v11249_v46, %v5854_v58  ;;  %v5429_v31 = vpop.xlane.xlu1 %5428  ;;  %v12518_v2 = vld [vmem:[#allocation61_spill] sm:$0xff] }
 0xd2a   : > { %v5572_v49 = vsub.f32 %v5508_v23, %v5540_v56  ;;  %v5509_v60 = vmul.f32 0.00390625, %v5429_v31  ;;  %v5657_v62 = vsub.f32 %v12518_v2, %v11739_v22  ;;  %v5658_v20 = vsub.f32 %v11315_v17, %v5476_v30 }
 0xd2b   : > { %v5855_v5 = vmul.f32 %v11230_v45, %v5780_v21  ;;  %v5856_v3 = vmul.f32 %v11239_v51, %v5781_v24  ;;  %5992 = vst [vmem:[%s11281_s13 + $0x120] sm:$0xff] %v5928_v19  ;;  %5993 = vst [vmem:[%s11281_s13 + $0x128] sm:$0xff] %v5929_v54  ;;  %v5659_v19 = vsub.f32 %v11319_v59, %v5476_v30 }
 0xd2c   : > { %v5604_v44 = vmax.f32 %v5572_v49, 0.0  ;;  %v5573_v55 = vsub.f32 %v5509_v60, %v5541_v63 }
 0xd2d   : > { %v5930_v37 = vadd.f32 %v11246_v39, %v5855_v5  ;;  %v5931_v29 = vadd.f32 %v11249_v46, %v5856_v3  ;;  %v5660_v5 = vsub.f32 %v11329_v15, %v5477_v26  ;;  %v5661_v3 = vsub.f32 %v11332_v47, %v5477_v26 }
 0xd2e   : > { %v5700_v13 = vadd.f32 1e-05, %v5604_v44  ;;  %v5605_v16 = vmax.f32 %v5573_v55, 0.0 }
 0xd2f   : > { %5994 = vst [vmem:[%s11281_s13 + $0x130] sm:$0xff] %v5930_v37  ;;  %5995 = vst [vmem:[%s11281_s13 + $0x138] sm:$0xff] %v5931_v29 }
 0xd30   : > { %v7541_v14 = vpop.eup %7540  ;;  %7544 = vrsqrt.f32 %v5700_v13  ;;  %v5701_v6 = vadd.f32 1e-05, %v5605_v16  ;;  %v5272_v54 = vpop.xlane.xlu0 %5271 }
 0xd31   : > { %v5782_v53 = vmul.f32 %v7541_v14, %v5654_v10  ;;  %v5783_v35 = vmul.f32 %v7541_v14, %v5655_v8  ;;  %v5275_v37 = vpop.xlane.xlu1 %5274  ;;  %v5478_v31 = vmul.f32 0.00390625, %v5272_v54 }
 0xd32   : > { %v7543_v7 = vpop.eup %7542  ;;  %7546 = vrsqrt.f32 %v5701_v6  ;;  %v5479_v59 = vmul.f32 0.00390625, %v5275_v37 }
 0xd33   : > { %v5784_v18 = vmul.f32 %v7543_v7, %v5656_v50  ;;  %v5785_v58 = vmul.f32 %v7543_v7, %v5657_v62  ;;  %v5857_v0 = vmul.f32 %v11230_v45, %v5782_v53  ;;  %v5858_v34 = vmul.f32 %v11239_v51, %v5783_v35 }
 0xd34   : > { %v5542_v16 = vmul.f32 %v5478_v31, %v5478_v31  ;;  %v5543_v14 = vmul.f32 %v5479_v59, %v5479_v59  ;;  %v5663_v54 = vsub.f32 %v11385_v28, %v5478_v31 }
 0xd35   : > { %v5859_v40 = vmul.f32 %v11230_v45, %v5784_v18  ;;  %v5860_v22 = vmul.f32 %v11239_v51, %v5785_v58  ;;  %v5932_v42 = vadd.f32 %v11246_v39, %v5857_v0  ;;  %v5933_v21 = vadd.f32 %v11249_v46, %v5858_v34 }
 0xd37   : > { %v5934_v24 = vadd.f32 %v11246_v39, %v5859_v40  ;;  %v5935_v11 = vadd.f32 %v11249_v46, %v5860_v22  ;;  %5996 = vst [vmem:[%s11281_s13 + $0x140] sm:$0xff] %v5932_v42  ;;  %5997 = vst [vmem:[%s11281_s13 + $0x148] sm:$0xff] %v5933_v21 }
 0xd39   : > { %5998 = vst [vmem:[%s11281_s13 + $0x150] sm:$0xff] %v5934_v24  ;;  %5999 = vst [vmem:[%s11281_s13 + $0x158] sm:$0xff] %v5935_v11 }
 0xd3a   : > { %v7545_v25 = vpop.eup %7544 }
 0xd3b   : > { %v5786_v56 = vmul.f32 %v7545_v25, %v5658_v20  ;;  %v5787_v23 = vmul.f32 %v7545_v25, %v5659_v19  ;;  %v5662_v19 = vsub.f32 %v11382_v4, %v5478_v31 }
 0xd3c   : > { %v7547_v29 = vpop.eup %7546 }
 0xd3d   : > { %v5861_v49 = vmul.f32 %v11230_v45, %v5786_v56  ;;  %v5862_v63 = vmul.f32 %v11239_v51, %v5787_v23  ;;  %v5788_v17 = vmul.f32 %v7547_v29, %v5660_v5  ;;  %v5789_v60 = vmul.f32 %v7547_v29, %v5661_v3 }
 0xd3e   : > { %v5664_v3 = vsub.f32 %v11390_v32, %v5479_v59  ;;  %v5665_v56 = vsub.f32 %v11412_v33, %v5479_v59 }
 0xd3f   : > { %v5936_v15 = vadd.f32 %v11246_v39, %v5861_v49  ;;  %v5937_v47 = vadd.f32 %v11249_v46, %v5862_v63  ;;  %v5863_v30 = vmul.f32 %v11230_v45, %v5788_v17  ;;  %v5864_v26 = vmul.f32 %v11239_v51, %v5789_v60  ;;  %v5432_v44 = vpop.xlane.xlu0 %5431 }
 0xd40   : > { %v5510_v10 = vmul.f32 0.00390625, %v5432_v44 }
 0xd41   : > { %6000 = vst [vmem:[%s11281_s13 + $0x160] sm:$0xff] %v5936_v15  ;;  %6001 = vst [vmem:[%s11281_s13 + $0x168] sm:$0xff] %v5937_v47  ;;  %v5938_v55 = vadd.f32 %v11246_v39, %v5863_v30  ;;  %v5939_v13 = vadd.f32 %v11249_v46, %v5864_v26  ;;  %v5435_v8 = vpop.xlane.xlu1 %5434 }
 0xd42   : > { %v5511_v50 = vmul.f32 0.00390625, %v5435_v8  ;;  %v5574_v2 = vsub.f32 %v5510_v10, %v5542_v16 }
 0xd43   : > { %6002 = vst [vmem:[%s11281_s13 + $0x170] sm:$0xff] %v5938_v55  ;;  %6003 = vst [vmem:[%s11281_s13 + $0x178] sm:$0xff] %v5939_v13  ;;  %v5278_v18 = vpop.xlane.xlu0 %5277 }
 0xd44   : > { %v5575_v62 = vsub.f32 %v5511_v50, %v5543_v14  ;;  %v5606_v6 = vmax.f32 %v5574_v2, 0.0  ;;  %v11805_v0 = vmul.f32 0.00390625, %v5278_v18 }
 0xd45   : > { %v5281_v58 = vpop.xlane.xlu1 %5280 }
 0xd46   : > { %v5607_v7 = vmax.f32 %v5575_v62, 0.0  ;;  %v5702_v53 = vadd.f32 1e-05, %v5606_v6  ;;  %v11807_v34 = vmul.f32 0.00390625, %v5281_v58  ;;  %v5544_v22 = vmul.f32 %v11805_v0, %v11805_v0 }
 0xd48   : > { %v5703_v35 = vadd.f32 1e-05, %v5607_v7  ;;  %7548 = vrsqrt.f32 %v5702_v53  ;;  %v5545_v11 = vmul.f32 %v11807_v34, %v11807_v34 }
 0xd4a   : > { %7550 = vrsqrt.f32 %v5703_v35 }
 0xd4e   : > { %v5438_v40 = vpop.xlane.xlu0 %5437 }
 0xd4f   : > { %v5512_v42 = vmul.f32 0.00390625, %v5438_v40 }
 0xd50   : > { %v5441_v21 = vpop.xlane.xlu1 %5440 }
 0xd51   : > { %v5576_v24 = vsub.f32 %v5512_v42, %v5544_v22  ;;  %v5513_v20 = vmul.f32 0.00390625, %v5441_v21  ;;  %v5666_v42 = vsub.f32 %v11448_v9, %v11805_v0  ;;  %v5667_v21 = vsub.f32 %v11455_v36, %v11805_v0 }
 0xd52   : > { %v5284_v25 = vpop.xlane.xlu0 %5283  ;;  %v7549_v5 = vpop.eup %7548 }
 0xd53   : > { %v5608_v23 = vmax.f32 %v5576_v24, 0.0  ;;  %v5577_v37 = vsub.f32 %v5513_v20, %v5545_v11  ;;  %v5790_v49 = vmul.f32 %v7549_v5, %v5662_v19  ;;  %v5791_v63 = vmul.f32 %v7549_v5, %v5663_v54 }
 0xd54   : > { %v7551_v29 = vpop.eup %7550  ;;  %v11817_v17 = vmul.f32 0.00390625, %v5284_v25  ;;  %v5287_v60 = vpop.xlane.xlu1 %5286  ;;  %v5668_v5 = vsub.f32 %v11481_v1, %v11807_v34 }
 0xd55   : > { %v5792_v15 = vmul.f32 %v7551_v29, %v5664_v3  ;;  %v5793_v47 = vmul.f32 %v7551_v29, %v5665_v56  ;;  %v5704_v30 = vadd.f32 1e-05, %v5608_v23  ;;  %v5609_v4 = vmax.f32 %v5577_v37, 0.0 }
 0xd56   : > { %v5865_v28 = vmul.f32 %v11230_v45, %v5790_v49  ;;  %v5866_v32 = vmul.f32 %v11239_v51, %v5791_v63  ;;  %v11825_v55 = vmul.f32 0.00390625, %v5287_v60  ;;  %v5546_v13 = vmul.f32 %v11817_v17, %v11817_v17 }
 0xd57   : > { %v5867_v33 = vmul.f32 %v11230_v45, %v5792_v15  ;;  %v5868_v31 = vmul.f32 %v11239_v51, %v5793_v47  ;;  %7552 = vrsqrt.f32 %v5704_v30  ;;  %v5705_v59 = vadd.f32 1e-05, %v5609_v4 }
 0xd58   : > { %v5940_v26 = vadd.f32 %v11246_v39, %v5865_v28  ;;  %v5941_v44 = vadd.f32 %v11249_v46, %v5866_v32  ;;  %v5547_v62 = vmul.f32 %v11825_v55, %v11825_v55  ;;  %v5669_v3 = vsub.f32 %v11492_v43, %v11807_v34 }
 0xd59   : > { %v5444_v16 = vpop.xlane.xlu0 %5443  ;;  %v5942_v10 = vadd.f32 %v11246_v39, %v5867_v33  ;;  %v5943_v8 = vadd.f32 %v11249_v46, %v5868_v31  ;;  %7554 = vrsqrt.f32 %v5705_v59 }
 0xd5a   : > { %v5514_v14 = vmul.f32 0.00390625, %v5444_v16  ;;  %6004 = vst [vmem:[%s11281_s13 + $0x180] sm:$0xff] %v5940_v26  ;;  %6005 = vst [vmem:[%s11281_s13 + $0x188] sm:$0xff] %v5941_v44  ;;  %v5670_v26 = vsub.f32 %v11549_v48, %v11817_v17  ;;  %v5671_v44 = vsub.f32 %v11552_v12, %v11817_v17  ;;  %v5672_v16 = vsub.f32 %v11555_v61, %v11825_v55 }
 0xd5b   : > { %v5447_v50 = vpop.xlane.xlu1 %5446  ;;  %6006 = vst [vmem:[%s11281_s13 + $0x190] sm:$0xff] %v5942_v10  ;;  %6007 = vst [vmem:[%s11281_s13 + $0x198] sm:$0xff] %v5943_v8  ;;  %v5673_v10 = vsub.f32 %v11570_v52, %v11825_v55 }
 0xd5c   : > { %v5578_v2 = vsub.f32 %v5514_v14, %v5546_v13  ;;  %v5515_v6 = vmul.f32 0.00390625, %v5447_v50 }
 0xd5d   : > { %v5290_v7 = vpop.xlane.xlu0 %5289 }
 0xd5e   : > { %v5610_v53 = vmax.f32 %v5578_v2, 0.0  ;;  %v5579_v35 = vsub.f32 %v5515_v6, %v5547_v62  ;;  %v11837_v18 = vmul.f32 0.00390625, %v5290_v7 }
 0xd5f   : > { %v5293_v58 = vpop.xlane.xlu1 %5292 }
 0xd60   : > { %v5706_v40 = vadd.f32 1e-05, %v5610_v53  ;;  %v5611_v22 = vmax.f32 %v5579_v35, 0.0  ;;  %v11843_v24 = vmul.f32 0.00390625, %v5293_v58  ;;  %v5548_v54 = vmul.f32 %v11837_v18, %v11837_v18 }
 0xd61   : > { %v5450_v11 = vpop.xlane.xlu0 %5449  ;;  %v7553_v20 = vpop.eup %7552  ;;  %v5674_v53 = vsub.f32 %v11605_v57, %v11837_v18  ;;  %v5675_v35 = vsub.f32 %v11618_v38, %v11837_v18 }
 0xd62   : > { %7556 = vrsqrt.f32 %v5706_v40  ;;  %v5707_v19 = vadd.f32 1e-05, %v5611_v22  ;;  %v5516_v25 = vmul.f32 0.00390625, %v5450_v11  ;;  %v5794_v9 = vmul.f32 %v7553_v20, %v5666_v42 }
 0xd63   : > { %v5795_v56 = vmul.f32 %v7553_v20, %v5667_v21  ;;  %v5453_v23 = vpop.xlane.xlu1 %5452  ;;  %v7555_v36 = vpop.eup %7554  ;;  %v5549_v37 = vmul.f32 %v11843_v24, %v11843_v24  ;;  %v5676_v40 = vsub.f32 %v11621_v27, %v11843_v24  ;;  %v5677_v22 = vsub.f32 %v11626_v41, %v11843_v24 }
 0xd64   : > { %7558 = vrsqrt.f32 %v5707_v19  ;;  %v5580_v0 = vsub.f32 %v5516_v25, %v5548_v54  ;;  %v5517_v29 = vmul.f32 0.00390625, %v5453_v23  ;;  %v5869_v49 = vmul.f32 %v11230_v45, %v5794_v9 }
 0xd65   : > { %v5870_v63 = vmul.f32 %v11239_v51, %v5795_v56  ;;  %v5796_v1 = vmul.f32 %v7555_v36, %v5668_v5  ;;  %v5797_v60 = vmul.f32 %v7555_v36, %v5669_v3 }
 0xd66   : > { %v5612_v43 = vmax.f32 %v5580_v0, 0.0  ;;  %v5581_v34 = vsub.f32 %v5517_v29, %v5549_v37  ;;  %v5944_v15 = vadd.f32 %v11246_v39, %v5869_v49 }
 0xd67   : > { %v5945_v47 = vadd.f32 %v11249_v46, %v5870_v63  ;;  %v5871_v30 = vmul.f32 %v11230_v45, %v5796_v1  ;;  %v5872_v4 = vmul.f32 %v11239_v51, %v5797_v60 }
 0xd68   : > { %v5708_v28 = vadd.f32 1e-05, %v5612_v43  ;;  %v5613_v32 = vmax.f32 %v5581_v34, 0.0  ;;  %6008 = vst [vmem:[%s11281_s13 + $0x1a0] sm:$0xff] %v5944_v15 }
 0xd69   : > { %6009 = vst [vmem:[%s11281_s13 + $0x1a8] sm:$0xff] %v5945_v47  ;;  %v5946_v33 = vadd.f32 %v11246_v39, %v5871_v30  ;;  %v5947_v31 = vadd.f32 %v11249_v46, %v5872_v4 }
 0xd6a   : > { %7560 = vrsqrt.f32 %v5708_v28  ;;  %v5709_v59 = vadd.f32 1e-05, %v5613_v32 }
 0xd6b   : > { %6010 = vst [vmem:[%s11281_s13 + $0x1b0] sm:$0xff] %v5946_v33  ;;  %6011 = vst [vmem:[%s11281_s13 + $0x1b8] sm:$0xff] %v5947_v31 }
 0xd6c   : > { %v7557_v13 = vpop.eup %7556  ;;  %7562 = vrsqrt.f32 %v5709_v59 }
 0xd6d   : > { %v5798_v8 = vmul.f32 %v7557_v13, %v5670_v26  ;;  %v5799_v14 = vmul.f32 %v7557_v13, %v5671_v44 }
 0xd6e   : > { %v7559_v50 = vpop.eup %7558 }
 0xd6f   : > { %v5873_v2 = vmul.f32 %v11230_v45, %v5798_v8  ;;  %v5874_v48 = vmul.f32 %v11239_v51, %v5799_v14  ;;  %v5800_v12 = vmul.f32 %v7559_v50, %v5672_v16  ;;  %v5801_v17 = vmul.f32 %v7559_v50, %v5673_v10 }
 0xd71   : > { %v5948_v62 = vadd.f32 %v11246_v39, %v5873_v2  ;;  %v5949_v6 = vadd.f32 %v11249_v46, %v5874_v48  ;;  %v5875_v61 = vmul.f32 %v11230_v45, %v5800_v12  ;;  %v5876_v7 = vmul.f32 %v11239_v51, %v5801_v17 }
 0xd73   : > { %6012 = vst [vmem:[%s11281_s13 + $0x1c0] sm:$0xff] %v5948_v62  ;;  %6013 = vst [vmem:[%s11281_s13 + $0x1c8] sm:$0xff] %v5949_v6  ;;  %v5950_v52 = vadd.f32 %v11246_v39, %v5875_v61  ;;  %v5951_v55 = vadd.f32 %v11249_v46, %v5876_v7 }
 0xd74   : > { %v7561_v58 = vpop.eup %7560 }
 0xd75   : > { %6014 = vst [vmem:[%s11281_s13 + $0x1d0] sm:$0xff] %v5950_v52  ;;  %6015 = vst [vmem:[%s11281_s13 + $0x1d8] sm:$0xff] %v5951_v55  ;;  %v5802_v42 = vmul.f32 %v7561_v58, %v5674_v53  ;;  %v5803_v21 = vmul.f32 %v7561_v58, %v5675_v35 }
 0xd76   : > { %v7563_v11 = vpop.eup %7562 }
 0xd77   : > { %v5877_v57 = vmul.f32 %v11230_v45, %v5802_v42  ;;  %v5878_v38 = vmul.f32 %v11239_v51, %v5803_v21  ;;  %v5804_v18 = vmul.f32 %v7563_v11, %v5676_v40  ;;  %v5805_v20 = vmul.f32 %v7563_v11, %v5677_v22 }
 0xd79   : > { %v5952_v27 = vadd.f32 %v11246_v39, %v5877_v57  ;;  %v5953_v19 = vadd.f32 %v11249_v46, %v5878_v38  ;;  %v5879_v41 = vmul.f32 %v11230_v45, %v5804_v18  ;;  %v5880_v24 = vmul.f32 %v11239_v51, %v5805_v20 }
 0xd7b   : > { %6016 = vst [vmem:[%s11281_s13 + $0x1e0] sm:$0xff] %v5952_v27  ;;  %6017 = vst [vmem:[%s11281_s13 + $0x1e8] sm:$0xff] %v5953_v19  ;;  %v5954_v54 = vadd.f32 %v11246_v39, %v5879_v41  ;;  %v5955_v25 = vadd.f32 %v11249_v46, %v5880_v24 }
 0xd7d   : > { %6018 = vst [vmem:[%s11281_s13 + $0x1f0] sm:$0xff] %v5954_v54  ;;  %6019 = vst [vmem:[%s11281_s13 + $0x1f8] sm:$0xff] %v5955_v25 }
 0xd7e   : > { %7783 = shalt.err (!%p7780_p11)
}
 0xd7f   : > { %s7784_s13 = scalar_lea.hbm %s11905_s11, 8192  ;;  %s7788_s21 = scalar_lea.hbm %s12519_s27, 16384 }
 0xd80   : > { %p7785_p8 = scmp.ne.s32.totalorder %s11905_s11, %s7784_s13  ;;  %p7789_p10 = scmp.lt.u32.totalorder %s11905_s11, %s12519_s27 }
 0xd81   : > { %p7790_p3 = scmp.lt.u32.totalorder %s7788_s21, %s7784_s13  ;;  %p7792_p12 = scmp.lt.u32.totalorder %s7784_s13, %s11905_s11 }
 0xd82   : > { %p7786_p13 = pnand %p7785_p8, %p8073_p5 }
 0xd83   : > { %p7791_p7 = por %p7790_p3, %p7789_p10 }
 0xd84   : > { %p7787_p6 = pneg %p7786_p13 }
 0xd85   : > { %p7793_p2 = por %p7792_p12, %p7791_p7 }
 0xd87   : > { %p7794_p1 = pnand %p7793_p2, %p7787_p6 }
 0xd89   : > { %7797 = shalt.err (!%p7794_p1)
}
 0xd8a   : > { %s7864_s12 = smov 256   ;;  %s7865_s25 = smov 16  }
 0xd8b   : > { %6862 = dma.vmem_to_hbm [thread:$0]  (%p8073_p5), %s11907_s17, 8192, %s11905_s11, %s6021_s29, %s7864_s12, %s7864_s12, %s7865_s25  }
 0xd8c PF: > { %s12520_s9 = sld [smem:[#allocation19_spill]]  ;;  %s12521_s28 = sld [smem:[#allocation20_spill]] }
 0xd8d   : > { %p12523_p9 = scmp.ge.s32.totalorder %s7848_s24, 2 }
 0xd92   : > { %s6072_s16 = sand.u32 1, %s12520_s9   ;;  %p12522_p4 = scmp.ne.s32.totalorder %s12521_s28, 0 }
 0xd93   : > { %s6073_s13 = scalar_lea.sflag [#allocation5], %s6072_s16 }
 0xd94   : > { %p6881_p0 = pnand %p12523_p9, %p12522_p4 }
 0xd96   : > { %7827 = dma.done.wait (!%p6881_p0), %s6073_s13, 8192  }
 0xd97   : > { %7829 = vsyncadd (!%p6881_p0), %s6073_s13, 4294959104  ;;  %s6082_s18 = scalar_lea.sflag [#allocation13], %s6072_s16 }
 0xd98   : > { %7831 = dma.done.wait (!%p6881_p0), %s6082_s18, 8192  }
 0xd99   : > { %7833 = vsyncadd (!%p6881_p0), %s6082_s18, 4294959104  ;;  %p31_p5 = scmp.ge.s32.totalorder %s8041_s19, 4   ;;  %s12524_s21 = smov %s7840_s22 }
 0xd9a   : > { %s12525_s22 = smov %s7844_s23  ;;  %s12526_s23 = smov %s8069_s14 }
 0xd9b   : > { %s12527_s24 = smov %s8041_s19  ;;  %33 = sbr.rel (!%p31_p5) target bundleno = 15 (0xf), region = 141 }
 0xda2   :  { %6087 = vsyncpa [#allocation4], 1 }
 0xda3   :  { %6089 = vsyncpa [#allocation4 + $0x1], 1 }
 0xda4   :  { %6090 = vsyncpa [#allocation7], 1 }
 0xda5   :  { %6091 = vsyncpa [#allocation10], 1 }
 0xda6   :  { %6092 = vsyncpa [#allocation5], 1 }
 0xda7   :  { %6094 = vsyncpa [#allocation5 + $0x1], 1 }
 0xda8   :  { %6095 = vsyncpa [#allocation13], 1 }
 0xda9   :  { %6097 = vsyncpa [#allocation13 + $0x1], 1 }

</bundles_post_ra>
